<compile_context>
chip_gen: v5e
topology: v5e:2x2
jax: 0.10.0
libtpu: 0.0.40
codegen_flags: <defaults>
</compile_context>

<pallas_src>
import jax
import jax.numpy as jnp
from jax import lax
from jax.experimental import pallas as pl
from jax.experimental.pallas import tpu as pltpu

# Problem sizes (match the PyTorch module / its example input).
N, CIN, H, W = 1, 48, 25, 25
COUT, KH, KW = 64, 5, 5
PAD = 2
EPS = 1e-3

WP = 32                      # padded width: 25 + 2*2 = 29 -> 32 (sublane-aligned kh shifts)
HP = H + 2 * PAD             # 29 padded height
MP = H * WP                  # 800 flat output rows, m = h*WP + w
X_ROWS = HP * WP             # 928 flat padded-input rows (covers max slice 4*160 + 4*32 + 160)
KP = 256                     # packed K: KW*CIN = 240 -> 256
COUT_P = 128                 # output channels padded 64 -> 128 (lane-dense, MXU N)
VALID = H * W                # 625 real output pixels (BatchNorm denominator)
TM = 160                     # MP tile for register-resident accumulation (800 = 5 * 160)
NT = MP // TM

# TODO(synk): BatchNorm running_mean/running_var (momentum=0.1) updates are stateful
# module bookkeeping that do not affect the returned tensor; omitted here.


def conv_bn_kernel(x_ref, w_ref, gamma_ref, beta_ref, out_ref):
    # Row-validity mask (w < 25).  TM is a multiple of WP, so the pattern is identical
    # for every tile and can be computed once.
    ridx = lax.broadcasted_iota(jnp.int32, (TM, 1), 0)
    mask = ((ridx & (WP - 1)) < W).astype(jnp.float32)           # [TM, 1]

    s = jnp.zeros((1, COUT_P), jnp.float32)
    sq = jnp.zeros((1, COUT_P), jnp.float32)

    # Pass 1: convolution per tile (register accumulation) + fused BN partial sums.
    for t in range(NT):
        base = t * TM
        acc = jnp.dot(x_ref[base:base + TM, :], w_ref[0],       # first tap: assign
                      preferred_element_type=jnp.float32)
        for kh in range(1, KH):
            off = base + kh * WP                                  # sublane-aligned shift
            acc = acc + jnp.dot(x_ref[off:off + TM, :], w_ref[kh],
                                preferred_element_type=jnp.float32)
        masked = acc * mask
        s = s + jnp.sum(masked, axis=0, keepdims=True)            # [1, COUT_P]
        sq = sq + jnp.sum(masked * masked, axis=0, keepdims=True)
        out_ref[base:base + TM, :] = acc                          # single store per tile

    # BatchNorm (training-mode batch statistics) folded into a single scale/shift.
    mean = s * (1.0 / VALID)
    var = sq * (1.0 / VALID) - mean * mean                        # biased variance (PyTorch)
    inv = lax.rsqrt(var + EPS)
    scale = gamma_ref[...] * inv
    shift = beta_ref[...] - mean * scale

    # Pass 2: single normalize sweep over the conv slab.
    for t in range(NT):
        base = t * TM
        out_ref[base:base + TM, :] = out_ref[base:base + TM, :] * scale + shift


@jax.jit
def conv_bn_forward(x_nchw, w_oihw, gamma, beta):
    """x_nchw: [N, CIN, H, W] f32; w_oihw: [COUT, CIN, KH, KW] f32."""
    # NCHW -> HWC, spatial pad (conv pad 2, width padded out to 32), flatten (h, w).
    x = jnp.transpose(x_nchw, (0, 2, 3, 1))[0]                           # [25, 25, 48]
    xp = jnp.pad(x, ((PAD, PAD), (PAD, WP - W - PAD), (0, 0)))           # [29, 32, 48]
    x_flat = xp.reshape(HP * WP, CIN)                                    # [928, 48]
    x_flat = jnp.pad(x_flat, ((0, KW - 1), (0, 0)))                      # [932, 48]

    # Pack the 5 kw taps into the K dimension: x_packed[r, kw*CIN + c] = x_flat[r + kw, c].
    x_packed = jnp.concatenate(
        [x_flat[kw:kw + X_ROWS, :] for kw in range(KW)], axis=1)         # [928, 240]
    x_packed = jnp.pad(x_packed, ((0, 0), (0, KP - KW * CIN))).astype(jnp.bfloat16)

    # Weights OIHW -> [kh, kw*CIN + ci, co], pad K 240->256 and co 64->128, bf16.
    wk = jnp.transpose(w_oihw, (2, 3, 1, 0)).reshape(KH, KW * CIN, COUT)
    wk = jnp.pad(wk, ((0, 0), (0, KP - KW * CIN),
                      (0, COUT_P - COUT))).astype(jnp.bfloat16)          # [5, 256, 128]

    g = jnp.pad(gamma, (0, COUT_P - COUT)).reshape(1, COUT_P).astype(jnp.float32)
    b = jnp.pad(beta, (0, COUT_P - COUT)).reshape(1, COUT_P).astype(jnp.float32)

    out_flat = pl.pallas_call(
        conv_bn_kernel,
        out_shape=jax.ShapeDtypeStruct((MP, COUT_P), jnp.float32),
        grid=(1,),
        in_specs=[
            pl.BlockSpec((X_ROWS, KP), lambda i: (0, 0)),
            pl.BlockSpec((KH, KP, COUT_P), lambda i: (0, 0, 0)),
            pl.BlockSpec((1, COUT_P), lambda i: (0, 0)),
            pl.BlockSpec((1, COUT_P), lambda i: (0, 0)),
        ],
        out_specs=pl.BlockSpec((MP, COUT_P), lambda i: (0, 0)),
        compiler_params=pltpu.CompilerParams(
            dimension_semantics=("arbitrary",)),
    )(x_packed, wk, g, b)

    # Slice padded rows/channels away and return NCHW.
    out = out_flat.reshape(H, WP, COUT_P)[:, :W, :COUT]                  # [25, 25, 64]
    return jnp.transpose(out, (2, 0, 1))[None]                           # [1, 64, 25, 25]


def reference_forward(x_nchw, w_oihw, gamma, beta):
    conv = lax.conv_general_dilated(
        x_nchw, w_oihw, window_strides=(1, 1), padding=((PAD, PAD), (PAD, PAD)),
        dimension_numbers=("NCHW", "OIHW", "NCHW"))
    mean = conv.mean(axis=(0, 2, 3), keepdims=True)
    var = ((conv - mean) ** 2).mean(axis=(0, 2, 3), keepdims=True)
    inv = lax.rsqrt(var + EPS)
    return (conv - mean) * inv * gamma.reshape(1, -1, 1, 1) + beta.reshape(1, -1, 1, 1)


if __name__ == "__main__":
    key = jax.random.PRNGKey(0)
    kx, kw_, kg, kb = jax.random.split(key, 4)

    x = jax.random.normal(kx, (N, CIN, H, W), dtype=jnp.float32)
    w = jax.random.normal(kw_, (COUT, CIN, KH, KW), dtype=jnp.float32) * 0.05
    gamma = 1.0 + 0.05 * jax.random.normal(kg, (COUT,), dtype=jnp.float32)
    beta = 0.05 * jax.random.normal(kb, (COUT,), dtype=jnp.float32)

    out = conv_bn_forward(x, w, gamma, beta)
    out = jax.block_until_ready(out)

    ref = reference_forward(x, w, gamma, beta)
    assert out.shape == (N, COUT, H, W), out.shape
    if not jnp.allclose(out, ref, atol=5e-2, rtol=5e-2):
        raise AssertionError("Pallas kernel output mismatch vs reference")

    print("KERNEL_OK")
</pallas_src>

<mosaic_0001>
module attributes {stable_mosaic.version = 11 : i64} {
  func.func @conv_bn_kernel(%arg0: i32, %arg1: memref<928x256xbf16, #tpu.memory_space<vmem>>, %arg2: memref<5x256x128xbf16, #tpu.memory_space<vmem>>, %arg3: memref<1x128xf32, #tpu.memory_space<vmem>>, %arg4: memref<1x128xf32, #tpu.memory_space<vmem>>, %arg5: memref<800x128xf32, #tpu.memory_space<vmem>>) attributes {dimension_semantics = [#tpu.dimension_semantics<arbitrary>], iteration_bounds = array<i64: 1>, scalar_prefetch = 0 : i64, scratch_operands = 0 : i64, tpu.core_type = #tpu.core_type<tc>, window_params = [{pipeline_mode = #tpu.pipeline_mode<synchronous>, transform_indices = @transform_0, window_bounds = array<i64: 928, 256>}, {pipeline_mode = #tpu.pipeline_mode<synchronous>, transform_indices = @transform_1, window_bounds = array<i64: 5, 256, 128>}, {pipeline_mode = #tpu.pipeline_mode<synchronous>, transform_indices = @transform_2, window_bounds = array<i64: 1, 128>}, {pipeline_mode = #tpu.pipeline_mode<synchronous>, transform_indices = @transform_3, window_bounds = array<i64: 1, 128>}, {pipeline_mode = #tpu.pipeline_mode<synchronous>, transform_indices = @transform_4, window_bounds = array<i64: 800, 128>}]} {
    %0 = tpu.iota {dimensions = array<i32: 0>} : vector<160x1xi32>
    %c31_i32 = arith.constant 31 : i32
    %1 = vector.broadcast %c31_i32 : i32 to vector<160x1xi32>
    %2 = arith.andi %0, %1 : vector<160x1xi32>
    %c25_i32 = arith.constant 25 : i32
    %3 = vector.broadcast %c25_i32 : i32 to vector<160x1xi32>
    %4 = arith.cmpi slt, %2, %3 : vector<160x1xi32>
    %5 = arith.extui %4 : vector<160x1xi1> to vector<160x1xi32>
    %6 = arith.sitofp %5 : vector<160x1xi32> to vector<160x1xf32>
    %cst = arith.constant 0.000000e+00 : f32
    %7 = vector.broadcast %cst : f32 to vector<1x128xf32>
    %cst_0 = arith.constant 0.000000e+00 : f32
    %8 = vector.broadcast %cst_0 : f32 to vector<1x128xf32>
    %c0 = arith.constant 0 : index
    %c0_1 = arith.constant 0 : index
    %9 = vector.load %arg1[%c0, %c0_1] : memref<928x256xbf16, #tpu.memory_space<vmem>>, vector<160x256xbf16>
    %c0_2 = arith.constant 0 : index
    %c0_3 = arith.constant 0 : index
    %c0_4 = arith.constant 0 : index
    %10 = vector.load %arg2[%c0_2, %c0_3, %c0_4] : memref<5x256x128xbf16, #tpu.memory_space<vmem>>, vector<1x256x128xbf16>
    %11 = vector.shape_cast %10 : vector<1x256x128xbf16> to vector<256x128xbf16>
    %cst_5 = arith.constant dense<0.000000e+00> : vector<160x128xf32>
    %12 = tpu.matmul %9, %11, %cst_5 {dimension_numbers = #tpu.dot_dimension_numbers<[1], [0], [0], [1], [0, 0, 1, 1], [], []>} : vector<160x256xbf16>, vector<256x128xbf16>, vector<160x128xf32> -> vector<160x128xf32>
    %c32 = arith.constant 32 : index
    %c0_6 = arith.constant 0 : index
    %13 = vector.load %arg1[%c32, %c0_6] : memref<928x256xbf16, #tpu.memory_space<vmem>>, vector<160x256xbf16>
    %c1 = arith.constant 1 : index
    %c0_7 = arith.constant 0 : index
    %c0_8 = arith.constant 0 : index
    %14 = vector.load %arg2[%c1, %c0_7, %c0_8] : memref<5x256x128xbf16, #tpu.memory_space<vmem>>, vector<1x256x128xbf16>
    %15 = vector.shape_cast %14 : vector<1x256x128xbf16> to vector<256x128xbf16>
    %cst_9 = arith.constant dense<0.000000e+00> : vector<160x128xf32>
    %16 = tpu.matmul %13, %15, %cst_9 {dimension_numbers = #tpu.dot_dimension_numbers<[1], [0], [0], [1], [0, 0, 1, 1], [], []>} : vector<160x256xbf16>, vector<256x128xbf16>, vector<160x128xf32> -> vector<160x128xf32>
    %17 = arith.addf %12, %16 : vector<160x128xf32>
    %c64 = arith.constant 64 : index
    %c0_10 = arith.constant 0 : index
    %18 = vector.load %arg1[%c64, %c0_10] : memref<928x256xbf16, #tpu.memory_space<vmem>>, vector<160x256xbf16>
    %c2 = arith.constant 2 : index
    %c0_11 = arith.constant 0 : index
    %c0_12 = arith.constant 0 : index
    %19 = vector.load %arg2[%c2, %c0_11, %c0_12] : memref<5x256x128xbf16, #tpu.memory_space<vmem>>, vector<1x256x128xbf16>
    %20 = vector.shape_cast %19 : vector<1x256x128xbf16> to vector<256x128xbf16>
    %cst_13 = arith.constant dense<0.000000e+00> : vector<160x128xf32>
    %21 = tpu.matmul %18, %20, %cst_13 {dimension_numbers = #tpu.dot_dimension_numbers<[1], [0], [0], [1], [0, 0, 1, 1], [], []>} : vector<160x256xbf16>, vector<256x128xbf16>, vector<160x128xf32> -> vector<160x128xf32>
    %22 = arith.addf %17, %21 : vector<160x128xf32>
    %c96 = arith.constant 96 : index
    %c0_14 = arith.constant 0 : index
    %23 = vector.load %arg1[%c96, %c0_14] : memref<928x256xbf16, #tpu.memory_space<vmem>>, vector<160x256xbf16>
    %c3 = arith.constant 3 : index
    %c0_15 = arith.constant 0 : index
    %c0_16 = arith.constant 0 : index
    %24 = vector.load %arg2[%c3, %c0_15, %c0_16] : memref<5x256x128xbf16, #tpu.memory_space<vmem>>, vector<1x256x128xbf16>
    %25 = vector.shape_cast %24 : vector<1x256x128xbf16> to vector<256x128xbf16>
    %cst_17 = arith.constant dense<0.000000e+00> : vector<160x128xf32>
    %26 = tpu.matmul %23, %25, %cst_17 {dimension_numbers = #tpu.dot_dimension_numbers<[1], [0], [0], [1], [0, 0, 1, 1], [], []>} : vector<160x256xbf16>, vector<256x128xbf16>, vector<160x128xf32> -> vector<160x128xf32>
    %27 = arith.addf %22, %26 : vector<160x128xf32>
    %c128 = arith.constant 128 : index
    %c0_18 = arith.constant 0 : index
    %28 = vector.load %arg1[%c128, %c0_18] : memref<928x256xbf16, #tpu.memory_space<vmem>>, vector<160x256xbf16>
    %c4 = arith.constant 4 : index
    %c0_19 = arith.constant 0 : index
    %c0_20 = arith.constant 0 : index
    %29 = vector.load %arg2[%c4, %c0_19, %c0_20] : memref<5x256x128xbf16, #tpu.memory_space<vmem>>, vector<1x256x128xbf16>
    %30 = vector.shape_cast %29 : vector<1x256x128xbf16> to vector<256x128xbf16>
    %cst_21 = arith.constant dense<0.000000e+00> : vector<160x128xf32>
    %31 = tpu.matmul %28, %30, %cst_21 {dimension_numbers = #tpu.dot_dimension_numbers<[1], [0], [0], [1], [0, 0, 1, 1], [], []>} : vector<160x256xbf16>, vector<256x128xbf16>, vector<160x128xf32> -> vector<160x128xf32>
    %32 = arith.addf %27, %31 : vector<160x128xf32>
    %33 = vector.broadcast %6 : vector<160x1xf32> to vector<160x128xf32>
    %34 = arith.mulf %32, %33 : vector<160x128xf32>
    %cst_22 = arith.constant dense<0.000000e+00> : vector<128xf32>
    %35 = vector.multi_reduction <add>, %34, %cst_22 [0] : vector<160x128xf32> to vector<128xf32>
    %36 = vector.shape_cast %35 : vector<128xf32> to vector<1x128xf32>
    %37 = arith.addf %7, %36 : vector<1x128xf32>
    %38 = arith.mulf %34, %34 : vector<160x128xf32>
    %cst_23 = arith.constant dense<0.000000e+00> : vector<128xf32>
    %39 = vector.multi_reduction <add>, %38, %cst_23 [0] : vector<160x128xf32> to vector<128xf32>
    %40 = vector.shape_cast %39 : vector<128xf32> to vector<1x128xf32>
    %41 = arith.addf %8, %40 : vector<1x128xf32>
    %c0_24 = arith.constant 0 : index
    %c0_25 = arith.constant 0 : index
    %42 = vector.load %arg5[%c0_24, %c0_25] : memref<800x128xf32, #tpu.memory_space<vmem>>, vector<160x128xf32>
    tpu.vector_store %arg5[%c0_24, %c0_25], %32 {strides = array<i32>} : memref<800x128xf32, #tpu.memory_space<vmem>>, vector<160x128xf32>,
    %c160 = arith.constant 160 : index
    %c0_26 = arith.constant 0 : index
    %43 = vector.load %arg1[%c160, %c0_26] : memref<928x256xbf16, #tpu.memory_space<vmem>>, vector<160x256xbf16>
    %c0_27 = arith.constant 0 : index
    %c0_28 = arith.constant 0 : index
    %c0_29 = arith.constant 0 : index
    %44 = vector.load %arg2[%c0_27, %c0_28, %c0_29] : memref<5x256x128xbf16, #tpu.memory_space<vmem>>, vector<1x256x128xbf16>
    %45 = vector.shape_cast %44 : vector<1x256x128xbf16> to vector<256x128xbf16>
    %cst_30 = arith.constant dense<0.000000e+00> : vector<160x128xf32>
    %46 = tpu.matmul %43, %45, %cst_30 {dimension_numbers = #tpu.dot_dimension_numbers<[1], [0], [0], [1], [0, 0, 1, 1], [], []>} : vector<160x256xbf16>, vector<256x128xbf16>, vector<160x128xf32> -> vector<160x128xf32>
    %c192 = arith.constant 192 : index
    %c0_31 = arith.constant 0 : index
    %47 = vector.load %arg1[%c192, %c0_31] : memref<928x256xbf16, #tpu.memory_space<vmem>>, vector<160x256xbf16>
    %c1_32 = arith.constant 1 : index
    %c0_33 = arith.constant 0 : index
    %c0_34 = arith.constant 0 : index
    %48 = vector.load %arg2[%c1_32, %c0_33, %c0_34] : memref<5x256x128xbf16, #tpu.memory_space<vmem>>, vector<1x256x128xbf16>
    %49 = vector.shape_cast %48 : vector<1x256x128xbf16> to vector<256x128xbf16>
    %cst_35 = arith.constant dense<0.000000e+00> : vector<160x128xf32>
    %50 = tpu.matmul %47, %49, %cst_35 {dimension_numbers = #tpu.dot_dimension_numbers<[1], [0], [0], [1], [0, 0, 1, 1], [], []>} : vector<160x256xbf16>, vector<256x128xbf16>, vector<160x128xf32> -> vector<160x128xf32>
    %51 = arith.addf %46, %50 : vector<160x128xf32>
    %c224 = arith.constant 224 : index
    %c0_36 = arith.constant 0 : index
    %52 = vector.load %arg1[%c224, %c0_36] : memref<928x256xbf16, #tpu.memory_space<vmem>>, vector<160x256xbf16>
    %c2_37 = arith.constant 2 : index
    %c0_38 = arith.constant 0 : index
    %c0_39 = arith.constant 0 : index
    %53 = vector.load %arg2[%c2_37, %c0_38, %c0_39] : memref<5x256x128xbf16, #tpu.memory_space<vmem>>, vector<1x256x128xbf16>
    %54 = vector.shape_cast %53 : vector<1x256x128xbf16> to vector<256x128xbf16>
    %cst_40 = arith.constant dense<0.000000e+00> : vector<160x128xf32>
    %55 = tpu.matmul %52, %54, %cst_40 {dimension_numbers = #tpu.dot_dimension_numbers<[1], [0], [0], [1], [0, 0, 1, 1], [], []>} : vector<160x256xbf16>, vector<256x128xbf16>, vector<160x128xf32> -> vector<160x128xf32>
    %56 = arith.addf %51, %55 : vector<160x128xf32>
    %c256 = arith.constant 256 : index
    %c0_41 = arith.constant 0 : index
    %57 = vector.load %arg1[%c256, %c0_41] : memref<928x256xbf16, #tpu.memory_space<vmem>>, vector<160x256xbf16>
    %c3_42 = arith.constant 3 : index
    %c0_43 = arith.constant 0 : index
    %c0_44 = arith.constant 0 : index
    %58 = vector.load %arg2[%c3_42, %c0_43, %c0_44] : memref<5x256x128xbf16, #tpu.memory_space<vmem>>, vector<1x256x128xbf16>
    %59 = vector.shape_cast %58 : vector<1x256x128xbf16> to vector<256x128xbf16>
    %cst_45 = arith.constant dense<0.000000e+00> : vector<160x128xf32>
    %60 = tpu.matmul %57, %59, %cst_45 {dimension_numbers = #tpu.dot_dimension_numbers<[1], [0], [0], [1], [0, 0, 1, 1], [], []>} : vector<160x256xbf16>, vector<256x128xbf16>, vector<160x128xf32> -> vector<160x128xf32>
    %61 = arith.addf %56, %60 : vector<160x128xf32>
    %c288 = arith.constant 288 : index
    %c0_46 = arith.constant 0 : index
    %62 = vector.load %arg1[%c288, %c0_46] : memref<928x256xbf16, #tpu.memory_space<vmem>>, vector<160x256xbf16>
    %c4_47 = arith.constant 4 : index
    %c0_48 = arith.constant 0 : index
    %c0_49 = arith.constant 0 : index
    %63 = vector.load %arg2[%c4_47, %c0_48, %c0_49] : memref<5x256x128xbf16, #tpu.memory_space<vmem>>, vector<1x256x128xbf16>
    %64 = vector.shape_cast %63 : vector<1x256x128xbf16> to vector<256x128xbf16>
    %cst_50 = arith.constant dense<0.000000e+00> : vector<160x128xf32>
    %65 = tpu.matmul %62, %64, %cst_50 {dimension_numbers = #tpu.dot_dimension_numbers<[1], [0], [0], [1], [0, 0, 1, 1], [], []>} : vector<160x256xbf16>, vector<256x128xbf16>, vector<160x128xf32> -> vector<160x128xf32>
    %66 = arith.addf %61, %65 : vector<160x128xf32>
    %67 = vector.broadcast %6 : vector<160x1xf32> to vector<160x128xf32>
    %68 = arith.mulf %66, %67 : vector<160x128xf32>
    %cst_51 = arith.constant dense<0.000000e+00> : vector<128xf32>
    %69 = vector.multi_reduction <add>, %68, %cst_51 [0] : vector<160x128xf32> to vector<128xf32>
    %70 = vector.shape_cast %69 : vector<128xf32> to vector<1x128xf32>
    %71 = arith.addf %37, %70 : vector<1x128xf32>
    %72 = arith.mulf %68, %68 : vector<160x128xf32>
    %cst_52 = arith.constant dense<0.000000e+00> : vector<128xf32>
    %73 = vector.multi_reduction <add>, %72, %cst_52 [0] : vector<160x128xf32> to vector<128xf32>
    %74 = vector.shape_cast %73 : vector<128xf32> to vector<1x128xf32>
    %75 = arith.addf %41, %74 : vector<1x128xf32>
    %c160_53 = arith.constant 160 : index
    %c0_54 = arith.constant 0 : index
    %76 = vector.load %arg5[%c160_53, %c0_54] : memref<800x128xf32, #tpu.memory_space<vmem>>, vector<160x128xf32>
    tpu.vector_store %arg5[%c160_53, %c0_54], %66 {strides = array<i32>} : memref<800x128xf32, #tpu.memory_space<vmem>>, vector<160x128xf32>,
    %c320 = arith.constant 320 : index
    %c0_55 = arith.constant 0 : index
    %77 = vector.load %arg1[%c320, %c0_55] : memref<928x256xbf16, #tpu.memory_space<vmem>>, vector<160x256xbf16>
    %c0_56 = arith.constant 0 : index
    %c0_57 = arith.constant 0 : index
    %c0_58 = arith.constant 0 : index
    %78 = vector.load %arg2[%c0_56, %c0_57, %c0_58] : memref<5x256x128xbf16, #tpu.memory_space<vmem>>, vector<1x256x128xbf16>
    %79 = vector.shape_cast %78 : vector<1x256x128xbf16> to vector<256x128xbf16>
    %cst_59 = arith.constant dense<0.000000e+00> : vector<160x128xf32>
    %80 = tpu.matmul %77, %79, %cst_59 {dimension_numbers = #tpu.dot_dimension_numbers<[1], [0], [0], [1], [0, 0, 1, 1], [], []>} : vector<160x256xbf16>, vector<256x128xbf16>, vector<160x128xf32> -> vector<160x128xf32>
    %c352 = arith.constant 352 : index
    %c0_60 = arith.constant 0 : index
    %81 = vector.load %arg1[%c352, %c0_60] : memref<928x256xbf16, #tpu.memory_space<vmem>>, vector<160x256xbf16>
    %c1_61 = arith.constant 1 : index
    %c0_62 = arith.constant 0 : index
    %c0_63 = arith.constant 0 : index
    %82 = vector.load %arg2[%c1_61, %c0_62, %c0_63] : memref<5x256x128xbf16, #tpu.memory_space<vmem>>, vector<1x256x128xbf16>
    %83 = vector.shape_cast %82 : vector<1x256x128xbf16> to vector<256x128xbf16>
    %cst_64 = arith.constant dense<0.000000e+00> : vector<160x128xf32>
    %84 = tpu.matmul %81, %83, %cst_64 {dimension_numbers = #tpu.dot_dimension_numbers<[1], [0], [0], [1], [0, 0, 1, 1], [], []>} : vector<160x256xbf16>, vector<256x128xbf16>, vector<160x128xf32> -> vector<160x128xf32>
    %85 = arith.addf %80, %84 : vector<160x128xf32>
    %c384 = arith.constant 384 : index
    %c0_65 = arith.constant 0 : index
    %86 = vector.load %arg1[%c384, %c0_65] : memref<928x256xbf16, #tpu.memory_space<vmem>>, vector<160x256xbf16>
    %c2_66 = arith.constant 2 : index
    %c0_67 = arith.constant 0 : index
    %c0_68 = arith.constant 0 : index
    %87 = vector.load %arg2[%c2_66, %c0_67, %c0_68] : memref<5x256x128xbf16, #tpu.memory_space<vmem>>, vector<1x256x128xbf16>
    %88 = vector.shape_cast %87 : vector<1x256x128xbf16> to vector<256x128xbf16>
    %cst_69 = arith.constant dense<0.000000e+00> : vector<160x128xf32>
    %89 = tpu.matmul %86, %88, %cst_69 {dimension_numbers = #tpu.dot_dimension_numbers<[1], [0], [0], [1], [0, 0, 1, 1], [], []>} : vector<160x256xbf16>, vector<256x128xbf16>, vector<160x128xf32> -> vector<160x128xf32>
    %90 = arith.addf %85, %89 : vector<160x128xf32>
    %c416 = arith.constant 416 : index
    %c0_70 = arith.constant 0 : index
    %91 = vector.load %arg1[%c416, %c0_70] : memref<928x256xbf16, #tpu.memory_space<vmem>>, vector<160x256xbf16>
    %c3_71 = arith.constant 3 : index
    %c0_72 = arith.constant 0 : index
    %c0_73 = arith.constant 0 : index
    %92 = vector.load %arg2[%c3_71, %c0_72, %c0_73] : memref<5x256x128xbf16, #tpu.memory_space<vmem>>, vector<1x256x128xbf16>
    %93 = vector.shape_cast %92 : vector<1x256x128xbf16> to vector<256x128xbf16>
    %cst_74 = arith.constant dense<0.000000e+00> : vector<160x128xf32>
    %94 = tpu.matmul %91, %93, %cst_74 {dimension_numbers = #tpu.dot_dimension_numbers<[1], [0], [0], [1], [0, 0, 1, 1], [], []>} : vector<160x256xbf16>, vector<256x128xbf16>, vector<160x128xf32> -> vector<160x128xf32>
    %95 = arith.addf %90, %94 : vector<160x128xf32>
    %c448 = arith.constant 448 : index
    %c0_75 = arith.constant 0 : index
    %96 = vector.load %arg1[%c448, %c0_75] : memref<928x256xbf16, #tpu.memory_space<vmem>>, vector<160x256xbf16>
    %c4_76 = arith.constant 4 : index
    %c0_77 = arith.constant 0 : index
    %c0_78 = arith.constant 0 : index
    %97 = vector.load %arg2[%c4_76, %c0_77, %c0_78] : memref<5x256x128xbf16, #tpu.memory_space<vmem>>, vector<1x256x128xbf16>
    %98 = vector.shape_cast %97 : vector<1x256x128xbf16> to vector<256x128xbf16>
    %cst_79 = arith.constant dense<0.000000e+00> : vector<160x128xf32>
    %99 = tpu.matmul %96, %98, %cst_79 {dimension_numbers = #tpu.dot_dimension_numbers<[1], [0], [0], [1], [0, 0, 1, 1], [], []>} : vector<160x256xbf16>, vector<256x128xbf16>, vector<160x128xf32> -> vector<160x128xf32>
    %100 = arith.addf %95, %99 : vector<160x128xf32>
    %101 = vector.broadcast %6 : vector<160x1xf32> to vector<160x128xf32>
    %102 = arith.mulf %100, %101 : vector<160x128xf32>
    %cst_80 = arith.constant dense<0.000000e+00> : vector<128xf32>
    %103 = vector.multi_reduction <add>, %102, %cst_80 [0] : vector<160x128xf32> to vector<128xf32>
    %104 = vector.shape_cast %103 : vector<128xf32> to vector<1x128xf32>
    %105 = arith.addf %71, %104 : vector<1x128xf32>
    %106 = arith.mulf %102, %102 : vector<160x128xf32>
    %cst_81 = arith.constant dense<0.000000e+00> : vector<128xf32>
    %107 = vector.multi_reduction <add>, %106, %cst_81 [0] : vector<160x128xf32> to vector<128xf32>
    %108 = vector.shape_cast %107 : vector<128xf32> to vector<1x128xf32>
    %109 = arith.addf %75, %108 : vector<1x128xf32>
    %c320_82 = arith.constant 320 : index
    %c0_83 = arith.constant 0 : index
    %110 = vector.load %arg5[%c320_82, %c0_83] : memref<800x128xf32, #tpu.memory_space<vmem>>, vector<160x128xf32>
    tpu.vector_store %arg5[%c320_82, %c0_83], %100 {strides = array<i32>} : memref<800x128xf32, #tpu.memory_space<vmem>>, vector<160x128xf32>,
    %c480 = arith.constant 480 : index
    %c0_84 = arith.constant 0 : index
    %111 = vector.load %arg1[%c480, %c0_84] : memref<928x256xbf16, #tpu.memory_space<vmem>>, vector<160x256xbf16>
    %c0_85 = arith.constant 0 : index
    %c0_86 = arith.constant 0 : index
    %c0_87 = arith.constant 0 : index
    %112 = vector.load %arg2[%c0_85, %c0_86, %c0_87] : memref<5x256x128xbf16, #tpu.memory_space<vmem>>, vector<1x256x128xbf16>
    %113 = vector.shape_cast %112 : vector<1x256x128xbf16> to vector<256x128xbf16>
    %cst_88 = arith.constant dense<0.000000e+00> : vector<160x128xf32>
    %114 = tpu.matmul %111, %113, %cst_88 {dimension_numbers = #tpu.dot_dimension_numbers<[1], [0], [0], [1], [0, 0, 1, 1], [], []>} : vector<160x256xbf16>, vector<256x128xbf16>, vector<160x128xf32> -> vector<160x128xf32>
    %c512 = arith.constant 512 : index
    %c0_89 = arith.constant 0 : index
    %115 = vector.load %arg1[%c512, %c0_89] : memref<928x256xbf16, #tpu.memory_space<vmem>>, vector<160x256xbf16>
    %c1_90 = arith.constant 1 : index
    %c0_91 = arith.constant 0 : index
    %c0_92 = arith.constant 0 : index
    %116 = vector.load %arg2[%c1_90, %c0_91, %c0_92] : memref<5x256x128xbf16, #tpu.memory_space<vmem>>, vector<1x256x128xbf16>
    %117 = vector.shape_cast %116 : vector<1x256x128xbf16> to vector<256x128xbf16>
    %cst_93 = arith.constant dense<0.000000e+00> : vector<160x128xf32>
    %118 = tpu.matmul %115, %117, %cst_93 {dimension_numbers = #tpu.dot_dimension_numbers<[1], [0], [0], [1], [0, 0, 1, 1], [], []>} : vector<160x256xbf16>, vector<256x128xbf16>, vector<160x128xf32> -> vector<160x128xf32>
    %119 = arith.addf %114, %118 : vector<160x128xf32>
    %c544 = arith.constant 544 : index
    %c0_94 = arith.constant 0 : index
    %120 = vector.load %arg1[%c544, %c0_94] : memref<928x256xbf16, #tpu.memory_space<vmem>>, vector<160x256xbf16>
    %c2_95 = arith.constant 2 : index
    %c0_96 = arith.constant 0 : index
    %c0_97 = arith.constant 0 : index
    %121 = vector.load %arg2[%c2_95, %c0_96, %c0_97] : memref<5x256x128xbf16, #tpu.memory_space<vmem>>, vector<1x256x128xbf16>
    %122 = vector.shape_cast %121 : vector<1x256x128xbf16> to vector<256x128xbf16>
    %cst_98 = arith.constant dense<0.000000e+00> : vector<160x128xf32>
    %123 = tpu.matmul %120, %122, %cst_98 {dimension_numbers = #tpu.dot_dimension_numbers<[1], [0], [0], [1], [0, 0, 1, 1], [], []>} : vector<160x256xbf16>, vector<256x128xbf16>, vector<160x128xf32> -> vector<160x128xf32>
    %124 = arith.addf %119, %123 : vector<160x128xf32>
    %c576 = arith.constant 576 : index
    %c0_99 = arith.constant 0 : index
    %125 = vector.load %arg1[%c576, %c0_99] : memref<928x256xbf16, #tpu.memory_space<vmem>>, vector<160x256xbf16>
    %c3_100 = arith.constant 3 : index
    %c0_101 = arith.constant 0 : index
    %c0_102 = arith.constant 0 : index
    %126 = vector.load %arg2[%c3_100, %c0_101, %c0_102] : memref<5x256x128xbf16, #tpu.memory_space<vmem>>, vector<1x256x128xbf16>
    %127 = vector.shape_cast %126 : vector<1x256x128xbf16> to vector<256x128xbf16>
    %cst_103 = arith.constant dense<0.000000e+00> : vector<160x128xf32>
    %128 = tpu.matmul %125, %127, %cst_103 {dimension_numbers = #tpu.dot_dimension_numbers<[1], [0], [0], [1], [0, 0, 1, 1], [], []>} : vector<160x256xbf16>, vector<256x128xbf16>, vector<160x128xf32> -> vector<160x128xf32>
    %129 = arith.addf %124, %128 : vector<160x128xf32>
    %c608 = arith.constant 608 : index
    %c0_104 = arith.constant 0 : index
    %130 = vector.load %arg1[%c608, %c0_104] : memref<928x256xbf16, #tpu.memory_space<vmem>>, vector<160x256xbf16>
    %c4_105 = arith.constant 4 : index
    %c0_106 = arith.constant 0 : index
    %c0_107 = arith.constant 0 : index
    %131 = vector.load %arg2[%c4_105, %c0_106, %c0_107] : memref<5x256x128xbf16, #tpu.memory_space<vmem>>, vector<1x256x128xbf16>
    %132 = vector.shape_cast %131 : vector<1x256x128xbf16> to vector<256x128xbf16>
    %cst_108 = arith.constant dense<0.000000e+00> : vector<160x128xf32>
    %133 = tpu.matmul %130, %132, %cst_108 {dimension_numbers = #tpu.dot_dimension_numbers<[1], [0], [0], [1], [0, 0, 1, 1], [], []>} : vector<160x256xbf16>, vector<256x128xbf16>, vector<160x128xf32> -> vector<160x128xf32>
    %134 = arith.addf %129, %133 : vector<160x128xf32>
    %135 = vector.broadcast %6 : vector<160x1xf32> to vector<160x128xf32>
    %136 = arith.mulf %134, %135 : vector<160x128xf32>
    %cst_109 = arith.constant dense<0.000000e+00> : vector<128xf32>
    %137 = vector.multi_reduction <add>, %136, %cst_109 [0] : vector<160x128xf32> to vector<128xf32>
    %138 = vector.shape_cast %137 : vector<128xf32> to vector<1x128xf32>
    %139 = arith.addf %105, %138 : vector<1x128xf32>
    %140 = arith.mulf %136, %136 : vector<160x128xf32>
    %cst_110 = arith.constant dense<0.000000e+00> : vector<128xf32>
    %141 = vector.multi_reduction <add>, %140, %cst_110 [0] : vector<160x128xf32> to vector<128xf32>
    %142 = vector.shape_cast %141 : vector<128xf32> to vector<1x128xf32>
    %143 = arith.addf %109, %142 : vector<1x128xf32>
    %c480_111 = arith.constant 480 : index
    %c0_112 = arith.constant 0 : index
    %144 = vector.load %arg5[%c480_111, %c0_112] : memref<800x128xf32, #tpu.memory_space<vmem>>, vector<160x128xf32>
    tpu.vector_store %arg5[%c480_111, %c0_112], %134 {strides = array<i32>} : memref<800x128xf32, #tpu.memory_space<vmem>>, vector<160x128xf32>,
    %c640 = arith.constant 640 : index
    %c0_113 = arith.constant 0 : index
    %145 = vector.load %arg1[%c640, %c0_113] : memref<928x256xbf16, #tpu.memory_space<vmem>>, vector<160x256xbf16>
    %c0_114 = arith.constant 0 : index
    %c0_115 = arith.constant 0 : index
    %c0_116 = arith.constant 0 : index
    %146 = vector.load %arg2[%c0_114, %c0_115, %c0_116] : memref<5x256x128xbf16, #tpu.memory_space<vmem>>, vector<1x256x128xbf16>
    %147 = vector.shape_cast %146 : vector<1x256x128xbf16> to vector<256x128xbf16>
    %cst_117 = arith.constant dense<0.000000e+00> : vector<160x128xf32>
    %148 = tpu.matmul %145, %147, %cst_117 {dimension_numbers = #tpu.dot_dimension_numbers<[1], [0], [0], [1], [0, 0, 1, 1], [], []>} : vector<160x256xbf16>, vector<256x128xbf16>, vector<160x128xf32> -> vector<160x128xf32>
    %c672 = arith.constant 672 : index
    %c0_118 = arith.constant 0 : index
    %149 = vector.load %arg1[%c672, %c0_118] : memref<928x256xbf16, #tpu.memory_space<vmem>>, vector<160x256xbf16>
    %c1_119 = arith.constant 1 : index
    %c0_120 = arith.constant 0 : index
    %c0_121 = arith.constant 0 : index
    %150 = vector.load %arg2[%c1_119, %c0_120, %c0_121] : memref<5x256x128xbf16, #tpu.memory_space<vmem>>, vector<1x256x128xbf16>
    %151 = vector.shape_cast %150 : vector<1x256x128xbf16> to vector<256x128xbf16>
    %cst_122 = arith.constant dense<0.000000e+00> : vector<160x128xf32>
    %152 = tpu.matmul %149, %151, %cst_122 {dimension_numbers = #tpu.dot_dimension_numbers<[1], [0], [0], [1], [0, 0, 1, 1], [], []>} : vector<160x256xbf16>, vector<256x128xbf16>, vector<160x128xf32> -> vector<160x128xf32>
    %153 = arith.addf %148, %152 : vector<160x128xf32>
    %c704 = arith.constant 704 : index
    %c0_123 = arith.constant 0 : index
    %154 = vector.load %arg1[%c704, %c0_123] : memref<928x256xbf16, #tpu.memory_space<vmem>>, vector<160x256xbf16>
    %c2_124 = arith.constant 2 : index
    %c0_125 = arith.constant 0 : index
    %c0_126 = arith.constant 0 : index
    %155 = vector.load %arg2[%c2_124, %c0_125, %c0_126] : memref<5x256x128xbf16, #tpu.memory_space<vmem>>, vector<1x256x128xbf16>
    %156 = vector.shape_cast %155 : vector<1x256x128xbf16> to vector<256x128xbf16>
    %cst_127 = arith.constant dense<0.000000e+00> : vector<160x128xf32>
    %157 = tpu.matmul %154, %156, %cst_127 {dimension_numbers = #tpu.dot_dimension_numbers<[1], [0], [0], [1], [0, 0, 1, 1], [], []>} : vector<160x256xbf16>, vector<256x128xbf16>, vector<160x128xf32> -> vector<160x128xf32>
    %158 = arith.addf %153, %157 : vector<160x128xf32>
    %c736 = arith.constant 736 : index
    %c0_128 = arith.constant 0 : index
    %159 = vector.load %arg1[%c736, %c0_128] : memref<928x256xbf16, #tpu.memory_space<vmem>>, vector<160x256xbf16>
    %c3_129 = arith.constant 3 : index
    %c0_130 = arith.constant 0 : index
    %c0_131 = arith.constant 0 : index
    %160 = vector.load %arg2[%c3_129, %c0_130, %c0_131] : memref<5x256x128xbf16, #tpu.memory_space<vmem>>, vector<1x256x128xbf16>
    %161 = vector.shape_cast %160 : vector<1x256x128xbf16> to vector<256x128xbf16>
    %cst_132 = arith.constant dense<0.000000e+00> : vector<160x128xf32>
    %162 = tpu.matmul %159, %161, %cst_132 {dimension_numbers = #tpu.dot_dimension_numbers<[1], [0], [0], [1], [0, 0, 1, 1], [], []>} : vector<160x256xbf16>, vector<256x128xbf16>, vector<160x128xf32> -> vector<160x128xf32>
    %163 = arith.addf %158, %162 : vector<160x128xf32>
    %c768 = arith.constant 768 : index
    %c0_133 = arith.constant 0 : index
    %164 = vector.load %arg1[%c768, %c0_133] : memref<928x256xbf16, #tpu.memory_space<vmem>>, vector<160x256xbf16>
    %c4_134 = arith.constant 4 : index
    %c0_135 = arith.constant 0 : index
    %c0_136 = arith.constant 0 : index
    %165 = vector.load %arg2[%c4_134, %c0_135, %c0_136] : memref<5x256x128xbf16, #tpu.memory_space<vmem>>, vector<1x256x128xbf16>
    %166 = vector.shape_cast %165 : vector<1x256x128xbf16> to vector<256x128xbf16>
    %cst_137 = arith.constant dense<0.000000e+00> : vector<160x128xf32>
    %167 = tpu.matmul %164, %166, %cst_137 {dimension_numbers = #tpu.dot_dimension_numbers<[1], [0], [0], [1], [0, 0, 1, 1], [], []>} : vector<160x256xbf16>, vector<256x128xbf16>, vector<160x128xf32> -> vector<160x128xf32>
    %168 = arith.addf %163, %167 : vector<160x128xf32>
    %169 = vector.broadcast %6 : vector<160x1xf32> to vector<160x128xf32>
    %170 = arith.mulf %168, %169 : vector<160x128xf32>
    %cst_138 = arith.constant dense<0.000000e+00> : vector<128xf32>
    %171 = vector.multi_reduction <add>, %170, %cst_138 [0] : vector<160x128xf32> to vector<128xf32>
    %172 = vector.shape_cast %171 : vector<128xf32> to vector<1x128xf32>
    %173 = arith.addf %139, %172 : vector<1x128xf32>
    %174 = arith.mulf %170, %170 : vector<160x128xf32>
    %cst_139 = arith.constant dense<0.000000e+00> : vector<128xf32>
    %175 = vector.multi_reduction <add>, %174, %cst_139 [0] : vector<160x128xf32> to vector<128xf32>
    %176 = vector.shape_cast %175 : vector<128xf32> to vector<1x128xf32>
    %177 = arith.addf %143, %176 : vector<1x128xf32>
    %c640_140 = arith.constant 640 : index
    %c0_141 = arith.constant 0 : index
    %178 = vector.load %arg5[%c640_140, %c0_141] : memref<800x128xf32, #tpu.memory_space<vmem>>, vector<160x128xf32>
    tpu.vector_store %arg5[%c640_140, %c0_141], %168 {strides = array<i32>} : memref<800x128xf32, #tpu.memory_space<vmem>>, vector<160x128xf32>,
    %cst_142 = arith.constant 1.600000e-03 : f32
    %179 = vector.broadcast %cst_142 : f32 to vector<1x128xf32>
    %180 = arith.mulf %173, %179 : vector<1x128xf32>
    %cst_143 = arith.constant 1.600000e-03 : f32
    %181 = vector.broadcast %cst_143 : f32 to vector<1x128xf32>
    %182 = arith.mulf %177, %181 : vector<1x128xf32>
    %183 = arith.mulf %180, %180 : vector<1x128xf32>
    %184 = arith.subf %182, %183 : vector<1x128xf32>
    %cst_144 = arith.constant 1.000000e-03 : f32
    %185 = vector.broadcast %cst_144 : f32 to vector<1x128xf32>
    %186 = arith.addf %184, %185 : vector<1x128xf32>
    %187 = math.rsqrt %186 : vector<1x128xf32>
    %c0_145 = arith.constant 0 : index
    %c0_146 = arith.constant 0 : index
    %188 = vector.load %arg3[%c0_145, %c0_146] : memref<1x128xf32, #tpu.memory_space<vmem>>, vector<1x128xf32>
    %189 = arith.mulf %188, %187 : vector<1x128xf32>
    %c0_147 = arith.constant 0 : index
    %c0_148 = arith.constant 0 : index
    %190 = vector.load %arg4[%c0_147, %c0_148] : memref<1x128xf32, #tpu.memory_space<vmem>>, vector<1x128xf32>
    %191 = arith.mulf %180, %189 : vector<1x128xf32>
    %192 = arith.subf %190, %191 : vector<1x128xf32>
    %c0_149 = arith.constant 0 : index
    %c0_150 = arith.constant 0 : index
    %193 = vector.load %arg5[%c0_149, %c0_150] : memref<800x128xf32, #tpu.memory_space<vmem>>, vector<160x128xf32>
    %194 = vector.broadcast %189 : vector<1x128xf32> to vector<160x128xf32>
    %195 = arith.mulf %193, %194 : vector<160x128xf32>
    %196 = vector.broadcast %192 : vector<1x128xf32> to vector<160x128xf32>
    %197 = arith.addf %195, %196 : vector<160x128xf32>
    %c0_151 = arith.constant 0 : index
    %c0_152 = arith.constant 0 : index
    %198 = vector.load %arg5[%c0_151, %c0_152] : memref<800x128xf32, #tpu.memory_space<vmem>>, vector<160x128xf32>
    tpu.vector_store %arg5[%c0_151, %c0_152], %197 {strides = array<i32>} : memref<800x128xf32, #tpu.memory_space<vmem>>, vector<160x128xf32>,
    %c160_153 = arith.constant 160 : index
    %c0_154 = arith.constant 0 : index
    %199 = vector.load %arg5[%c160_153, %c0_154] : memref<800x128xf32, #tpu.memory_space<vmem>>, vector<160x128xf32>
    %200 = vector.broadcast %189 : vector<1x128xf32> to vector<160x128xf32>
    %201 = arith.mulf %199, %200 : vector<160x128xf32>
    %202 = vector.broadcast %192 : vector<1x128xf32> to vector<160x128xf32>
    %203 = arith.addf %201, %202 : vector<160x128xf32>
    %c160_155 = arith.constant 160 : index
    %c0_156 = arith.constant 0 : index
    %204 = vector.load %arg5[%c160_155, %c0_156] : memref<800x128xf32, #tpu.memory_space<vmem>>, vector<160x128xf32>
    tpu.vector_store %arg5[%c160_155, %c0_156], %203 {strides = array<i32>} : memref<800x128xf32, #tpu.memory_space<vmem>>, vector<160x128xf32>,
    %c320_157 = arith.constant 320 : index
    %c0_158 = arith.constant 0 : index
    %205 = vector.load %arg5[%c320_157, %c0_158] : memref<800x128xf32, #tpu.memory_space<vmem>>, vector<160x128xf32>
    %206 = vector.broadcast %189 : vector<1x128xf32> to vector<160x128xf32>
    %207 = arith.mulf %205, %206 : vector<160x128xf32>
    %208 = vector.broadcast %192 : vector<1x128xf32> to vector<160x128xf32>
    %209 = arith.addf %207, %208 : vector<160x128xf32>
    %c320_159 = arith.constant 320 : index
    %c0_160 = arith.constant 0 : index
    %210 = vector.load %arg5[%c320_159, %c0_160] : memref<800x128xf32, #tpu.memory_space<vmem>>, vector<160x128xf32>
    tpu.vector_store %arg5[%c320_159, %c0_160], %209 {strides = array<i32>} : memref<800x128xf32, #tpu.memory_space<vmem>>, vector<160x128xf32>,
    %c480_161 = arith.constant 480 : index
    %c0_162 = arith.constant 0 : index
    %211 = vector.load %arg5[%c480_161, %c0_162] : memref<800x128xf32, #tpu.memory_space<vmem>>, vector<160x128xf32>
    %212 = vector.broadcast %189 : vector<1x128xf32> to vector<160x128xf32>
    %213 = arith.mulf %211, %212 : vector<160x128xf32>
    %214 = vector.broadcast %192 : vector<1x128xf32> to vector<160x128xf32>
    %215 = arith.addf %213, %214 : vector<160x128xf32>
    %c480_163 = arith.constant 480 : index
    %c0_164 = arith.constant 0 : index
    %216 = vector.load %arg5[%c480_163, %c0_164] : memref<800x128xf32, #tpu.memory_space<vmem>>, vector<160x128xf32>
    tpu.vector_store %arg5[%c480_163, %c0_164], %215 {strides = array<i32>} : memref<800x128xf32, #tpu.memory_space<vmem>>, vector<160x128xf32>,
    %c640_165 = arith.constant 640 : index
    %c0_166 = arith.constant 0 : index
    %217 = vector.load %arg5[%c640_165, %c0_166] : memref<800x128xf32, #tpu.memory_space<vmem>>, vector<160x128xf32>
    %218 = vector.broadcast %189 : vector<1x128xf32> to vector<160x128xf32>
    %219 = arith.mulf %217, %218 : vector<160x128xf32>
    %220 = vector.broadcast %192 : vector<1x128xf32> to vector<160x128xf32>
    %221 = arith.addf %219, %220 : vector<160x128xf32>
    %c640_167 = arith.constant 640 : index
    %c0_168 = arith.constant 0 : index
    %222 = vector.load %arg5[%c640_167, %c0_168] : memref<800x128xf32, #tpu.memory_space<vmem>>, vector<160x128xf32>
    tpu.vector_store %arg5[%c640_167, %c0_168], %221 {strides = array<i32>} : memref<800x128xf32, #tpu.memory_space<vmem>>, vector<160x128xf32>,
    return
  }
  func.func @transform_0(%arg0: i32) -> (i32, i32) {
    %c0_i32 = arith.constant 0 : i32
    %c0_i32_0 = arith.constant 0 : i32
    %c0_i32_1 = arith.constant 0 : i32
    return %c0_i32, %c0_i32_0 : i32, i32
  }
  func.func @transform_1(%arg0: i32) -> (i32, i32, i32) {
    %c0_i32 = arith.constant 0 : i32
    %c0_i32_0 = arith.constant 0 : i32
    %c0_i32_1 = arith.constant 0 : i32
    %c0_i32_2 = arith.constant 0 : i32
    return %c0_i32, %c0_i32_0, %c0_i32_1 : i32, i32, i32
  }
  func.func @transform_2(%arg0: i32) -> (i32, i32) {
    %c0_i32 = arith.constant 0 : i32
    %c0_i32_0 = arith.constant 0 : i32
    %c0_i32_1 = arith.constant 0 : i32
    return %c0_i32, %c0_i32_0 : i32, i32
  }
  func.func @transform_3(%arg0: i32) -> (i32, i32) {
    %c0_i32 = arith.constant 0 : i32
    %c0_i32_0 = arith.constant 0 : i32
    %c0_i32_1 = arith.constant 0 : i32
    return %c0_i32, %c0_i32_0 : i32, i32
  }
  func.func @transform_4(%arg0: i32) -> (i32, i32) {
    %c0_i32 = arith.constant 0 : i32
    %c0_i32_0 = arith.constant 0 : i32
    %c0_i32_1 = arith.constant 0 : i32
    return %c0_i32, %c0_i32_0 : i32, i32
  }
}

</mosaic_0001>

<bundles_post_ra>
// kernel: conv_bn_forward.1
= control target key start
LH: loop header
LB: loop body
LE: loop exit
PB: predicated region body
PF: predicated region fallthrough
CT: control target
= control target key end

     0   :  { %s20872_s1 = inlined_call_operand.vmem [shape: bf16[5,256,128], index: 1, kind: input, shape index: {}]   ;;  %s20873_s0 = inlined_call_operand.vmem [shape: bf16[928,256], index: 0, kind: input, shape index: {}]   ;;  %s20874_s2 = inlined_call_operand.vmem [shape: f32[1,128], index: 2, kind: input, shape index: {}]   ;;  %s20875_s3 = inlined_call_operand.vmem [shape: f32[1,128], index: 3, kind: input, shape index: {}]   ;;  %s20876_s4 = inlined_call_operand.vmem [shape: f32[800,128], index: 4, kind: output, shape index: {}]  }
   0x1   :  { %v14054_v0 = vld [vmem:[%s20872_s1 + $0xb8] sm:$0xff]  ;;  %v14053_v2 = vld [vmem:[%s20872_s1 + $0xb0] sm:$0xff]  ;;  %v14052_v4 = vld [vmem:[%s20872_s1 + $0xa8] sm:$0xff] }
   0x2   :  { %v14062_v1 = vld [vmem:[%s20872_s1 + $0xf8] sm:$0xff]  ;;  %403 = vmatpush.bf16.msra.mxu0 %v14054_v0  ;;  %14827 = vmatpush.bf16.msra.mxu2 %v14054_v0  ;;  %v14061_v3 = vld [vmem:[%s20872_s1 + $0xf0] sm:$0xff]  ;;  %v14060_v5 = vld [vmem:[%s20872_s1 + $0xe8] sm:$0xff] }
   0x3   :  { %462 = vmatpush.bf16.msra.mxu1 %v14062_v1  ;;  %14835 = vmatpush.bf16.msra.mxu3 %v14062_v1  ;;  %v14051_v6 = vld [vmem:[%s20872_s1 + $0xa0] sm:$0xff]  ;;  %v14050_v8 = vld [vmem:[%s20872_s1 + $0x98] sm:$0xff]  ;;  %v14049_v10 = vld [vmem:[%s20872_s1 + $0x90] sm:$0xff] }
   0x4   :  { %v14059_v7 = vld [vmem:[%s20872_s1 + $0xe0] sm:$0xff]  ;;  %v14058_v9 = vld [vmem:[%s20872_s1 + $0xd8] sm:$0xff]  ;;  %v14057_v11 = vld [vmem:[%s20872_s1 + $0xd0] sm:$0xff] }
   0x5   :  { %v14048_v12 = vld [vmem:[%s20872_s1 + $0x88] sm:$0xff]  ;;  %v14047_v14 = vld [vmem:[%s20872_s1 + $0x80] sm:$0xff]  ;;  %v10161_v18 = vld [vmem:[%s20873_s0 + $0x70] sm:$0xf] }
   0x6   :  { %404 = vmatpush.bf16.msra.mxu0 %v14053_v2  ;;  %14828 = vmatpush.bf16.msra.mxu2 %v14053_v2  ;;  %v14056_v13 = vld [vmem:[%s20872_s1 + $0xc8] sm:$0xff]  ;;  %v14055_v15 = vld [vmem:[%s20872_s1 + $0xc0] sm:$0xff]  ;;  %v14022_v19 = vld [vmem:[%s20873_s0 + $0x74] sm:$0xf0] }
   0x7   :  { %463 = vmatpush.bf16.msra.mxu1 %v14061_v3  ;;  %14836 = vmatpush.bf16.msra.mxu3 %v14061_v3  ;;  %v10121_v16 = vld [vmem:[%s20873_s0 + $0x20] sm:$0xf]  ;;  %v14012_v17 = vld [vmem:[%s20873_s0 + $0x24] sm:$0xf0]  ;;  %v14011_v20 = vld [vmem:[%s20873_s0 + $0x24] sm:$0xf]  ;;  %v14952_v27 = vor.u32 %v14022_v19, %v10161_v18 }
   0x8   :  { %v10123_v21 = vld [vmem:[%s20873_s0 + $0x28] sm:$0xf0]  ;;  %v14021_v22 = vld [vmem:[%s20873_s0 + $0x74] sm:$0xf]  ;;  %v10163_v23 = vld [vmem:[%s20873_s0 + $0x78] sm:$0xf0]  ;;  %v14950_v26 = vor.u32 %v14012_v17, %v10121_v16 }
   0x9   :  { %v14034_v24 = vld [vmem:[%s20872_s1 + $0x38] sm:$0xff]  ;;  %v14954_v28 = vor.u32 %v14011_v20, %v10123_v21  ;;  %v14956_v29 = vor.u32 %v14021_v22, %v10163_v23  ;;  %v14033_v32 = vld [vmem:[%s20872_s1 + $0x30] sm:$0xff]  ;;  %v14032_v36 = vld [vmem:[%s20872_s1 + $0x28] sm:$0xff] }
   0xa   :  { %405 = vmatpush.bf16.msra.mxu0 %v14052_v4  ;;  %14829 = vmatpush.bf16.msra.mxu2 %v14052_v4  ;;  %v14042_v25 = vld [vmem:[%s20872_s1 + $0x78] sm:$0xff]  ;;  %v14041_v33 = vld [vmem:[%s20872_s1 + $0x70] sm:$0xff]  ;;  %v14040_v37 = vld [vmem:[%s20872_s1 + $0x68] sm:$0xff] }
   0xb   :  { %464 = vmatpush.bf16.msra.mxu1 %v14060_v5  ;;  %14837 = vmatpush.bf16.msra.mxu3 %v14060_v5  ;;  %v14090_v30 = vld [vmem:[%s20872_s1 + $0x138] sm:$0xff]  ;;  %v14089_v34 = vld [vmem:[%s20872_s1 + $0x130] sm:$0xff]  ;;  %v14088_v38 = vld [vmem:[%s20872_s1 + $0x128] sm:$0xff] }
   0xc   :  { %v14098_v31 = vld [vmem:[%s20872_s1 + $0x178] sm:$0xff]  ;;  %v14097_v35 = vld [vmem:[%s20872_s1 + $0x170] sm:$0xff]  ;;  %v14096_v39 = vld [vmem:[%s20872_s1 + $0x168] sm:$0xff] }
   0xd   :  { %v10129_v40 = vld [vmem:[%s20873_s0 + $0x30] sm:$0xf]  ;;  %v14031_v41 = vld [vmem:[%s20872_s1 + $0x20] sm:$0xff]  ;;  %v14014_v43 = vld [vmem:[%s20873_s0 + $0x34] sm:$0xf0] }
   0xe   :  { %406 = vmatpush.bf16.msra.mxu0 %v14051_v6  ;;  %14830 = vmatpush.bf16.msra.mxu2 %v14051_v6  ;;  %v14039_v42 = vld [vmem:[%s20872_s1 + $0x60] sm:$0xff]  ;;  %v14024_v45 = vld [vmem:[%s20873_s0 + $0x84] sm:$0xf0]  ;;  %v14013_v46 = vld [vmem:[%s20873_s0 + $0x34] sm:$0xf]  ;;  %v15034_v54 = vor.u32 %v14014_v43, %v10129_v40 }
   0xf   :  { %465 = vmatpush.bf16.msra.mxu1 %v14059_v7  ;;  %14838 = vmatpush.bf16.msra.mxu3 %v14059_v7  ;;  %v10169_v44 = vld [vmem:[%s20873_s0 + $0x80] sm:$0xf]  ;;  %v10131_v47 = vld [vmem:[%s20873_s0 + $0x38] sm:$0xf0]  ;;  %v14023_v48 = vld [vmem:[%s20873_s0 + $0x84] sm:$0xf] }
  0x10   :  { %v10171_v49 = vld [vmem:[%s20873_s0 + $0x88] sm:$0xf0]  ;;  %v14087_v50 = vld [vmem:[%s20872_s1 + $0x120] sm:$0xff]  ;;  %v14030_v52 = vld [vmem:[%s20872_s1 + $0x18] sm:$0xff]  ;;  %v15036_v55 = vor.u32 %v14024_v45, %v10169_v44  ;;  %v15038_v56 = vor.u32 %v14013_v46, %v10131_v47 }
  0x11   :  { %v14095_v51 = vld [vmem:[%s20872_s1 + $0x160] sm:$0xff]  ;;  %v14038_v53 = vld [vmem:[%s20872_s1 + $0x58] sm:$0xff]  ;;  %v15040_v57 = vor.u32 %v14023_v48, %v10171_v49  ;;  %v14029_v60 = vld [vmem:[%s20872_s1 + $0x10] sm:$0xff] }
  0x12   :  { %407 = vmatpush.bf16.msra.mxu0 %v14050_v8  ;;  %14831 = vmatpush.bf16.msra.mxu2 %v14050_v8  ;;  %v14086_v58 = vld [vmem:[%s20872_s1 + $0x118] sm:$0xff]  ;;  %v14037_v61 = vld [vmem:[%s20872_s1 + $0x50] sm:$0xff]  ;;  %v14028_v0 = vld [vmem:[%s20872_s1 + $0x8] sm:$0xff] }
  0x13   :  { %466 = vmatpush.bf16.msra.mxu1 %v14058_v9  ;;  %14839 = vmatpush.bf16.msra.mxu3 %v14058_v9  ;;  %v14094_v59 = vld [vmem:[%s20872_s1 + $0x158] sm:$0xff]  ;;  %v14085_v62 = vld [vmem:[%s20872_s1 + $0x110] sm:$0xff]  ;;  %v14036_v1 = vld [vmem:[%s20872_s1 + $0x48] sm:$0xff] }
  0x14   :  { %v14093_v63 = vld [vmem:[%s20872_s1 + $0x150] sm:$0xff]  ;;  %v10137_v2 = vld [vmem:[%s20873_s0 + $0x40] sm:$0xf]  ;;  %v14016_v3 = vld [vmem:[%s20873_s0 + $0x44] sm:$0xf0] }
  0x15   :  { %v10177_v4 = vld [vmem:[%s20873_s0 + $0x90] sm:$0xf]  ;;  %v14026_v5 = vld [vmem:[%s20873_s0 + $0x94] sm:$0xf0]  ;;  %v14015_v6 = vld [vmem:[%s20873_s0 + $0x44] sm:$0xf] }
  0x16   :  { %408 = vmatpush.bf16.msra.mxu0 %v14049_v10  ;;  %14832 = vmatpush.bf16.msra.mxu2 %v14049_v10  ;;  %v10139_v7 = vld [vmem:[%s20873_s0 + $0x48] sm:$0xf0]  ;;  %v14025_v8 = vld [vmem:[%s20873_s0 + $0x94] sm:$0xf]  ;;  %v10179_v9 = vld [vmem:[%s20873_s0 + $0x98] sm:$0xf0]  ;;  %v15094_v10 = vor.u32 %v14016_v3, %v10137_v2 }
  0x17   :  { %467 = vmatpush.bf16.msra.mxu1 %v14057_v11  ;;  %14840 = vmatpush.bf16.msra.mxu3 %v14057_v11  ;;  %v15096_v11 = vor.u32 %v14026_v5, %v10177_v4  ;;  %v14027_v16 = vld [vmem:[%s20872_s1] sm:$0xff]  ;;  %v10145_v20 = vld [vmem:[%s20873_s0 + $0x50] sm:$0xf]  ;;  %v14018_v21 = vld [vmem:[%s20873_s0 + $0x54] sm:$0xf0] }
  0x18   :  { %v14035_v17 = vld [vmem:[%s20872_s1 + $0x40] sm:$0xff]  ;;  %v14044_v23 = vld [vmem:[%s20873_s0 + $0xa4] sm:$0xf0]  ;;  %v14046_v43 = vld [vmem:[%s20873_s0 + $0xb4] sm:$0xf0] }
  0x19   :  { %v14083_v18 = vld [vmem:[%s20872_s1 + $0x100] sm:$0xff]  ;;  %v10155_v45 = vld [vmem:[%s20873_s0 + $0x68] sm:$0xf0]  ;;  %v14045_v46 = vld [vmem:[%s20873_s0 + $0xb4] sm:$0xf] }
  0x1a   :  { %409 = vmatpush.bf16.msra.mxu0 %v14048_v12  ;;  %14833 = vmatpush.bf16.msra.mxu2 %v14048_v12  ;;  %v15098_v12 = vor.u32 %v14015_v6, %v10139_v7  ;;  %v14091_v19 = vld [vmem:[%s20872_s1 + $0x140] sm:$0xff]  ;;  %v10195_v47 = vld [vmem:[%s20873_s0 + $0xb8] sm:$0xf0]  ;;  %v10379_v3 = vld [vmem:[%s20873_s0 + $0x48] sm:$0xf0] }
  0x1b   :  { %468 = vmatpush.bf16.msra.mxu1 %v14056_v13  ;;  %14841 = vmatpush.bf16.msra.mxu3 %v14056_v13  ;;  %v15100_v13 = vor.u32 %v14025_v8, %v10179_v9  ;;  %v10185_v22 = vld [vmem:[%s20873_s0 + $0xa0] sm:$0xf]  ;;  %v14019_v44 = vld [vmem:[%s20873_s0 + $0x64] sm:$0xf]  ;;  %v14124_v8 = vld [vmem:[%s20872_s1 + $0x1a8] sm:$0xff] }
  0x1c   :  { %v10153_v40 = vld [vmem:[%s20873_s0 + $0x60] sm:$0xf]  ;;  %v14063_v2 = vld [vmem:[%s20873_s0 + $0x44] sm:$0xf]  ;;  %v14132_v9 = vld [vmem:[%s20872_s1 + $0x1e8] sm:$0xff] }
  0x1d   :  { %v10382_v7 = vor.u32 %v14063_v2, %v10379_v3  ;;  %v14072_v2 = vld [vmem:[%s20873_s0 + $0x84] sm:$0xf0]  ;;  %v14071_v3 = vld [vmem:[%s20873_s0 + $0x84] sm:$0xf] }
  0x1e   :  { %410 = vmatpush.bf16.msra.mxu0 %v14047_v14  ;;  %14834 = vmatpush.bf16.msra.mxu2 %v14047_v14  ;;  %v14084_v14 = vld [vmem:[%s20872_s1 + $0x108] sm:$0xff] }
  0x1f   :  { %469 = vmatpush.bf16.msra.mxu1 %v14055_v15  ;;  %14842 = vmatpush.bf16.msra.mxu3 %v14055_v15  ;;  %v14092_v15 = vld [vmem:[%s20872_s1 + $0x148] sm:$0xff] }
  0x21   :  { %411 = vmatmul.bf16.vlgmr.msra.gmra.mxu0 %v14950_v26  ;;  %436 = vmatmul.bf16.vlgmr.msra.gmra.mxu2 %v14952_v27 }
  0x22   :  { %637 = vmatpush.bf16.msrb.mxu2 %v14034_v24  ;;  %470 = vmatmul.bf16.vlgmr.msra.gmra.mxu1 %v14954_v28  ;;  %v14017_v24 = vld [vmem:[%s20873_s0 + $0x54] sm:$0xf] }
  0x23   :  { %696 = vmatpush.bf16.msrb.mxu3 %v14042_v25  ;;  %1004 = vmatpush.bf16.msrb.mxu0 %v14090_v30  ;;  %v10147_v25 = vld [vmem:[%s20873_s0 + $0x58] sm:$0xf0]  ;;  %v14043_v30 = vld [vmem:[%s20873_s0 + $0xa4] sm:$0xf] }
  0x24   :  { %495 = vmatmul.bf16.vlgmr.msra.gmra.mxu3 %v14956_v29  ;;  %1063 = vmatpush.bf16.msrb.mxu1 %v14098_v31  ;;  %v10187_v31 = vld [vmem:[%s20873_s0 + $0xa8] sm:$0xf0] }
  0x26   :  { %638 = vmatpush.bf16.msrb.mxu2 %v14033_v32  ;;  %v15148_v32 = vor.u32 %v14018_v21, %v10145_v20  ;;  %v14065_v20 = vld [vmem:[%s20873_s0 + $0x54] sm:$0xf]  ;;  %v10387_v21 = vld [vmem:[%s20873_s0 + $0x58] sm:$0xf0] }
  0x27   :  { %697 = vmatpush.bf16.msrb.mxu3 %v14041_v33  ;;  %1005 = vmatpush.bf16.msrb.mxu0 %v14089_v34  ;;  %v10186_v33 = vor.u32 %v14044_v23, %v10185_v22  ;;  %v15150_v34 = vor.u32 %v14017_v24, %v10147_v25  ;;  %v10390_v25 = vor.u32 %v14065_v20, %v10387_v21  ;;  %v14121_v21 = vld [vmem:[%s20872_s1 + $0x190] sm:$0xff] }
  0x28   :  { %1064 = vmatpush.bf16.msrb.mxu1 %v14097_v35  ;;  %v10190_v35 = vor.u32 %v14043_v30, %v10187_v31  ;;  %v14160_v30 = vld [vmem:[%s20872_s1 + $0x228] sm:$0xff] }
  0x29   :  { %v14168_v31 = vld [vmem:[%s20872_s1 + $0x268] sm:$0xff] }
  0x2a   :  { %639 = vmatpush.bf16.msrb.mxu2 %v14032_v36  ;;  %v14126_v36 = vld [vmem:[%s20872_s1 + $0x1b8] sm:$0xff] }
  0x2b   :  { %698 = vmatpush.bf16.msrb.mxu3 %v14040_v37  ;;  %1006 = vmatpush.bf16.msrb.mxu0 %v14088_v38  ;;  %v14134_v37 = vld [vmem:[%s20872_s1 + $0x1f8] sm:$0xff] }
  0x2c   :  { %1065 = vmatpush.bf16.msrb.mxu1 %v14096_v39  ;;  %v14162_v38 = vld [vmem:[%s20872_s1 + $0x238] sm:$0xff] }
  0x2d   :  { %v14170_v39 = vld [vmem:[%s20872_s1 + $0x278] sm:$0xff] }
  0x2e   :  { %640 = vmatpush.bf16.msrb.mxu2 %v14031_v41  ;;  %v14020_v41 = vld [vmem:[%s20873_s0 + $0x64] sm:$0xf0] }
  0x2f   :  { %699 = vmatpush.bf16.msrb.mxu3 %v14039_v42  ;;  %1007 = vmatpush.bf16.msrb.mxu0 %v14087_v50  ;;  %v10193_v42 = vld [vmem:[%s20873_s0 + $0xb0] sm:$0xf]  ;;  %v15190_v48 = vor.u32 %v14020_v41, %v10153_v40  ;;  %v15192_v50 = vor.u32 %v14019_v44, %v10155_v45  ;;  %v14123_v40 = vld [vmem:[%s20872_s1 + $0x1a0] sm:$0xff]  ;;  %v10403_v45 = vld [vmem:[%s20873_s0 + $0x78] sm:$0xf0] }
  0x30   :  { %1066 = vmatpush.bf16.msrb.mxu1 %v14095_v51  ;;  %v10194_v49 = vor.u32 %v14046_v43, %v10193_v42  ;;  %v10198_v51 = vor.u32 %v14045_v46, %v10195_v47  ;;  %v14131_v41 = vld [vmem:[%s20872_s1 + $0x1e0] sm:$0xff]  ;;  %v10401_v44 = vld [vmem:[%s20873_s0 + $0x70] sm:$0xf] }
  0x31   :  { %416 = vmatmul.bf16.gmra.mxu0 %v15034_v54  ;;  %441 = vmatmul.bf16.gmra.mxu2 %v15036_v55  ;;  %v14159_v42 = vld [vmem:[%s20872_s1 + $0x220] sm:$0xff] }
  0x32   :  { %641 = vmatpush.bf16.msrb.mxu2 %v14030_v52  ;;  %475 = vmatmul.bf16.gmra.mxu1 %v15038_v56  ;;  %v14125_v52 = vld [vmem:[%s20872_s1 + $0x1b0] sm:$0xff]  ;;  %v14167_v43 = vld [vmem:[%s20872_s1 + $0x260] sm:$0xff] }
  0x33   :  { %700 = vmatpush.bf16.msrb.mxu3 %v14038_v53  ;;  %1008 = vmatpush.bf16.msrb.mxu0 %v14086_v58  ;;  %v14133_v53 = vld [vmem:[%s20872_s1 + $0x1f0] sm:$0xff] }
  0x34   :  { %500 = vmatmul.bf16.gmra.mxu3 %v15040_v57  ;;  %1067 = vmatpush.bf16.msrb.mxu1 %v14094_v59  ;;  %v14161_v58 = vld [vmem:[%s20872_s1 + $0x230] sm:$0xff] }
  0x35   :  { %v14169_v59 = vld [vmem:[%s20872_s1 + $0x270] sm:$0xff] }
  0x36   :  { %642 = vmatpush.bf16.msrb.mxu2 %v14029_v60  ;;  %v10265_v60 = vld [vmem:[%s20873_s0] sm:$0xf] }
  0x37   :  { %701 = vmatpush.bf16.msrb.mxu3 %v14037_v61  ;;  %1009 = vmatpush.bf16.msrb.mxu0 %v14085_v62  ;;  %v14008_v61 = vld [vmem:[%s20873_s0 + $0x4] sm:$0xf0]  ;;  %v14007_v62 = vld [vmem:[%s20873_s0 + $0x4] sm:$0xf] }
  0x38   :  { %1068 = vmatpush.bf16.msrb.mxu1 %v14093_v63  ;;  %v10377_v63 = vld [vmem:[%s20873_s0 + $0x40] sm:$0xf]  ;;  %v10266_v4 = vor.u32 %v14008_v61, %v10265_v60 }
  0x3a   :  { %643 = vmatpush.bf16.msrb.mxu2 %v14028_v0  ;;  %v14064_v0 = vld [vmem:[%s20873_s0 + $0x44] sm:$0xf0] }
  0x3b   :  { %702 = vmatpush.bf16.msrb.mxu3 %v14036_v1  ;;  %1010 = vmatpush.bf16.msrb.mxu0 %v14084_v14  ;;  %v10267_v1 = vld [vmem:[%s20873_s0 + $0x8] sm:$0xf0]  ;;  %v10378_v5 = vor.u32 %v14064_v0, %v10377_v63  ;;  %v10273_v14 = vld [vmem:[%s20873_s0 + $0x10] sm:$0xf]  ;;  %v14166_v0 = vld [vmem:[%s20872_s1 + $0x258] sm:$0xff] }
  0x3c   :  { %1069 = vmatpush.bf16.msrb.mxu1 %v14092_v15  ;;  %v10270_v6 = vor.u32 %v14007_v62, %v10267_v1  ;;  %v14010_v15 = vld [vmem:[%s20873_s0 + $0x14] sm:$0xf0]  ;;  %v10409_v1 = vld [vmem:[%s20873_s0 + $0x80] sm:$0xf] }
  0x3d   :  { %v10274_v22 = vor.u32 %v14010_v15, %v10273_v14 }
  0x3e   :  { %644 = vmatpush.bf16.msrb.mxu2 %v14027_v16  ;;  %v14009_v16 = vld [vmem:[%s20873_s0 + $0x14] sm:$0xf] }
  0x3f   :  { %703 = vmatpush.bf16.msrb.mxu3 %v14035_v17  ;;  %1011 = vmatpush.bf16.msrb.mxu0 %v14083_v18  ;;  %v10385_v17 = vld [vmem:[%s20873_s0 + $0x50] sm:$0xf]  ;;  %v14066_v18 = vld [vmem:[%s20873_s0 + $0x54] sm:$0xf0] }
  0x40   :  { %1070 = vmatpush.bf16.msrb.mxu1 %v14091_v19  ;;  %v10275_v19 = vld [vmem:[%s20873_s0 + $0x18] sm:$0xf0]  ;;  %v10386_v23 = vor.u32 %v14066_v18, %v10385_v17 }
  0x41   :  { %421 = vmatmul.bf16.gmra.mxu0 %v15094_v10  ;;  %446 = vmatmul.bf16.gmra.mxu2 %v15096_v11  ;;  %v10278_v24 = vor.u32 %v14009_v16, %v10275_v19 }
  0x42   :  { %480 = vmatmul.bf16.gmra.mxu1 %v15098_v12  ;;  %1391 = vmatpush.bf16.msra.mxu2 %v14126_v36  ;;  %v14067_v36 = vld [vmem:[%s20873_s0 + $0x64] sm:$0xf] }
  0x43   :  { %1450 = vmatpush.bf16.msra.mxu3 %v14134_v37  ;;  %1778 = vmatpush.bf16.msra.mxu0 %v14162_v38  ;;  %v10395_v37 = vld [vmem:[%s20873_s0 + $0x68] sm:$0xf0] }
  0x44   :  { %505 = vmatmul.bf16.gmra.mxu3 %v15100_v13  ;;  %1837 = vmatpush.bf16.msra.mxu1 %v14170_v39  ;;  %v10398_v39 = vor.u32 %v14067_v36, %v10395_v37 }
  0x46   :  { %1392 = vmatpush.bf16.msra.mxu2 %v14125_v52 }
  0x47   :  { %1451 = vmatpush.bf16.msra.mxu3 %v14133_v53  ;;  %1779 = vmatpush.bf16.msra.mxu0 %v14161_v58  ;;  %v14122_v53 = vld [vmem:[%s20872_s1 + $0x198] sm:$0xff] }
  0x48   :  { %1838 = vmatpush.bf16.msra.mxu1 %v14169_v59  ;;  %v14130_v58 = vld [vmem:[%s20872_s1 + $0x1d8] sm:$0xff] }
  0x4a   :  { %1393 = vmatpush.bf16.msra.mxu2 %v14124_v8 }
  0x4b   :  { %1452 = vmatpush.bf16.msra.mxu3 %v14132_v9  ;;  %1780 = vmatpush.bf16.msra.mxu0 %v14160_v30  ;;  %v10419_v30 = vld [vmem:[%s20873_s0 + $0x98] sm:$0xf0] }
  0x4c   :  { %1839 = vmatpush.bf16.msra.mxu1 %v14168_v31 }
  0x4e   :  { %1394 = vmatpush.bf16.msra.mxu2 %v14123_v40  ;;  %v14165_v40 = vld [vmem:[%s20872_s1 + $0x250] sm:$0xff] }
  0x4f   :  { %1453 = vmatpush.bf16.msra.mxu3 %v14131_v41  ;;  %1781 = vmatpush.bf16.msra.mxu0 %v14159_v42 }
  0x50   :  { %1840 = vmatpush.bf16.msra.mxu1 %v14167_v43 }
  0x51   :  { %426 = vmatmul.bf16.gmra.mxu0 %v15148_v32  ;;  %451 = vmatmul.bf16.gmra.mxu2 %v10186_v33  ;;  %v10393_v33 = vld [vmem:[%s20873_s0 + $0x60] sm:$0xf] }
  0x52   :  { %485 = vmatmul.bf16.gmra.mxu1 %v15150_v34  ;;  %1395 = vmatpush.bf16.msra.mxu2 %v14122_v53  ;;  %v10427_v53 = vld [vmem:[%s20873_s0 + $0xa8] sm:$0xf0] }
  0x53   :  { %1454 = vmatpush.bf16.msra.mxu3 %v14130_v58 }
  0x54   :  { %510 = vmatmul.bf16.gmra.mxu3 %v10190_v35  ;;  %v14068_v35 = vld [vmem:[%s20873_s0 + $0x64] sm:$0xf0]  ;;  %1841 = vmatpush.bf16.msra.mxu1 %v14166_v0 }
  0x55   :  { %v10394_v38 = vor.u32 %v14068_v35, %v10393_v33 }
  0x56   :  { %1396 = vmatpush.bf16.msra.mxu2 %v14121_v21 }
  0x58   :  { %1842 = vmatpush.bf16.msra.mxu1 %v14165_v40  ;;  %v14155_v40 = vld [vmem:[%s20872_s1 + $0x200] sm:$0xff] }
  0x61   :  { %431 = vmatmul.bf16.gmra.mxu0 %v15190_v48  ;;  %456 = vmatmul.bf16.gmra.mxu2 %v10194_v49 }
  0x62   :  { %490 = vmatmul.bf16.gmra.mxu1 %v15192_v50 }
  0x64   :  { %515 = vmatmul.bf16.gmra.mxu3 %v10198_v51 }
  0x71   :  { %645 = vmatmul.bf16.vlgmr.msrb.gmra.mxu2 %v10266_v4  ;;  %1012 = vmatmul.bf16.vlgmr.msrb.gmra.mxu0 %v10378_v5  ;;  %v10411_v4 = vld [vmem:[%s20873_s0 + $0x88] sm:$0xf0] }
  0x72   :  { %1071 = vmatmul.bf16.vlgmr.msrb.gmra.mxu1 %v10382_v7  ;;  %v10410_v7 = vor.u32 %v14072_v2, %v10409_v1  ;;  %v10414_v14 = vor.u32 %v14071_v3, %v10411_v4  ;;  %v14156_v2 = vld [vmem:[%s20872_s1 + $0x208] sm:$0xff] }
  0x73   :  { %v14164_v3 = vld [vmem:[%s20872_s1 + $0x248] sm:$0xff] }
  0x74   :  { %704 = vmatmul.bf16.vlgmr.msrb.gmra.mxu3 %v10270_v6  ;;  %1843 = vmatpush.bf16.msra.mxu1 %v14164_v3 }
  0x81   :  { %650 = vmatmul.bf16.gmra.mxu2 %v10274_v22  ;;  %1017 = vmatmul.bf16.gmra.mxu0 %v10386_v23  ;;  %v14129_v22 = vld [vmem:[%s20872_s1 + $0x1d0] sm:$0xff] }
  0x82   :  { %1076 = vmatmul.bf16.gmra.mxu1 %v10390_v25  ;;  %1455 = vmatpush.bf16.msra.mxu3 %v14129_v22  ;;  %v14073_v25 = vld [vmem:[%s20873_s0 + $0x94] sm:$0xf] }
  0x84   :  { %709 = vmatmul.bf16.gmra.mxu3 %v10278_v24 }
  0x91   :  { %655 = vmatmul.bf16.gmra.mxu2 %v14950_v26  ;;  %1022 = vmatmul.bf16.gmra.mxu0 %v10394_v38  ;;  %v14070_v26 = vld [vmem:[%s20873_s0 + $0x74] sm:$0xf0]  ;;  %v10422_v38 = vor.u32 %v14073_v25, %v10419_v30  ;;  %v14119_v30 = vld [vmem:[%s20872_s1 + $0x180] sm:$0xff] }
  0x92   :  { %1081 = vmatmul.bf16.gmra.mxu1 %v10398_v39  ;;  %v10402_v46 = vor.u32 %v14070_v26, %v10401_v44  ;;  %v14157_v39 = vld [vmem:[%s20872_s1 + $0x210] sm:$0xff] }
  0x94   :  { %714 = vmatmul.bf16.gmra.mxu3 %v14954_v28  ;;  %v14069_v28 = vld [vmem:[%s20873_s0 + $0x74] sm:$0xf] }
  0x95   :  { %v10406_v49 = vor.u32 %v14069_v28, %v10403_v45 }
  0x9e   :  { %v412_v47 = vpop.f32.mrf.mxu0 }
  0x9f   :  { %v471_v51 = vpop.f32.mrf.mxu1 }
  0xa0   :  { %v15306_v52 = vadd.f32 %v471_v51, %v412_v47  ;;  %v14120_v47 = vld [vmem:[%s20872_s1 + $0x188] sm:$0xff]  ;;  %v14075_v51 = vld [vmem:[%s20873_s0 + $0xa4] sm:$0xf] }
  0xa1   :  { %660 = vmatmul.bf16.gmra.mxu2 %v15034_v54  ;;  %1027 = vmatmul.bf16.gmra.mxu0 %v10402_v46 }
  0xa2   :  { %1086 = vmatmul.bf16.gmra.mxu1 %v10406_v49  ;;  %v14076_v49 = vld [vmem:[%s20873_s0 + $0xa4] sm:$0xf0]  ;;  %1397 = vmatpush.bf16.msra.mxu2 %v14120_v47 }
  0xa4   :  { %719 = vmatmul.bf16.gmra.mxu3 %v15038_v56  ;;  %v437_v59 = vpop.f32.mrf.mxu2  ;;  %v14158_v56 = vld [vmem:[%s20872_s1 + $0x218] sm:$0xff] }
  0xa5   :  { %1782 = vmatpush.bf16.msra.mxu0 %v14158_v56  ;;  %v10430_v56 = vor.u32 %v14075_v51, %v10427_v53 }
  0xa6   :  { %v414_v62 = vpop.f32.mrf.mxu0  ;;  %1398 = vmatpush.bf16.msra.mxu2 %v14119_v30 }
  0xa7   :  { %v496_v60 = vpop.f32.mrf.mxu3  ;;  %v473_v54 = vpop.f32.mrf.mxu1 }
  0xa8   :  { %v15316_v61 = vadd.f32 %v496_v60, %v437_v59  ;;  %v15318_v63 = vadd.f32 %v473_v54, %v414_v62 }
  0xa9   :  { %1783 = vmatpush.bf16.msra.mxu0 %v14157_v39 }
  0xac   :  { %v439_v5 = vpop.f32.mrf.mxu2 }
  0xad   :  { %1784 = vmatpush.bf16.msra.mxu0 %v14156_v2 }
  0xae   :  { %v417_v9 = vpop.f32.mrf.mxu0 }
  0xaf   :  { %v498_v6 = vpop.f32.mrf.mxu3  ;;  %v476_v15 = vpop.f32.mrf.mxu1 }
  0xb0   :  { %v15338_v8 = vadd.f32 %v498_v6, %v439_v5  ;;  %v15340_v16 = vadd.f32 %v476_v15, %v417_v9  ;;  %v14077_v15 = vld [vmem:[%s20873_s0 + $0xb4] sm:$0xf] }
  0xb1   :  { %665 = vmatmul.bf16.gmra.mxu2 %v15094_v10  ;;  %1032 = vmatmul.bf16.gmra.mxu0 %v10410_v7  ;;  %v10417_v10 = vld [vmem:[%s20873_s0 + $0x90] sm:$0xf] }
  0xb2   :  { %1091 = vmatmul.bf16.gmra.mxu1 %v10414_v14  ;;  %v14078_v14 = vld [vmem:[%s20873_s0 + $0xb4] sm:$0xf0]  ;;  %1785 = vmatpush.bf16.msra.mxu0 %v14155_v40 }
  0xb4   :  { %724 = vmatmul.bf16.gmra.mxu3 %v15098_v12  ;;  %v442_v17 = vpop.f32.mrf.mxu2  ;;  %v14074_v12 = vld [vmem:[%s20873_s0 + $0x94] sm:$0xf0] }
  0xb5   :  { %v10418_v35 = vor.u32 %v14074_v12, %v10417_v10 }
  0xb6   :  { %v419_v20 = vpop.f32.mrf.mxu0 }
  0xb7   :  { %v501_v18 = vpop.f32.mrf.mxu3  ;;  %v478_v23 = vpop.f32.mrf.mxu1 }
  0xb8   :  { %v15344_v19 = vadd.f32 %v501_v18, %v442_v17  ;;  %v15352_v24 = vadd.f32 %v478_v23, %v419_v20  ;;  %v10435_v17 = vld [vmem:[%s20873_s0 + $0xb8] sm:$0xf0] }
  0xb9   :  { %v10438_v10 = vor.u32 %v14077_v15, %v10435_v17 }
  0xbc   :  { %v444_v31 = vpop.f32.mrf.mxu2 }
  0xbe   :  { %v422_v37 = vpop.f32.mrf.mxu0 }
  0xbf   :  { %v503_v33 = vpop.f32.mrf.mxu3  ;;  %v481_v41 = vpop.f32.mrf.mxu1 }
  0xc0   :  { %v15366_v36 = vadd.f32 %v503_v33, %v444_v31  ;;  %v15374_v42 = vadd.f32 %v481_v41, %v422_v37  ;;  %v14127_v31 = vld [vmem:[%s20872_s1 + $0x1c0] sm:$0xff] }
  0xc1   :  { %670 = vmatmul.bf16.gmra.mxu2 %v15148_v32  ;;  %1037 = vmatmul.bf16.gmra.mxu0 %v10418_v35  ;;  %v14128_v32 = vld [vmem:[%s20872_s1 + $0x1c8] sm:$0xff]  ;;  %v14163_v41 = vld [vmem:[%s20872_s1 + $0x240] sm:$0xff] }
  0xc2   :  { %1096 = vmatmul.bf16.gmra.mxu1 %v10422_v38  ;;  %1456 = vmatpush.bf16.msra.mxu3 %v14128_v32 }
  0xc3   :  { %1844 = vmatpush.bf16.msra.mxu1 %v14163_v41 }
  0xc4   :  { %729 = vmatmul.bf16.gmra.mxu3 %v15150_v34  ;;  %v447_v43 = vpop.f32.mrf.mxu2  ;;  %v10425_v34 = vld [vmem:[%s20873_s0 + $0xa0] sm:$0xf] }
  0xc5   :  { %v10426_v60 = vor.u32 %v14076_v49, %v10425_v34 }
  0xc6   :  { %v424_v28 = vpop.f32.mrf.mxu0  ;;  %1457 = vmatpush.bf16.msra.mxu3 %v14127_v31 }
  0xc7   :  { %v506_v44 = vpop.f32.mrf.mxu3  ;;  %v483_v45 = vpop.f32.mrf.mxu1 }
  0xc8   :  { %v15378_v26 = vadd.f32 %v506_v44, %v447_v43  ;;  %v15380_v46 = vadd.f32 %v483_v45, %v424_v28  ;;  %v14080_v43 = vld [vmem:[%s20873_s0 + $0xc4] sm:$0xf0]  ;;  %v14079_v44 = vld [vmem:[%s20873_s0 + $0xc4] sm:$0xf]  ;;  %v10443_v28 = vld [vmem:[%s20873_s0 + $0xc8] sm:$0xf0] }
  0xc9   :  { %v10446_v51 = vor.u32 %v14079_v44, %v10443_v28  ;;  %v14099_v44 = vld [vmem:[%s20873_s0 + $0x64] sm:$0xf]  ;;  %v10729_v28 = vld [vmem:[%s20873_s0 + $0x80] sm:$0xf] }
  0xcc   :  { %v449_v58 = vpop.f32.mrf.mxu2 }
  0xce   :  { %v427_v54 = vpop.f32.mrf.mxu0 }
  0xcf   :  { %v508_v59 = vpop.f32.mrf.mxu3  ;;  %v486_v0 = vpop.f32.mrf.mxu1 }
  0xd0   :  { %v15400_v62 = vadd.f32 %v508_v59, %v449_v58  ;;  %v15402_v1 = vadd.f32 %v486_v0, %v427_v54  ;;  %v14218_v59 = vld [vmem:[%s20872_s1 + $0xb8] sm:$0xff] }
  0xd1   :  { %675 = vmatmul.bf16.gmra.mxu2 %v15190_v48  ;;  %1042 = vmatmul.bf16.gmra.mxu0 %v10426_v60  ;;  %v14226_v60 = vld [vmem:[%s20872_s1 + $0xf8] sm:$0xff] }
  0xd2   :  { %1101 = vmatmul.bf16.gmra.mxu1 %v10430_v56  ;;  %2312 = vmatpush.bf16.msrb.mxu2 %v14218_v59 }
  0xd3   :  { %2371 = vmatpush.bf16.msrb.mxu3 %v14226_v60 }
  0xd4   :  { %734 = vmatmul.bf16.gmra.mxu3 %v15192_v50  ;;  %v452_v4 = vpop.f32.mrf.mxu2  ;;  %v10433_v50 = vld [vmem:[%s20873_s0 + $0xb0] sm:$0xf] }
  0xd5   :  { %v10434_v21 = vor.u32 %v14078_v14, %v10433_v50  ;;  %v14081_v50 = vld [vmem:[%s20873_s0 + $0xd4] sm:$0xf]  ;;  %v10451_v14 = vld [vmem:[%s20873_s0 + $0xd8] sm:$0xf0] }
  0xd6   :  { %v429_v7 = vpop.f32.mrf.mxu0 }
  0xd7   :  { %v511_v5 = vpop.f32.mrf.mxu3  ;;  %v488_v48 = vpop.f32.mrf.mxu1 }
  0xd8   :  { %v15412_v6 = vadd.f32 %v511_v5, %v452_v4  ;;  %v15414_v9 = vadd.f32 %v488_v48, %v429_v7  ;;  %v14198_v5 = vld [vmem:[%s20872_s1 + $0x38] sm:$0xff]  ;;  %v10449_v48 = vld [vmem:[%s20873_s0 + $0xd0] sm:$0xf] }
  0xd9   :  { %v14206_v7 = vld [vmem:[%s20872_s1 + $0x78] sm:$0xff]  ;;  %2546 = vmatpush.bf16.msrb.mxu0 %v14198_v5  ;;  %v14197_v5 = vld [vmem:[%s20872_s1 + $0x30] sm:$0xff] }
  0xda   :  { %2605 = vmatpush.bf16.msrb.mxu1 %v14206_v7 }
  0xdc   :  { %v454_v18 = vpop.f32.mrf.mxu2 }
  0xdd   :  { %2547 = vmatpush.bf16.msrb.mxu0 %v14197_v5  ;;  %v10571_v5 = vld [vmem:[%s20873_s0 + $0x88] sm:$0xf0] }
  0xde   :  { %v432_v23 = vpop.f32.mrf.mxu0 }
  0xdf   :  { %v513_v20 = vpop.f32.mrf.mxu3  ;;  %v491_v12 = vpop.f32.mrf.mxu1 }
  0xe0   :  { %v15428_v22 = vadd.f32 %v513_v20, %v454_v18  ;;  %v15430_v25 = vadd.f32 %v491_v12, %v432_v23  ;;  %v10454_v23 = vor.u32 %v14081_v50, %v10451_v14 }
  0xe1   :  { %680 = vmatmul.bf16.gmra.mxu2 %v14952_v27  ;;  %1047 = vmatmul.bf16.gmra.mxu0 %v10434_v21 }
  0xe2   :  { %1106 = vmatmul.bf16.gmra.mxu1 %v10438_v10 }
  0xe4   :  { %739 = vmatmul.bf16.gmra.mxu3 %v14956_v29  ;;  %v457_v33 = vpop.f32.mrf.mxu2  ;;  %v10441_v29 = vld [vmem:[%s20873_s0 + $0xc0] sm:$0xf] }
  0xe5   :  { %v10442_v32 = vor.u32 %v14080_v43, %v10441_v29  ;;  %v10553_v29 = vld [vmem:[%s20873_s0 + $0x60] sm:$0xf] }
  0xe6   :  { %v434_v38 = vpop.f32.mrf.mxu0 }
  0xe7   :  { %v516_v35 = vpop.f32.mrf.mxu3  ;;  %v493_v27 = vpop.f32.mrf.mxu1 }
  0xe8   :  { %v15440_v37 = vadd.f32 %v516_v35, %v457_v33  ;;  %v15442_v39 = vadd.f32 %v493_v27, %v434_v38 }
  0xec   :  { %v459_v45 = vpop.f32.mrf.mxu2 }
  0xee   :  { %v1013_v49 = vpop.f32.mrf.mxu0 }
  0xef   :  { %v518_v47 = vpop.f32.mrf.mxu3  ;;  %v1072_v53 = vpop.f32.mrf.mxu1 }
  0xf0   :  { %v15462_v34 = vadd.f32 %v518_v47, %v459_v45  ;;  %v1073_v58 = vadd.f32 %v1072_v53, %v1013_v49  ;;  %v14136_v45 = vld [vmem:[%s20873_s0 + $0x84] sm:$0xf0]  ;;  %v10555_v47 = vld [vmem:[%s20873_s0 + $0x68] sm:$0xf0] }
  0xf1   :  { %685 = vmatmul.bf16.gmra.mxu2 %v15036_v55  ;;  %1052 = vmatmul.bf16.gmra.mxu0 %v10442_v32  ;;  %v14135_v32 = vld [vmem:[%s20873_s0 + $0x84] sm:$0xf]  ;;  %v10731_v49 = vld [vmem:[%s20873_s0 + $0x88] sm:$0xf0]  ;;  %v10730_v60 = vor.u32 %v14136_v45, %v10729_v28 }
  0xf2   :  { %1111 = vmatmul.bf16.gmra.mxu1 %v10446_v51 }
  0xf4   :  { %744 = vmatmul.bf16.gmra.mxu3 %v15040_v57  ;;  %v646_v54 = vpop.f32.mrf.mxu2 }
  0xf5   :  { %v647_v56 = vadd.f32 %v646_v54, %v15306_v52  ;;  %v14082_v52 = vld [vmem:[%s20873_s0 + $0xd4] sm:$0xf0] }
  0xf6   :  { %v1015_v2 = vpop.f32.mrf.mxu0  ;;  %v10450_v20 = vor.u32 %v14082_v52, %v10449_v48 }
  0xf7   :  { %v705_v0 = vpop.f32.mrf.mxu3  ;;  %v1074_v3 = vpop.f32.mrf.mxu1 }
  0xf8   :  { %v706_v55 = vadd.f32 %v705_v0, %v647_v56  ;;  %v1075_v4 = vadd.f32 %v1074_v3, %v1015_v2  ;;  %v10558_v56 = vor.u32 %v14099_v44, %v10555_v47  ;;  %v10734_v0 = vor.u32 %v14135_v32, %v10731_v49  ;;  %v14196_v32 = vld [vmem:[%s20872_s1 + $0x28] sm:$0xff] }
  0xf9   :  { %2548 = vmatpush.bf16.msrb.mxu0 %v14196_v32  ;;  %v10579_v32 = vld [vmem:[%s20873_s0 + $0x98] sm:$0xf0] }
  0xfa   :  { %v15473_v57 = vadd.f32 %v1073_v58, %v706_v55 }
  0xfc   :  { %v648_v15 = vpop.f32.mrf.mxu2 }
  0xfd   :  { %v649_v17 = vadd.f32 %v648_v15, %v15318_v63 }
  0xfe   :  { %v1018_v21 = vpop.f32.mrf.mxu0 }
  0xff   :  { %v707_v18 = vpop.f32.mrf.mxu3  ;;  %v1077_v12 = vpop.f32.mrf.mxu1 }
 0x100   :  { %v708_v10 = vadd.f32 %v707_v18, %v649_v17  ;;  %v1078_v30 = vadd.f32 %v1077_v12, %v1018_v21  ;;  %v10561_v18 = vld [vmem:[%s20873_s0 + $0x70] sm:$0xf]  ;;  %v14102_v21 = vld [vmem:[%s20873_s0 + $0x74] sm:$0xf0] }
 0x101   :  { %690 = vmatmul.bf16.gmra.mxu2 %v15096_v11  ;;  %1057 = vmatmul.bf16.gmra.mxu0 %v10450_v20  ;;  %v14100_v11 = vld [vmem:[%s20873_s0 + $0x64] sm:$0xf0]  ;;  %v10737_v12 = vld [vmem:[%s20873_s0 + $0x90] sm:$0xf] }
 0x102   :  { %v15494_v31 = vadd.f32 %v1075_v4, %v708_v10  ;;  %1116 = vmatmul.bf16.gmra.mxu1 %v10454_v23  ;;  %v10554_v59 = vor.u32 %v14100_v11, %v10553_v29  ;;  %v14216_v23 = vld [vmem:[%s20872_s1 + $0xa8] sm:$0xff]  ;;  %v14101_v10 = vld [vmem:[%s20873_s0 + $0x74] sm:$0xf] }
 0x104   :  { %749 = vmatmul.bf16.gmra.mxu3 %v15100_v13  ;;  %v651_v33 = vpop.f32.mrf.mxu2  ;;  %v14217_v13 = vld [vmem:[%s20872_s1 + $0xb0] sm:$0xff] }
 0x105   :  { %v652_v35 = vadd.f32 %v651_v33, %v15340_v16  ;;  %v14225_v16 = vld [vmem:[%s20872_s1 + $0xf0] sm:$0xff]  ;;  %2313 = vmatpush.bf16.msrb.mxu2 %v14217_v13  ;;  %v10563_v33 = vld [vmem:[%s20873_s0 + $0x78] sm:$0xf0] }
 0x106   :  { %v1020_v63 = vpop.f32.mrf.mxu0  ;;  %2372 = vmatpush.bf16.msrb.mxu3 %v14225_v16  ;;  %v10566_v13 = vor.u32 %v14101_v10, %v10563_v33 }
 0x107   :  { %v710_v38 = vpop.f32.mrf.mxu3  ;;  %v1079_v40 = vpop.f32.mrf.mxu1 }
 0x108   :  { %v711_v27 = vadd.f32 %v710_v38, %v652_v35  ;;  %v1080_v41 = vadd.f32 %v1079_v40, %v1020_v63  ;;  %v14137_v35 = vld [vmem:[%s20873_s0 + $0x94] sm:$0xf]  ;;  %v10739_v38 = vld [vmem:[%s20873_s0 + $0x98] sm:$0xf0] }
 0x109   :  { %2314 = vmatpush.bf16.msrb.mxu2 %v14216_v23  ;;  %v10742_v16 = vor.u32 %v14137_v35, %v10739_v38 }
 0x10a   :  { %v15502_v43 = vadd.f32 %v1078_v30, %v711_v27  ;;  %v14138_v30 = vld [vmem:[%s20873_s0 + $0x94] sm:$0xf0] }
 0x10b   :  { %v10738_v29 = vor.u32 %v14138_v30, %v10737_v12  ;;  %v14215_v30 = vld [vmem:[%s20872_s1 + $0xa0] sm:$0xff] }
 0x10c   :  { %v653_v51 = vpop.f32.mrf.mxu2 }
 0x10d   :  { %v654_v53 = vadd.f32 %v653_v51, %v15352_v24  ;;  %v14205_v24 = vld [vmem:[%s20872_s1 + $0x70] sm:$0xff]  ;;  %2315 = vmatpush.bf16.msrb.mxu2 %v14215_v30  ;;  %v10761_v30 = vld [vmem:[%s20873_s0 + $0xc0] sm:$0xf] }
 0x10e   :  { %v1023_v54 = vpop.f32.mrf.mxu0  ;;  %2606 = vmatpush.bf16.msrb.mxu1 %v14205_v24  ;;  %v14139_v24 = vld [vmem:[%s20873_s0 + $0xa4] sm:$0xf] }
 0x10f   :  { %v712_v58 = vpop.f32.mrf.mxu3  ;;  %v1082_v55 = vpop.f32.mrf.mxu1 }
 0x110   :  { %v713_v2 = vadd.f32 %v712_v58, %v654_v53  ;;  %v1083_v3 = vadd.f32 %v1082_v55, %v1023_v54  ;;  %v14103_v55 = vld [vmem:[%s20873_s0 + $0x84] sm:$0xf] }
 0x111   :  { %1399 = vmatmul.bf16.vlgmr.msra.gmra.mxu2 %v10554_v59  ;;  %1786 = vmatmul.bf16.vlgmr.msra.gmra.mxu0 %v10730_v60 }
 0x112   :  { %v15532_v4 = vadd.f32 %v1080_v41, %v713_v2  ;;  %1845 = vmatmul.bf16.vlgmr.msra.gmra.mxu1 %v10734_v0  ;;  %v10562_v41 = vor.u32 %v14102_v21, %v10561_v18  ;;  %v10569_v0 = vld [vmem:[%s20873_s0 + $0x80] sm:$0xf]  ;;  %v14104_v2 = vld [vmem:[%s20873_s0 + $0x84] sm:$0xf0]  ;;  %v10574_v18 = vor.u32 %v14103_v55, %v10571_v5 }
 0x114   :  { %1458 = vmatmul.bf16.vlgmr.msra.gmra.mxu3 %v10558_v56  ;;  %v656_v7 = vpop.f32.mrf.mxu2 }
 0x115   :  { %v657_v48 = vadd.f32 %v656_v7, %v15374_v42  ;;  %v14224_v42 = vld [vmem:[%s20872_s1 + $0xe8] sm:$0xff] }
 0x116   :  { %v1025_v50 = vpop.f32.mrf.mxu0  ;;  %2373 = vmatpush.bf16.msrb.mxu3 %v14224_v42  ;;  %v10747_v7 = vld [vmem:[%s20873_s0 + $0xa8] sm:$0xf0] }
 0x117   :  { %v715_v52 = vpop.f32.mrf.mxu3  ;;  %v1084_v15 = vpop.f32.mrf.mxu1  ;;  %v10750_v21 = vor.u32 %v14139_v24, %v10747_v7  ;;  %v14214_v24 = vld [vmem:[%s20872_s1 + $0x98] sm:$0xff] }
 0x118   :  { %v716_v14 = vadd.f32 %v715_v52, %v657_v48  ;;  %v1085_v17 = vadd.f32 %v1084_v15, %v1025_v50  ;;  %2316 = vmatpush.bf16.msrb.mxu2 %v14214_v24  ;;  %v10595_v24 = vld [vmem:[%s20873_s0 + $0xb8] sm:$0xf0] }
 0x11a   :  { %v15544_v20 = vadd.f32 %v1083_v3, %v716_v14  ;;  %v14140_v3 = vld [vmem:[%s20873_s0 + $0xa4] sm:$0xf0]  ;;  %v10570_v14 = vor.u32 %v14104_v2, %v10569_v0 }
 0x11c   :  { %v658_v63 = vpop.f32.mrf.mxu2 }
 0x11d   :  { %v659_v27 = vadd.f32 %v658_v63, %v15380_v46  ;;  %v14204_v46 = vld [vmem:[%s20872_s1 + $0x68] sm:$0xff] }
 0x11e   :  { %v1028_v11 = vpop.f32.mrf.mxu0  ;;  %2607 = vmatpush.bf16.msrb.mxu1 %v14204_v46  ;;  %v14141_v46 = vld [vmem:[%s20873_s0 + $0xb4] sm:$0xf] }
 0x11f   :  { %v717_v40 = vpop.f32.mrf.mxu3  ;;  %v1087_v28 = vpop.f32.mrf.mxu1 }
 0x120   :  { %v718_v44 = vadd.f32 %v717_v40, %v659_v27  ;;  %v1088_v45 = vadd.f32 %v1087_v28, %v1028_v11  ;;  %v10753_v28 = vld [vmem:[%s20873_s0 + $0xb0] sm:$0xf] }
 0x121   :  { %1404 = vmatmul.bf16.gmra.mxu2 %v10562_v41  ;;  %1791 = vmatmul.bf16.gmra.mxu0 %v10738_v29  ;;  %v10577_v29 = vld [vmem:[%s20873_s0 + $0x90] sm:$0xf] }
 0x122   :  { %v15574_v47 = vadd.f32 %v1085_v17, %v718_v44  ;;  %1850 = vmatmul.bf16.gmra.mxu1 %v10742_v16  ;;  %v14195_v16 = vld [vmem:[%s20872_s1 + $0x20] sm:$0xff]  ;;  %v14105_v44 = vld [vmem:[%s20873_s0 + $0x94] sm:$0xf] }
 0x123   :  { %2549 = vmatpush.bf16.msrb.mxu0 %v14195_v16  ;;  %v10582_v0 = vor.u32 %v14105_v44, %v10579_v32 }
 0x124   :  { %1463 = vmatmul.bf16.gmra.mxu3 %v10566_v13  ;;  %v661_v49 = vpop.f32.mrf.mxu2  ;;  %v14106_v13 = vld [vmem:[%s20873_s0 + $0x94] sm:$0xf0] }
 0x125   :  { %v662_v51 = vadd.f32 %v661_v49, %v15402_v1  ;;  %v10745_v1 = vld [vmem:[%s20873_s0 + $0xa0] sm:$0xf]  ;;  %v10755_v49 = vld [vmem:[%s20873_s0 + $0xb8] sm:$0xf0] }
 0x126   :  { %v1030_v58 = vpop.f32.mrf.mxu0  ;;  %v10746_v15 = vor.u32 %v14140_v3, %v10745_v1  ;;  %v10758_v2 = vor.u32 %v14141_v46, %v10755_v49 }
 0x127   :  { %v720_v53 = vpop.f32.mrf.mxu3  ;;  %v1089_v60 = vpop.f32.mrf.mxu1 }
 0x128   :  { %v721_v59 = vadd.f32 %v720_v53, %v662_v51  ;;  %v1090_v54 = vadd.f32 %v1089_v60, %v1030_v58 }
 0x12a   :  { %v15583_v56 = vadd.f32 %v1088_v45, %v721_v59  ;;  %v14142_v45 = vld [vmem:[%s20873_s0 + $0xb4] sm:$0xf0]  ;;  %v10578_v59 = vor.u32 %v14106_v13, %v10577_v29 }
 0x12b   :  { %v10754_v60 = vor.u32 %v14142_v45, %v10753_v28 }
 0x12c   :  { %v663_v48 = vpop.f32.mrf.mxu2 }
 0x12d   :  { %v664_v52 = vadd.f32 %v663_v48, %v15414_v9  ;;  %v14223_v9 = vld [vmem:[%s20872_s1 + $0xe0] sm:$0xff] }
 0x12e   :  { %v1033_v17 = vpop.f32.mrf.mxu0  ;;  %2374 = vmatpush.bf16.msrb.mxu3 %v14223_v9  ;;  %v14144_v9 = vld [vmem:[%s20873_s0 + $0xc4] sm:$0xf0] }
 0x12f   :  { %v722_v50 = vpop.f32.mrf.mxu3  ;;  %v1092_v42 = vpop.f32.mrf.mxu1  ;;  %v10762_v29 = vor.u32 %v14144_v9, %v10761_v30  ;;  %v14193_v9 = vld [vmem:[%s20872_s1 + $0x10] sm:$0xff] }
 0x130   :  { %v723_v23 = vadd.f32 %v722_v50, %v664_v52  ;;  %v1093_v10 = vadd.f32 %v1092_v42, %v1033_v17  ;;  %v14194_v42 = vld [vmem:[%s20872_s1 + $0x18] sm:$0xff] }
 0x131   :  { %1409 = vmatmul.bf16.gmra.mxu2 %v10570_v14  ;;  %1796 = vmatmul.bf16.gmra.mxu0 %v10746_v15 }
 0x132   :  { %v15610_v12 = vadd.f32 %v1090_v54, %v723_v23  ;;  %1855 = vmatmul.bf16.gmra.mxu1 %v10750_v21  ;;  %v14108_v23 = vld [vmem:[%s20873_s0 + $0xa4] sm:$0xf0]  ;;  %2550 = vmatpush.bf16.msrb.mxu0 %v14194_v42 }
 0x134   :  { %1468 = vmatmul.bf16.gmra.mxu3 %v10574_v18  ;;  %v666_v33 = vpop.f32.mrf.mxu2  ;;  %v10585_v18 = vld [vmem:[%s20873_s0 + $0xa0] sm:$0xf] }
 0x135   :  { %v667_v35 = vadd.f32 %v666_v33, %v15430_v25  ;;  %v14203_v25 = vld [vmem:[%s20872_s1 + $0x60] sm:$0xff]  ;;  %v10587_v33 = vld [vmem:[%s20873_s0 + $0xa8] sm:$0xf0] }
 0x136   :  { %v1035_v63 = vpop.f32.mrf.mxu0  ;;  %2608 = vmatpush.bf16.msrb.mxu1 %v14203_v25  ;;  %2551 = vmatpush.bf16.msrb.mxu0 %v14193_v9  ;;  %v10611_v9 = vld [vmem:[%s20873_s0 + $0xd8] sm:$0xf0] }
 0x137   :  { %v725_v38 = vpop.f32.mrf.mxu3  ;;  %v1094_v40 = vpop.f32.mrf.mxu1 }
 0x138   :  { %v726_v27 = vadd.f32 %v725_v38, %v667_v35  ;;  %v1095_v41 = vadd.f32 %v1094_v40, %v1035_v63  ;;  %v14143_v35 = vld [vmem:[%s20873_s0 + $0xc4] sm:$0xf]  ;;  %v10763_v38 = vld [vmem:[%s20873_s0 + $0xc8] sm:$0xf0] }
 0x139   :  { %v10766_v25 = vor.u32 %v14143_v35, %v10763_v38 }
 0x13a   :  { %v15622_v11 = vadd.f32 %v1093_v10, %v726_v27  ;;  %v14107_v10 = vld [vmem:[%s20873_s0 + $0xa4] sm:$0xf] }
 0x13b   :  { %v10590_v16 = vor.u32 %v14107_v10, %v10587_v33 }
 0x13c   :  { %v668_v51 = vpop.f32.mrf.mxu2 }
 0x13d   :  { %v669_v53 = vadd.f32 %v668_v51, %v15442_v39  ;;  %v14222_v39 = vld [vmem:[%s20872_s1 + $0xd8] sm:$0xff] }
 0x13e   :  { %v1038_v54 = vpop.f32.mrf.mxu0  ;;  %2375 = vmatpush.bf16.msrb.mxu3 %v14222_v39  ;;  %v14145_v39 = vld [vmem:[%s20873_s0 + $0xd4] sm:$0xf] }
 0x13f   :  { %v727_v58 = vpop.f32.mrf.mxu3  ;;  %v1097_v1 = vpop.f32.mrf.mxu1 }
 0x140   :  { %v728_v55 = vadd.f32 %v727_v58, %v669_v53  ;;  %v1098_v3 = vadd.f32 %v1097_v1, %v1038_v54  ;;  %v10769_v1 = vld [vmem:[%s20873_s0 + $0xd0] sm:$0xf] }
 0x141   :  { %1414 = vmatmul.bf16.gmra.mxu2 %v10578_v59  ;;  %1801 = vmatmul.bf16.gmra.mxu0 %v10754_v60  ;;  %v10593_v60 = vld [vmem:[%s20873_s0 + $0xb0] sm:$0xf] }
 0x142   :  { %v15652_v5 = vadd.f32 %v1095_v41, %v728_v55  ;;  %1860 = vmatmul.bf16.gmra.mxu1 %v10758_v2  ;;  %v10586_v41 = vor.u32 %v14108_v23, %v10585_v18  ;;  %v14213_v2 = vld [vmem:[%s20872_s1 + $0x90] sm:$0xff] }
 0x143   :  { %v14109_v55 = vld [vmem:[%s20873_s0 + $0xb4] sm:$0xf]  ;;  %2317 = vmatpush.bf16.msrb.mxu2 %v14213_v2 }
 0x144   :  { %1473 = vmatmul.bf16.gmra.mxu3 %v10582_v0  ;;  %v671_v7 = vpop.f32.mrf.mxu2  ;;  %v14110_v0 = vld [vmem:[%s20873_s0 + $0xb4] sm:$0xf0]  ;;  %v10598_v18 = vor.u32 %v14109_v55, %v10595_v24 }
 0x145   :  { %v672_v48 = vadd.f32 %v671_v7, %v15316_v61  ;;  %v14202_v61 = vld [vmem:[%s20872_s1 + $0x58] sm:$0xff] }
 0x146   :  { %v1040_v50 = vpop.f32.mrf.mxu0  ;;  %2609 = vmatpush.bf16.msrb.mxu1 %v14202_v61  ;;  %v10771_v7 = vld [vmem:[%s20873_s0 + $0xd8] sm:$0xf0] }
 0x147   :  { %v730_v52 = vpop.f32.mrf.mxu3  ;;  %v1099_v15 = vpop.f32.mrf.mxu1  ;;  %v10774_v23 = vor.u32 %v14145_v39, %v10771_v7  ;;  %v14192_v39 = vld [vmem:[%s20872_s1 + $0x8] sm:$0xff] }
 0x148   :  { %v731_v14 = vadd.f32 %v730_v52, %v672_v48  ;;  %v1100_v17 = vadd.f32 %v1099_v15, %v1040_v50  ;;  %2552 = vmatpush.bf16.msrb.mxu0 %v14192_v39  ;;  %v10795_v39 = vld [vmem:[%s20873_s0 + $0x108] sm:$0xf0] }
 0x14a   :  { %v15664_v21 = vadd.f32 %v1098_v3, %v731_v14  ;;  %v14146_v3 = vld [vmem:[%s20873_s0 + $0xd4] sm:$0xf0]  ;;  %v10594_v14 = vor.u32 %v14110_v0, %v10593_v60 }
 0x14b   :  { %v10770_v15 = vor.u32 %v14146_v3, %v10769_v1 }
 0x14c   :  { %v673_v63 = vpop.f32.mrf.mxu2 }
 0x14d   :  { %v674_v27 = vadd.f32 %v673_v63, %v15338_v8 }
 0x14e   :  { %v1043_v13 = vpop.f32.mrf.mxu0 }
 0x14f   :  { %v732_v40 = vpop.f32.mrf.mxu3  ;;  %v1102_v28 = vpop.f32.mrf.mxu1 }
 0x150   :  { %v733_v44 = vadd.f32 %v732_v40, %v674_v27  ;;  %v1103_v45 = vadd.f32 %v1102_v28, %v1043_v13  ;;  %v10777_v28 = vld [vmem:[%s20873_s0 + $0xe0] sm:$0xf] }
 0x151   :  { %1419 = vmatmul.bf16.gmra.mxu2 %v10586_v41  ;;  %1806 = vmatmul.bf16.gmra.mxu0 %v10762_v29  ;;  %v10601_v29 = vld [vmem:[%s20873_s0 + $0xc0] sm:$0xf] }
 0x152   :  { %v15694_v32 = vadd.f32 %v1100_v17, %v733_v44  ;;  %1865 = vmatmul.bf16.gmra.mxu1 %v10766_v25  ;;  %v14212_v25 = vld [vmem:[%s20872_s1 + $0x88] sm:$0xff]  ;;  %v14111_v44 = vld [vmem:[%s20873_s0 + $0xc4] sm:$0xf] }
 0x153   :  { %2318 = vmatpush.bf16.msrb.mxu2 %v14212_v25 }
 0x154   :  { %1478 = vmatmul.bf16.gmra.mxu3 %v10590_v16  ;;  %v676_v46 = vpop.f32.mrf.mxu2  ;;  %v14112_v16 = vld [vmem:[%s20873_s0 + $0xc4] sm:$0xf0] }
 0x155   :  { %v677_v49 = vadd.f32 %v676_v46, %v15344_v19  ;;  %v14221_v19 = vld [vmem:[%s20872_s1 + $0xd0] sm:$0xff]  ;;  %v10603_v46 = vld [vmem:[%s20873_s0 + $0xc8] sm:$0xf0] }
 0x156   :  { %v1045_v8 = vpop.f32.mrf.mxu0  ;;  %2376 = vmatpush.bf16.msrb.mxu3 %v14221_v19  ;;  %v10606_v2 = vor.u32 %v14111_v44, %v10603_v46 }
 0x157   :  { %v735_v51 = vpop.f32.mrf.mxu3  ;;  %v1104_v58 = vpop.f32.mrf.mxu1 }
 0x158   :  { %v736_v53 = vadd.f32 %v735_v51, %v677_v49  ;;  %v1105_v59 = vadd.f32 %v1104_v58, %v1045_v8  ;;  %v14147_v49 = vld [vmem:[%s20873_s0 + $0xe4] sm:$0xf]  ;;  %v10779_v51 = vld [vmem:[%s20873_s0 + $0xe8] sm:$0xf0] }
 0x159   :  { %v10782_v19 = vor.u32 %v14147_v49, %v10779_v51  ;;  %v14211_v51 = vld [vmem:[%s20872_s1 + $0x80] sm:$0xff] }
 0x15a   :  { %v15700_v54 = vadd.f32 %v1103_v45, %v736_v53  ;;  %v14148_v45 = vld [vmem:[%s20873_s0 + $0xe4] sm:$0xf0]  ;;  %2319 = vmatpush.bf16.msrb.mxu2 %v14211_v51 }
 0x15b   :  { %v10778_v60 = vor.u32 %v14148_v45, %v10777_v28 }
 0x15c   :  { %v678_v48 = vpop.f32.mrf.mxu2 }
 0x15d   :  { %v679_v52 = vadd.f32 %v678_v48, %v15366_v36  ;;  %v14201_v36 = vld [vmem:[%s20872_s1 + $0x50] sm:$0xff] }
 0x15e   :  { %v1048_v17 = vpop.f32.mrf.mxu0  ;;  %2610 = vmatpush.bf16.msrb.mxu1 %v14201_v36  ;;  %v14149_v36 = vld [vmem:[%s20873_s0 + $0xf4] sm:$0xf] }
 0x15f   :  { %v737_v50 = vpop.f32.mrf.mxu3  ;;  %v1107_v61 = vpop.f32.mrf.mxu1 }
 0x160   :  { %v738_v42 = vadd.f32 %v737_v50, %v679_v52  ;;  %v1108_v10 = vadd.f32 %v1107_v61, %v1048_v17  ;;  %v14113_v61 = vld [vmem:[%s20873_s0 + $0xd4] sm:$0xf] }
 0x161   :  { %1424 = vmatmul.bf16.gmra.mxu2 %v10594_v14  ;;  %1811 = vmatmul.bf16.gmra.mxu0 %v10770_v15 }
 0x162   :  { %v15730_v30 = vadd.f32 %v1105_v59, %v738_v42  ;;  %1870 = vmatmul.bf16.gmra.mxu1 %v10774_v23  ;;  %v10602_v59 = vor.u32 %v14112_v16, %v10601_v29  ;;  %v10609_v23 = vld [vmem:[%s20873_s0 + $0xd0] sm:$0xf]  ;;  %v14114_v42 = vld [vmem:[%s20873_s0 + $0xd4] sm:$0xf0]  ;;  %v10614_v29 = vor.u32 %v14113_v61, %v10611_v9 }
 0x164   :  { %1483 = vmatmul.bf16.gmra.mxu3 %v10598_v18  ;;  %v681_v33 = vpop.f32.mrf.mxu2 }
 0x165   :  { %v682_v35 = vadd.f32 %v681_v33, %v15378_v26  ;;  %v14220_v26 = vld [vmem:[%s20872_s1 + $0xc8] sm:$0xff]  ;;  %v10787_v33 = vld [vmem:[%s20873_s0 + $0xf8] sm:$0xf0] }
 0x166   :  { %v1050_v63 = vpop.f32.mrf.mxu0  ;;  %2377 = vmatpush.bf16.msrb.mxu3 %v14220_v26  ;;  %v10790_v16 = vor.u32 %v14149_v36, %v10787_v33 }
 0x167   :  { %v740_v38 = vpop.f32.mrf.mxu3  ;;  %v1109_v40 = vpop.f32.mrf.mxu1 }
 0x168   :  { %v741_v27 = vadd.f32 %v740_v38, %v682_v35  ;;  %v1110_v41 = vadd.f32 %v1109_v40, %v1050_v63 }
 0x16a   :  { %v15742_v13 = vadd.f32 %v1108_v10, %v741_v27  ;;  %v14150_v10 = vld [vmem:[%s20873_s0 + $0xf4] sm:$0xf0]  ;;  %v10610_v27 = vor.u32 %v14114_v42, %v10609_v23 }
 0x16c   :  { %v683_v8 = vpop.f32.mrf.mxu2 }
 0x16d   :  { %v684_v53 = vadd.f32 %v683_v8, %v15400_v62  ;;  %v14200_v62 = vld [vmem:[%s20872_s1 + $0x48] sm:$0xff]  ;;  %v14219_v8 = vld [vmem:[%s20872_s1 + $0xc0] sm:$0xff] }
 0x16e   :  { %v1053_v0 = vpop.f32.mrf.mxu0  ;;  %2611 = vmatpush.bf16.msrb.mxu1 %v14200_v62  ;;  %2378 = vmatpush.bf16.msrb.mxu3 %v14219_v8 }
 0x16f   :  { %v742_v58 = vpop.f32.mrf.mxu3  ;;  %v1112_v1 = vpop.f32.mrf.mxu1 }
 0x170   :  { %v743_v55 = vadd.f32 %v742_v58, %v684_v53  ;;  %v1113_v3 = vadd.f32 %v1112_v1, %v1053_v0  ;;  %v14116_v0 = vld [vmem:[%s20873_s0 + $0xe4] sm:$0xf0]  ;;  %v10619_v1 = vld [vmem:[%s20873_s0 + $0xe8] sm:$0xf0] }
 0x171   :  { %1429 = vmatmul.bf16.gmra.mxu2 %v10602_v59  ;;  %1816 = vmatmul.bf16.gmra.mxu0 %v10778_v60 }
 0x172   :  { %v15772_v24 = vadd.f32 %v1110_v41, %v743_v55  ;;  %1875 = vmatmul.bf16.gmra.mxu1 %v10782_v19  ;;  %v10793_v19 = vld [vmem:[%s20873_s0 + $0x100] sm:$0xf]  ;;  %v14152_v55 = vld [vmem:[%s20873_s0 + $0x104] sm:$0xf0] }
 0x174   :  { %1488 = vmatmul.bf16.gmra.mxu3 %v10606_v2  ;;  %v686_v7 = vpop.f32.mrf.mxu2  ;;  %v14115_v2 = vld [vmem:[%s20873_s0 + $0xe4] sm:$0xf] }
 0x175   :  { %v687_v48 = vadd.f32 %v686_v7, %v15412_v6  ;;  %v10785_v6 = vld [vmem:[%s20873_s0 + $0xf0] sm:$0xf]  ;;  %v10622_v23 = vor.u32 %v14115_v2, %v10619_v1  ;;  %v14290_v2 = vld [vmem:[%s20872_s1 + $0x1b8] sm:$0xff] }
 0x176   :  { %v1055_v50 = vpop.f32.mrf.mxu0  ;;  %v10786_v40 = vor.u32 %v14150_v10, %v10785_v6 }
 0x177   :  { %v745_v52 = vpop.f32.mrf.mxu3  ;;  %v1114_v15 = vpop.f32.mrf.mxu1 }
 0x178   :  { %v746_v14 = vadd.f32 %v745_v52, %v687_v48  ;;  %v1115_v17 = vadd.f32 %v1114_v15, %v1055_v50  ;;  %v10794_v50 = vor.u32 %v14152_v55, %v10793_v19  ;;  %v14199_v15 = vld [vmem:[%s20872_s1 + $0x40] sm:$0xff]  ;;  %v14298_v19 = vld [vmem:[%s20872_s1 + $0x1f8] sm:$0xff] }
 0x179   :  { %2612 = vmatpush.bf16.msrb.mxu1 %v14199_v15 }
 0x17a   :  { %v15781_v18 = vadd.f32 %v1113_v3, %v746_v14  ;;  %v14151_v3 = vld [vmem:[%s20873_s0 + $0x104] sm:$0xf] }
 0x17b   :  { %v14191_v14 = vld [vmem:[%s20872_s1] sm:$0xff]  ;;  %v10798_v42 = vor.u32 %v14151_v3, %v10795_v39 }
 0x17c   :  { %v688_v35 = vpop.f32.mrf.mxu2  ;;  %2553 = vmatpush.bf16.msrb.mxu0 %v14191_v14 }
 0x17d   :  { %v689_v38 = vadd.f32 %v688_v35, %v15428_v22  ;;  %3357 = vmatpush.bf16.msra.mxu1 %v14298_v19  ;;  %v11057_v19 = vld [vmem:[%s20873_s0 + $0xb0] sm:$0xf] }
 0x17e   :  { %v1058_v41 = vpop.f32.mrf.mxu0 }
 0x17f   :  { %v747_v63 = vpop.f32.mrf.mxu3  ;;  %v1117_v26 = vpop.f32.mrf.mxu1 }
 0x180   :  { %v748_v25 = vadd.f32 %v747_v63, %v689_v38  ;;  %v1118_v44 = vadd.f32 %v1117_v26, %v1058_v41  ;;  %v14262_v41 = vld [vmem:[%s20872_s1 + $0x178] sm:$0xff]  ;;  %v10801_v26 = vld [vmem:[%s20873_s0 + $0x110] sm:$0xf]  ;;  %3298 = vmatpush.bf16.msra.mxu0 %v14290_v2 }
 0x181   :  { %1434 = vmatmul.bf16.gmra.mxu2 %v10610_v27  ;;  %1821 = vmatmul.bf16.gmra.mxu0 %v10786_v40  ;;  %v14254_v40 = vld [vmem:[%s20872_s1 + $0x138] sm:$0xff] }
 0x182   :  { %v15808_v28 = vadd.f32 %v1115_v17, %v748_v25  ;;  %1880 = vmatmul.bf16.gmra.mxu1 %v10790_v16  ;;  %v14118_v16 = vld [vmem:[%s20873_s0 + $0xf4] sm:$0xf0]  ;;  %2912 = vmatpush.bf16.msra.mxu2 %v14254_v40 }
 0x183   :  { %2971 = vmatpush.bf16.msra.mxu3 %v14262_v41 }
 0x184   :  { %1493 = vmatmul.bf16.gmra.mxu3 %v10614_v29  ;;  %v691_v45 = vpop.f32.mrf.mxu2  ;;  %v10625_v29 = vld [vmem:[%s20873_s0 + $0xf0] sm:$0xf] }
 0x185   :  { %v692_v46 = vadd.f32 %v691_v45, %v15440_v37  ;;  %v10617_v37 = vld [vmem:[%s20873_s0 + $0xe0] sm:$0xf]  ;;  %v10627_v45 = vld [vmem:[%s20873_s0 + $0xf8] sm:$0xf0]  ;;  %v10626_v8 = vor.u32 %v14118_v16, %v10625_v29  ;;  %v14253_v29 = vld [vmem:[%s20872_s1 + $0x130] sm:$0xff] }
 0x186   :  { %v1060_v22 = vpop.f32.mrf.mxu0  ;;  %v10618_v52 = vor.u32 %v14116_v0, %v10617_v37  ;;  %v14261_v16 = vld [vmem:[%s20872_s1 + $0x170] sm:$0xff]  ;;  %2913 = vmatpush.bf16.msra.mxu2 %v14253_v29 }
 0x187   :  { %v750_v49 = vpop.f32.mrf.mxu3  ;;  %v1119_v58 = vpop.f32.mrf.mxu1  ;;  %2972 = vmatpush.bf16.msra.mxu3 %v14261_v16 }
 0x188   :  { %v751_v53 = vadd.f32 %v750_v49, %v692_v46  ;;  %v1120_v59 = vadd.f32 %v1119_v58, %v1060_v22  ;;  %v14153_v46 = vld [vmem:[%s20873_s0 + $0x114] sm:$0xf]  ;;  %v10803_v49 = vld [vmem:[%s20873_s0 + $0x118] sm:$0xf0] }
 0x189   :  { %v10806_v0 = vor.u32 %v14153_v46, %v10803_v49 }
 0x18a   :  { %v15817_v60 = vadd.f32 %v1118_v44, %v751_v53  ;;  %v14154_v44 = vld [vmem:[%s20873_s0 + $0x114] sm:$0xf0] }
 0x18b   :  { %v10802_v53 = vor.u32 %v14154_v44, %v10801_v26 }
 0x18c   :  { %v693_v62 = vpop.f32.mrf.mxu2 }
 0x18d   :  { %v694_v7 = vadd.f32 %v693_v62, %v15462_v34 }
 0x18e   :  { %v1787_v17 = vpop.f32.mrf.mxu0 }
 0x18f   :  { %v752_v48 = vpop.f32.mrf.mxu3  ;;  %v1846_v6 = vpop.f32.mrf.mxu1 }
 0x190   :  { %v753_v61 = vadd.f32 %v752_v48, %v694_v7  ;;  %v1847_v10 = vadd.f32 %v1846_v6, %v1787_v17  ;;  %v14176_v17 = vld [vmem:[%s20873_s0 + $0xc4] sm:$0xf0]  ;;  %v10907_v6 = vld [vmem:[%s20873_s0 + $0xc8] sm:$0xf0] }
 0x191   :  { %1439 = vmatmul.bf16.gmra.mxu2 %v10618_v52  ;;  %1826 = vmatmul.bf16.gmra.mxu0 %v10794_v50 }
 0x192   :  { %v15850_v34 = vadd.f32 %v1120_v59, %v753_v61  ;;  %1885 = vmatmul.bf16.gmra.mxu1 %v10798_v42  ;;  %v14175_v42 = vld [vmem:[%s20873_s0 + $0xc4] sm:$0xf]  ;;  %v11049_v61 = vld [vmem:[%s20873_s0 + $0xa0] sm:$0xf] }
 0x193   :  { %v15923_v40 = vor.u32 %v14175_v42, %v10907_v6  ;;  %v14252_v42 = vld [vmem:[%s20872_s1 + $0x128] sm:$0xff] }
 0x194   :  { %1498 = vmatmul.bf16.gmra.mxu3 %v10622_v23  ;;  %v1400_v9 = vpop.f32.mrf.mxu2  ;;  %2914 = vmatpush.bf16.msra.mxu2 %v14252_v42 }
 0x196   :  { %v1789_v35 = vpop.f32.mrf.mxu0 }
 0x197   :  { %v1459_v36 = vpop.f32.mrf.mxu3  ;;  %v1848_v38 = vpop.f32.mrf.mxu1 }
 0x198   :  { %v1460_v33 = vadd.f32 %v1459_v36, %v1400_v9  ;;  %v1849_v27 = vadd.f32 %v1848_v38, %v1789_v35  ;;  %v11051_v9 = vld [vmem:[%s20873_s0 + $0xa8] sm:$0xf0] }
 0x19a   :  { %v1509_v63 = vadd.f32 %v1460_v33, %v15473_v57  ;;  %v14117_v57 = vld [vmem:[%s20873_s0 + $0xf4] sm:$0xf] }
 0x19b   :  { %v10630_v37 = vor.u32 %v14117_v57, %v10627_v45 }
 0x19c   :  { %v15865_v25 = vadd.f32 %v1847_v10, %v1509_v63  ;;  %v1402_v22 = vpop.f32.mrf.mxu2  ;;  %v14171_v10 = vld [vmem:[%s20873_s0 + $0xa4] sm:$0xf] }
 0x19d   :  { %v11054_v41 = vor.u32 %v14171_v10, %v11051_v9 }
 0x19e   :  { %21008 = vst [vmem:[#allocation2_spill] sm:$0xff] %v15865_v25  ;;  %v1792_v59 = vpop.f32.mrf.mxu0 }
 0x19f   :  { %v1461_v51 = vpop.f32.mrf.mxu3  ;;  %v1851_v55 = vpop.f32.mrf.mxu1 }
 0x1a0   :  { %v1462_v58 = vadd.f32 %v1461_v51, %v1402_v22  ;;  %v1852_v3 = vadd.f32 %v1851_v55, %v1792_v59  ;;  %v14297_v59 = vld [vmem:[%s20872_s1 + $0x1f0] sm:$0xff]  ;;  %v14174_v55 = vld [vmem:[%s20873_s0 + $0xb4] sm:$0xf0] }
 0x1a1   :  { %1444 = vmatmul.bf16.gmra.mxu2 %v10626_v8  ;;  %1831 = vmatmul.bf16.gmra.mxu0 %v10802_v53 }
 0x1a2   :  { %v1510_v1 = vadd.f32 %v1462_v58, %v15494_v31  ;;  %1890 = vmatmul.bf16.gmra.mxu1 %v10806_v0  ;;  %v10905_v31 = vld [vmem:[%s20873_s0 + $0xc0] sm:$0xf]  ;;  %v14178_v0 = vld [vmem:[%s20873_s0 + $0xd4] sm:$0xf0] }
 0x1a3   :  { %v15921_v35 = vor.u32 %v14176_v17, %v10905_v31  ;;  %3358 = vmatpush.bf16.msra.mxu1 %v14297_v59 }
 0x1a4   :  { %v15892_v39 = vadd.f32 %v1849_v27, %v1510_v1  ;;  %1503 = vmatmul.bf16.gmra.mxu3 %v10630_v37  ;;  %v1405_v62 = vpop.f32.mrf.mxu2  ;;  %v10913_v37 = vld [vmem:[%s20873_s0 + $0xd0] sm:$0xf]  ;;  %v10915_v1 = vld [vmem:[%s20873_s0 + $0xd8] sm:$0xf0] }
 0x1a6   :  { %21009 = vst [vmem:[#allocation3_spill] sm:$0xff] %v15892_v39  ;;  %v1794_v52 = vpop.f32.mrf.mxu0 }
 0x1a7   :  { %v1464_v7 = vpop.f32.mrf.mxu3  ;;  %v1853_v50 = vpop.f32.mrf.mxu1 }
 0x1a8   :  { %v1465_v48 = vadd.f32 %v1464_v7, %v1405_v62  ;;  %v1854_v15 = vadd.f32 %v1853_v50, %v1794_v52  ;;  %v11059_v62 = vld [vmem:[%s20873_s0 + $0xb8] sm:$0xf0]  ;;  %v15969_v52 = vor.u32 %v14178_v0, %v10913_v37  ;;  %v11058_v50 = vor.u32 %v14174_v55, %v11057_v19 }
 0x1aa   :  { %v1511_v14 = vadd.f32 %v1465_v48, %v15502_v43  ;;  %v14172_v43 = vld [vmem:[%s20873_s0 + $0xa4] sm:$0xf0] }
 0x1ab   :  { %v11050_v38 = vor.u32 %v14172_v43, %v11049_v61  ;;  %v14260_v61 = vld [vmem:[%s20872_s1 + $0x168] sm:$0xff] }
 0x1ac   :  { %v15901_v23 = vadd.f32 %v1852_v3, %v1511_v14  ;;  %v1407_v36 = vpop.f32.mrf.mxu2  ;;  %v14173_v3 = vld [vmem:[%s20873_s0 + $0xb4] sm:$0xf]  ;;  %2973 = vmatpush.bf16.msra.mxu3 %v14260_v61 }
 0x1ad   :  { %v11062_v17 = vor.u32 %v14173_v3, %v11059_v62 }
 0x1ae   :  { %21010 = vst [vmem:[#allocation4_spill] sm:$0xff] %v15901_v23  ;;  %v1797_v27 = vpop.f32.mrf.mxu0 }
 0x1af   :  { %v1466_v33 = vpop.f32.mrf.mxu3  ;;  %v1856_v57 = vpop.f32.mrf.mxu1 }
 0x1b0   :  { %v1467_v63 = vadd.f32 %v1466_v33, %v1407_v36  ;;  %v1857_v44 = vadd.f32 %v1856_v57, %v1797_v27  ;;  %v14288_v27 = vld [vmem:[%s20872_s1 + $0x1a8] sm:$0xff] }
 0x1b1   :  { %2320 = vmatmul.bf16.vlgmr.msrb.gmra.mxu2 %v15921_v35  ;;  %2554 = vmatmul.bf16.vlgmr.msrb.gmra.mxu0 %v11050_v38 }
 0x1b2   :  { %v1512_v26 = vadd.f32 %v1467_v63, %v15532_v4  ;;  %2613 = vmatmul.bf16.vlgmr.msrb.gmra.mxu1 %v11054_v41  ;;  %v14289_v4 = vld [vmem:[%s20872_s1 + $0x1b0] sm:$0xff] }
 0x1b3   :  { %3299 = vmatpush.bf16.msra.mxu0 %v14289_v4 }
 0x1b4   :  { %v15933_v45 = vadd.f32 %v1854_v15, %v1512_v26  ;;  %2379 = vmatmul.bf16.vlgmr.msrb.gmra.mxu3 %v15923_v40  ;;  %v1410_v46 = vpop.f32.mrf.mxu2  ;;  %v10921_v26 = vld [vmem:[%s20873_s0 + $0xe0] sm:$0xf] }
 0x1b6   :  { %21011 = vst [vmem:[#allocation5_spill] sm:$0xff] %v15933_v45  ;;  %v1799_v51 = vpop.f32.mrf.mxu0 }
 0x1b7   :  { %v1469_v49 = vpop.f32.mrf.mxu3  ;;  %v1858_v8 = vpop.f32.mrf.mxu1  ;;  %3300 = vmatpush.bf16.msra.mxu0 %v14288_v27 }
 0x1b8   :  { %v1470_v22 = vadd.f32 %v1469_v49, %v1410_v46  ;;  %v1859_v58 = vadd.f32 %v1858_v8, %v1799_v51  ;;  %v14179_v46 = vld [vmem:[%s20873_s0 + $0xe4] sm:$0xf] }
 0x1ba   :  { %v1513_v53 = vadd.f32 %v1470_v22, %v15544_v20  ;;  %v14177_v20 = vld [vmem:[%s20873_s0 + $0xd4] sm:$0xf] }
 0x1bb   :  { %v15971_v31 = vor.u32 %v14177_v20, %v10915_v1 }
 0x1bc   :  { %v15949_v2 = vadd.f32 %v1857_v44, %v1513_v53  ;;  %v1412_v7 = vpop.f32.mrf.mxu2  ;;  %v14180_v44 = vld [vmem:[%s20873_s0 + $0xe4] sm:$0xf0] }
 0x1bd   :  { %v16005_v51 = vor.u32 %v14180_v44, %v10921_v26  ;;  %v14258_v26 = vld [vmem:[%s20872_s1 + $0x158] sm:$0xff] }
 0x1be   :  { %21012 = vst [vmem:[#allocation6_spill] sm:$0xff] %v15949_v2  ;;  %v1802_v15 = vpop.f32.mrf.mxu0 }
 0x1bf   :  { %v1471_v48 = vpop.f32.mrf.mxu3  ;;  %v1861_v43 = vpop.f32.mrf.mxu1 }
 0x1c0   :  { %v1472_v14 = vadd.f32 %v1471_v48, %v1412_v7  ;;  %v1862_v10 = vadd.f32 %v1861_v43, %v1802_v15 }
 0x1c1   :  { %2325 = vmatmul.bf16.gmra.mxu2 %v15969_v52  ;;  %2559 = vmatmul.bf16.gmra.mxu0 %v11058_v50  ;;  %v14182_v50 = vld [vmem:[%s20873_s0 + $0xf4] sm:$0xf0] }
 0x1c2   :  { %v1514_v6 = vadd.f32 %v1472_v14, %v15574_v47  ;;  %2618 = vmatmul.bf16.gmra.mxu1 %v11062_v17  ;;  %v14296_v47 = vld [vmem:[%s20872_s1 + $0x1e8] sm:$0xff]  ;;  %v10931_v14 = vld [vmem:[%s20873_s0 + $0xf8] sm:$0xf0] }
 0x1c3   :  { %3359 = vmatpush.bf16.msra.mxu1 %v14296_v47 }
 0x1c4   :  { %v15981_v9 = vadd.f32 %v1859_v58, %v1514_v6  ;;  %2384 = vmatmul.bf16.gmra.mxu3 %v15971_v31  ;;  %v1415_v36 = vpop.f32.mrf.mxu2 }
 0x1c6   :  { %21013 = vst [vmem:[#allocation7_spill] sm:$0xff] %v15981_v9  ;;  %v1804_v63 = vpop.f32.mrf.mxu0 }
 0x1c7   :  { %v1474_v33 = vpop.f32.mrf.mxu3  ;;  %v1863_v41 = vpop.f32.mrf.mxu1 }
 0x1c8   :  { %v1475_v38 = vadd.f32 %v1474_v33, %v1415_v36  ;;  %v1864_v16 = vadd.f32 %v1863_v41, %v1804_v63  ;;  %v14295_v36 = vld [vmem:[%s20872_s1 + $0x1e0] sm:$0xff] }
 0x1c9   :  { %3360 = vmatpush.bf16.msra.mxu1 %v14295_v36 }
 0x1ca   :  { %v1515_v29 = vadd.f32 %v1475_v38, %v15583_v56  ;;  %v10923_v56 = vld [vmem:[%s20873_s0 + $0xe8] sm:$0xf0] }
 0x1cb   :  { %v16007_v58 = vor.u32 %v14179_v46, %v10923_v56 }
 0x1cc   :  { %v15991_v57 = vadd.f32 %v1862_v10, %v1515_v29  ;;  %v1417_v49 = vpop.f32.mrf.mxu2  ;;  %v14287_v10 = vld [vmem:[%s20872_s1 + $0x1a0] sm:$0xff] }
 0x1cd   :  { %3301 = vmatpush.bf16.msra.mxu0 %v14287_v10 }
 0x1ce   :  { %21014 = vst [vmem:[#allocation8_spill] sm:$0xff] %v15991_v57  ;;  %v1807_v53 = vpop.f32.mrf.mxu0 }
 0x1cf   :  { %v1476_v22 = vpop.f32.mrf.mxu3  ;;  %v1866_v4 = vpop.f32.mrf.mxu1 }
 0x1d0   :  { %v1477_v8 = vadd.f32 %v1476_v22, %v1417_v49  ;;  %v1867_v37 = vadd.f32 %v1866_v4, %v1807_v53  ;;  %v14184_v49 = vld [vmem:[%s20873_s0 + $0x104] sm:$0xf0]  ;;  %v14183_v22 = vld [vmem:[%s20873_s0 + $0x104] sm:$0xf] }
 0x1d1   :  { %2330 = vmatmul.bf16.gmra.mxu2 %v16005_v51  ;;  %2564 = vmatmul.bf16.gmra.mxu0 %v15921_v35  ;;  %v14259_v35 = vld [vmem:[%s20872_s1 + $0x160] sm:$0xff] }
 0x1d2   :  { %v1516_v59 = vadd.f32 %v1477_v8, %v15610_v12  ;;  %2623 = vmatmul.bf16.gmra.mxu1 %v15923_v40  ;;  %v14251_v12 = vld [vmem:[%s20872_s1 + $0x120] sm:$0xff]  ;;  %v10929_v40 = vld [vmem:[%s20873_s0 + $0xf0] sm:$0xf]  ;;  %2974 = vmatpush.bf16.msra.mxu3 %v14259_v35 }
 0x1d3   :  { %2915 = vmatpush.bf16.msra.mxu2 %v14251_v12  ;;  %v16037_v42 = vor.u32 %v14182_v50, %v10929_v40 }
 0x1d4   :  { %v16012_v0 = vadd.f32 %v1864_v16, %v1516_v59  ;;  %2389 = vmatmul.bf16.gmra.mxu3 %v16007_v58  ;;  %v1420_v20 = vpop.f32.mrf.mxu2 }
 0x1d6   :  { %21015 = vst [vmem:[#allocation9_spill] sm:$0xff] %v16012_v0  ;;  %v1809_v1 = vpop.f32.mrf.mxu0  ;;  %2975 = vmatpush.bf16.msra.mxu3 %v14258_v26 }
 0x1d7   :  { %v1479_v19 = vpop.f32.mrf.mxu3  ;;  %v1868_v3 = vpop.f32.mrf.mxu1 }
 0x1d8   :  { %v1480_v55 = vadd.f32 %v1479_v19, %v1420_v20  ;;  %v1869_v7 = vadd.f32 %v1868_v3, %v1809_v1  ;;  %v14286_v19 = vld [vmem:[%s20872_s1 + $0x198] sm:$0xff] }
 0x1d9   :  { %3302 = vmatpush.bf16.msra.mxu0 %v14286_v19 }
 0x1da   :  { %v1517_v62 = vadd.f32 %v1480_v55, %v15622_v11  ;;  %v14181_v11 = vld [vmem:[%s20873_s0 + $0xf4] sm:$0xf]  ;;  %v14294_v55 = vld [vmem:[%s20872_s1 + $0x1d8] sm:$0xff] }
 0x1db   :  { %v16039_v6 = vor.u32 %v14181_v11, %v10931_v14  ;;  %3361 = vmatpush.bf16.msra.mxu1 %v14294_v55 }
 0x1dc   :  { %v16023_v48 = vadd.f32 %v1867_v37, %v1517_v62  ;;  %v1422_v15 = vpop.f32.mrf.mxu2 }
 0x1de   :  { %21016 = vst [vmem:[#allocation10_spill] sm:$0xff] %v16023_v48  ;;  %v1812_v43 = vpop.f32.mrf.mxu0 }
 0x1df   :  { %v1481_v17 = vpop.f32.mrf.mxu3  ;;  %v1871_v33 = vpop.f32.mrf.mxu1 }
 0x1e0   :  { %v1482_v61 = vadd.f32 %v1481_v17, %v1422_v15  ;;  %v1872_v63 = vadd.f32 %v1871_v33, %v1812_v43  ;;  %v14186_v17 = vld [vmem:[%s20873_s0 + $0x114] sm:$0xf0] }
 0x1e1   :  { %2335 = vmatmul.bf16.gmra.mxu2 %v16037_v42  ;;  %2569 = vmatmul.bf16.gmra.mxu0 %v15969_v52 }
 0x1e2   :  { %v1518_v38 = vadd.f32 %v1482_v61, %v15652_v5  ;;  %2628 = vmatmul.bf16.gmra.mxu1 %v15971_v31  ;;  %v14250_v5 = vld [vmem:[%s20872_s1 + $0x118] sm:$0xff]  ;;  %v10937_v31 = vld [vmem:[%s20873_s0 + $0x100] sm:$0xf] }
 0x1e3   :  { %2916 = vmatpush.bf16.msra.mxu2 %v14250_v5  ;;  %v16075_v4 = vor.u32 %v14184_v49, %v10937_v31  ;;  %v10947_v61 = vld [vmem:[%s20873_s0 + $0x118] sm:$0xf0]  ;;  %v14293_v31 = vld [vmem:[%s20872_s1 + $0x1d0] sm:$0xff] }
 0x1e4   :  { %v16050_v27 = vadd.f32 %v1869_v7, %v1518_v38  ;;  %2394 = vmatmul.bf16.gmra.mxu3 %v16039_v6  ;;  %v1425_v47 = vpop.f32.mrf.mxu2  ;;  %3362 = vmatpush.bf16.msra.mxu1 %v14293_v31  ;;  %v14247_v31 = vld [vmem:[%s20872_s1 + $0x100] sm:$0xff] }
 0x1e6   :  { %21017 = vst [vmem:[#allocation11_spill] sm:$0xff] %v16050_v27  ;;  %v1814_v16 = vpop.f32.mrf.mxu0 }
 0x1e7   :  { %v1484_v41 = vpop.f32.mrf.mxu3  ;;  %v1873_v44 = vpop.f32.mrf.mxu1 }
 0x1e8   :  { %v1485_v29 = vadd.f32 %v1484_v41, %v1425_v47  ;;  %v1874_v46 = vadd.f32 %v1873_v44, %v1814_v16  ;;  %v14257_v47 = vld [vmem:[%s20872_s1 + $0x150] sm:$0xff] }
 0x1e9   :  { %2976 = vmatpush.bf16.msra.mxu3 %v14257_v47 }
 0x1ea   :  { %v1519_v52 = vadd.f32 %v1485_v29, %v15664_v21  ;;  %v10939_v21 = vld [vmem:[%s20873_s0 + $0x108] sm:$0xf0] }
 0x1eb   :  { %v16077_v20 = vor.u32 %v14183_v22, %v10939_v21 }
 0x1ec   :  { %v16061_v56 = vadd.f32 %v1872_v63, %v1519_v52  ;;  %v1427_v8 = vpop.f32.mrf.mxu2  ;;  %v14249_v63 = vld [vmem:[%s20872_s1 + $0x110] sm:$0xff] }
 0x1ed   :  { %2917 = vmatpush.bf16.msra.mxu2 %v14249_v63 }
 0x1ee   :  { %21018 = vst [vmem:[#allocation12_spill] sm:$0xff] %v16061_v56  ;;  %v1817_v37 = vpop.f32.mrf.mxu0 }
 0x1ef   :  { %v1486_v53 = vpop.f32.mrf.mxu3  ;;  %v1876_v1 = vpop.f32.mrf.mxu1 }
 0x1f0   :  { %v1487_v59 = vadd.f32 %v1486_v53, %v1427_v8  ;;  %v1877_v62 = vadd.f32 %v1876_v1, %v1817_v37  ;;  %v14188_v8 = vld [vmem:[%s20873_s0 + $0x124] sm:$0xf0]  ;;  %v14187_v53 = vld [vmem:[%s20873_s0 + $0x124] sm:$0xf] }
 0x1f1   :  { %2340 = vmatmul.bf16.gmra.mxu2 %v16075_v4  ;;  %2574 = vmatmul.bf16.gmra.mxu0 %v16005_v51  ;;  %v10945_v51 = vld [vmem:[%s20873_s0 + $0x110] sm:$0xf] }
 0x1f2   :  { %v1520_v3 = vadd.f32 %v1487_v59, %v15694_v32  ;;  %2633 = vmatmul.bf16.gmra.mxu1 %v16007_v58  ;;  %v14185_v58 = vld [vmem:[%s20873_s0 + $0x114] sm:$0xf]  ;;  %v16107_v10 = vor.u32 %v14186_v17, %v10945_v51 }
 0x1f3   :  { %v16109_v38 = vor.u32 %v14185_v58, %v10947_v61 }
 0x1f4   :  { %v16088_v7 = vadd.f32 %v1874_v46, %v1520_v3  ;;  %2399 = vmatmul.bf16.gmra.mxu3 %v16077_v20  ;;  %v1430_v12 = vpop.f32.mrf.mxu2 }
 0x1f6   :  { %21019 = vst [vmem:[#allocation13_spill] sm:$0xff] %v16088_v7  ;;  %v1819_v50 = vpop.f32.mrf.mxu0 }
 0x1f7   :  { %v1489_v35 = vpop.f32.mrf.mxu3  ;;  %v1878_v11 = vpop.f32.mrf.mxu1 }
 0x1f8   :  { %v1490_v40 = vadd.f32 %v1489_v35, %v1430_v12  ;;  %v1879_v14 = vadd.f32 %v1878_v11, %v1819_v50  ;;  %v14256_v12 = vld [vmem:[%s20872_s1 + $0x148] sm:$0xff] }
 0x1f9   :  { %2977 = vmatpush.bf16.msra.mxu3 %v14256_v12 }
 0x1fa   :  { %v1521_v32 = vadd.f32 %v1490_v40, %v15700_v54 }
 0x1fc   :  { %v16093_v15 = vadd.f32 %v1877_v62, %v1521_v32  ;;  %v1432_v54 = vpop.f32.mrf.mxu2  ;;  %v14248_v62 = vld [vmem:[%s20872_s1 + $0x108] sm:$0xff] }
 0x1fd   :  { %2918 = vmatpush.bf16.msra.mxu2 %v14248_v62 }
 0x1fe   :  { %21020 = vst [vmem:[#allocation14_spill] sm:$0xff] %v16093_v15  ;;  %v1822_v33 = vpop.f32.mrf.mxu0  ;;  %v14421_v15 = vld [vmem:[%s20872_s1 + $0x150] sm:$0xff] }
 0x1ff   :  { %v1491_v43 = vpop.f32.mrf.mxu3  ;;  %v1881_v41 = vpop.f32.mrf.mxu1 }
 0x200   :  { %v1492_v36 = vadd.f32 %v1491_v43, %v1432_v54  ;;  %v1882_v16 = vadd.f32 %v1881_v41, %v1822_v33  ;;  %v14190_v43 = vld [vmem:[%s20873_s0 + $0x134] sm:$0xf0] }
 0x201   :  { %2345 = vmatmul.bf16.gmra.mxu2 %v16107_v10  ;;  %2579 = vmatmul.bf16.gmra.mxu0 %v16037_v42 }
 0x202   :  { %v1522_v29 = vadd.f32 %v1492_v36, %v15730_v30  ;;  %2638 = vmatmul.bf16.gmra.mxu1 %v16039_v6  ;;  %v14285_v30 = vld [vmem:[%s20872_s1 + $0x190] sm:$0xff]  ;;  %v10953_v6 = vld [vmem:[%s20873_s0 + $0x120] sm:$0xf]  ;;  %v10963_v36 = vld [vmem:[%s20873_s0 + $0x138] sm:$0xf0]  ;;  %2919 = vmatpush.bf16.msra.mxu2 %v14247_v31 }
 0x203   :  { %3303 = vmatpush.bf16.msra.mxu0 %v14285_v30  ;;  %v16145_v19 = vor.u32 %v14188_v8, %v10953_v6  ;;  %v14284_v30 = vld [vmem:[%s20872_s1 + $0x188] sm:$0xff] }
 0x204   :  { %v16120_v5 = vadd.f32 %v1879_v14, %v1522_v29  ;;  %2404 = vmatmul.bf16.gmra.mxu3 %v16109_v38  ;;  %v1435_v26 = vpop.f32.mrf.mxu2 }
 0x206   :  { %21021 = vst [vmem:[#allocation15_spill] sm:$0xff] %v16120_v5  ;;  %v1824_v46 = vpop.f32.mrf.mxu0  ;;  %v14413_v5 = vld [vmem:[%s20872_s1 + $0x110] sm:$0xff] }
 0x207   :  { %v1494_v44 = vpop.f32.mrf.mxu3  ;;  %v1883_v49 = vpop.f32.mrf.mxu1  ;;  %3304 = vmatpush.bf16.msra.mxu0 %v14284_v30 }
 0x208   :  { %v1495_v52 = vadd.f32 %v1494_v44, %v1435_v26  ;;  %v1884_v22 = vadd.f32 %v1883_v49, %v1824_v46  ;;  %v14255_v49 = vld [vmem:[%s20872_s1 + $0x140] sm:$0xff] }
 0x209   :  { %2978 = vmatpush.bf16.msra.mxu3 %v14255_v49 }
 0x20a   :  { %v1523_v42 = vadd.f32 %v1495_v52, %v15742_v13  ;;  %v10955_v13 = vld [vmem:[%s20873_s0 + $0x128] sm:$0xf0] }
 0x20b   :  { %v16147_v3 = vor.u32 %v14187_v53, %v10955_v13  ;;  %v14283_v53 = vld [vmem:[%s20872_s1 + $0x180] sm:$0xff] }
 0x20c   :  { %v16131_v21 = vadd.f32 %v1882_v16, %v1523_v42  ;;  %v1437_v59 = vpop.f32.mrf.mxu2  ;;  %v14291_v13 = vld [vmem:[%s20872_s1 + $0x1c0] sm:$0xff]  ;;  %3305 = vmatpush.bf16.msra.mxu0 %v14283_v53 }
 0x20e   :  { %21022 = vst [vmem:[#allocation16_spill] sm:$0xff] %v16131_v21  ;;  %v1827_v1 = vpop.f32.mrf.mxu0 }
 0x20f   :  { %v1496_v37 = vpop.f32.mrf.mxu3  ;;  %v1886_v35 = vpop.f32.mrf.mxu1 }
 0x210   :  { %v1497_v55 = vadd.f32 %v1496_v37, %v1437_v59  ;;  %v1887_v50 = vadd.f32 %v1886_v35, %v1827_v1  ;;  %v10969_v37 = vld [vmem:[%s20873_s0 + $0x140] sm:$0xf]  ;;  %v10971_v1 = vld [vmem:[%s20873_s0 + $0x148] sm:$0xf0] }
 0x211   :  { %2350 = vmatmul.bf16.gmra.mxu2 %v16145_v19  ;;  %2584 = vmatmul.bf16.gmra.mxu0 %v16075_v4  ;;  %v10961_v4 = vld [vmem:[%s20873_s0 + $0x130] sm:$0xf] }
 0x212   :  { %v1524_v40 = vadd.f32 %v1497_v55, %v15772_v24  ;;  %2643 = vmatmul.bf16.gmra.mxu1 %v16077_v20  ;;  %v14189_v20 = vld [vmem:[%s20873_s0 + $0x134] sm:$0xf]  ;;  %v16177_v63 = vor.u32 %v14190_v43, %v10961_v4  ;;  %v14208_v55 = vld [vmem:[%s20873_s0 + $0x144] sm:$0xf0] }
 0x213   :  { %v16179_v29 = vor.u32 %v14189_v20, %v10963_v36  ;;  %v10970_v35 = vor.u32 %v14208_v55, %v10969_v37  ;;  %v14390_v36 = vld [vmem:[%s20872_s1 + $0xf8] sm:$0xff]  ;;  %v14325_v37 = vld [vmem:[%s20872_s1 + $0x230] sm:$0xff] }
 0x214   :  { %v16158_v11 = vadd.f32 %v1884_v22, %v1524_v40  ;;  %2409 = vmatmul.bf16.gmra.mxu3 %v16147_v3  ;;  %v1440_v32 = vpop.f32.mrf.mxu2  ;;  %v14333_v55 = vld [vmem:[%s20872_s1 + $0x270] sm:$0xff] }
 0x216   :  { %21023 = vst [vmem:[#allocation17_spill] sm:$0xff] %v16158_v11  ;;  %v1829_v17 = vpop.f32.mrf.mxu0 }
 0x217   :  { %v1499_v14 = vpop.f32.mrf.mxu3  ;;  %v1888_v58 = vpop.f32.mrf.mxu1 }
 0x218   :  { %v1500_v51 = vadd.f32 %v1499_v14, %v1440_v32  ;;  %v1889_v61 = vadd.f32 %v1888_v58, %v1829_v17  ;;  %v14326_v58 = vld [vmem:[%s20872_s1 + $0x238] sm:$0xff] }
 0x219   :  { %3684 = vmatpush.bf16.msrb.mxu2 %v14326_v58 }
 0x21a   :  { %v1525_v24 = vadd.f32 %v1500_v51, %v15781_v18 }
 0x21c   :  { %v16163_v54 = vadd.f32 %v1887_v50, %v1525_v24  ;;  %v1442_v18 = vpop.f32.mrf.mxu2  ;;  %v14334_v24 = vld [vmem:[%s20872_s1 + $0x278] sm:$0xff] }
 0x21d   :  { %3743 = vmatpush.bf16.msrb.mxu3 %v14334_v24  ;;  %3685 = vmatpush.bf16.msrb.mxu2 %v14325_v37 }
 0x21e   :  { %21024 = vst [vmem:[#allocation18_spill] sm:$0xff] %v16163_v54  ;;  %v1832_v41 = vpop.f32.mrf.mxu0 }
 0x21f   :  { %v1501_v33 = vpop.f32.mrf.mxu3  ;;  %v1891_v16 = vpop.f32.mrf.mxu1 }
 0x220   :  { %v1502_v47 = vadd.f32 %v1501_v33, %v1442_v18  ;;  %v1892_v44 = vadd.f32 %v1891_v16, %v1832_v41  ;;  %v10977_v18 = vld [vmem:[%s20873_s0 + $0x150] sm:$0xf]  ;;  %v14210_v33 = vld [vmem:[%s20873_s0 + $0x154] sm:$0xf0]  ;;  %v14209_v41 = vld [vmem:[%s20873_s0 + $0x154] sm:$0xf] }
 0x221   :  { %2355 = vmatmul.bf16.gmra.mxu2 %v16177_v63  ;;  %2589 = vmatmul.bf16.gmra.mxu0 %v16107_v10  ;;  %v10979_v16 = vld [vmem:[%s20873_s0 + $0x158] sm:$0xf0] }
 0x222   :  { %v1526_v26 = vadd.f32 %v1502_v47, %v15808_v28  ;;  %2648 = vmatmul.bf16.gmra.mxu1 %v16109_v38  ;;  %v14292_v28 = vld [vmem:[%s20872_s1 + $0x1c8] sm:$0xff]  ;;  %v10982_v31 = vor.u32 %v14209_v41, %v10979_v16  ;;  %3744 = vmatpush.bf16.msrb.mxu3 %v14333_v55 }
 0x223   :  { %3363 = vmatpush.bf16.msra.mxu1 %v14292_v28 }
 0x224   :  { %v16184_v52 = vadd.f32 %v1889_v61, %v1526_v26  ;;  %2414 = vmatmul.bf16.gmra.mxu3 %v16179_v29  ;;  %v1445_v46 = vpop.f32.mrf.mxu2 }
 0x226   :  { %21025 = vst [vmem:[#allocation19_spill] sm:$0xff] %v16184_v52  ;;  %v1834_v38 = vpop.f32.mrf.mxu0 }
 0x227   :  { %v1504_v10 = vpop.f32.mrf.mxu3  ;;  %v1893_v22 = vpop.f32.mrf.mxu1  ;;  %3364 = vmatpush.bf16.msra.mxu1 %v14291_v13 }
 0x228   :  { %v1505_v42 = vadd.f32 %v1504_v10, %v1445_v46  ;;  %v1894_v8 = vadd.f32 %v1893_v22, %v1834_v38  ;;  %v10978_v46 = vor.u32 %v14210_v33, %v10977_v18 }
 0x22a   :  { %v1527_v6 = vadd.f32 %v1505_v42, %v15817_v60  ;;  %v14207_v60 = vld [vmem:[%s20873_s0 + $0x144] sm:$0xf] }
 0x22b   :  { %v10974_v32 = vor.u32 %v14207_v60, %v10971_v1  ;;  %4277 = vmatpush.bf16.msrb.mxu1 %v14390_v36  ;;  %v14227_v60 = vld [vmem:[%s20873_s0 + $0xe4] sm:$0xf]  ;;  %v11337_v1 = vld [vmem:[%s20873_s0 + $0x100] sm:$0xf] }
 0x22c   :  { %v16207_v59 = vadd.f32 %v1892_v44, %v1527_v6  ;;  %v1447_v62 = vpop.f32.mrf.mxu2 }
 0x22e   :  { %21026 = vst [vmem:[#allocation20_spill] sm:$0xff] %v16207_v59  ;;  %v2555_v50 = vpop.f32.mrf.mxu0 }
 0x22f   :  { %v1506_v12 = vpop.f32.mrf.mxu3  ;;  %v2614_v14 = vpop.f32.mrf.mxu1 }
 0x230   :  { %v1507_v40 = vadd.f32 %v1506_v12, %v1447_v62  ;;  %v14264_v62 = vld [vmem:[%s20873_s0 + $0x104] sm:$0xf0] }
 0x231   :  { %2360 = vmatmul.bf16.gmra.mxu2 %v10970_v35  ;;  %2594 = vmatmul.bf16.gmra.mxu0 %v16145_v19  ;;  %v11163_v35 = vld [vmem:[%s20873_s0 + $0xe8] sm:$0xf0]  ;;  %v11338_v58 = vor.u32 %v14264_v62, %v11337_v1 }
 0x232   :  { %v1528_v51 = vadd.f32 %v1507_v40, %v15850_v34  ;;  %2653 = vmatmul.bf16.gmra.mxu1 %v16147_v3  ;;  %v14382_v3 = vld [vmem:[%s20872_s1 + $0xb8] sm:$0xff]  ;;  %v14263_v40 = vld [vmem:[%s20873_s0 + $0x104] sm:$0xf] }
 0x233   :  { %4218 = vmatpush.bf16.msrb.mxu0 %v14382_v3  ;;  %v14389_v3 = vld [vmem:[%s20872_s1 + $0xf0] sm:$0xff] }
 0x234   :  { %v16223_v17 = vadd.f32 %v1894_v8, %v1528_v51  ;;  %2419 = vmatmul.bf16.gmra.mxu3 %v10974_v32  ;;  %v2321_v61 = vpop.f32.mrf.mxu2  ;;  %4278 = vmatpush.bf16.msrb.mxu1 %v14389_v3  ;;  %v11353_v3 = vld [vmem:[%s20873_s0 + $0x120] sm:$0xf] }
 0x236   :  { %21027 = vst [vmem:[#allocation21_spill] sm:$0xff] %v16223_v17  ;;  %v2557_v43 = vpop.f32.mrf.mxu0  ;;  %v14367_v17 = vld [vmem:[%s20872_s1 + $0x60] sm:$0xff] }
 0x237   :  { %v2380_v34 = vpop.f32.mrf.mxu3  ;;  %v2616_v19 = vpop.f32.mrf.mxu1 }
 0x238   :  { %v2381_v4 = vadd.f32 %v2380_v34, %v2321_v61  ;;  %v11166_v34 = vor.u32 %v14227_v60, %v11163_v35 }
 0x23a   :  { %v2556_v20 = vadd.f32 %v2555_v50, %v2381_v4  ;;  %v11339_v50 = vld [vmem:[%s20873_s0 + $0x108] sm:$0xf0] }
 0x23b   :  { %v11342_v4 = vor.u32 %v14263_v40, %v11339_v50  ;;  %v14380_v50 = vld [vmem:[%s20872_s1 + $0xa8] sm:$0xff] }
 0x23c   :  { %v16244_v47 = vadd.f32 %v2614_v14, %v2556_v20  ;;  %v2323_v26 = vpop.f32.mrf.mxu2  ;;  %v14381_v20 = vld [vmem:[%s20872_s1 + $0xb0] sm:$0xff] }
 0x23d   :  { %4219 = vmatpush.bf16.msrb.mxu0 %v14381_v20  ;;  %v14231_v20 = vld [vmem:[%s20873_s0 + $0x104] sm:$0xf] }
 0x23e   :  { %v2560_v28 = vpop.f32.mrf.mxu0 }
 0x23f   :  { %v2382_v44 = vpop.f32.mrf.mxu3  ;;  %v2619_v10 = vpop.f32.mrf.mxu1 }
 0x240   :  { %v2383_v30 = vadd.f32 %v2382_v44, %v2323_v26 }
 0x241   :  { %2365 = vmatmul.bf16.gmra.mxu2 %v10978_v46  ;;  %2599 = vmatmul.bf16.gmra.mxu0 %v16177_v63  ;;  %v11161_v63 = vld [vmem:[%s20873_s0 + $0xe0] sm:$0xf]  ;;  %v14324_v46 = vld [vmem:[%s20872_s1 + $0x228] sm:$0xff] }
 0x242   :  { %v2558_v49 = vadd.f32 %v2557_v43, %v2383_v30  ;;  %2658 = vmatmul.bf16.gmra.mxu1 %v16179_v29  ;;  %v14228_v29 = vld [vmem:[%s20873_s0 + $0xe4] sm:$0xf0]  ;;  %3686 = vmatpush.bf16.msrb.mxu2 %v14324_v46 }
 0x243   :  { %v11162_v51 = vor.u32 %v14228_v29, %v11161_v63  ;;  %v14332_v30 = vld [vmem:[%s20872_s1 + $0x268] sm:$0xff]  ;;  %4220 = vmatpush.bf16.msrb.mxu0 %v14380_v50  ;;  %v11185_v50 = vld [vmem:[%s20873_s0 + $0x110] sm:$0xf] }
 0x244   :  { %2424 = vmatmul.bf16.gmra.mxu3 %v10982_v31  ;;  %v16254_v42 = vadd.f32 %v2616_v19, %v2558_v49  ;;  %v2326_v38 = vpop.f32.mrf.mxu2  ;;  %v14230_v31 = vld [vmem:[%s20873_s0 + $0xf4] sm:$0xf0]  ;;  %v11345_v49 = vld [vmem:[%s20873_s0 + $0x110] sm:$0xf] }
 0x245   :  { %3745 = vmatpush.bf16.msrb.mxu3 %v14332_v30 }
 0x246   :  { %v2562_v8 = vpop.f32.mrf.mxu0 }
 0x247   :  { %v2385_v22 = vpop.f32.mrf.mxu3  ;;  %v2621_v53 = vpop.f32.mrf.mxu1 }
 0x248   :  { %v2386_v6 = vadd.f32 %v2385_v22, %v2326_v38  ;;  %v14266_v38 = vld [vmem:[%s20873_s0 + $0x114] sm:$0xf0] }
 0x249   :  { %v11346_v63 = vor.u32 %v14266_v38, %v11345_v49 }
 0x24a   :  { %v2561_v13 = vadd.f32 %v2560_v28, %v2386_v6  ;;  %v11169_v28 = vld [vmem:[%s20873_s0 + $0xf0] sm:$0xf]  ;;  %v11171_v6 = vld [vmem:[%s20873_s0 + $0xf8] sm:$0xf0] }
 0x24b   :  { %v11170_v55 = vor.u32 %v14230_v31, %v11169_v28 }
 0x24c   :  { %v16277_v12 = vadd.f32 %v2619_v10, %v2561_v13  ;;  %v2328_v32 = vpop.f32.mrf.mxu2  ;;  %v14229_v10 = vld [vmem:[%s20873_s0 + $0xf4] sm:$0xf] }
 0x24d   :  { %v11174_v1 = vor.u32 %v14229_v10, %v11171_v6 }
 0x24e   :  { %v2565_v61 = vpop.f32.mrf.mxu0 }
 0x24f   :  { %v2387_v14 = vpop.f32.mrf.mxu3  ;;  %v2624_v43 = vpop.f32.mrf.mxu1 }
 0x250   :  { %v2388_v24 = vadd.f32 %v2387_v14, %v2328_v32  ;;  %v14388_v32 = vld [vmem:[%s20872_s1 + $0xe8] sm:$0xff] }
 0x251   :  { %2920 = vmatmul.bf16.vlgmr.msra.gmra.mxu2 %v11162_v51  ;;  %3306 = vmatmul.bf16.vlgmr.msra.gmra.mxu0 %v11338_v58 }
 0x252   :  { %v2563_v19 = vadd.f32 %v2562_v8, %v2388_v24  ;;  %3365 = vmatmul.bf16.vlgmr.msra.gmra.mxu1 %v11342_v4  ;;  %v14265_v8 = vld [vmem:[%s20873_s0 + $0x114] sm:$0xf] }
 0x253   :  { %4279 = vmatpush.bf16.msrb.mxu1 %v14388_v32  ;;  %v14234_v32 = vld [vmem:[%s20873_s0 + $0x114] sm:$0xf0] }
 0x254   :  { %2979 = vmatmul.bf16.vlgmr.msra.gmra.mxu3 %v11166_v34  ;;  %v16294_v36 = vadd.f32 %v2621_v53, %v2563_v19  ;;  %v2331_v18 = vpop.f32.mrf.mxu2  ;;  %v11347_v53 = vld [vmem:[%s20873_s0 + $0x118] sm:$0xf0]  ;;  %v14232_v19 = vld [vmem:[%s20873_s0 + $0x104] sm:$0xf0] }
 0x255   :  { %v11350_v62 = vor.u32 %v14265_v8, %v11347_v53  ;;  %v14323_v53 = vld [vmem:[%s20872_s1 + $0x220] sm:$0xff] }
 0x256   :  { %v2567_v16 = vpop.f32.mrf.mxu0  ;;  %3687 = vmatpush.bf16.msrb.mxu2 %v14323_v53 }
 0x257   :  { %v2390_v33 = vpop.f32.mrf.mxu3  ;;  %v2626_v26 = vpop.f32.mrf.mxu1 }
 0x258   :  { %v2391_v41 = vadd.f32 %v2390_v33, %v2331_v18  ;;  %v14268_v18 = vld [vmem:[%s20873_s0 + $0x124] sm:$0xf0] }
 0x259   :  { %v11354_v28 = vor.u32 %v14268_v18, %v11353_v3  ;;  %v11186_v3 = vor.u32 %v14234_v32, %v11185_v50  ;;  %v11195_v50 = vld [vmem:[%s20873_s0 + $0x128] sm:$0xf0]  ;;  %v14271_v32 = vld [vmem:[%s20873_s0 + $0x144] sm:$0xf] }
 0x25a   :  { %v2566_v44 = vadd.f32 %v2565_v61, %v2391_v41  ;;  %v11179_v41 = vld [vmem:[%s20873_s0 + $0x108] sm:$0xf0] }
 0x25b   :  { %v11182_v49 = vor.u32 %v14231_v20, %v11179_v41 }
 0x25c   :  { %v16317_v22 = vadd.f32 %v2624_v43, %v2566_v44  ;;  %v2333_v13 = vpop.f32.mrf.mxu2  ;;  %v11177_v43 = vld [vmem:[%s20873_s0 + $0x100] sm:$0xf] }
 0x25d   :  { %v11178_v30 = vor.u32 %v14232_v19, %v11177_v43  ;;  %v11363_v43 = vld [vmem:[%s20873_s0 + $0x138] sm:$0xf0] }
 0x25e   :  { %v2570_v60 = vpop.f32.mrf.mxu0 }
 0x25f   :  { %v2392_v37 = vpop.f32.mrf.mxu3  ;;  %v2629_v35 = vpop.f32.mrf.mxu1 }
 0x260   :  { %v2393_v29 = vadd.f32 %v2392_v37, %v2333_v13  ;;  %v14331_v13 = vld [vmem:[%s20872_s1 + $0x260] sm:$0xff] }
 0x261   :  { %2925 = vmatmul.bf16.gmra.mxu2 %v11170_v55  ;;  %3311 = vmatmul.bf16.gmra.mxu0 %v11346_v63 }
 0x262   :  { %v2568_v40 = vadd.f32 %v2567_v16, %v2393_v29  ;;  %3370 = vmatmul.bf16.gmra.mxu1 %v11350_v62  ;;  %v14267_v16 = vld [vmem:[%s20873_s0 + $0x124] sm:$0xf]  ;;  %3746 = vmatpush.bf16.msrb.mxu3 %v14331_v13 }
 0x264   :  { %2984 = vmatmul.bf16.gmra.mxu3 %v11174_v1  ;;  %v16334_v14 = vadd.f32 %v2626_v26, %v2568_v40  ;;  %v2336_v51 = vpop.f32.mrf.mxu2  ;;  %v11355_v26 = vld [vmem:[%s20873_s0 + $0x128] sm:$0xf0]  ;;  %v14387_v40 = vld [vmem:[%s20872_s1 + $0xe0] sm:$0xff] }
 0x265   :  { %v11358_v38 = vor.u32 %v14267_v16, %v11355_v26  ;;  %4280 = vmatpush.bf16.msrb.mxu1 %v14387_v40 }
 0x266   :  { %v2572_v61 = vpop.f32.mrf.mxu0 }
 0x267   :  { %v2395_v58 = vpop.f32.mrf.mxu3  ;;  %v2631_v34 = vpop.f32.mrf.mxu1 }
 0x268   :  { %v2396_v24 = vadd.f32 %v2395_v58, %v2336_v51  ;;  %v14233_v51 = vld [vmem:[%s20873_s0 + $0x114] sm:$0xf]  ;;  %v11361_v58 = vld [vmem:[%s20873_s0 + $0x130] sm:$0xf] }
 0x26a   :  { %v2571_v4 = vadd.f32 %v2570_v60, %v2396_v24  ;;  %v14270_v24 = vld [vmem:[%s20873_s0 + $0x134] sm:$0xf0] }
 0x26b   :  { %v11362_v18 = vor.u32 %v14270_v24, %v11361_v58 }
 0x26c   :  { %v16351_v33 = vadd.f32 %v2629_v35, %v2571_v4  ;;  %v2338_v44 = vpop.f32.mrf.mxu2  ;;  %v14379_v35 = vld [vmem:[%s20872_s1 + $0xa0] sm:$0xff]  ;;  %v14269_v4 = vld [vmem:[%s20873_s0 + $0x134] sm:$0xf] }
 0x26d   :  { %4221 = vmatpush.bf16.msrb.mxu0 %v14379_v35  ;;  %v14272_v35 = vld [vmem:[%s20873_s0 + $0x144] sm:$0xf0] }
 0x26e   :  { %v2575_v10 = vpop.f32.mrf.mxu0 }
 0x26f   :  { %v2397_v46 = vpop.f32.mrf.mxu3  ;;  %v2634_v6 = vpop.f32.mrf.mxu1 }
 0x270   :  { %v2398_v31 = vadd.f32 %v2397_v46, %v2338_v44  ;;  %v11366_v44 = vor.u32 %v14269_v4, %v11363_v43 }
 0x271   :  { %2930 = vmatmul.bf16.gmra.mxu2 %v11178_v30  ;;  %3316 = vmatmul.bf16.gmra.mxu0 %v11354_v28  ;;  %v14322_v28 = vld [vmem:[%s20872_s1 + $0x218] sm:$0xff] }
 0x272   :  { %v2573_v8 = vadd.f32 %v2572_v61, %v2398_v31  ;;  %3375 = vmatmul.bf16.gmra.mxu1 %v11358_v38  ;;  %v14330_v31 = vld [vmem:[%s20872_s1 + $0x258] sm:$0xff]  ;;  %3688 = vmatpush.bf16.msrb.mxu2 %v14322_v28 }
 0x273   :  { %3747 = vmatpush.bf16.msrb.mxu3 %v14330_v31 }
 0x274   :  { %2989 = vmatmul.bf16.gmra.mxu3 %v11182_v49  ;;  %v16368_v37 = vadd.f32 %v2631_v34, %v2573_v8  ;;  %v2341_v55 = vpop.f32.mrf.mxu2  ;;  %v11187_v34 = vld [vmem:[%s20873_s0 + $0x118] sm:$0xf0] }
 0x275   :  { %v11190_v26 = vor.u32 %v14233_v51, %v11187_v34  ;;  %v11371_v51 = vld [vmem:[%s20873_s0 + $0x148] sm:$0xf0] }
 0x276   :  { %v2577_v60 = vpop.f32.mrf.mxu0 }
 0x277   :  { %v2400_v63 = vpop.f32.mrf.mxu3  ;;  %v2636_v1 = vpop.f32.mrf.mxu1 }
 0x278   :  { %v2401_v29 = vadd.f32 %v2400_v63, %v2341_v55  ;;  %v14378_v55 = vld [vmem:[%s20872_s1 + $0x98] sm:$0xff] }
 0x279   :  { %v14386_v63 = vld [vmem:[%s20872_s1 + $0xd8] sm:$0xff]  ;;  %4222 = vmatpush.bf16.msrb.mxu0 %v14378_v55 }
 0x27a   :  { %v2576_v62 = vadd.f32 %v2575_v10, %v2401_v29  ;;  %v11193_v29 = vld [vmem:[%s20873_s0 + $0x120] sm:$0xf]  ;;  %4281 = vmatpush.bf16.msrb.mxu1 %v14386_v63  ;;  %v14274_v55 = vld [vmem:[%s20873_s0 + $0x154] sm:$0xf0] }
 0x27c   :  { %v16391_v61 = vadd.f32 %v2634_v6, %v2576_v62  ;;  %v2343_v19 = vpop.f32.mrf.mxu2  ;;  %v11369_v62 = vld [vmem:[%s20873_s0 + $0x140] sm:$0xf] }
 0x27d   :  { %v11370_v4 = vor.u32 %v14272_v35, %v11369_v62 }
 0x27e   :  { %v2580_v16 = vpop.f32.mrf.mxu0 }
 0x27f   :  { %v2402_v20 = vpop.f32.mrf.mxu3  ;;  %v2639_v46 = vpop.f32.mrf.mxu1 }
 0x280   :  { %v2403_v41 = vadd.f32 %v2402_v20, %v2343_v19 }
 0x281   :  { %2935 = vmatmul.bf16.gmra.mxu2 %v11186_v3  ;;  %3321 = vmatmul.bf16.gmra.mxu0 %v11362_v18  ;;  %v11374_v3 = vor.u32 %v14271_v32, %v11371_v51 }
 0x282   :  { %v2578_v30 = vadd.f32 %v2577_v60, %v2403_v41  ;;  %3380 = vmatmul.bf16.gmra.mxu1 %v11366_v44  ;;  %v14236_v60 = vld [vmem:[%s20873_s0 + $0x124] sm:$0xf0] }
 0x283   :  { %v11194_v34 = vor.u32 %v14236_v60, %v11193_v29  ;;  %v11203_v29 = vld [vmem:[%s20873_s0 + $0x138] sm:$0xf0]  ;;  %v14273_v60 = vld [vmem:[%s20873_s0 + $0x154] sm:$0xf] }
 0x284   :  { %2994 = vmatmul.bf16.gmra.mxu3 %v11190_v26  ;;  %v16408_v10 = vadd.f32 %v2636_v1, %v2578_v30  ;;  %v2346_v49 = vpop.f32.mrf.mxu2  ;;  %v14235_v1 = vld [vmem:[%s20873_s0 + $0x124] sm:$0xf] }
 0x285   :  { %v11198_v20 = vor.u32 %v14235_v1, %v11195_v50  ;;  %v11379_v1 = vld [vmem:[%s20873_s0 + $0x158] sm:$0xf0] }
 0x286   :  { %v2582_v8 = vpop.f32.mrf.mxu0 }
 0x287   :  { %v2405_v38 = vpop.f32.mrf.mxu3  ;;  %v2641_v53 = vpop.f32.mrf.mxu1 }
 0x288   :  { %v2406_v6 = vadd.f32 %v2405_v38, %v2346_v49  ;;  %v14321_v49 = vld [vmem:[%s20872_s1 + $0x210] sm:$0xff] }
 0x289   :  { %v14329_v38 = vld [vmem:[%s20872_s1 + $0x250] sm:$0xff]  ;;  %3689 = vmatpush.bf16.msrb.mxu2 %v14321_v49  ;;  %v14328_v49 = vld [vmem:[%s20872_s1 + $0x248] sm:$0xff] }
 0x28a   :  { %v2581_v13 = vadd.f32 %v2580_v16, %v2406_v6  ;;  %v11201_v6 = vld [vmem:[%s20873_s0 + $0x130] sm:$0xf]  ;;  %3748 = vmatpush.bf16.msrb.mxu3 %v14329_v38  ;;  %v14240_v38 = vld [vmem:[%s20873_s0 + $0x144] sm:$0xf0] }
 0x28c   :  { %v16431_v40 = vadd.f32 %v2639_v46, %v2581_v13  ;;  %v2348_v58 = vpop.f32.mrf.mxu2  ;;  %v11377_v13 = vld [vmem:[%s20873_s0 + $0x150] sm:$0xf] }
 0x28d   :  { %v11378_v32 = vor.u32 %v14274_v55, %v11377_v13  ;;  %v11211_v55 = vld [vmem:[%s20873_s0 + $0x148] sm:$0xf0] }
 0x28e   :  { %v2585_v19 = vpop.f32.mrf.mxu0  ;;  %3749 = vmatpush.bf16.msrb.mxu3 %v14328_v49  ;;  %v11217_v49 = vld [vmem:[%s20873_s0 + $0x150] sm:$0xf] }
 0x28f   :  { %v2407_v24 = vpop.f32.mrf.mxu3  ;;  %v2644_v18 = vpop.f32.mrf.mxu1 }
 0x290   :  { %v2408_v43 = vadd.f32 %v2407_v24, %v2348_v58 }
 0x291   :  { %2940 = vmatmul.bf16.gmra.mxu2 %v11194_v34  ;;  %3326 = vmatmul.bf16.gmra.mxu0 %v11370_v4  ;;  %v11382_v34 = vor.u32 %v14273_v60, %v11379_v1  ;;  %v11387_v60 = vld [vmem:[%s20873_s0 + $0x168] sm:$0xf0] }
 0x292   :  { %v2583_v41 = vadd.f32 %v2582_v8, %v2408_v43  ;;  %3385 = vmatmul.bf16.gmra.mxu1 %v11374_v3  ;;  %v14238_v8 = vld [vmem:[%s20873_s0 + $0x134] sm:$0xf0] }
 0x293   :  { %v11202_v50 = vor.u32 %v14238_v8, %v11201_v6  ;;  %v14239_v6 = vld [vmem:[%s20873_s0 + $0x144] sm:$0xf]  ;;  %v11385_v8 = vld [vmem:[%s20873_s0 + $0x160] sm:$0xf] }
 0x294   :  { %2999 = vmatmul.bf16.gmra.mxu3 %v11198_v20  ;;  %v16442_v16 = vadd.f32 %v2641_v53, %v2583_v41  ;;  %v2351_v26 = vpop.f32.mrf.mxu2  ;;  %v14237_v53 = vld [vmem:[%s20873_s0 + $0x134] sm:$0xf] }
 0x295   :  { %v11206_v24 = vor.u32 %v14237_v53, %v11203_v29  ;;  %v14385_v20 = vld [vmem:[%s20872_s1 + $0xd0] sm:$0xff]  ;;  %v14276_v53 = vld [vmem:[%s20873_s0 + $0x164] sm:$0xf0]  ;;  %v14275_v29 = vld [vmem:[%s20873_s0 + $0x164] sm:$0xf] }
 0x296   :  { %v2587_v30 = vpop.f32.mrf.mxu0  ;;  %4282 = vmatpush.bf16.msrb.mxu1 %v14385_v20 }
 0x297   :  { %v2410_v44 = vpop.f32.mrf.mxu3  ;;  %v2646_v28 = vpop.f32.mrf.mxu1 }
 0x298   :  { %v2411_v46 = vadd.f32 %v2410_v44, %v2351_v26 }
 0x29a   :  { %v2586_v31 = vadd.f32 %v2585_v19, %v2411_v46  ;;  %v14377_v19 = vld [vmem:[%s20872_s1 + $0x90] sm:$0xff] }
 0x29b   :  { %4223 = vmatpush.bf16.msrb.mxu0 %v14377_v19  ;;  %v14384_v19 = vld [vmem:[%s20872_s1 + $0xc8] sm:$0xff] }
 0x29c   :  { %v16465_v63 = vadd.f32 %v2644_v18, %v2586_v31  ;;  %v2353_v62 = vpop.f32.mrf.mxu2  ;;  %v14320_v31 = vld [vmem:[%s20872_s1 + $0x208] sm:$0xff]  ;;  %4283 = vmatpush.bf16.msrb.mxu1 %v14384_v19 }
 0x29d   :  { %3690 = vmatpush.bf16.msrb.mxu2 %v14320_v31 }
 0x29e   :  { %v2590_v58 = vpop.f32.mrf.mxu0 }
 0x29f   :  { %v2412_v35 = vpop.f32.mrf.mxu3  ;;  %v2649_v4 = vpop.f32.mrf.mxu1 }
 0x2a0   :  { %v2413_v51 = vadd.f32 %v2412_v35, %v2353_v62 }
 0x2a1   :  { %2945 = vmatmul.bf16.gmra.mxu2 %v11202_v50  ;;  %3331 = vmatmul.bf16.gmra.mxu0 %v11378_v32  ;;  %v11386_v50 = vor.u32 %v14276_v53, %v11385_v8  ;;  %v11219_v53 = vld [vmem:[%s20873_s0 + $0x158] sm:$0xf0] }
 0x2a2   :  { %v2588_v43 = vadd.f32 %v2587_v30, %v2413_v51  ;;  %3390 = vmatmul.bf16.gmra.mxu1 %v11382_v34 }
 0x2a4   :  { %3004 = vmatmul.bf16.gmra.mxu3 %v11206_v24  ;;  %v16482_v3 = vadd.f32 %v2646_v28, %v2588_v43  ;;  %v2356_v18 = vpop.f32.mrf.mxu2  ;;  %v11209_v28 = vld [vmem:[%s20873_s0 + $0x140] sm:$0xf]  ;;  %v11390_v24 = vor.u32 %v14275_v29, %v11387_v60  ;;  %v14376_v43 = vld [vmem:[%s20872_s1 + $0x88] sm:$0xff]  ;;  %v11395_v29 = vld [vmem:[%s20873_s0 + $0x178] sm:$0xf0] }
 0x2a5   :  { %v11210_v35 = vor.u32 %v14240_v38, %v11209_v28  ;;  %4224 = vmatpush.bf16.msrb.mxu0 %v14376_v43  ;;  %v14242_v28 = vld [vmem:[%s20873_s0 + $0x154] sm:$0xf0]  ;;  %v11393_v38 = vld [vmem:[%s20873_s0 + $0x170] sm:$0xf]  ;;  %v14327_v43 = vld [vmem:[%s20872_s1 + $0x240] sm:$0xff] }
 0x2a6   :  { %v2592_v44 = vpop.f32.mrf.mxu0  ;;  %3750 = vmatpush.bf16.msrb.mxu3 %v14327_v43 }
 0x2a7   :  { %v2415_v41 = vpop.f32.mrf.mxu3  ;;  %v2651_v46 = vpop.f32.mrf.mxu1 }
 0x2a8   :  { %v2416_v26 = vadd.f32 %v2415_v41, %v2356_v18 }
 0x2aa   :  { %v2591_v30 = vadd.f32 %v2590_v58, %v2416_v26  ;;  %v11214_v58 = vor.u32 %v14239_v6, %v11211_v55  ;;  %v14278_v6 = vld [vmem:[%s20873_s0 + $0x174] sm:$0xf0]  ;;  %v14277_v55 = vld [vmem:[%s20873_s0 + $0x174] sm:$0xf] }
 0x2ac   :  { %v16505_v13 = vadd.f32 %v2649_v4, %v2591_v30  ;;  %v2358_v1 = vpop.f32.mrf.mxu2 }
 0x2ae   :  { %v2595_v51 = vpop.f32.mrf.mxu0 }
 0x2af   :  { %v2417_v62 = vpop.f32.mrf.mxu3  ;;  %v2654_v34 = vpop.f32.mrf.mxu1 }
 0x2b0   :  { %v2418_v32 = vadd.f32 %v2417_v62, %v2358_v1  ;;  %v11218_v62 = vor.u32 %v14242_v28, %v11217_v49  ;;  %v14375_v28 = vld [vmem:[%s20872_s1 + $0x80] sm:$0xff] }
 0x2b1   :  { %2950 = vmatmul.bf16.gmra.mxu2 %v11210_v35  ;;  %3336 = vmatmul.bf16.gmra.mxu0 %v11386_v50  ;;  %v11394_v35 = vor.u32 %v14278_v6, %v11393_v38  ;;  %v14244_v38 = vld [vmem:[%s20873_s0 + $0x164] sm:$0xf0]  ;;  %v14243_v6 = vld [vmem:[%s20873_s0 + $0x164] sm:$0xf] }
 0x2b2   :  { %v2593_v4 = vadd.f32 %v2592_v44, %v2418_v32  ;;  %3395 = vmatmul.bf16.gmra.mxu1 %v11390_v24  ;;  %4225 = vmatpush.bf16.msrb.mxu0 %v14375_v28  ;;  %v14370_v28 = vld [vmem:[%s20872_s1 + $0x78] sm:$0xff] }
 0x2b3   :  { %4511 = vmatpush.bf16.msra.mxu3 %v14370_v28 }
 0x2b4   :  { %3009 = vmatmul.bf16.gmra.mxu3 %v11214_v58  ;;  %v16522_v20 = vadd.f32 %v2651_v46, %v2593_v4  ;;  %v2361_v18 = vpop.f32.mrf.mxu2  ;;  %v14241_v46 = vld [vmem:[%s20873_s0 + $0x154] sm:$0xf]  ;;  %v11398_v58 = vor.u32 %v14277_v55, %v11395_v29  ;;  %v14319_v4 = vld [vmem:[%s20872_s1 + $0x200] sm:$0xff]  ;;  %v14280_v55 = vld [vmem:[%s20873_s0 + $0x184] sm:$0xf0] }
 0x2b5   :  { %3691 = vmatpush.bf16.msrb.mxu2 %v14319_v4 }
 0x2b6   :  { %v2597_v44 = vpop.f32.mrf.mxu0 }
 0x2b7   :  { %v2420_v41 = vpop.f32.mrf.mxu3  ;;  %v2656_v30 = vpop.f32.mrf.mxu1 }
 0x2b8   :  { %v2421_v26 = vadd.f32 %v2420_v41, %v2361_v18 }
 0x2ba   :  { %v2596_v31 = vadd.f32 %v2595_v51, %v2421_v26  ;;  %v11222_v51 = vor.u32 %v14241_v46, %v11219_v53  ;;  %v14383_v46 = vld [vmem:[%s20872_s1 + $0xc0] sm:$0xff] }
 0x2bb   :  { %v11401_v53 = vld [vmem:[%s20873_s0 + $0x180] sm:$0xf]  ;;  %4284 = vmatpush.bf16.msrb.mxu1 %v14383_v46 }
 0x2bc   :  { %v16539_v8 = vadd.f32 %v2654_v34, %v2596_v31  ;;  %v2363_v60 = vpop.f32.mrf.mxu2 }
 0x2be   :  { %v2600_v32 = vpop.f32.mrf.mxu0 }
 0x2bf   :  { %v2422_v1 = vpop.f32.mrf.mxu3  ;;  %v2659_v24 = vpop.f32.mrf.mxu1 }
 0x2c0   :  { %v2423_v50 = vadd.f32 %v2422_v1, %v2363_v60  ;;  %v11227_v60 = vld [vmem:[%s20873_s0 + $0x168] sm:$0xf0]  ;;  %v14279_v1 = vld [vmem:[%s20873_s0 + $0x184] sm:$0xf] }
 0x2c1   :  { %2955 = vmatmul.bf16.gmra.mxu2 %v11218_v62  ;;  %3341 = vmatmul.bf16.gmra.mxu0 %v11394_v35  ;;  %v11403_v62 = vld [vmem:[%s20873_s0 + $0x188] sm:$0xf0] }
 0x2c2   :  { %v2598_v34 = vadd.f32 %v2597_v44, %v2423_v50  ;;  %3400 = vmatmul.bf16.gmra.mxu1 %v11398_v58  ;;  %v11406_v4 = vor.u32 %v14279_v1, %v11403_v62  ;;  %v11233_v1 = vld [vmem:[%s20873_s0 + $0x170] sm:$0xf]  ;;  %v14246_v62 = vld [vmem:[%s20873_s0 + $0x174] sm:$0xf0] }
 0x2c4   :  { %3014 = vmatmul.bf16.gmra.mxu3 %v11222_v51  ;;  %v16556_v19 = vadd.f32 %v2656_v30, %v2598_v34  ;;  %v2366_v18 = vpop.f32.mrf.mxu2  ;;  %v11225_v30 = vld [vmem:[%s20873_s0 + $0x160] sm:$0xf]  ;;  %v11402_v51 = vor.u32 %v14280_v55, %v11401_v53 }
 0x2c6   :  { %v2602_v44 = vpop.f32.mrf.mxu0 }
 0x2c7   :  { %v2425_v41 = vpop.f32.mrf.mxu3  ;;  %v2661_v31 = vpop.f32.mrf.mxu1 }
 0x2c8   :  { %v2426_v26 = vadd.f32 %v2425_v41, %v2366_v18 }
 0x2ca   :  { %v2601_v49 = vadd.f32 %v2600_v32, %v2426_v26  ;;  %v11226_v32 = vor.u32 %v14244_v38, %v11225_v30  ;;  %v14362_v26 = vld [vmem:[%s20872_s1 + $0x38] sm:$0xff] }
 0x2cb   :  { %4452 = vmatpush.bf16.msra.mxu2 %v14362_v26 }
 0x2cc   :  { %v16579_v29 = vadd.f32 %v2659_v24, %v2601_v49  ;;  %v2368_v35 = vpop.f32.mrf.mxu2  ;;  %v11230_v24 = vor.u32 %v14243_v6, %v11227_v60  ;;  %v14418_v60 = vld [vmem:[%s20872_s1 + $0x138] sm:$0xff] }
 0x2cd   :  { %4818 = vmatpush.bf16.msra.mxu0 %v14418_v60 }
 0x2ce   :  { %v3307_v34 = vpop.f32.mrf.mxu0 }
 0x2cf   :  { %v2427_v50 = vpop.f32.mrf.mxu3  ;;  %v3366_v43 = vpop.f32.mrf.mxu1 }
 0x2d0   :  { %v2428_v58 = vadd.f32 %v2427_v50, %v2368_v35  ;;  %v3367_v41 = vadd.f32 %v3366_v43, %v3307_v34  ;;  %v11409_v35 = vld [vmem:[%s20873_s0 + $0x190] sm:$0xf]  ;;  %v14282_v50 = vld [vmem:[%s20873_s0 + $0x194] sm:$0xf0]  ;;  %v11411_v34 = vld [vmem:[%s20873_s0 + $0x198] sm:$0xf0]  ;;  %v11234_v43 = vor.u32 %v14246_v62, %v11233_v1 }
 0x2d1   :  { %2960 = vmatmul.bf16.gmra.mxu2 %v11226_v32  ;;  %3346 = vmatmul.bf16.gmra.mxu0 %v11402_v51  ;;  %v11235_v51 = vld [vmem:[%s20873_s0 + $0x178] sm:$0xf0] }
 0x2d2   :  { %v2603_v18 = vadd.f32 %v2602_v44, %v2428_v58  ;;  %3405 = vmatmul.bf16.gmra.mxu1 %v11406_v4  ;;  %v14281_v58 = vld [vmem:[%s20873_s0 + $0x194] sm:$0xf] }
 0x2d4   :  { %3019 = vmatmul.bf16.gmra.mxu3 %v11230_v24  ;;  %v16593_v49 = vadd.f32 %v2661_v31, %v2603_v18  ;;  %v2921_v46 = vpop.f32.mrf.mxu2  ;;  %v14426_v31 = vld [vmem:[%s20872_s1 + $0x178] sm:$0xff]  ;;  %v11410_v18 = vor.u32 %v14282_v50, %v11409_v35  ;;  %v14300_v50 = vld [vmem:[%s20873_s0 + $0x124] sm:$0xf0] }
 0x2d5   :  { %4877 = vmatpush.bf16.msra.mxu1 %v14426_v31 }
 0x2d6   :  { %v3309_v38 = vpop.f32.mrf.mxu0 }
 0x2d7   :  { %v2980_v30 = vpop.f32.mrf.mxu3  ;;  %v3368_v6 = vpop.f32.mrf.mxu1 }
 0x2d8   :  { %v2981_v44 = vadd.f32 %v2980_v30, %v2921_v46  ;;  %v3369_v55 = vadd.f32 %v3368_v6, %v3309_v38  ;;  %v11414_v46 = vor.u32 %v14281_v58, %v11411_v34  ;;  %v11515_v34 = vld [vmem:[%s20873_s0 + $0x128] sm:$0xf0] }
 0x2da   :  { %v3030_v53 = vadd.f32 %v2981_v44, %v16244_v47  ;;  %v14245_v47 = vld [vmem:[%s20873_s0 + $0x174] sm:$0xf] }
 0x2dc   :  { %v16620_v32 = vadd.f32 %v3367_v41, %v3030_v53  ;;  %v2923_v24 = vpop.f32.mrf.mxu2  ;;  %v11238_v41 = vor.u32 %v14245_v47, %v11235_v51  ;;  %v14361_v47 = vld [vmem:[%s20872_s1 + $0x30] sm:$0xff]  ;;  %v14340_v51 = vld [vmem:[%s20873_s0 + $0x164] sm:$0xf0] }
 0x2dd   :  { %4453 = vmatpush.bf16.msra.mxu2 %v14361_v47 }
 0x2de   :  { %v3312_v28 = vpop.f32.mrf.mxu0 }
 0x2df   :  { %v2982_v4 = vpop.f32.mrf.mxu3  ;;  %v3371_v30 = vpop.f32.mrf.mxu1 }
 0x2e0   :  { %v2983_v26 = vadd.f32 %v2982_v4, %v2923_v24  ;;  %v3372_v38 = vadd.f32 %v3371_v30, %v3312_v28  ;;  %v14339_v24 = vld [vmem:[%s20873_s0 + $0x164] sm:$0xf]  ;;  %v11691_v4 = vld [vmem:[%s20873_s0 + $0x168] sm:$0xf0] }
 0x2e1   :  { %2965 = vmatmul.bf16.gmra.mxu2 %v11234_v43  ;;  %3351 = vmatmul.bf16.gmra.mxu0 %v11410_v18 }
 0x2e2   :  { %v3031_v44 = vadd.f32 %v2983_v26, %v16254_v42  ;;  %3410 = vmatmul.bf16.gmra.mxu1 %v11414_v46  ;;  %v14369_v42 = vld [vmem:[%s20872_s1 + $0x70] sm:$0xff] }
 0x2e3   :  { %4512 = vmatpush.bf16.msra.mxu3 %v14369_v42 }
 0x2e4   :  { %3024 = vmatmul.bf16.gmra.mxu3 %v11238_v41  ;;  %v16632_v6 = vadd.f32 %v3369_v55, %v3031_v44  ;;  %v2926_v53 = vpop.f32.mrf.mxu2  ;;  %v11513_v55 = vld [vmem:[%s20873_s0 + $0x120] sm:$0xf]  ;;  %v16669_v44 = vor.u32 %v14339_v24, %v11691_v4  ;;  %v14302_v24 = vld [vmem:[%s20873_s0 + $0x134] sm:$0xf0]  ;;  %v11697_v4 = vld [vmem:[%s20873_s0 + $0x170] sm:$0xf] }
 0x2e5   :  { %v11514_v26 = vor.u32 %v14300_v50, %v11513_v55 }
 0x2e6   :  { %v3314_v59 = vpop.f32.mrf.mxu0 }
 0x2e7   :  { %v2985_v60 = vpop.f32.mrf.mxu3  ;;  %v3373_v1 = vpop.f32.mrf.mxu1 }
 0x2e8   :  { %v2986_v31 = vadd.f32 %v2985_v60, %v2926_v53  ;;  %v3374_v35 = vadd.f32 %v3373_v1, %v3314_v59  ;;  %v14299_v59 = vld [vmem:[%s20873_s0 + $0x124] sm:$0xf]  ;;  %v14425_v1 = vld [vmem:[%s20872_s1 + $0x170] sm:$0xff] }
 0x2e9   :  { %v11518_v30 = vor.u32 %v14299_v59, %v11515_v34  ;;  %4878 = vmatpush.bf16.msra.mxu1 %v14425_v1  ;;  %v14368_v34 = vld [vmem:[%s20872_s1 + $0x68] sm:$0xff] }
 0x2ea   :  { %v3032_v62 = vadd.f32 %v2986_v31, %v16277_v12  ;;  %v11689_v12 = vld [vmem:[%s20873_s0 + $0x160] sm:$0xf]  ;;  %v14417_v31 = vld [vmem:[%s20872_s1 + $0x130] sm:$0xff]  ;;  %4513 = vmatpush.bf16.msra.mxu3 %v14368_v34  ;;  %v14424_v34 = vld [vmem:[%s20872_s1 + $0x168] sm:$0xff] }
 0x2eb   :  { %v16667_v28 = vor.u32 %v14340_v51, %v11689_v12  ;;  %4819 = vmatpush.bf16.msra.mxu0 %v14417_v31  ;;  %v14360_v51 = vld [vmem:[%s20872_s1 + $0x28] sm:$0xff] }
 0x2ec   :  { %v16656_v58 = vadd.f32 %v3372_v38, %v3032_v62  ;;  %v2928_v43 = vpop.f32.mrf.mxu2  ;;  %4454 = vmatpush.bf16.msra.mxu2 %v14360_v51 }
 0x2ed   :  { %4879 = vmatpush.bf16.msra.mxu1 %v14424_v34 }
 0x2ee   :  { %v3317_v46 = vpop.f32.mrf.mxu0  ;;  %4514 = vmatpush.bf16.msra.mxu3 %v14367_v17  ;;  %v11537_v17 = vld [vmem:[%s20873_s0 + $0x150] sm:$0xf] }
 0x2ef   :  { %v2987_v18 = vpop.f32.mrf.mxu3  ;;  %v3376_v38 = vpop.f32.mrf.mxu1 }
 0x2f0   :  { %v2988_v41 = vadd.f32 %v2987_v18, %v2928_v43  ;;  %v3377_v60 = vadd.f32 %v3376_v38, %v3317_v46  ;;  %v14342_v43 = vld [vmem:[%s20873_s0 + $0x174] sm:$0xf0]  ;;  %v11699_v46 = vld [vmem:[%s20873_s0 + $0x178] sm:$0xf0] }
 0x2f1   :  { %3692 = vmatmul.bf16.vlgmr.msrb.gmra.mxu2 %v11514_v26  ;;  %4226 = vmatmul.bf16.vlgmr.msrb.gmra.mxu0 %v16667_v28  ;;  %v11523_v26 = vld [vmem:[%s20873_s0 + $0x138] sm:$0xf0]  ;;  %v16715_v31 = vor.u32 %v14342_v43, %v11697_v4 }
 0x2f2   :  { %v3033_v53 = vadd.f32 %v2988_v41, %v16294_v36  ;;  %4285 = vmatmul.bf16.vlgmr.msrb.gmra.mxu1 %v16669_v44  ;;  %v14341_v41 = vld [vmem:[%s20873_s0 + $0x174] sm:$0xf] }
 0x2f4   :  { %3751 = vmatmul.bf16.vlgmr.msrb.gmra.mxu3 %v11518_v30  ;;  %v16680_v62 = vadd.f32 %v3374_v35, %v3033_v53  ;;  %v2931_v36 = vpop.f32.mrf.mxu2  ;;  %v11521_v35 = vld [vmem:[%s20873_s0 + $0x130] sm:$0xf] }
 0x2f5   :  { %v11522_v53 = vor.u32 %v14302_v24, %v11521_v35 }
 0x2f6   :  { %v3319_v55 = vpop.f32.mrf.mxu0 }
 0x2f7   :  { %v2990_v47 = vpop.f32.mrf.mxu3  ;;  %v3378_v50 = vpop.f32.mrf.mxu1 }
 0x2f8   :  { %v2991_v42 = vadd.f32 %v2990_v47, %v2931_v36  ;;  %v3379_v12 = vadd.f32 %v3378_v50, %v3319_v55  ;;  %v16717_v47 = vor.u32 %v14341_v41, %v11699_v46  ;;  %v11529_v41 = vld [vmem:[%s20873_s0 + $0x140] sm:$0xf]  ;;  %v14303_v46 = vld [vmem:[%s20873_s0 + $0x144] sm:$0xf] }
 0x2fa   :  { %v3034_v59 = vadd.f32 %v2991_v42, %v16317_v22  ;;  %v14301_v22 = vld [vmem:[%s20873_s0 + $0x134] sm:$0xf] }
 0x2fb   :  { %v11526_v36 = vor.u32 %v14301_v22, %v11523_v26 }
 0x2fc   :  { %v16704_v18 = vadd.f32 %v3377_v60, %v3034_v59  ;;  %v2933_v30 = vpop.f32.mrf.mxu2  ;;  %v14416_v59 = vld [vmem:[%s20872_s1 + $0x128] sm:$0xff] }
 0x2fd   :  { %4820 = vmatpush.bf16.msra.mxu0 %v14416_v59 }
 0x2fe   :  { %v3322_v60 = vpop.f32.mrf.mxu0 }
 0x2ff   :  { %v2992_v38 = vpop.f32.mrf.mxu3  ;;  %v3381_v42 = vpop.f32.mrf.mxu1 }
 0x300   :  { %v2993_v1 = vadd.f32 %v2992_v38, %v2933_v30  ;;  %v3382_v50 = vadd.f32 %v3381_v42, %v3322_v60  ;;  %v11705_v30 = vld [vmem:[%s20873_s0 + $0x180] sm:$0xf]  ;;  %v11707_v60 = vld [vmem:[%s20873_s0 + $0x188] sm:$0xf0] }
 0x301   :  { %3697 = vmatmul.bf16.gmra.mxu2 %v11522_v53  ;;  %4231 = vmatmul.bf16.gmra.mxu0 %v16715_v31  ;;  %v11531_v53 = vld [vmem:[%s20873_s0 + $0x148] sm:$0xf0] }
 0x302   :  { %v3035_v55 = vadd.f32 %v2993_v1, %v16334_v14  ;;  %4290 = vmatmul.bf16.gmra.mxu1 %v16717_v47  ;;  %v14343_v1 = vld [vmem:[%s20873_s0 + $0x184] sm:$0xf] }
 0x304   :  { %3756 = vmatmul.bf16.gmra.mxu3 %v11526_v36  ;;  %v16725_v51 = vadd.f32 %v3379_v12, %v3035_v55  ;;  %v2936_v35 = vpop.f32.mrf.mxu2  ;;  %v14304_v12 = vld [vmem:[%s20873_s0 + $0x144] sm:$0xf0] }
 0x305   :  { %v11530_v55 = vor.u32 %v14304_v12, %v11529_v41 }
 0x306   :  { %v3324_v22 = vpop.f32.mrf.mxu0 }
 0x307   :  { %v2995_v14 = vpop.f32.mrf.mxu3  ;;  %v3383_v4 = vpop.f32.mrf.mxu1 }
 0x308   :  { %v2996_v24 = vadd.f32 %v2995_v14, %v2936_v35  ;;  %v3384_v26 = vadd.f32 %v3383_v4, %v3324_v22  ;;  %v11534_v35 = vor.u32 %v14303_v46, %v11531_v53  ;;  %v16759_v14 = vor.u32 %v14343_v1, %v11707_v60  ;;  %v14415_v60 = vld [vmem:[%s20872_s1 + $0x120] sm:$0xff] }
 0x309   :  { %4821 = vmatpush.bf16.msra.mxu0 %v14415_v60 }
 0x30a   :  { %v3036_v43 = vadd.f32 %v2996_v24, %v16351_v33  ;;  %v14344_v33 = vld [vmem:[%s20873_s0 + $0x184] sm:$0xf0] }
 0x30b   :  { %v16757_v59 = vor.u32 %v14344_v33, %v11705_v30 }
 0x30c   :  { %v16746_v38 = vadd.f32 %v3382_v50, %v3036_v43  ;;  %v2938_v36 = vpop.f32.mrf.mxu2  ;;  %v14359_v43 = vld [vmem:[%s20872_s1 + $0x20] sm:$0xff] }
 0x30d   :  { %4455 = vmatpush.bf16.msra.mxu2 %v14359_v43 }
 0x30e   :  { %v3327_v50 = vpop.f32.mrf.mxu0 }
 0x30f   :  { %v2997_v42 = vpop.f32.mrf.mxu3  ;;  %v3386_v24 = vpop.f32.mrf.mxu1 }
 0x310   :  { %v2998_v34 = vadd.f32 %v2997_v42, %v2938_v36  ;;  %v3387_v4 = vadd.f32 %v3386_v24, %v3327_v50  ;;  %v14423_v36 = vld [vmem:[%s20872_s1 + $0x160] sm:$0xff]  ;;  %v11713_v42 = vld [vmem:[%s20873_s0 + $0x190] sm:$0xf]  ;;  %v11539_v50 = vld [vmem:[%s20873_s0 + $0x158] sm:$0xf0] }
 0x311   :  { %3702 = vmatmul.bf16.gmra.mxu2 %v11530_v55  ;;  %4236 = vmatmul.bf16.gmra.mxu0 %v16757_v59  ;;  %v14346_v55 = vld [vmem:[%s20873_s0 + $0x194] sm:$0xf0]  ;;  %v11715_v24 = vld [vmem:[%s20873_s0 + $0x198] sm:$0xf0] }
 0x312   :  { %v3037_v22 = vadd.f32 %v2998_v34, %v16368_v37  ;;  %4295 = vmatmul.bf16.gmra.mxu1 %v16759_v14 }
 0x313   :  { %4880 = vmatpush.bf16.msra.mxu1 %v14423_v36 }
 0x314   :  { %3761 = vmatmul.bf16.gmra.mxu3 %v11534_v35  ;;  %v16770_v41 = vadd.f32 %v3384_v26, %v3037_v22  ;;  %v2941_v37 = vpop.f32.mrf.mxu2  ;;  %v14306_v26 = vld [vmem:[%s20873_s0 + $0x154] sm:$0xf0]  ;;  %v14345_v35 = vld [vmem:[%s20873_s0 + $0x194] sm:$0xf] }
 0x316   :  { %v3329_v30 = vpop.f32.mrf.mxu0 }
 0x317   :  { %v3000_v12 = vpop.f32.mrf.mxu3  ;;  %v3388_v33 = vpop.f32.mrf.mxu1 }
 0x318   :  { %v3001_v46 = vadd.f32 %v3000_v12, %v2941_v37  ;;  %v3389_v1 = vadd.f32 %v3388_v33, %v3329_v30  ;;  %v11538_v37 = vor.u32 %v14306_v26, %v11537_v17  ;;  %v16805_v12 = vor.u32 %v14346_v55, %v11713_v42  ;;  %v14358_v17 = vld [vmem:[%s20872_s1 + $0x18] sm:$0xff] }
 0x319   :  { %v16807_v33 = vor.u32 %v14345_v35, %v11715_v24  ;;  %4456 = vmatpush.bf16.msra.mxu2 %v14358_v17  ;;  %v14347_v17 = vld [vmem:[%s20873_s0 + $0x1a4] sm:$0xf] }
 0x31a   :  { %v3038_v53 = vadd.f32 %v3001_v46, %v16391_v61  ;;  %v14305_v61 = vld [vmem:[%s20873_s0 + $0x154] sm:$0xf] }
 0x31b   :  { %v11542_v30 = vor.u32 %v14305_v61, %v11539_v50  ;;  %v14366_v61 = vld [vmem:[%s20872_s1 + $0x58] sm:$0xff] }
 0x31c   :  { %v16794_v34 = vadd.f32 %v3387_v4, %v3038_v53  ;;  %v2943_v22 = vpop.f32.mrf.mxu2  ;;  %4515 = vmatpush.bf16.msra.mxu3 %v14366_v61  ;;  %v11723_v61 = vld [vmem:[%s20873_s0 + $0x1a8] sm:$0xf0] }
 0x31e   :  { %v3332_v4 = vpop.f32.mrf.mxu0 }
 0x31f   :  { %v3002_v43 = vpop.f32.mrf.mxu3  ;;  %v3391_v53 = vpop.f32.mrf.mxu1 }
 0x320   :  { %v3003_v46 = vadd.f32 %v3002_v43, %v2943_v22  ;;  %v3392_v36 = vadd.f32 %v3391_v53, %v3332_v4  ;;  %v14414_v43 = vld [vmem:[%s20872_s1 + $0x118] sm:$0xff]  ;;  %v11721_v4 = vld [vmem:[%s20873_s0 + $0x1a0] sm:$0xf] }
 0x321   :  { %3707 = vmatmul.bf16.gmra.mxu2 %v11538_v37  ;;  %4241 = vmatmul.bf16.gmra.mxu0 %v16805_v12  ;;  %v11545_v37 = vld [vmem:[%s20873_s0 + $0x160] sm:$0xf] }
 0x322   :  { %v3039_v60 = vadd.f32 %v3003_v46, %v16408_v10  ;;  %4300 = vmatmul.bf16.gmra.mxu1 %v16807_v33  ;;  %v14308_v46 = vld [vmem:[%s20873_s0 + $0x164] sm:$0xf0]  ;;  %4822 = vmatpush.bf16.msra.mxu0 %v14414_v43  ;;  %v16855_v43 = vor.u32 %v14347_v17, %v11723_v61  ;;  %v14365_v17 = vld [vmem:[%s20872_s1 + $0x50] sm:$0xff] }
 0x323   :  { %v11729_v61 = vld [vmem:[%s20873_s0 + $0x1b0] sm:$0xf]  ;;  %4516 = vmatpush.bf16.msra.mxu3 %v14365_v17 }
 0x324   :  { %3766 = vmatmul.bf16.gmra.mxu3 %v11542_v30  ;;  %v16815_v26 = vadd.f32 %v3389_v1, %v3039_v60  ;;  %v2946_v42 = vpop.f32.mrf.mxu2  ;;  %v14422_v1 = vld [vmem:[%s20872_s1 + $0x158] sm:$0xff]  ;;  %v14348_v30 = vld [vmem:[%s20873_s0 + $0x1a4] sm:$0xf0]  ;;  %v11547_v60 = vld [vmem:[%s20873_s0 + $0x168] sm:$0xf0] }
 0x325   :  { %4881 = vmatpush.bf16.msra.mxu1 %v14422_v1 }
 0x326   :  { %v3334_v50 = vpop.f32.mrf.mxu0  ;;  %4823 = vmatpush.bf16.msra.mxu0 %v14413_v5  ;;  %v14312_v5 = vld [vmem:[%s20873_s0 + $0x184] sm:$0xf0] }
 0x327   :  { %v3005_v10 = vpop.f32.mrf.mxu3  ;;  %v3393_v35 = vpop.f32.mrf.mxu1 }
 0x328   :  { %v3006_v55 = vadd.f32 %v3005_v10, %v2946_v42  ;;  %v3394_v22 = vadd.f32 %v3393_v35, %v3334_v50  ;;  %v16853_v50 = vor.u32 %v14348_v30, %v11721_v4 }
 0x329   :  { %4882 = vmatpush.bf16.msra.mxu1 %v14421_v15  ;;  %v11561_v15 = vld [vmem:[%s20873_s0 + $0x180] sm:$0xf] }
 0x32a   :  { %v3040_v24 = vadd.f32 %v3006_v55, %v16431_v40  ;;  %v14307_v40 = vld [vmem:[%s20873_s0 + $0x164] sm:$0xf]  ;;  %v11546_v55 = vor.u32 %v14308_v46, %v11545_v37 }
 0x32c   :  { %v16842_v53 = vadd.f32 %v3392_v36, %v3040_v24  ;;  %v2948_v42 = vpop.f32.mrf.mxu2  ;;  %v11550_v24 = vor.u32 %v14307_v40, %v11547_v60 }
 0x32e   :  { %v3337_v36 = vpop.f32.mrf.mxu0 }
 0x32f   :  { %v3007_v10 = vpop.f32.mrf.mxu3  ;;  %v3396_v1 = vpop.f32.mrf.mxu1 }
 0x330   :  { %v3008_v35 = vadd.f32 %v3007_v10, %v2948_v42  ;;  %v3397_v54 = vadd.f32 %v3396_v1, %v3337_v36  ;;  %v14350_v10 = vld [vmem:[%s20873_s0 + $0x1b4] sm:$0xf0]  ;;  %v14349_v36 = vld [vmem:[%s20873_s0 + $0x1b4] sm:$0xf] }
 0x331   :  { %3712 = vmatmul.bf16.gmra.mxu2 %v11546_v55  ;;  %4246 = vmatmul.bf16.gmra.mxu0 %v16853_v50 }
 0x332   :  { %v3041_v52 = vadd.f32 %v3008_v35, %v16442_v16  ;;  %4305 = vmatmul.bf16.gmra.mxu1 %v16855_v43  ;;  %v14357_v16 = vld [vmem:[%s20872_s1 + $0x10] sm:$0xff]  ;;  %v11555_v35 = vld [vmem:[%s20873_s0 + $0x178] sm:$0xf0] }
 0x333   :  { %4457 = vmatpush.bf16.msra.mxu2 %v14357_v16 }
 0x334   :  { %3771 = vmatmul.bf16.gmra.mxu3 %v11550_v24  ;;  %v16860_v21 = vadd.f32 %v3394_v22, %v3041_v52  ;;  %v2951_v37 = vpop.f32.mrf.mxu2  ;;  %v11553_v52 = vld [vmem:[%s20873_s0 + $0x170] sm:$0xf]  ;;  %v14310_v22 = vld [vmem:[%s20873_s0 + $0x174] sm:$0xf0]  ;;  %v11731_v24 = vld [vmem:[%s20873_s0 + $0x1b8] sm:$0xf0] }
 0x336   :  { %v3339_v30 = vpop.f32.mrf.mxu0 }
 0x337   :  { %v3010_v46 = vpop.f32.mrf.mxu3  ;;  %v3398_v42 = vpop.f32.mrf.mxu1 }
 0x338   :  { %v3011_v4 = vadd.f32 %v3010_v46, %v2951_v37  ;;  %v3399_v60 = vadd.f32 %v3398_v42, %v3339_v30  ;;  %v11554_v46 = vor.u32 %v14310_v22, %v11553_v52 }
 0x33a   :  { %v3042_v40 = vadd.f32 %v3011_v4, %v16465_v63  ;;  %v14309_v63 = vld [vmem:[%s20873_s0 + $0x174] sm:$0xf]  ;;  %v16895_v4 = vor.u32 %v14350_v10, %v11729_v61 }
 0x33b   :  { %v11558_v42 = vor.u32 %v14309_v63, %v11555_v35 }
 0x33c   :  { %v16884_v55 = vadd.f32 %v3397_v54, %v3042_v40  ;;  %v2953_v1 = vpop.f32.mrf.mxu2  ;;  %v16897_v40 = vor.u32 %v14349_v36, %v11731_v24  ;;  %v14356_v24 = vld [vmem:[%s20872_s1 + $0x8] sm:$0xff] }
 0x33d   :  { %4458 = vmatpush.bf16.msra.mxu2 %v14356_v24 }
 0x33e   :  { %v3342_v54 = vpop.f32.mrf.mxu0 }
 0x33f   :  { %v3012_v37 = vpop.f32.mrf.mxu3  ;;  %v3401_v16 = vpop.f32.mrf.mxu1 }
 0x340   :  { %v3013_v30 = vadd.f32 %v3012_v37, %v2953_v1  ;;  %v3402_v11 = vadd.f32 %v3401_v16, %v3342_v54  ;;  %v14364_v1 = vld [vmem:[%s20872_s1 + $0x48] sm:$0xff]  ;;  %v14351_v54 = vld [vmem:[%s20873_s0 + $0x1c4] sm:$0xf] }
 0x341   :  { %3717 = vmatmul.bf16.gmra.mxu2 %v11554_v46  ;;  %4251 = vmatmul.bf16.gmra.mxu0 %v16895_v4  ;;  %v14352_v37 = vld [vmem:[%s20873_s0 + $0x1c4] sm:$0xf0] }
 0x342   :  { %v3043_v17 = vadd.f32 %v3013_v30, %v16482_v3  ;;  %4310 = vmatmul.bf16.gmra.mxu1 %v16897_v40  ;;  %4517 = vmatpush.bf16.msra.mxu3 %v14364_v1  ;;  %v11563_v30 = vld [vmem:[%s20873_s0 + $0x188] sm:$0xf0] }
 0x344   :  { %3776 = vmatmul.bf16.gmra.mxu3 %v11558_v42  ;;  %v16908_v52 = vadd.f32 %v3399_v60, %v3043_v17  ;;  %v2956_v3 = vpop.f32.mrf.mxu2  ;;  %v11737_v60 = vld [vmem:[%s20873_s0 + $0x1c0] sm:$0xf]  ;;  %v11739_v42 = vld [vmem:[%s20873_s0 + $0x1c8] sm:$0xf0] }
 0x346   :  { %v3344_v61 = vpop.f32.mrf.mxu0 }
 0x347   :  { %v3015_v22 = vpop.f32.mrf.mxu3  ;;  %v3403_v10 = vpop.f32.mrf.mxu1 }
 0x348   :  { %v3016_v63 = vadd.f32 %v3015_v22, %v2956_v3  ;;  %v3404_v36 = vadd.f32 %v3403_v10, %v3344_v61  ;;  %v11562_v3 = vor.u32 %v14312_v5, %v11561_v15  ;;  %v16943_v22 = vor.u32 %v14352_v37, %v11737_v60  ;;  %v14412_v15 = vld [vmem:[%s20872_s1 + $0x108] sm:$0xff] }
 0x349   :  { %v16945_v10 = vor.u32 %v14351_v54, %v11739_v42  ;;  %4824 = vmatpush.bf16.msra.mxu0 %v14412_v15 }
 0x34a   :  { %v3044_v35 = vadd.f32 %v3016_v63, %v16505_v13  ;;  %v14311_v13 = vld [vmem:[%s20873_s0 + $0x184] sm:$0xf] }
 0x34b   :  { %v11566_v61 = vor.u32 %v14311_v13, %v11563_v30  ;;  %v14420_v13 = vld [vmem:[%s20872_s1 + $0x148] sm:$0xff] }
 0x34c   :  { %v16932_v46 = vadd.f32 %v3402_v11, %v3044_v35  ;;  %v2958_v16 = vpop.f32.mrf.mxu2  ;;  %4883 = vmatpush.bf16.msra.mxu1 %v14420_v13 }
 0x34e   :  { %v3347_v11 = vpop.f32.mrf.mxu0 }
 0x34f   :  { %v3017_v17 = vpop.f32.mrf.mxu3  ;;  %v3406_v35 = vpop.f32.mrf.mxu1 }
 0x350   :  { %v3018_v63 = vadd.f32 %v3017_v17, %v2958_v16  ;;  %v3407_v1 = vadd.f32 %v3406_v35, %v3347_v11  ;;  %v11569_v17 = vld [vmem:[%s20873_s0 + $0x190] sm:$0xf]  ;;  %v14353_v35 = vld [vmem:[%s20873_s0 + $0x1d4] sm:$0xf] }
 0x351   :  { %3722 = vmatmul.bf16.gmra.mxu2 %v11562_v3  ;;  %4256 = vmatmul.bf16.gmra.mxu0 %v16943_v22  ;;  %v14313_v3 = vld [vmem:[%s20873_s0 + $0x194] sm:$0xf] }
 0x352   :  { %v3045_v24 = vadd.f32 %v3018_v63, %v16522_v20  ;;  %4315 = vmatmul.bf16.gmra.mxu1 %v16945_v10  ;;  %v11745_v63 = vld [vmem:[%s20873_s0 + $0x1d0] sm:$0xf] }
 0x354   :  { %3781 = vmatmul.bf16.gmra.mxu3 %v11566_v61  ;;  %v16953_v5 = vadd.f32 %v3404_v36, %v3045_v24  ;;  %v2961_v60 = vpop.f32.mrf.mxu2  ;;  %v14314_v36 = vld [vmem:[%s20873_s0 + $0x194] sm:$0xf0]  ;;  %v11571_v61 = vld [vmem:[%s20873_s0 + $0x198] sm:$0xf0] }
 0x355   :  { %v11747_v24 = vld [vmem:[%s20873_s0 + $0x1d8] sm:$0xf0] }
 0x356   :  { %v3349_v30 = vpop.f32.mrf.mxu0 }
 0x357   :  { %v3020_v20 = vpop.f32.mrf.mxu3  ;;  %v3408_v54 = vpop.f32.mrf.mxu1 }
 0x358   :  { %v3021_v37 = vadd.f32 %v3020_v20, %v2961_v60  ;;  %v3409_v16 = vadd.f32 %v3408_v54, %v3349_v30  ;;  %v11570_v60 = vor.u32 %v14314_v36, %v11569_v17  ;;  %v11574_v30 = vor.u32 %v14313_v3, %v11571_v61  ;;  %v14355_v36 = vld [vmem:[%s20872_s1] sm:$0xff] }
 0x359   :  { %v16987_v54 = vor.u32 %v14353_v35, %v11747_v24  ;;  %v14363_v3 = vld [vmem:[%s20872_s1 + $0x40] sm:$0xff]  ;;  %4459 = vmatpush.bf16.msra.mxu2 %v14355_v36 }
 0x35a   :  { %v3046_v42 = vadd.f32 %v3021_v37, %v16539_v8  ;;  %v14354_v8 = vld [vmem:[%s20873_s0 + $0x1d4] sm:$0xf0]  ;;  %4518 = vmatpush.bf16.msra.mxu3 %v14363_v3 }
 0x35b   :  { %v16985_v20 = vor.u32 %v14354_v8, %v11745_v63 }
 0x35c   :  { %v16974_v11 = vadd.f32 %v3407_v1, %v3046_v42  ;;  %v2963_v15 = vpop.f32.mrf.mxu2 }
 0x35e   :  { %v3352_v1 = vpop.f32.mrf.mxu0 }
 0x35f   :  { %v3022_v13 = vpop.f32.mrf.mxu3  ;;  %v3411_v42 = vpop.f32.mrf.mxu1 }
 0x360   :  { %v3023_v37 = vadd.f32 %v3022_v13, %v2963_v15  ;;  %v3412_v7 = vadd.f32 %v3411_v42, %v3352_v1  ;;  %v14315_v15 = vld [vmem:[%s20873_s0 + $0x1a4] sm:$0xf]  ;;  %v11753_v13 = vld [vmem:[%s20873_s0 + $0x1e0] sm:$0xf] }
 0x361   :  { %3727 = vmatmul.bf16.gmra.mxu2 %v11570_v60  ;;  %4261 = vmatmul.bf16.gmra.mxu0 %v16985_v20  ;;  %v14371_v1 = vld [vmem:[%s20873_s0 + $0x1e4] sm:$0xf] }
 0x362   :  { %v3047_v56 = vadd.f32 %v3023_v37, %v16556_v19  ;;  %4320 = vmatmul.bf16.gmra.mxu1 %v16987_v54  ;;  %v11579_v37 = vld [vmem:[%s20873_s0 + $0x1a8] sm:$0xf0] }
 0x364   :  { %3786 = vmatmul.bf16.gmra.mxu3 %v11574_v30  ;;  %v16992_v27 = vadd.f32 %v3409_v16, %v3047_v56  ;;  %v2966_v17 = vpop.f32.mrf.mxu2  ;;  %v11577_v56 = vld [vmem:[%s20873_s0 + $0x1a0] sm:$0xf]  ;;  %v14316_v16 = vld [vmem:[%s20873_s0 + $0x1a4] sm:$0xf0]  ;;  %v11755_v30 = vld [vmem:[%s20873_s0 + $0x1e8] sm:$0xf0] }
 0x365   :  { %v11578_v3 = vor.u32 %v14316_v16, %v11577_v56 }
 0x366   :  { %v3354_v8 = vpop.f32.mrf.mxu0 }
 0x367   :  { %v3025_v63 = vpop.f32.mrf.mxu3  ;;  %v3413_v61 = vpop.f32.mrf.mxu1 }
 0x368   :  { %v3026_v19 = vadd.f32 %v3025_v63, %v2966_v17  ;;  %v3414_v24 = vadd.f32 %v3413_v61, %v3354_v8  ;;  %v14411_v17 = vld [vmem:[%s20872_s1 + $0x100] sm:$0xff]  ;;  %v11582_v61 = vor.u32 %v14315_v15, %v11579_v37  ;;  %v14454_v15 = vld [vmem:[%s20872_s1 + $0x1b8] sm:$0xff] }
 0x369   :  { %4825 = vmatpush.bf16.msra.mxu0 %v14411_v17  ;;  %5204 = vmatpush.bf16.msrb.mxu2 %v14454_v15  ;;  %v11763_v17 = vld [vmem:[%s20873_s0 + $0x1f8] sm:$0xf0] }
 0x36a   :  { %v3048_v35 = vadd.f32 %v3026_v19, %v16579_v29  ;;  %v14372_v29 = vld [vmem:[%s20873_s0 + $0x1e4] sm:$0xf0] }
 0x36b   :  { %v11754_v63 = vor.u32 %v14372_v29, %v11753_v13 }
 0x36c   :  { %v17016_v60 = vadd.f32 %v3412_v7, %v3048_v35  ;;  %v2968_v42 = vpop.f32.mrf.mxu2  ;;  %v14419_v7 = vld [vmem:[%s20872_s1 + $0x140] sm:$0xff]  ;;  %v11758_v35 = vor.u32 %v14371_v1, %v11755_v30  ;;  %v14374_v1 = vld [vmem:[%s20873_s0 + $0x1f4] sm:$0xf0]  ;;  %v11587_v30 = vld [vmem:[%s20873_s0 + $0x1b8] sm:$0xf0] }
 0x36d   :  { %4884 = vmatpush.bf16.msra.mxu1 %v14419_v7 }
 0x36e   :  { %v4227_v8 = vpop.f32.mrf.mxu0 }
 0x36f   :  { %v3027_v36 = vpop.f32.mrf.mxu3  ;;  %v4286_v48 = vpop.f32.mrf.mxu1 }
 0x370   :  { %v3028_v19 = vadd.f32 %v3027_v36, %v2968_v42  ;;  %v17034_v0 = vadd.f32 %v4286_v48, %v4227_v8  ;;  %v14373_v42 = vld [vmem:[%s20873_s0 + $0x1f4] sm:$0xf]  ;;  %v14490_v36 = vld [vmem:[%s20872_s1 + $0x238] sm:$0xff] }
 0x371   :  { %3732 = vmatmul.bf16.gmra.mxu2 %v11578_v3  ;;  %4266 = vmatmul.bf16.gmra.mxu0 %v11754_v63  ;;  %v14498_v3 = vld [vmem:[%s20872_s1 + $0x278] sm:$0xff] }
 0x372   :  { %v3049_v57 = vadd.f32 %v3028_v19, %v16593_v49  ;;  %4325 = vmatmul.bf16.gmra.mxu1 %v11758_v35  ;;  %v14462_v49 = vld [vmem:[%s20872_s1 + $0x1f8] sm:$0xff]  ;;  %5590 = vmatpush.bf16.msrb.mxu0 %v14490_v36  ;;  %v11947_v36 = vld [vmem:[%s20873_s0 + $0x188] sm:$0xf0] }
 0x373   :  { %5263 = vmatpush.bf16.msrb.mxu3 %v14462_v49  ;;  %5649 = vmatpush.bf16.msrb.mxu1 %v14498_v3 }
 0x374   :  { %3791 = vmatmul.bf16.gmra.mxu3 %v11582_v61  ;;  %v17036_v9 = vadd.f32 %v3414_v24, %v3049_v57  ;;  %v3693_v2 = vpop.f32.mrf.mxu2  ;;  %v14318_v57 = vld [vmem:[%s20873_s0 + $0x1b4] sm:$0xf0]  ;;  %v14317_v24 = vld [vmem:[%s20873_s0 + $0x1b4] sm:$0xf] }
 0x376   :  { %v4229_v13 = vpop.f32.mrf.mxu0 }
 0x377   :  { %v3752_v56 = vpop.f32.mrf.mxu3  ;;  %v4288_v48 = vpop.f32.mrf.mxu1 }
 0x378   :  { %v3753_v16 = vadd.f32 %v3752_v56, %v3693_v2  ;;  %v17047_v37 = vadd.f32 %v4288_v48, %v4229_v13  ;;  %v11585_v2 = vld [vmem:[%s20873_s0 + $0x1b0] sm:$0xf]  ;;  %v11590_v56 = vor.u32 %v14317_v24, %v11587_v30  ;;  %v14336_v30 = vld [vmem:[%s20873_s0 + $0x144] sm:$0xf0] }
 0x379   :  { %v11586_v19 = vor.u32 %v14318_v57, %v11585_v2 }
 0x37a   :  { %v17045_v29 = vadd.f32 %v3753_v16, %v16620_v32  ;;  %v11761_v32 = vld [vmem:[%s20873_s0 + $0x1f0] sm:$0xf]  ;;  %v11766_v16 = vor.u32 %v14373_v42, %v11763_v17  ;;  %v14335_v42 = vld [vmem:[%s20873_s0 + $0x144] sm:$0xf]  ;;  %v11835_v17 = vld [vmem:[%s20873_s0 + $0x148] sm:$0xf0] }
 0x37b   :  { %v11762_v8 = vor.u32 %v14374_v1, %v11761_v32 }
 0x37c   :  { %21028 = vst [vmem:[#allocation22_spill] sm:$0xff] %v17045_v29  ;;  %v3695_v7 = vpop.f32.mrf.mxu2 }
 0x37e   :  { %v4232_v35 = vpop.f32.mrf.mxu0 }
 0x37f   :  { %v3754_v63 = vpop.f32.mrf.mxu3  ;;  %v4291_v13 = vpop.f32.mrf.mxu1 }
 0x380   :  { %v3755_v61 = vadd.f32 %v3754_v63, %v3695_v7  ;;  %v17082_v49 = vadd.f32 %v4291_v13, %v4232_v35  ;;  %v14391_v7 = vld [vmem:[%s20873_s0 + $0x184] sm:$0xf]  ;;  %v14453_v63 = vld [vmem:[%s20872_s1 + $0x1b0] sm:$0xff]  ;;  %v11838_v13 = vor.u32 %v14335_v42, %v11835_v17 }
 0x381   :  { %3737 = vmatmul.bf16.gmra.mxu2 %v11586_v19  ;;  %4271 = vmatmul.bf16.gmra.mxu0 %v11762_v8  ;;  %v14461_v19 = vld [vmem:[%s20872_s1 + $0x1f0] sm:$0xff] }
 0x382   :  { %v17080_v15 = vadd.f32 %v3755_v61, %v16632_v6  ;;  %4330 = vmatmul.bf16.gmra.mxu1 %v11766_v16  ;;  %v11833_v6 = vld [vmem:[%s20873_s0 + $0x140] sm:$0xf]  ;;  %5205 = vmatpush.bf16.msrb.mxu2 %v14453_v63  ;;  %v14489_v42 = vld [vmem:[%s20872_s1 + $0x230] sm:$0xff] }
 0x383   :  { %v11834_v61 = vor.u32 %v14336_v30, %v11833_v6  ;;  %5264 = vmatpush.bf16.msrb.mxu3 %v14461_v19  ;;  %5591 = vmatpush.bf16.msrb.mxu0 %v14489_v42  ;;  %v14393_v63 = vld [vmem:[%s20873_s0 + $0x194] sm:$0xf]  ;;  %v11955_v19 = vld [vmem:[%s20873_s0 + $0x198] sm:$0xf0] }
 0x384   :  { %21029 = vst [vmem:[#allocation23_spill] sm:$0xff] %v17080_v15  ;;  %3796 = vmatmul.bf16.gmra.mxu3 %v11590_v56  ;;  %v3698_v48 = vpop.f32.mrf.mxu2 }
 0x386   :  { %v4234_v57 = vpop.f32.mrf.mxu0 }
 0x387   :  { %v3757_v29 = vpop.f32.mrf.mxu3  ;;  %v4293_v32 = vpop.f32.mrf.mxu1 }
 0x388   :  { %v3758_v2 = vadd.f32 %v3757_v29, %v3698_v48  ;;  %v17087_v1 = vadd.f32 %v4293_v32, %v4234_v57  ;;  %v11945_v29 = vld [vmem:[%s20873_s0 + $0x180] sm:$0xf]  ;;  %v11950_v48 = vor.u32 %v14391_v7, %v11947_v36  ;;  %v14337_v7 = vld [vmem:[%s20873_s0 + $0x154] sm:$0xf]  ;;  %v14394_v36 = vld [vmem:[%s20873_s0 + $0x194] sm:$0xf0] }
 0x38a   :  { %v17085_v24 = vadd.f32 %v3758_v2, %v16656_v58  ;;  %v14392_v58 = vld [vmem:[%s20873_s0 + $0x184] sm:$0xf0] }
 0x38b   :  { %v11946_v35 = vor.u32 %v14392_v58, %v11945_v29  ;;  %v14497_v29 = vld [vmem:[%s20872_s1 + $0x270] sm:$0xff] }
 0x38c   :  { %21030 = vst [vmem:[#allocation24_spill] sm:$0xff] %v17085_v24  ;;  %v3700_v3 = vpop.f32.mrf.mxu2  ;;  %5650 = vmatpush.bf16.msrb.mxu1 %v14497_v29 }
 0x38e   :  { %v4237_v16 = vpop.f32.mrf.mxu0 }
 0x38f   :  { %v3759_v8 = vpop.f32.mrf.mxu3  ;;  %v4296_v2 = vpop.f32.mrf.mxu1 }
 0x390   :  { %v3760_v56 = vadd.f32 %v3759_v8, %v3700_v3  ;;  %v17122_v32 = vadd.f32 %v4296_v2, %v4237_v16  ;;  %v11843_v3 = vld [vmem:[%s20873_s0 + $0x158] sm:$0xf0] }
 0x391   :  { %4460 = vmatmul.bf16.vlgmr.msra.gmra.mxu2 %v11834_v61  ;;  %4826 = vmatmul.bf16.vlgmr.msra.gmra.mxu0 %v11946_v35  ;;  %v14452_v61 = vld [vmem:[%s20872_s1 + $0x1a8] sm:$0xff] }
 0x392   :  { %v17120_v57 = vadd.f32 %v3760_v56, %v16680_v62  ;;  %4885 = vmatmul.bf16.vlgmr.msra.gmra.mxu1 %v11950_v48  ;;  %v14460_v35 = vld [vmem:[%s20872_s1 + $0x1e8] sm:$0xff]  ;;  %5206 = vmatpush.bf16.msrb.mxu2 %v14452_v61 }
 0x393   :  { %5265 = vmatpush.bf16.msrb.mxu3 %v14460_v35  ;;  %v11963_v61 = vld [vmem:[%s20873_s0 + $0x1a8] sm:$0xf0] }
 0x394   :  { %21031 = vst [vmem:[#allocation25_spill] sm:$0xff] %v17120_v57  ;;  %4519 = vmatmul.bf16.vlgmr.msra.gmra.mxu3 %v11838_v13  ;;  %v3703_v24 = vpop.f32.mrf.mxu2 }
 0x396   :  { %v4239_v30 = vpop.f32.mrf.mxu0 }
 0x397   :  { %v3762_v15 = vpop.f32.mrf.mxu3  ;;  %v4298_v62 = vpop.f32.mrf.mxu1 }
 0x398   :  { %v3763_v6 = vadd.f32 %v3762_v15, %v3703_v24  ;;  %v17133_v17 = vadd.f32 %v4298_v62, %v4239_v30  ;;  %v11841_v15 = vld [vmem:[%s20873_s0 + $0x150] sm:$0xf]  ;;  %v14338_v24 = vld [vmem:[%s20873_s0 + $0x154] sm:$0xf0]  ;;  %v11958_v30 = vor.u32 %v14393_v63, %v11955_v19  ;;  %v11961_v19 = vld [vmem:[%s20873_s0 + $0x1a0] sm:$0xf] }
 0x399   :  { %v11842_v16 = vor.u32 %v14338_v24, %v11841_v15  ;;  %v14488_v15 = vld [vmem:[%s20872_s1 + $0x228] sm:$0xff] }
 0x39a   :  { %v17131_v58 = vadd.f32 %v3763_v6, %v16704_v18  ;;  %v11953_v18 = vld [vmem:[%s20873_s0 + $0x190] sm:$0xf]  ;;  %v11846_v6 = vor.u32 %v14337_v7, %v11843_v3  ;;  %v14496_v24 = vld [vmem:[%s20872_s1 + $0x268] sm:$0xff]  ;;  %5592 = vmatpush.bf16.msrb.mxu0 %v14488_v15 }
 0x39b   :  { %v11954_v13 = vor.u32 %v14394_v36, %v11953_v18  ;;  %5651 = vmatpush.bf16.msrb.mxu1 %v14496_v24 }
 0x39c   :  { %21032 = vst [vmem:[#allocation26_spill] sm:$0xff] %v17131_v58  ;;  %v3705_v8 = vpop.f32.mrf.mxu2 }
 0x39e   :  { %v4242_v2 = vpop.f32.mrf.mxu0 }
 0x39f   :  { %v3764_v56 = vpop.f32.mrf.mxu3  ;;  %v4301_v42 = vpop.f32.mrf.mxu1 }
 0x3a0   :  { %v3765_v48 = vadd.f32 %v3764_v56, %v3705_v8  ;;  %v17168_v62 = vadd.f32 %v4301_v42, %v4242_v2  ;;  %v14396_v8 = vld [vmem:[%s20873_s0 + $0x1a4] sm:$0xf0] }
 0x3a1   :  { %4465 = vmatmul.bf16.gmra.mxu2 %v11842_v16  ;;  %4831 = vmatmul.bf16.gmra.mxu0 %v11954_v13  ;;  %v11962_v56 = vor.u32 %v14396_v8, %v11961_v19  ;;  %v14398_v19 = vld [vmem:[%s20873_s0 + $0x1b4] sm:$0xf0]  ;;  %v14397_v8 = vld [vmem:[%s20873_s0 + $0x1b4] sm:$0xf] }
 0x3a2   :  { %v17166_v29 = vadd.f32 %v3765_v48, %v16725_v51  ;;  %4890 = vmatmul.bf16.gmra.mxu1 %v11958_v30 }
 0x3a4   :  { %21033 = vst [vmem:[#allocation27_spill] sm:$0xff] %v17166_v29  ;;  %4524 = vmatmul.bf16.gmra.mxu3 %v11846_v6  ;;  %v3708_v58 = vpop.f32.mrf.mxu2 }
 0x3a6   :  { %v4244_v36 = vpop.f32.mrf.mxu0 }
 0x3a7   :  { %v3767_v7 = vpop.f32.mrf.mxu3  ;;  %v4303_v51 = vpop.f32.mrf.mxu1 }
 0x3a8   :  { %v3768_v18 = vadd.f32 %v3767_v7, %v3708_v58  ;;  %v17179_v63 = vadd.f32 %v4303_v51, %v4244_v36  ;;  %v14395_v58 = vld [vmem:[%s20873_s0 + $0x1a4] sm:$0xf] }
 0x3a9   :  { %v11966_v48 = vor.u32 %v14395_v58, %v11963_v61  ;;  %v14487_v61 = vld [vmem:[%s20872_s1 + $0x220] sm:$0xff] }
 0x3aa   :  { %v17177_v3 = vadd.f32 %v3768_v18, %v16746_v38  ;;  %v14451_v18 = vld [vmem:[%s20872_s1 + $0x1a0] sm:$0xff]  ;;  %5593 = vmatpush.bf16.msrb.mxu0 %v14487_v61  ;;  %v14486_v61 = vld [vmem:[%s20872_s1 + $0x218] sm:$0xff] }
 0x3ab   :  { %5207 = vmatpush.bf16.msrb.mxu2 %v14451_v18  ;;  %v14458_v18 = vld [vmem:[%s20872_s1 + $0x1d8] sm:$0xff] }
 0x3ac   :  { %21034 = vst [vmem:[#allocation28_spill] sm:$0xff] %v17177_v3  ;;  %v3710_v38 = vpop.f32.mrf.mxu2 }
 0x3ae   :  { %v4247_v13 = vpop.f32.mrf.mxu0  ;;  %5594 = vmatpush.bf16.msrb.mxu0 %v14486_v61 }
 0x3af   :  { %v3769_v35 = vpop.f32.mrf.mxu3  ;;  %v4306_v2 = vpop.f32.mrf.mxu1 }
 0x3b0   :  { %v3770_v16 = vadd.f32 %v3769_v35, %v3710_v38  ;;  %v17196_v30 = vadd.f32 %v4306_v2, %v4247_v13  ;;  %v14495_v38 = vld [vmem:[%s20872_s1 + $0x260] sm:$0xff] }
 0x3b1   :  { %4470 = vmatmul.bf16.gmra.mxu2 %v16667_v28  ;;  %4836 = vmatmul.bf16.gmra.mxu0 %v11962_v56 }
 0x3b2   :  { %v17194_v6 = vadd.f32 %v3770_v16, %v16770_v41  ;;  %4895 = vmatmul.bf16.gmra.mxu1 %v11966_v48  ;;  %v14459_v41 = vld [vmem:[%s20872_s1 + $0x1e0] sm:$0xff] }
 0x3b3   :  { %5266 = vmatpush.bf16.msrb.mxu3 %v14459_v41  ;;  %5652 = vmatpush.bf16.msrb.mxu1 %v14495_v38  ;;  %v14494_v38 = vld [vmem:[%s20872_s1 + $0x258] sm:$0xff] }
 0x3b4   :  { %21035 = vst [vmem:[#allocation29_spill] sm:$0xff] %v17194_v6  ;;  %4529 = vmatmul.bf16.gmra.mxu3 %v16669_v44  ;;  %v3713_v42 = vpop.f32.mrf.mxu2  ;;  %v11969_v44 = vld [vmem:[%s20873_s0 + $0x1b0] sm:$0xf] }
 0x3b5   :  { %v11970_v56 = vor.u32 %v14398_v19, %v11969_v44  ;;  %v11977_v19 = vld [vmem:[%s20873_s0 + $0x1c0] sm:$0xf] }
 0x3b6   :  { %v4249_v7 = vpop.f32.mrf.mxu0 }
 0x3b7   :  { %v3772_v15 = vpop.f32.mrf.mxu3  ;;  %v4308_v36 = vpop.f32.mrf.mxu1  ;;  %5267 = vmatpush.bf16.msrb.mxu3 %v14458_v18  ;;  %5653 = vmatpush.bf16.msrb.mxu1 %v14494_v38 }
 0x3b8   :  { %v3773_v24 = vadd.f32 %v3772_v15, %v3713_v42  ;;  %v17209_v28 = vadd.f32 %v4308_v36, %v4249_v7  ;;  %v14450_v7 = vld [vmem:[%s20872_s1 + $0x198] sm:$0xff] }
 0x3b9   :  { %5208 = vmatpush.bf16.msrb.mxu2 %v14450_v7 }
 0x3ba   :  { %v17207_v51 = vadd.f32 %v3773_v24, %v16794_v34  ;;  %v11971_v34 = vld [vmem:[%s20873_s0 + $0x1b8] sm:$0xf0] }
 0x3bb   :  { %v11974_v48 = vor.u32 %v14397_v8, %v11971_v34  ;;  %v14400_v8 = vld [vmem:[%s20873_s0 + $0x1c4] sm:$0xf0]  ;;  %v14399_v34 = vld [vmem:[%s20873_s0 + $0x1c4] sm:$0xf] }
 0x3bc   :  { %21036 = vst [vmem:[#allocation30_spill] sm:$0xff] %v17207_v51  ;;  %v3715_v58 = vpop.f32.mrf.mxu2 }
 0x3be   :  { %v4252_v13 = vpop.f32.mrf.mxu0 }
 0x3bf   :  { %v3774_v35 = vpop.f32.mrf.mxu3  ;;  %v4311_v2 = vpop.f32.mrf.mxu1 }
 0x3c0   :  { %v3775_v16 = vadd.f32 %v3774_v35, %v3715_v58  ;;  %v17232_v15 = vadd.f32 %v4311_v2, %v4252_v13  ;;  %v11979_v58 = vld [vmem:[%s20873_s0 + $0x1c8] sm:$0xf0] }
 0x3c1   :  { %4475 = vmatmul.bf16.gmra.mxu2 %v16715_v31  ;;  %4841 = vmatmul.bf16.gmra.mxu0 %v11970_v56  ;;  %v11978_v56 = vor.u32 %v14400_v8, %v11977_v19 }
 0x3c2   :  { %v17230_v42 = vadd.f32 %v3775_v16, %v16815_v26  ;;  %4900 = vmatmul.bf16.gmra.mxu1 %v11974_v48  ;;  %v11982_v48 = vor.u32 %v14399_v34, %v11979_v58  ;;  %v11987_v34 = vld [vmem:[%s20873_s0 + $0x1d8] sm:$0xf0]  ;;  %v14449_v58 = vld [vmem:[%s20872_s1 + $0x190] sm:$0xff] }
 0x3c3   :  { %5209 = vmatpush.bf16.msrb.mxu2 %v14449_v58  ;;  %v14448_v58 = vld [vmem:[%s20872_s1 + $0x188] sm:$0xff] }
 0x3c4   :  { %21037 = vst [vmem:[#allocation31_spill] sm:$0xff] %v17230_v42  ;;  %4534 = vmatmul.bf16.gmra.mxu3 %v16717_v47  ;;  %v3718_v24 = vpop.f32.mrf.mxu2 }
 0x3c6   :  { %v4254_v36 = vpop.f32.mrf.mxu0 }
 0x3c7   :  { %v3777_v41 = vpop.f32.mrf.mxu3  ;;  %v4313_v44 = vpop.f32.mrf.mxu1  ;;  %5210 = vmatpush.bf16.msrb.mxu2 %v14448_v58 }
 0x3c8   :  { %v3778_v26 = vadd.f32 %v3777_v41, %v3718_v24  ;;  %v17245_v47 = vadd.f32 %v4313_v44, %v4254_v36 }
 0x3ca   :  { %v17243_v31 = vadd.f32 %v3778_v26, %v16842_v53 }
 0x3cc   :  { %21038 = vst [vmem:[#allocation32_spill] sm:$0xff] %v17243_v31  ;;  %v3720_v53 = vpop.f32.mrf.mxu2 }
 0x3ce   :  { %v4257_v13 = vpop.f32.mrf.mxu0 }
 0x3cf   :  { %v3779_v35 = vpop.f32.mrf.mxu3  ;;  %v4316_v2 = vpop.f32.mrf.mxu1 }
 0x3d0   :  { %v3780_v16 = vadd.f32 %v3779_v35, %v3720_v53  ;;  %v17268_v7 = vadd.f32 %v4316_v2, %v4257_v13  ;;  %v14457_v53 = vld [vmem:[%s20872_s1 + $0x1d0] sm:$0xff] }
 0x3d1   :  { %4480 = vmatmul.bf16.gmra.mxu2 %v16757_v59  ;;  %4846 = vmatmul.bf16.gmra.mxu0 %v11978_v56  ;;  %v14402_v59 = vld [vmem:[%s20873_s0 + $0x1d4] sm:$0xf0] }
 0x3d2   :  { %v17266_v24 = vadd.f32 %v3780_v16, %v16860_v21  ;;  %4905 = vmatmul.bf16.gmra.mxu1 %v11982_v48  ;;  %v11985_v21 = vld [vmem:[%s20873_s0 + $0x1d0] sm:$0xf]  ;;  %5268 = vmatpush.bf16.msrb.mxu3 %v14457_v53  ;;  %v14456_v53 = vld [vmem:[%s20872_s1 + $0x1c8] sm:$0xff] }
 0x3d3   :  { %v11986_v38 = vor.u32 %v14402_v59, %v11985_v21  ;;  %v11993_v59 = vld [vmem:[%s20873_s0 + $0x1e0] sm:$0xf] }
 0x3d4   :  { %21039 = vst [vmem:[#allocation33_spill] sm:$0xff] %v17266_v24  ;;  %4539 = vmatmul.bf16.gmra.mxu3 %v16759_v14  ;;  %v3723_v18 = vpop.f32.mrf.mxu2  ;;  %v14401_v14 = vld [vmem:[%s20873_s0 + $0x1d4] sm:$0xf] }
 0x3d5   :  { %v11990_v16 = vor.u32 %v14401_v14, %v11987_v34  ;;  %v14404_v14 = vld [vmem:[%s20873_s0 + $0x1e4] sm:$0xf0]  ;;  %v14403_v34 = vld [vmem:[%s20873_s0 + $0x1e4] sm:$0xf] }
 0x3d6   :  { %v4259_v36 = vpop.f32.mrf.mxu0  ;;  %5269 = vmatpush.bf16.msrb.mxu3 %v14456_v53 }
 0x3d7   :  { %v3782_v41 = vpop.f32.mrf.mxu3  ;;  %v4318_v44 = vpop.f32.mrf.mxu1 }
 0x3d8   :  { %v3783_v26 = vadd.f32 %v3782_v41, %v3723_v18  ;;  %v17275_v8 = vadd.f32 %v4318_v44, %v4259_v36  ;;  %v14485_v41 = vld [vmem:[%s20872_s1 + $0x210] sm:$0xff] }
 0x3d9   :  { %5595 = vmatpush.bf16.msrb.mxu0 %v14485_v41 }
 0x3da   :  { %v17273_v19 = vadd.f32 %v3783_v26, %v16884_v55  ;;  %v14493_v26 = vld [vmem:[%s20872_s1 + $0x250] sm:$0xff] }
 0x3db   :  { %5654 = vmatpush.bf16.msrb.mxu1 %v14493_v26 }
 0x3dc   :  { %21040 = vst [vmem:[#allocation34_spill] sm:$0xff] %v17273_v19  ;;  %v3725_v55 = vpop.f32.mrf.mxu2 }
 0x3de   :  { %v4262_v56 = vpop.f32.mrf.mxu0 }
 0x3df   :  { %v3784_v61 = vpop.f32.mrf.mxu3  ;;  %v4321_v13 = vpop.f32.mrf.mxu1 }
 0x3e0   :  { %v3785_v35 = vadd.f32 %v3784_v61, %v3725_v55  ;;  %v17298_v2 = vadd.f32 %v4321_v13, %v4262_v56  ;;  %v11995_v55 = vld [vmem:[%s20873_s0 + $0x1e8] sm:$0xf0] }
 0x3e1   :  { %4485 = vmatmul.bf16.gmra.mxu2 %v16805_v12  ;;  %4851 = vmatmul.bf16.gmra.mxu0 %v11986_v38  ;;  %v11994_v38 = vor.u32 %v14404_v14, %v11993_v59 }
 0x3e2   :  { %v17296_v48 = vadd.f32 %v3785_v35, %v16908_v52  ;;  %4910 = vmatmul.bf16.gmra.mxu1 %v11990_v16  ;;  %v11998_v16 = vor.u32 %v14403_v34, %v11995_v55  ;;  %v12003_v34 = vld [vmem:[%s20873_s0 + $0x1f8] sm:$0xf0] }
 0x3e4   :  { %21041 = vst [vmem:[#allocation35_spill] sm:$0xff] %v17296_v48  ;;  %4544 = vmatmul.bf16.gmra.mxu3 %v16807_v33  ;;  %v3728_v18 = vpop.f32.mrf.mxu2 }
 0x3e6   :  { %v4264_v44 = vpop.f32.mrf.mxu0 }
 0x3e7   :  { %v3787_v36 = vpop.f32.mrf.mxu3  ;;  %v4323_v21 = vpop.f32.mrf.mxu1 }
 0x3e8   :  { %v3788_v52 = vadd.f32 %v3787_v36, %v3728_v18  ;;  %v17311_v33 = vadd.f32 %v4323_v21, %v4264_v44 }
 0x3ea   :  { %v17309_v12 = vadd.f32 %v3788_v52, %v16932_v46 }
 0x3ec   :  { %21042 = vst [vmem:[#allocation36_spill] sm:$0xff] %v17309_v12  ;;  %v3730_v46 = vpop.f32.mrf.mxu2 }
 0x3ee   :  { %v4267_v56 = vpop.f32.mrf.mxu0 }
 0x3ef   :  { %v3789_v61 = vpop.f32.mrf.mxu3  ;;  %v4326_v13 = vpop.f32.mrf.mxu1 }
 0x3f0   :  { %v3790_v35 = vadd.f32 %v3789_v61, %v3730_v46  ;;  %v17334_v41 = vadd.f32 %v4326_v13, %v4267_v56  ;;  %v14484_v13 = vld [vmem:[%s20872_s1 + $0x208] sm:$0xff] }
 0x3f1   :  { %4490 = vmatmul.bf16.gmra.mxu2 %v16853_v50  ;;  %4856 = vmatmul.bf16.gmra.mxu0 %v11994_v38  ;;  %v14406_v50 = vld [vmem:[%s20873_s0 + $0x1f4] sm:$0xf0] }
 0x3f2   :  { %v17332_v18 = vadd.f32 %v3790_v35, %v16953_v5  ;;  %4915 = vmatmul.bf16.gmra.mxu1 %v11998_v16  ;;  %v12001_v5 = vld [vmem:[%s20873_s0 + $0x1f0] sm:$0xf]  ;;  %5596 = vmatpush.bf16.msrb.mxu0 %v14484_v13 }
 0x3f3   :  { %v12002_v46 = vor.u32 %v14406_v50, %v12001_v5  ;;  %v14483_v50 = vld [vmem:[%s20872_s1 + $0x200] sm:$0xff] }
 0x3f4   :  { %21043 = vst [vmem:[#allocation37_spill] sm:$0xff] %v17332_v18  ;;  %4549 = vmatmul.bf16.gmra.mxu3 %v16855_v43  ;;  %v3733_v26 = vpop.f32.mrf.mxu2  ;;  %v14405_v43 = vld [vmem:[%s20873_s0 + $0x1f4] sm:$0xf]  ;;  %v14695_v18 = vld [vmem:[%s20872_s1 + $0x60] sm:$0xff] }
 0x3f5   :  { %v12006_v61 = vor.u32 %v14405_v43, %v12003_v34  ;;  %v14491_v43 = vld [vmem:[%s20872_s1 + $0x240] sm:$0xff] }
 0x3f6   :  { %v4269_v44 = vpop.f32.mrf.mxu0  ;;  %v12009_v34 = vld [vmem:[%s20873_s0 + $0x200] sm:$0xf]  ;;  %5597 = vmatpush.bf16.msrb.mxu0 %v14483_v50 }
 0x3f7   :  { %v3792_v36 = vpop.f32.mrf.mxu3  ;;  %v4328_v21 = vpop.f32.mrf.mxu1 }
 0x3f8   :  { %v3793_v52 = vadd.f32 %v3792_v36, %v3733_v26  ;;  %v17341_v14 = vadd.f32 %v4328_v21, %v4269_v44  ;;  %v14492_v26 = vld [vmem:[%s20872_s1 + $0x248] sm:$0xff] }
 0x3f9   :  { %5655 = vmatpush.bf16.msrb.mxu1 %v14492_v26 }
 0x3fa   :  { %v17339_v59 = vadd.f32 %v3793_v52, %v16974_v11 }
 0x3fc   :  { %21044 = vst [vmem:[#allocation38_spill] sm:$0xff] %v17339_v59  ;;  %v3735_v11 = vpop.f32.mrf.mxu2 }
 0x3fd   :  { %5656 = vmatpush.bf16.msrb.mxu1 %v14491_v43 }
 0x3fe   :  { %v4272_v53 = vpop.f32.mrf.mxu0 }
 0x3ff   :  { %v3794_v55 = vpop.f32.mrf.mxu3  ;;  %v4331_v38 = vpop.f32.mrf.mxu1 }
 0x400   :  { %v3795_v58 = vadd.f32 %v3794_v55, %v3735_v11  ;;  %v17358_v56 = vadd.f32 %v4331_v38, %v4272_v53  ;;  %v14408_v11 = vld [vmem:[%s20873_s0 + $0x204] sm:$0xf0]  ;;  %v12011_v55 = vld [vmem:[%s20873_s0 + $0x208] sm:$0xf0] }
 0x401   :  { %4495 = vmatmul.bf16.gmra.mxu2 %v16895_v4  ;;  %4861 = vmatmul.bf16.gmra.mxu0 %v12002_v46  ;;  %v14455_v4 = vld [vmem:[%s20872_s1 + $0x1c0] sm:$0xff]  ;;  %v12010_v53 = vor.u32 %v14408_v11, %v12009_v34  ;;  %v14526_v34 = vld [vmem:[%s20872_s1 + $0x38] sm:$0xff] }
 0x402   :  { %v17356_v35 = vadd.f32 %v3795_v58, %v16992_v27  ;;  %4920 = vmatmul.bf16.gmra.mxu1 %v12006_v61  ;;  %v14447_v27 = vld [vmem:[%s20872_s1 + $0x180] sm:$0xff]  ;;  %5270 = vmatpush.bf16.msrb.mxu3 %v14455_v4  ;;  %v14554_v4 = vld [vmem:[%s20872_s1 + $0xf8] sm:$0xff] }
 0x403   :  { %5211 = vmatpush.bf16.msrb.mxu2 %v14447_v27  ;;  %v14534_v11 = vld [vmem:[%s20872_s1 + $0x78] sm:$0xff]  ;;  %6358 = vmatpush.bf16.msra.mxu0 %v14526_v34 }
 0x404   :  { %21045 = vst [vmem:[#allocation39_spill] sm:$0xff] %v17356_v35  ;;  %4554 = vmatmul.bf16.gmra.mxu3 %v16897_v40  ;;  %v3738_v16 = vpop.f32.mrf.mxu2  ;;  %6417 = vmatpush.bf16.msra.mxu1 %v14534_v11  ;;  %v12121_v11 = vld [vmem:[%s20873_s0 + $0x1a0] sm:$0xf] }
 0x406   :  { %v4274_v52 = vpop.f32.mrf.mxu0  ;;  %6183 = vmatpush.bf16.msra.mxu3 %v14554_v4 }
 0x407   :  { %v3797_v36 = vpop.f32.mrf.mxu3  ;;  %v4333_v44 = vpop.f32.mrf.mxu1 }
 0x408   :  { %v3798_v40 = vadd.f32 %v3797_v36, %v3738_v16  ;;  %v17377_v5 = vadd.f32 %v4333_v44, %v4274_v52  ;;  %v14546_v36 = vld [vmem:[%s20872_s1 + $0xb8] sm:$0xff] }
 0x409   :  { %6124 = vmatpush.bf16.msra.mxu2 %v14546_v36 }
 0x40a   :  { %v17375_v21 = vadd.f32 %v3798_v40, %v17016_v60  ;;  %v14407_v60 = vld [vmem:[%s20873_s0 + $0x204] sm:$0xf] }
 0x40b   :  { %v12014_v16 = vor.u32 %v14407_v60, %v12011_v55  ;;  %v14410_v60 = vld [vmem:[%s20873_s0 + $0x214] sm:$0xf0]  ;;  %v14409_v55 = vld [vmem:[%s20873_s0 + $0x214] sm:$0xf] }
 0x40c   :  { %21046 = vst [vmem:[#allocation40_spill] sm:$0xff] %v17375_v21  ;;  %v3740_v46 = vpop.f32.mrf.mxu2 }
 0x40e   :  { %v4827_v38 = vpop.f32.mrf.mxu0 }
 0x40f   :  { %v3799_v58 = vpop.f32.mrf.mxu3  ;;  %v4886_v13 = vpop.f32.mrf.mxu1 }
 0x410   :  { %v3800_v61 = vadd.f32 %v3799_v58, %v3740_v46  ;;  %v4887_v27 = vadd.f32 %v4886_v13, %v4827_v38  ;;  %v12019_v46 = vld [vmem:[%s20873_s0 + $0x218] sm:$0xf0] }
 0x411   :  { %4500 = vmatmul.bf16.gmra.mxu2 %v16943_v22  ;;  %4866 = vmatmul.bf16.gmra.mxu0 %v12010_v53  ;;  %v12022_v13 = vor.u32 %v14409_v55, %v12019_v46  ;;  %v14464_v55 = vld [vmem:[%s20873_s0 + $0x1c4] sm:$0xf0]  ;;  %v12123_v46 = vld [vmem:[%s20873_s0 + $0x1a8] sm:$0xf0] }
 0x412   :  { %v17398_v26 = vadd.f32 %v3800_v61, %v17036_v9  ;;  %4925 = vmatmul.bf16.gmra.mxu1 %v12014_v16 }
 0x414   :  { %21047 = vst [vmem:[#allocation41_spill] sm:$0xff] %v17398_v26  ;;  %4559 = vmatmul.bf16.gmra.mxu3 %v16945_v10  ;;  %v4461_v40 = vpop.f32.mrf.mxu2 }
 0x415   :  { %v4462_v9 = vadd.f32 %v4461_v40, %v17034_v0  ;;  %v12017_v0 = vld [vmem:[%s20873_s0 + $0x210] sm:$0xf] }
 0x416   :  { %v4829_v44 = vpop.f32.mrf.mxu0  ;;  %v12018_v38 = vor.u32 %v14410_v60, %v12017_v0  ;;  %v14427_v0 = vld [vmem:[%s20873_s0 + $0x1a4] sm:$0xf]  ;;  %v12297_v60 = vld [vmem:[%s20873_s0 + $0x1c0] sm:$0xf] }
 0x417   :  { %v4520_v52 = vpop.f32.mrf.mxu3  ;;  %v4888_v50 = vpop.f32.mrf.mxu1 }
 0x418   :  { %v4521_v22 = vadd.f32 %v4520_v52, %v4462_v9  ;;  %v4889_v43 = vadd.f32 %v4888_v50, %v4829_v44 }
 0x41a   :  { %v17409_v10 = vadd.f32 %v4887_v27, %v4521_v22 }
 0x41c   :  { %v4463_v58 = vpop.f32.mrf.mxu2 }
 0x41d   :  { %v4464_v53 = vadd.f32 %v4463_v58, %v17047_v37  ;;  %v14463_v58 = vld [vmem:[%s20873_s0 + $0x1c4] sm:$0xf] }
 0x41e   :  { %v4832_v16 = vpop.f32.mrf.mxu0 }
 0x41f   :  { %v4522_v61 = vpop.f32.mrf.mxu3  ;;  %v4891_v36 = vpop.f32.mrf.mxu1 }
 0x420   :  { %v4523_v27 = vadd.f32 %v4522_v61, %v4464_v53  ;;  %v4892_v4 = vadd.f32 %v4891_v36, %v4832_v16  ;;  %v12299_v53 = vld [vmem:[%s20873_s0 + $0x1c8] sm:$0xf0] }
 0x421   :  { %4505 = vmatmul.bf16.gmra.mxu2 %v16985_v20  ;;  %4871 = vmatmul.bf16.gmra.mxu0 %v12018_v38  ;;  %v14428_v20 = vld [vmem:[%s20873_s0 + $0x1a4] sm:$0xf0] }
 0x422   :  { %v17430_v40 = vadd.f32 %v4889_v43, %v4523_v27  ;;  %4930 = vmatmul.bf16.gmra.mxu1 %v12022_v13  ;;  %v12122_v13 = vor.u32 %v14428_v20, %v12121_v11  ;;  %v12298_v27 = vor.u32 %v14464_v55, %v12297_v60  ;;  %v12129_v55 = vld [vmem:[%s20873_s0 + $0x1b0] sm:$0xf] }
 0x424   :  { %4564 = vmatmul.bf16.gmra.mxu3 %v16987_v54  ;;  %v4466_v9 = vpop.f32.mrf.mxu2  ;;  %v14545_v54 = vld [vmem:[%s20872_s1 + $0xb0] sm:$0xff] }
 0x425   :  { %v4467_v52 = vadd.f32 %v4466_v9, %v17082_v49  ;;  %v14553_v49 = vld [vmem:[%s20872_s1 + $0xf0] sm:$0xff]  ;;  %6125 = vmatpush.bf16.msra.mxu2 %v14545_v54  ;;  %v12302_v9 = vor.u32 %v14463_v58, %v12299_v53  ;;  %v14430_v58 = vld [vmem:[%s20873_s0 + $0x1b4] sm:$0xf0]  ;;  %v14544_v53 = vld [vmem:[%s20872_s1 + $0xa8] sm:$0xff] }
 0x426   :  { %v4834_v37 = vpop.f32.mrf.mxu0  ;;  %6184 = vmatpush.bf16.msra.mxu3 %v14553_v49 }
 0x427   :  { %v4525_v44 = vpop.f32.mrf.mxu3  ;;  %v4893_v50 = vpop.f32.mrf.mxu1 }
 0x428   :  { %v4526_v22 = vadd.f32 %v4525_v44, %v4467_v52  ;;  %v4894_v34 = vadd.f32 %v4893_v50, %v4834_v37  ;;  %v14525_v50 = vld [vmem:[%s20872_s1 + $0x30] sm:$0xff] }
 0x429   :  { %6359 = vmatpush.bf16.msra.mxu0 %v14525_v50  ;;  %6126 = vmatpush.bf16.msra.mxu2 %v14544_v53 }
 0x42a   :  { %v17438_v43 = vadd.f32 %v4892_v4, %v4526_v22  ;;  %v12126_v4 = vor.u32 %v14427_v0, %v12123_v46 }
 0x42c   :  { %v4468_v61 = vpop.f32.mrf.mxu2 }
 0x42d   :  { %v4469_v38 = vadd.f32 %v4468_v61, %v17087_v1  ;;  %v14533_v1 = vld [vmem:[%s20872_s1 + $0x70] sm:$0xff] }
 0x42e   :  { %v4837_v36 = vpop.f32.mrf.mxu0  ;;  %6418 = vmatpush.bf16.msra.mxu1 %v14533_v1  ;;  %v14429_v61 = vld [vmem:[%s20873_s0 + $0x1b4] sm:$0xf] }
 0x42f   :  { %v4527_v16 = vpop.f32.mrf.mxu3  ;;  %v4896_v44 = vpop.f32.mrf.mxu1 }
 0x430   :  { %v4528_v52 = vadd.f32 %v4527_v16, %v4469_v38  ;;  %v4897_v37 = vadd.f32 %v4896_v44, %v4837_v36  ;;  %v12305_v38 = vld [vmem:[%s20873_s0 + $0x1d0] sm:$0xf]  ;;  %v14466_v16 = vld [vmem:[%s20873_s0 + $0x1d4] sm:$0xf0]  ;;  %v12307_v36 = vld [vmem:[%s20873_s0 + $0x1d8] sm:$0xf0]  ;;  %v12130_v44 = vor.u32 %v14430_v58, %v12129_v55 }
 0x431   :  { %5212 = vmatmul.bf16.vlgmr.msrb.gmra.mxu2 %v12122_v13  ;;  %5598 = vmatmul.bf16.vlgmr.msrb.gmra.mxu0 %v12298_v27  ;;  %v12131_v13 = vld [vmem:[%s20873_s0 + $0x1b8] sm:$0xf0]  ;;  %v14465_v27 = vld [vmem:[%s20873_s0 + $0x1d4] sm:$0xf] }
 0x432   :  { %v17468_v22 = vadd.f32 %v4894_v34, %v4528_v52  ;;  %5657 = vmatmul.bf16.vlgmr.msrb.gmra.mxu1 %v12302_v9  ;;  %v12134_v1 = vor.u32 %v14429_v61, %v12131_v13  ;;  %v12137_v13 = vld [vmem:[%s20873_s0 + $0x1c0] sm:$0xf] }
 0x434   :  { %5271 = vmatmul.bf16.vlgmr.msrb.gmra.mxu3 %v12126_v4  ;;  %v4471_v11 = vpop.f32.mrf.mxu2 }
 0x435   :  { %v4472_v20 = vadd.f32 %v4471_v11, %v17122_v32  ;;  %v14552_v32 = vld [vmem:[%s20872_s1 + $0xe8] sm:$0xff]  ;;  %v12310_v11 = vor.u32 %v14465_v27, %v12307_v36  ;;  %v12313_v36 = vld [vmem:[%s20873_s0 + $0x1e0] sm:$0xf] }
 0x436   :  { %v4839_v34 = vpop.f32.mrf.mxu0  ;;  %6185 = vmatpush.bf16.msra.mxu3 %v14552_v32  ;;  %v14432_v27 = vld [vmem:[%s20873_s0 + $0x1c4] sm:$0xf0] }
 0x437   :  { %v4530_v54 = vpop.f32.mrf.mxu3  ;;  %v4898_v0 = vpop.f32.mrf.mxu1 }
 0x438   :  { %v4531_v49 = vadd.f32 %v4530_v54, %v4472_v20  ;;  %v4899_v60 = vadd.f32 %v4898_v0, %v4839_v34  ;;  %v14524_v0 = vld [vmem:[%s20872_s1 + $0x28] sm:$0xff] }
 0x439   :  { %6360 = vmatpush.bf16.msra.mxu0 %v14524_v0 }
 0x43a   :  { %v17480_v46 = vadd.f32 %v4897_v37, %v4531_v49  ;;  %v12306_v37 = vor.u32 %v14466_v16, %v12305_v38 }
 0x43c   :  { %v4473_v4 = vpop.f32.mrf.mxu2 }
 0x43d   :  { %v4474_v9 = vadd.f32 %v4473_v4, %v17133_v17  ;;  %v14532_v17 = vld [vmem:[%s20872_s1 + $0x68] sm:$0xff] }
 0x43e   :  { %v4842_v50 = vpop.f32.mrf.mxu0  ;;  %6419 = vmatpush.bf16.msra.mxu1 %v14532_v17  ;;  %v14468_v4 = vld [vmem:[%s20873_s0 + $0x1e4] sm:$0xf0] }
 0x43f   :  { %v4532_v52 = vpop.f32.mrf.mxu3  ;;  %v4901_v54 = vpop.f32.mrf.mxu1 }
 0x440   :  { %v4533_v20 = vadd.f32 %v4532_v52, %v4474_v9  ;;  %v4902_v34 = vadd.f32 %v4901_v54, %v4842_v50  ;;  %v12139_v9 = vld [vmem:[%s20873_s0 + $0x1c8] sm:$0xf0]  ;;  %v14467_v52 = vld [vmem:[%s20873_s0 + $0x1e4] sm:$0xf] }
 0x441   :  { %5217 = vmatmul.bf16.gmra.mxu2 %v12130_v44  ;;  %5603 = vmatmul.bf16.gmra.mxu0 %v12306_v37  ;;  %v12315_v44 = vld [vmem:[%s20873_s0 + $0x1e8] sm:$0xf0] }
 0x442   :  { %v17510_v49 = vadd.f32 %v4899_v60, %v4533_v20  ;;  %5662 = vmatmul.bf16.gmra.mxu1 %v12310_v11  ;;  %v12138_v11 = vor.u32 %v14432_v27, %v12137_v13  ;;  %v12314_v20 = vor.u32 %v14468_v4, %v12313_v36  ;;  %v12318_v0 = vor.u32 %v14467_v52, %v12315_v44  ;;  %v12145_v4 = vld [vmem:[%s20873_s0 + $0x1d0] sm:$0xf]  ;;  %v14434_v52 = vld [vmem:[%s20873_s0 + $0x1d4] sm:$0xf0]  ;;  %v14523_v44 = vld [vmem:[%s20872_s1 + $0x20] sm:$0xff] }
 0x443   :  { %6361 = vmatpush.bf16.msra.mxu0 %v14523_v44 }
 0x444   :  { %5276 = vmatmul.bf16.gmra.mxu3 %v12134_v1  ;;  %v4476_v55 = vpop.f32.mrf.mxu2 }
 0x445   :  { %v4477_v58 = vadd.f32 %v4476_v55, %v17168_v62  ;;  %v14431_v62 = vld [vmem:[%s20873_s0 + $0x1c4] sm:$0xf] }
 0x446   :  { %v4844_v60 = vpop.f32.mrf.mxu0 }
 0x447   :  { %v4535_v53 = vpop.f32.mrf.mxu3  ;;  %v4903_v61 = vpop.f32.mrf.mxu1 }
 0x448   :  { %v4536_v32 = vadd.f32 %v4535_v53, %v4477_v58  ;;  %v4904_v38 = vadd.f32 %v4903_v61, %v4844_v60  ;;  %v14543_v60 = vld [vmem:[%s20872_s1 + $0xa0] sm:$0xff] }
 0x449   :  { %6127 = vmatpush.bf16.msra.mxu2 %v14543_v60 }
 0x44a   :  { %v17519_v16 = vadd.f32 %v4902_v34, %v4536_v32  ;;  %v12142_v34 = vor.u32 %v14431_v62, %v12139_v9 }
 0x44c   :  { %v4478_v37 = vpop.f32.mrf.mxu2 }
 0x44d   :  { %v4479_v50 = vadd.f32 %v4478_v37, %v17179_v63  ;;  %v14551_v63 = vld [vmem:[%s20872_s1 + $0xe0] sm:$0xff]  ;;  %v14433_v37 = vld [vmem:[%s20873_s0 + $0x1d4] sm:$0xf] }
 0x44e   :  { %v4847_v54 = vpop.f32.mrf.mxu0  ;;  %6186 = vmatpush.bf16.msra.mxu3 %v14551_v63 }
 0x44f   :  { %v4537_v1 = vpop.f32.mrf.mxu3  ;;  %v4906_v55 = vpop.f32.mrf.mxu1 }
 0x450   :  { %v4538_v17 = vadd.f32 %v4537_v1, %v4479_v50  ;;  %v4907_v58 = vadd.f32 %v4906_v55, %v4847_v54  ;;  %v12321_v50 = vld [vmem:[%s20873_s0 + $0x1f0] sm:$0xf]  ;;  %v14470_v1 = vld [vmem:[%s20873_s0 + $0x1f4] sm:$0xf0]  ;;  %v12323_v54 = vld [vmem:[%s20873_s0 + $0x1f8] sm:$0xf0]  ;;  %v12146_v55 = vor.u32 %v14434_v52, %v12145_v4 }
 0x451   :  { %5222 = vmatmul.bf16.gmra.mxu2 %v12138_v11  ;;  %5608 = vmatmul.bf16.gmra.mxu0 %v12314_v20  ;;  %v12147_v11 = vld [vmem:[%s20873_s0 + $0x1d8] sm:$0xf0]  ;;  %v14469_v20 = vld [vmem:[%s20873_s0 + $0x1f4] sm:$0xf] }
 0x452   :  { %v17546_v53 = vadd.f32 %v4904_v38, %v4538_v17  ;;  %5667 = vmatmul.bf16.gmra.mxu1 %v12318_v0  ;;  %v12150_v63 = vor.u32 %v14433_v37, %v12147_v11 }
 0x454   :  { %5281 = vmatmul.bf16.gmra.mxu3 %v12142_v34  ;;  %v4481_v32 = vpop.f32.mrf.mxu2 }
 0x455   :  { %v4482_v61 = vadd.f32 %v4481_v32, %v17196_v30  ;;  %v14531_v30 = vld [vmem:[%s20872_s1 + $0x60] sm:$0xff]  ;;  %v12326_v32 = vor.u32 %v14469_v20, %v12323_v54  ;;  %v14436_v20 = vld [vmem:[%s20873_s0 + $0x1e4] sm:$0xf0]  ;;  %v14530_v54 = vld [vmem:[%s20872_s1 + $0x58] sm:$0xff] }
 0x456   :  { %v4849_v38 = vpop.f32.mrf.mxu0  ;;  %6420 = vmatpush.bf16.msra.mxu1 %v14531_v30 }
 0x457   :  { %v4540_v13 = vpop.f32.mrf.mxu3  ;;  %v4908_v62 = vpop.f32.mrf.mxu1 }
 0x458   :  { %v4541_v27 = vadd.f32 %v4540_v13, %v4482_v61  ;;  %v4909_v36 = vadd.f32 %v4908_v62, %v4849_v38  ;;  %v14542_v62 = vld [vmem:[%s20872_s1 + $0x98] sm:$0xff] }
 0x459   :  { %6128 = vmatpush.bf16.msra.mxu2 %v14542_v62 }
 0x45a   :  { %v17558_v9 = vadd.f32 %v4907_v58, %v4541_v27  ;;  %v12322_v58 = vor.u32 %v14470_v1, %v12321_v50  ;;  %v12153_v1 = vld [vmem:[%s20873_s0 + $0x1e0] sm:$0xf]  ;;  %6421 = vmatpush.bf16.msra.mxu1 %v14530_v54 }
 0x45c   :  { %v4483_v34 = vpop.f32.mrf.mxu2 }
 0x45d   :  { %v4484_v0 = vadd.f32 %v4483_v34, %v17209_v28  ;;  %v14550_v28 = vld [vmem:[%s20872_s1 + $0xd8] sm:$0xff]  ;;  %v14435_v34 = vld [vmem:[%s20873_s0 + $0x1e4] sm:$0xf] }
 0x45e   :  { %v4852_v60 = vpop.f32.mrf.mxu0  ;;  %6187 = vmatpush.bf16.msra.mxu3 %v14550_v28 }
 0x45f   :  { %v4542_v17 = vpop.f32.mrf.mxu3  ;;  %v4911_v13 = vpop.f32.mrf.mxu1 }
 0x460   :  { %v4543_v61 = vadd.f32 %v4542_v17, %v4484_v0  ;;  %v4912_v38 = vadd.f32 %v4911_v13, %v4852_v60  ;;  %v12329_v0 = vld [vmem:[%s20873_s0 + $0x200] sm:$0xf]  ;;  %v14472_v17 = vld [vmem:[%s20873_s0 + $0x204] sm:$0xf0]  ;;  %v12331_v60 = vld [vmem:[%s20873_s0 + $0x208] sm:$0xf0]  ;;  %v12154_v13 = vor.u32 %v14436_v20, %v12153_v1 }
 0x461   :  { %5227 = vmatmul.bf16.gmra.mxu2 %v12146_v55  ;;  %5613 = vmatmul.bf16.gmra.mxu0 %v12322_v58  ;;  %v12155_v55 = vld [vmem:[%s20873_s0 + $0x1e8] sm:$0xf0]  ;;  %v14471_v58 = vld [vmem:[%s20873_s0 + $0x204] sm:$0xf] }
 0x462   :  { %v17588_v27 = vadd.f32 %v4909_v36, %v4543_v61  ;;  %5672 = vmatmul.bf16.gmra.mxu1 %v12326_v32  ;;  %v12158_v28 = vor.u32 %v14435_v34, %v12155_v55  ;;  %v12161_v34 = vld [vmem:[%s20873_s0 + $0x1f0] sm:$0xf]  ;;  %v14437_v55 = vld [vmem:[%s20873_s0 + $0x1f4] sm:$0xf] }
 0x464   :  { %5286 = vmatmul.bf16.gmra.mxu3 %v12150_v63  ;;  %v4486_v4 = vpop.f32.mrf.mxu2 }
 0x465   :  { %v4487_v52 = vadd.f32 %v4486_v4, %v17232_v15  ;;  %v14522_v15 = vld [vmem:[%s20872_s1 + $0x18] sm:$0xff]  ;;  %v12334_v4 = vor.u32 %v14471_v58, %v12331_v60  ;;  %v12337_v58 = vld [vmem:[%s20873_s0 + $0x210] sm:$0xf] }
 0x466   :  { %v4854_v36 = vpop.f32.mrf.mxu0  ;;  %6362 = vmatpush.bf16.msra.mxu0 %v14522_v15  ;;  %v14474_v60 = vld [vmem:[%s20873_s0 + $0x214] sm:$0xf0] }
 0x467   :  { %v4545_v44 = vpop.f32.mrf.mxu3  ;;  %v4913_v37 = vpop.f32.mrf.mxu1 }
 0x468   :  { %v4546_v30 = vadd.f32 %v4545_v44, %v4487_v52  ;;  %v4914_v50 = vadd.f32 %v4913_v37, %v4854_v36 }
 0x46a   :  { %v17600_v11 = vadd.f32 %v4912_v38, %v4546_v30  ;;  %v12330_v38 = vor.u32 %v14472_v17, %v12329_v0  ;;  %v14541_v17 = vld [vmem:[%s20872_s1 + $0x90] sm:$0xff] }
 0x46b   :  { %6129 = vmatpush.bf16.msra.mxu2 %v14541_v17 }
 0x46c   :  { %v4488_v63 = vpop.f32.mrf.mxu2 }
 0x46d   :  { %v4489_v32 = vadd.f32 %v4488_v63, %v17245_v47 }
 0x46e   :  { %v4857_v62 = vpop.f32.mrf.mxu0 }
 0x46f   :  { %v4547_v61 = vpop.f32.mrf.mxu3  ;;  %v4916_v44 = vpop.f32.mrf.mxu1 }
 0x470   :  { %v4548_v52 = vadd.f32 %v4547_v61, %v4489_v32  ;;  %v4917_v36 = vadd.f32 %v4916_v44, %v4857_v62  ;;  %v12163_v32 = vld [vmem:[%s20873_s0 + $0x1f8] sm:$0xf0]  ;;  %v14473_v61 = vld [vmem:[%s20873_s0 + $0x214] sm:$0xf] }
 0x471   :  { %5232 = vmatmul.bf16.gmra.mxu2 %v12154_v13  ;;  %5618 = vmatmul.bf16.gmra.mxu0 %v12330_v38  ;;  %v12339_v13 = vld [vmem:[%s20873_s0 + $0x218] sm:$0xf0] }
 0x472   :  { %v17630_v30 = vadd.f32 %v4914_v50, %v4548_v52  ;;  %5677 = vmatmul.bf16.gmra.mxu1 %v12334_v4  ;;  %v14438_v50 = vld [vmem:[%s20873_s0 + $0x1f4] sm:$0xf0]  ;;  %v12338_v52 = vor.u32 %v14474_v60, %v12337_v58  ;;  %v12169_v60 = vld [vmem:[%s20873_s0 + $0x200] sm:$0xf] }
 0x473   :  { %v12162_v4 = vor.u32 %v14438_v50, %v12161_v34 }
 0x474   :  { %5291 = vmatmul.bf16.gmra.mxu3 %v12158_v28  ;;  %v4491_v37 = vpop.f32.mrf.mxu2 }
 0x475   :  { %v4492_v15 = vadd.f32 %v4491_v37, %v17268_v7  ;;  %v14549_v7 = vld [vmem:[%s20872_s1 + $0xd0] sm:$0xff]  ;;  %v12342_v37 = vor.u32 %v14473_v61, %v12339_v13  ;;  %v14440_v61 = vld [vmem:[%s20873_s0 + $0x204] sm:$0xf0] }
 0x476   :  { %v4859_v47 = vpop.f32.mrf.mxu0  ;;  %6188 = vmatpush.bf16.msra.mxu3 %v14549_v7  ;;  %v14540_v13 = vld [vmem:[%s20872_s1 + $0x88] sm:$0xff] }
 0x477   :  { %v4550_v54 = vpop.f32.mrf.mxu3  ;;  %v4918_v1 = vpop.f32.mrf.mxu1  ;;  %6130 = vmatpush.bf16.msra.mxu2 %v14540_v13 }
 0x478   :  { %v4551_v63 = vadd.f32 %v4550_v54, %v4492_v15  ;;  %v4919_v20 = vadd.f32 %v4918_v1, %v4859_v47  ;;  %v14521_v1 = vld [vmem:[%s20872_s1 + $0x10] sm:$0xff] }
 0x479   :  { %6363 = vmatpush.bf16.msra.mxu0 %v14521_v1 }
 0x47a   :  { %v17636_v0 = vadd.f32 %v4917_v36, %v4551_v63  ;;  %v12166_v36 = vor.u32 %v14437_v55, %v12163_v32 }
 0x47c   :  { %v4493_v38 = vpop.f32.mrf.mxu2 }
 0x47d   :  { %v4494_v62 = vadd.f32 %v4493_v38, %v17275_v8  ;;  %v14529_v8 = vld [vmem:[%s20872_s1 + $0x50] sm:$0xff]  ;;  %v14439_v38 = vld [vmem:[%s20873_s0 + $0x204] sm:$0xf] }
 0x47e   :  { %v4862_v44 = vpop.f32.mrf.mxu0  ;;  %6422 = vmatpush.bf16.msra.mxu1 %v14529_v8 }
 0x47f   :  { %v4552_v28 = vpop.f32.mrf.mxu3  ;;  %v4921_v54 = vpop.f32.mrf.mxu1 }
 0x480   :  { %v4553_v15 = vadd.f32 %v4552_v28, %v4494_v62  ;;  %v4922_v47 = vadd.f32 %v4921_v54, %v4862_v44  ;;  %v12345_v62 = vld [vmem:[%s20873_s0 + $0x220] sm:$0xf]  ;;  %v14476_v28 = vld [vmem:[%s20873_s0 + $0x224] sm:$0xf0]  ;;  %v12347_v44 = vld [vmem:[%s20873_s0 + $0x228] sm:$0xf0]  ;;  %v12170_v54 = vor.u32 %v14440_v61, %v12169_v60 }
 0x481   :  { %5237 = vmatmul.bf16.gmra.mxu2 %v12162_v4  ;;  %5623 = vmatmul.bf16.gmra.mxu0 %v12338_v52  ;;  %v12171_v4 = vld [vmem:[%s20873_s0 + $0x208] sm:$0xf0]  ;;  %v14475_v52 = vld [vmem:[%s20873_s0 + $0x224] sm:$0xf] }
 0x482   :  { %v17666_v63 = vadd.f32 %v4919_v20, %v4553_v15  ;;  %5682 = vmatmul.bf16.gmra.mxu1 %v12342_v37  ;;  %v12174_v8 = vor.u32 %v14439_v38, %v12171_v4  ;;  %v12177_v4 = vld [vmem:[%s20873_s0 + $0x210] sm:$0xf] }
 0x484   :  { %5296 = vmatmul.bf16.gmra.mxu3 %v12166_v36  ;;  %v4496_v34 = vpop.f32.mrf.mxu2 }
 0x485   :  { %v4497_v50 = vadd.f32 %v4496_v34, %v17298_v2  ;;  %v14548_v2 = vld [vmem:[%s20872_s1 + $0xc8] sm:$0xff]  ;;  %v12350_v34 = vor.u32 %v14475_v52, %v12347_v44  ;;  %v14442_v52 = vld [vmem:[%s20873_s0 + $0x214] sm:$0xf0]  ;;  %v12353_v44 = vld [vmem:[%s20873_s0 + $0x230] sm:$0xf] }
 0x486   :  { %v4864_v20 = vpop.f32.mrf.mxu0  ;;  %6189 = vmatpush.bf16.msra.mxu3 %v14548_v2 }
 0x487   :  { %v4555_v17 = vpop.f32.mrf.mxu3  ;;  %v4923_v55 = vpop.f32.mrf.mxu1 }
 0x488   :  { %v4556_v7 = vadd.f32 %v4555_v17, %v4497_v50  ;;  %v4924_v58 = vadd.f32 %v4923_v55, %v4864_v20  ;;  %v14520_v55 = vld [vmem:[%s20872_s1 + $0x8] sm:$0xff] }
 0x489   :  { %6364 = vmatpush.bf16.msra.mxu0 %v14520_v55 }
 0x48a   :  { %v17678_v32 = vadd.f32 %v4922_v47, %v4556_v7  ;;  %v12346_v47 = vor.u32 %v14476_v28, %v12345_v62 }
 0x48c   :  { %v4498_v36 = vpop.f32.mrf.mxu2 }
 0x48d   :  { %v4499_v37 = vadd.f32 %v4498_v36, %v17311_v33  ;;  %v14528_v33 = vld [vmem:[%s20872_s1 + $0x48] sm:$0xff]  ;;  %v14478_v36 = vld [vmem:[%s20873_s0 + $0x234] sm:$0xf0] }
 0x48e   :  { %v4867_v1 = vpop.f32.mrf.mxu0  ;;  %6423 = vmatpush.bf16.msra.mxu1 %v14528_v33 }
 0x48f   :  { %v4557_v15 = vpop.f32.mrf.mxu3  ;;  %v4926_v17 = vpop.f32.mrf.mxu1 }
 0x490   :  { %v4558_v50 = vadd.f32 %v4557_v15, %v4499_v37  ;;  %v4927_v20 = vadd.f32 %v4926_v17, %v4867_v1  ;;  %v12179_v37 = vld [vmem:[%s20873_s0 + $0x218] sm:$0xf0]  ;;  %v14477_v15 = vld [vmem:[%s20873_s0 + $0x234] sm:$0xf] }
 0x491   :  { %5242 = vmatmul.bf16.gmra.mxu2 %v12170_v54  ;;  %5628 = vmatmul.bf16.gmra.mxu0 %v12346_v47  ;;  %v12355_v54 = vld [vmem:[%s20873_s0 + $0x238] sm:$0xf0] }
 0x492   :  { %v17708_v7 = vadd.f32 %v4924_v58, %v4558_v50  ;;  %5687 = vmatmul.bf16.gmra.mxu1 %v12350_v34  ;;  %v12178_v34 = vor.u32 %v14442_v52, %v12177_v4  ;;  %v12354_v50 = vor.u32 %v14478_v36, %v12353_v44  ;;  %v12358_v55 = vor.u32 %v14477_v15, %v12355_v54  ;;  %v14539_v4 = vld [vmem:[%s20872_s1 + $0x80] sm:$0xff] }
 0x493   :  { %v14547_v52 = vld [vmem:[%s20872_s1 + $0xc0] sm:$0xff]  ;;  %6131 = vmatpush.bf16.msra.mxu2 %v14539_v4 }
 0x494   :  { %5301 = vmatmul.bf16.gmra.mxu3 %v12174_v8  ;;  %v4501_v60 = vpop.f32.mrf.mxu2  ;;  %v14443_v15 = vld [vmem:[%s20873_s0 + $0x224] sm:$0xf]  ;;  %v12361_v54 = vld [vmem:[%s20873_s0 + $0x240] sm:$0xf] }
 0x495   :  { %v4502_v61 = vadd.f32 %v4501_v60, %v17334_v41  ;;  %v14441_v41 = vld [vmem:[%s20873_s0 + $0x214] sm:$0xf]  ;;  %6190 = vmatpush.bf16.msra.mxu3 %v14547_v52 }
 0x496   :  { %v4869_v58 = vpop.f32.mrf.mxu0 }
 0x497   :  { %v4560_v13 = vpop.f32.mrf.mxu3  ;;  %v4928_v38 = vpop.f32.mrf.mxu1 }
 0x498   :  { %v4561_v2 = vadd.f32 %v4560_v13, %v4502_v61  ;;  %v4929_v62 = vadd.f32 %v4928_v38, %v4869_v58 }
 0x49a   :  { %v17717_v28 = vadd.f32 %v4927_v20, %v4561_v2  ;;  %v12182_v20 = vor.u32 %v14441_v41, %v12179_v37  ;;  %v14444_v37 = vld [vmem:[%s20873_s0 + $0x224] sm:$0xf0] }
 0x49c   :  { %v4503_v47 = vpop.f32.mrf.mxu2 }
 0x49d   :  { %v4504_v1 = vadd.f32 %v4503_v47, %v17341_v14  ;;  %v14480_v47 = vld [vmem:[%s20873_s0 + $0x244] sm:$0xf0] }
 0x49e   :  { %v4872_v17 = vpop.f32.mrf.mxu0 }
 0x49f   :  { %v4562_v8 = vpop.f32.mrf.mxu3  ;;  %v4931_v60 = vpop.f32.mrf.mxu1 }
 0x4a0   :  { %v4563_v33 = vadd.f32 %v4562_v8, %v4504_v1  ;;  %v4932_v61 = vadd.f32 %v4931_v60, %v4872_v17  ;;  %v12187_v1 = vld [vmem:[%s20873_s0 + $0x228] sm:$0xf0]  ;;  %v14479_v8 = vld [vmem:[%s20873_s0 + $0x244] sm:$0xf] }
 0x4a1   :  { %5247 = vmatmul.bf16.gmra.mxu2 %v12178_v34  ;;  %5633 = vmatmul.bf16.gmra.mxu0 %v12354_v50  ;;  %v12363_v34 = vld [vmem:[%s20873_s0 + $0x248] sm:$0xf0] }
 0x4a2   :  { %v17744_v13 = vadd.f32 %v4929_v62, %v4563_v33  ;;  %5692 = vmatmul.bf16.gmra.mxu1 %v12358_v55  ;;  %v12362_v33 = vor.u32 %v14480_v47, %v12361_v54 }
 0x4a4   :  { %5306 = vmatmul.bf16.gmra.mxu3 %v12182_v20  ;;  %v4506_v58 = vpop.f32.mrf.mxu2 }
 0x4a5   :  { %v4507_v2 = vadd.f32 %v4506_v58, %v17358_v56  ;;  %v12185_v56 = vld [vmem:[%s20873_s0 + $0x220] sm:$0xf]  ;;  %v12366_v58 = vor.u32 %v14479_v8, %v12363_v34  ;;  %v12193_v8 = vld [vmem:[%s20873_s0 + $0x230] sm:$0xf]  ;;  %v14446_v34 = vld [vmem:[%s20873_s0 + $0x234] sm:$0xf0] }
 0x4a6   :  { %v4874_v14 = vpop.f32.mrf.mxu0  ;;  %v12186_v55 = vor.u32 %v14444_v37, %v12185_v56 }
 0x4a7   :  { %v4565_v38 = vpop.f32.mrf.mxu3  ;;  %v4933_v62 = vpop.f32.mrf.mxu1 }
 0x4a8   :  { %v4566_v41 = vadd.f32 %v4565_v38, %v4507_v2  ;;  %v4934_v44 = vadd.f32 %v4933_v62, %v4874_v14  ;;  %v14519_v2 = vld [vmem:[%s20872_s1] sm:$0xff] }
 0x4a9   :  { %v14527_v38 = vld [vmem:[%s20872_s1 + $0x40] sm:$0xff]  ;;  %6365 = vmatpush.bf16.msra.mxu0 %v14519_v2  ;;  %v12194_v2 = vor.u32 %v14446_v34, %v12193_v8 }
 0x4aa   :  { %v17753_v36 = vadd.f32 %v4932_v61, %v4566_v41  ;;  %v12190_v61 = vor.u32 %v14443_v15, %v12187_v1  ;;  %6424 = vmatpush.bf16.msra.mxu1 %v14527_v38  ;;  %v14582_v1 = vld [vmem:[%s20872_s1 + $0x138] sm:$0xff] }
 0x4ab   :  { %6724 = vmatpush.bf16.msrb.mxu2 %v14582_v1 }
 0x4ac   :  { %v4508_v50 = vpop.f32.mrf.mxu2 }
 0x4ad   :  { %v4509_v17 = vadd.f32 %v4508_v50, %v17377_v5 }
 0x4ae   :  { %v5599_v60 = vpop.f32.mrf.mxu0 }
 0x4af   :  { %v4567_v20 = vpop.f32.mrf.mxu3  ;;  %v5658_v4 = vpop.f32.mrf.mxu1 }
 0x4b0   :  { %v4568_v14 = vadd.f32 %v4567_v20, %v4509_v17  ;;  %v5659_v52 = vadd.f32 %v5658_v4, %v5599_v60  ;;  %v12369_v17 = vld [vmem:[%s20873_s0 + $0x250] sm:$0xf]  ;;  %v14482_v20 = vld [vmem:[%s20873_s0 + $0x254] sm:$0xf0]  ;;  %v12371_v60 = vld [vmem:[%s20873_s0 + $0x258] sm:$0xf0] }
 0x4b1   :  { %5252 = vmatmul.bf16.gmra.mxu2 %v12186_v55  ;;  %5638 = vmatmul.bf16.gmra.mxu0 %v12362_v33  ;;  %v12195_v55 = vld [vmem:[%s20873_s0 + $0x238] sm:$0xf0]  ;;  %v14481_v33 = vld [vmem:[%s20873_s0 + $0x254] sm:$0xf]  ;;  %v12370_v38 = vor.u32 %v14482_v20, %v12369_v17 }
 0x4b2   :  { %v17786_v5 = vadd.f32 %v4934_v44, %v4568_v14  ;;  %5697 = vmatmul.bf16.gmra.mxu1 %v12366_v58  ;;  %v14590_v44 = vld [vmem:[%s20872_s1 + $0x178] sm:$0xff] }
 0x4b3   :  { %6783 = vmatpush.bf16.msrb.mxu3 %v14590_v44 }
 0x4b4   :  { %5311 = vmatmul.bf16.gmra.mxu3 %v12190_v61  ;;  %v5213_v41 = vpop.f32.mrf.mxu2 }
 0x4b6   :  { %v5601_v37 = vpop.f32.mrf.mxu0 }
 0x4b7   :  { %v5272_v62 = vpop.f32.mrf.mxu3  ;;  %v5660_v15 = vpop.f32.mrf.mxu1 }
 0x4b8   :  { %v5273_v56 = vadd.f32 %v5272_v62, %v5213_v41  ;;  %v5661_v47 = vadd.f32 %v5660_v15, %v5601_v37  ;;  %v12374_v41 = vor.u32 %v14481_v33, %v12371_v60  ;;  %v14618_v62 = vld [vmem:[%s20872_s1 + $0x1b8] sm:$0xff]  ;;  %v14504_v33 = vld [vmem:[%s20873_s0 + $0x204] sm:$0xf0]  ;;  %v14503_v60 = vld [vmem:[%s20873_s0 + $0x204] sm:$0xf] }
 0x4b9   :  { %7110 = vmatpush.bf16.msrb.mxu0 %v14618_v62 }
 0x4ba   :  { %v5322_v54 = vadd.f32 %v5273_v56, %v17409_v10  ;;  %v14445_v10 = vld [vmem:[%s20873_s0 + $0x234] sm:$0xf]  ;;  %v14626_v56 = vld [vmem:[%s20872_s1 + $0x1f8] sm:$0xff] }
 0x4bb   :  { %7169 = vmatpush.bf16.msrb.mxu1 %v14626_v56 }
 0x4bc   :  { %v17801_v50 = vadd.f32 %v5659_v52, %v5322_v54  ;;  %v5215_v61 = vpop.f32.mrf.mxu2  ;;  %v12198_v52 = vor.u32 %v14445_v10, %v12195_v55 }
 0x4be   :  { %21048 = vst [vmem:[#allocation42_spill] sm:$0xff] %v17801_v50  ;;  %v5604_v4 = vpop.f32.mrf.mxu0 }
 0x4bf   :  { %v5274_v58 = vpop.f32.mrf.mxu3  ;;  %v5663_v37 = vpop.f32.mrf.mxu1 }
 0x4c0   :  { %v5275_v14 = vadd.f32 %v5274_v58, %v5215_v61  ;;  %v5664_v54 = vadd.f32 %v5663_v37, %v5604_v4  ;;  %v12617_v61 = vld [vmem:[%s20873_s0 + $0x1e0] sm:$0xf]  ;;  %v12475_v58 = vld [vmem:[%s20873_s0 + $0x208] sm:$0xf0] }
 0x4c1   :  { %5257 = vmatmul.bf16.gmra.mxu2 %v12194_v2  ;;  %5643 = vmatmul.bf16.gmra.mxu0 %v12370_v38  ;;  %v14499_v2 = vld [vmem:[%s20873_s0 + $0x1e4] sm:$0xf]  ;;  %v12619_v38 = vld [vmem:[%s20873_s0 + $0x1e8] sm:$0xf0]  ;;  %v17859_v37 = vor.u32 %v14503_v60, %v12475_v58 }
 0x4c2   :  { %v5323_v15 = vadd.f32 %v5275_v14, %v17430_v40  ;;  %5702 = vmatmul.bf16.gmra.mxu1 %v12374_v41  ;;  %v12473_v40 = vld [vmem:[%s20873_s0 + $0x200] sm:$0xf] }
 0x4c4   :  { %v17828_v1 = vadd.f32 %v5661_v47, %v5323_v15  ;;  %5316 = vmatmul.bf16.gmra.mxu3 %v12198_v52  ;;  %v5218_v44 = vpop.f32.mrf.mxu2  ;;  %v17857_v52 = vor.u32 %v14504_v33, %v12473_v40  ;;  %v12622_v15 = vor.u32 %v14499_v2, %v12619_v38  ;;  %v12481_v2 = vld [vmem:[%s20873_s0 + $0x210] sm:$0xf]  ;;  %v14506_v38 = vld [vmem:[%s20873_s0 + $0x214] sm:$0xf0] }
 0x4c6   :  { %21049 = vst [vmem:[#allocation43_spill] sm:$0xff] %v17828_v1  ;;  %v5606_v10 = vpop.f32.mrf.mxu0  ;;  %v14749_v1 = vld [vmem:[%s20872_s1 + $0x150] sm:$0xff] }
 0x4c7   :  { %v5277_v8 = vpop.f32.mrf.mxu3  ;;  %v5665_v17 = vpop.f32.mrf.mxu1 }
 0x4c8   :  { %v5278_v34 = vadd.f32 %v5277_v8, %v5218_v44  ;;  %v5666_v55 = vadd.f32 %v5665_v17, %v5606_v10  ;;  %v14589_v44 = vld [vmem:[%s20872_s1 + $0x170] sm:$0xff] }
 0x4c9   :  { %6784 = vmatpush.bf16.msrb.mxu3 %v14589_v44 }
 0x4ca   :  { %v5324_v20 = vadd.f32 %v5278_v34, %v17438_v43  ;;  %v14500_v43 = vld [vmem:[%s20873_s0 + $0x1e4] sm:$0xf0] }
 0x4cb   :  { %v12618_v41 = vor.u32 %v14500_v43, %v12617_v61 }
 0x4cc   :  { %v17837_v47 = vadd.f32 %v5664_v54, %v5324_v20  ;;  %v5220_v14 = vpop.f32.mrf.mxu2  ;;  %v14581_v54 = vld [vmem:[%s20872_s1 + $0x130] sm:$0xff] }
 0x4cd   :  { %6725 = vmatpush.bf16.msrb.mxu2 %v14581_v54 }
 0x4ce   :  { %21050 = vst [vmem:[#allocation44_spill] sm:$0xff] %v17837_v47  ;;  %v5609_v56 = vpop.f32.mrf.mxu0 }
 0x4cf   :  { %v5279_v4 = vpop.f32.mrf.mxu3  ;;  %v5668_v8 = vpop.f32.mrf.mxu1 }
 0x4d0   :  { %v5280_v62 = vadd.f32 %v5279_v4, %v5220_v14  ;;  %v5669_v10 = vadd.f32 %v5668_v8, %v5609_v56  ;;  %v12625_v4 = vld [vmem:[%s20873_s0 + $0x1f0] sm:$0xf]  ;;  %v14501_v56 = vld [vmem:[%s20873_s0 + $0x1f4] sm:$0xf]  ;;  %v17905_v8 = vor.u32 %v14506_v38, %v12481_v2 }
 0x4d1   :  { %6132 = vmatmul.bf16.vlgmr.msra.gmra.mxu2 %v17857_v52  ;;  %6366 = vmatmul.bf16.vlgmr.msra.gmra.mxu0 %v12618_v41  ;;  %v14502_v41 = vld [vmem:[%s20873_s0 + $0x1f4] sm:$0xf0] }
 0x4d2   :  { %v5325_v34 = vadd.f32 %v5280_v62, %v17468_v22  ;;  %6425 = vmatmul.bf16.vlgmr.msra.gmra.mxu1 %v12622_v15  ;;  %v14617_v22 = vld [vmem:[%s20872_s1 + $0x1b0] sm:$0xff]  ;;  %v12483_v62 = vld [vmem:[%s20873_s0 + $0x218] sm:$0xf0] }
 0x4d3   :  { %7111 = vmatpush.bf16.msrb.mxu0 %v14617_v22  ;;  %v12627_v15 = vld [vmem:[%s20873_s0 + $0x1f8] sm:$0xf0] }
 0x4d4   :  { %v17869_v17 = vadd.f32 %v5666_v55, %v5325_v34  ;;  %6191 = vmatmul.bf16.vlgmr.msra.gmra.mxu3 %v17859_v37  ;;  %v5223_v20 = vpop.f32.mrf.mxu2  ;;  %v14625_v55 = vld [vmem:[%s20872_s1 + $0x1f0] sm:$0xff]  ;;  %v12626_v34 = vor.u32 %v14502_v41, %v12625_v4 }
 0x4d5   :  { %7170 = vmatpush.bf16.msrb.mxu1 %v14625_v55 }
 0x4d6   :  { %21051 = vst [vmem:[#allocation45_spill] sm:$0xff] %v17869_v17  ;;  %v5611_v60 = vpop.f32.mrf.mxu0  ;;  %v14741_v17 = vld [vmem:[%s20872_s1 + $0x110] sm:$0xff] }
 0x4d7   :  { %v5282_v40 = vpop.f32.mrf.mxu3  ;;  %v5670_v61 = vpop.f32.mrf.mxu1 }
 0x4d8   :  { %v5283_v33 = vadd.f32 %v5282_v40, %v5223_v20  ;;  %v5671_v58 = vadd.f32 %v5670_v61, %v5611_v60  ;;  %v14580_v60 = vld [vmem:[%s20872_s1 + $0x128] sm:$0xff] }
 0x4d9   :  { %v14588_v61 = vld [vmem:[%s20872_s1 + $0x168] sm:$0xff]  ;;  %6726 = vmatpush.bf16.msrb.mxu2 %v14580_v60 }
 0x4da   :  { %v5326_v43 = vadd.f32 %v5283_v33, %v17480_v46  ;;  %v14505_v46 = vld [vmem:[%s20873_s0 + $0x214] sm:$0xf]  ;;  %v12630_v33 = vor.u32 %v14501_v56, %v12627_v15  ;;  %6785 = vmatpush.bf16.msrb.mxu3 %v14588_v61 }
 0x4db   :  { %v17907_v40 = vor.u32 %v14505_v46, %v12483_v62  ;;  %v14616_v62 = vld [vmem:[%s20872_s1 + $0x1a8] sm:$0xff] }
 0x4dc   :  { %v17885_v14 = vadd.f32 %v5669_v10, %v5326_v43  ;;  %v5225_v54 = vpop.f32.mrf.mxu2  ;;  %7112 = vmatpush.bf16.msrb.mxu0 %v14616_v62 }
 0x4de   :  { %21052 = vst [vmem:[#allocation46_spill] sm:$0xff] %v17885_v14  ;;  %v5614_v20 = vpop.f32.mrf.mxu0 }
 0x4df   :  { %v5284_v44 = vpop.f32.mrf.mxu3  ;;  %v5673_v43 = vpop.f32.mrf.mxu1 }
 0x4e0   :  { %v5285_v10 = vadd.f32 %v5284_v44, %v5225_v54  ;;  %v5674_v55 = vadd.f32 %v5673_v43, %v5614_v20  ;;  %v12489_v44 = vld [vmem:[%s20873_s0 + $0x220] sm:$0xf] }
 0x4e1   :  { %6137 = vmatmul.bf16.gmra.mxu2 %v17905_v8  ;;  %6371 = vmatmul.bf16.gmra.mxu0 %v12626_v34  ;;  %v14508_v34 = vld [vmem:[%s20873_s0 + $0x224] sm:$0xf0] }
 0x4e2   :  { %v5327_v22 = vadd.f32 %v5285_v10, %v17510_v49  ;;  %6430 = vmatmul.bf16.gmra.mxu1 %v12630_v33  ;;  %v14624_v49 = vld [vmem:[%s20872_s1 + $0x1e8] sm:$0xff]  ;;  %v14507_v10 = vld [vmem:[%s20873_s0 + $0x224] sm:$0xf]  ;;  %v17941_v60 = vor.u32 %v14508_v34, %v12489_v44 }
 0x4e3   :  { %7171 = vmatpush.bf16.msrb.mxu1 %v14624_v49 }
 0x4e4   :  { %v17917_v2 = vadd.f32 %v5671_v58, %v5327_v22  ;;  %6196 = vmatmul.bf16.gmra.mxu3 %v17907_v40  ;;  %v5228_v38 = vpop.f32.mrf.mxu2 }
 0x4e6   :  { %21053 = vst [vmem:[#allocation47_spill] sm:$0xff] %v17917_v2  ;;  %v5616_v41 = vpop.f32.mrf.mxu0 }
 0x4e7   :  { %v5287_v46 = vpop.f32.mrf.mxu3  ;;  %v5675_v56 = vpop.f32.mrf.mxu1 }
 0x4e8   :  { %v5288_v4 = vadd.f32 %v5287_v46, %v5228_v38  ;;  %v5676_v58 = vadd.f32 %v5675_v56, %v5616_v41 }
 0x4ea   :  { %v5328_v15 = vadd.f32 %v5288_v4, %v17519_v16  ;;  %v12491_v16 = vld [vmem:[%s20873_s0 + $0x228] sm:$0xf0] }
 0x4eb   :  { %v17943_v22 = vor.u32 %v14507_v10, %v12491_v16  ;;  %v14510_v10 = vld [vmem:[%s20873_s0 + $0x234] sm:$0xf0]  ;;  %v12499_v16 = vld [vmem:[%s20873_s0 + $0x238] sm:$0xf0] }
 0x4ec   :  { %v17927_v54 = vadd.f32 %v5674_v55, %v5328_v15  ;;  %v5230_v20 = vpop.f32.mrf.mxu2 }
 0x4ee   :  { %21054 = vst [vmem:[#allocation48_spill] sm:$0xff] %v17927_v54  ;;  %v5619_v43 = vpop.f32.mrf.mxu0  ;;  %v14690_v54 = vld [vmem:[%s20872_s1 + $0x38] sm:$0xff] }
 0x4ef   :  { %v5289_v33 = vpop.f32.mrf.mxu3  ;;  %v5678_v55 = vpop.f32.mrf.mxu1 }
 0x4f0   :  { %v5290_v61 = vadd.f32 %v5289_v33, %v5230_v20  ;;  %v5679_v46 = vadd.f32 %v5678_v55, %v5619_v43 }
 0x4f1   :  { %6142 = vmatmul.bf16.gmra.mxu2 %v17941_v60  ;;  %6376 = vmatmul.bf16.gmra.mxu0 %v17857_v52  ;;  %v14587_v52 = vld [vmem:[%s20872_s1 + $0x160] sm:$0xff] }
 0x4f2   :  { %v5329_v38 = vadd.f32 %v5290_v61, %v17546_v53  ;;  %6435 = vmatmul.bf16.gmra.mxu1 %v17859_v37  ;;  %v14579_v53 = vld [vmem:[%s20872_s1 + $0x120] sm:$0xff]  ;;  %v12497_v37 = vld [vmem:[%s20873_s0 + $0x230] sm:$0xf]  ;;  %6786 = vmatpush.bf16.msrb.mxu3 %v14587_v52 }
 0x4f3   :  { %6727 = vmatpush.bf16.msrb.mxu2 %v14579_v53  ;;  %v17973_v61 = vor.u32 %v14510_v10, %v12497_v37  ;;  %v14586_v10 = vld [vmem:[%s20872_s1 + $0x158] sm:$0xff] }
 0x4f4   :  { %v17948_v4 = vadd.f32 %v5676_v58, %v5329_v38  ;;  %6201 = vmatmul.bf16.gmra.mxu3 %v17943_v22  ;;  %v5233_v41 = vpop.f32.mrf.mxu2 }
 0x4f6   :  { %21055 = vst [vmem:[#allocation49_spill] sm:$0xff] %v17948_v4  ;;  %v5621_v56 = vpop.f32.mrf.mxu0  ;;  %6787 = vmatpush.bf16.msrb.mxu3 %v14586_v10 }
 0x4f7   :  { %v5292_v62 = vpop.f32.mrf.mxu3  ;;  %v5680_v15 = vpop.f32.mrf.mxu1 }
 0x4f8   :  { %v5293_v49 = vadd.f32 %v5292_v62, %v5233_v41  ;;  %v5681_v34 = vadd.f32 %v5680_v15, %v5621_v56  ;;  %v14623_v41 = vld [vmem:[%s20872_s1 + $0x1e0] sm:$0xff] }
 0x4f9   :  { %7172 = vmatpush.bf16.msrb.mxu1 %v14623_v41 }
 0x4fa   :  { %v5330_v44 = vadd.f32 %v5293_v49, %v17558_v9  ;;  %v14509_v9 = vld [vmem:[%s20873_s0 + $0x234] sm:$0xf] }
 0x4fb   :  { %v17975_v38 = vor.u32 %v14509_v9, %v12499_v16 }
 0x4fc   :  { %v17959_v58 = vadd.f32 %v5679_v46, %v5330_v44  ;;  %v5235_v20 = vpop.f32.mrf.mxu2  ;;  %v14615_v46 = vld [vmem:[%s20872_s1 + $0x1a0] sm:$0xff] }
 0x4fd   :  { %7113 = vmatpush.bf16.msrb.mxu0 %v14615_v46 }
 0x4fe   :  { %21056 = vst [vmem:[#allocation50_spill] sm:$0xff] %v17959_v58  ;;  %v5624_v55 = vpop.f32.mrf.mxu0  ;;  %v14655_v58 = vld [vmem:[%s20872_s1 + $0x240] sm:$0xff] }
 0x4ff   :  { %v5294_v33 = vpop.f32.mrf.mxu3  ;;  %v5683_v62 = vpop.f32.mrf.mxu1 }
 0x500   :  { %v5295_v43 = vadd.f32 %v5294_v33, %v5235_v20  ;;  %v5684_v56 = vadd.f32 %v5683_v62, %v5624_v55  ;;  %v14512_v20 = vld [vmem:[%s20873_s0 + $0x244] sm:$0xf0]  ;;  %v14511_v33 = vld [vmem:[%s20873_s0 + $0x244] sm:$0xf] }
 0x501   :  { %6147 = vmatmul.bf16.gmra.mxu2 %v17973_v61  ;;  %6381 = vmatmul.bf16.gmra.mxu0 %v17905_v8 }
 0x502   :  { %v5331_v49 = vadd.f32 %v5295_v43, %v17588_v27  ;;  %6440 = vmatmul.bf16.gmra.mxu1 %v17907_v40  ;;  %v14578_v27 = vld [vmem:[%s20872_s1 + $0x118] sm:$0xff]  ;;  %v12505_v40 = vld [vmem:[%s20873_s0 + $0x240] sm:$0xf] }
 0x503   :  { %6728 = vmatpush.bf16.msrb.mxu2 %v14578_v27  ;;  %v18011_v46 = vor.u32 %v14512_v20, %v12505_v40 }
 0x504   :  { %v17986_v15 = vadd.f32 %v5681_v34, %v5331_v49  ;;  %6206 = vmatmul.bf16.gmra.mxu3 %v17975_v38  ;;  %v5238_v44 = vpop.f32.mrf.mxu2 }
 0x506   :  { %21057 = vst [vmem:[#allocation51_spill] sm:$0xff] %v17986_v15  ;;  %v5626_v37 = vpop.f32.mrf.mxu0 }
 0x507   :  { %v5297_v53 = vpop.f32.mrf.mxu3  ;;  %v5685_v9 = vpop.f32.mrf.mxu1 }
 0x508   :  { %v5298_v52 = vadd.f32 %v5297_v53, %v5238_v44  ;;  %v5686_v34 = vadd.f32 %v5685_v9, %v5626_v37  ;;  %v14622_v44 = vld [vmem:[%s20872_s1 + $0x1d8] sm:$0xff] }
 0x509   :  { %7173 = vmatpush.bf16.msrb.mxu1 %v14622_v44 }
 0x50a   :  { %v5332_v8 = vadd.f32 %v5298_v52, %v17600_v11  ;;  %v12507_v11 = vld [vmem:[%s20873_s0 + $0x248] sm:$0xf0] }
 0x50b   :  { %v18013_v49 = vor.u32 %v14511_v33, %v12507_v11 }
 0x50c   :  { %v17997_v16 = vadd.f32 %v5684_v56, %v5332_v8  ;;  %v5240_v43 = vpop.f32.mrf.mxu2  ;;  %v14614_v56 = vld [vmem:[%s20872_s1 + $0x198] sm:$0xff] }
 0x50d   :  { %7114 = vmatpush.bf16.msrb.mxu0 %v14614_v56 }
 0x50e   :  { %21058 = vst [vmem:[#allocation52_spill] sm:$0xff] %v17997_v16  ;;  %v5629_v62 = vpop.f32.mrf.mxu0 }
 0x50f   :  { %v5299_v55 = vpop.f32.mrf.mxu3  ;;  %v5688_v53 = vpop.f32.mrf.mxu1 }
 0x510   :  { %v5300_v41 = vadd.f32 %v5299_v55, %v5240_v43  ;;  %v5689_v37 = vadd.f32 %v5688_v53, %v5629_v62  ;;  %v12515_v43 = vld [vmem:[%s20873_s0 + $0x258] sm:$0xf0]  ;;  %v14577_v53 = vld [vmem:[%s20872_s1 + $0x110] sm:$0xff] }
 0x511   :  { %6152 = vmatmul.bf16.gmra.mxu2 %v18011_v46  ;;  %6386 = vmatmul.bf16.gmra.mxu0 %v17941_v60  ;;  %v12513_v60 = vld [vmem:[%s20873_s0 + $0x250] sm:$0xf] }
 0x512   :  { %v5333_v52 = vadd.f32 %v5300_v41, %v17630_v30  ;;  %6445 = vmatmul.bf16.gmra.mxu1 %v17943_v22  ;;  %v14513_v22 = vld [vmem:[%s20873_s0 + $0x254] sm:$0xf]  ;;  %6729 = vmatpush.bf16.msrb.mxu2 %v14577_v53 }
 0x513   :  { %v18045_v44 = vor.u32 %v14513_v22, %v12515_v43 }
 0x514   :  { %v18024_v27 = vadd.f32 %v5686_v34, %v5333_v52  ;;  %6211 = vmatmul.bf16.gmra.mxu3 %v18013_v49  ;;  %v5243_v10 = vpop.f32.mrf.mxu2  ;;  %v14514_v34 = vld [vmem:[%s20873_s0 + $0x254] sm:$0xf0]  ;;  %v14585_v52 = vld [vmem:[%s20872_s1 + $0x150] sm:$0xff] }
 0x515   :  { %v18043_v41 = vor.u32 %v14514_v34, %v12513_v60  ;;  %6788 = vmatpush.bf16.msrb.mxu3 %v14585_v52  ;;  %v14621_v34 = vld [vmem:[%s20872_s1 + $0x1d0] sm:$0xff] }
 0x516   :  { %21059 = vst [vmem:[#allocation53_spill] sm:$0xff] %v18024_v27  ;;  %v5631_v40 = vpop.f32.mrf.mxu0  ;;  %7174 = vmatpush.bf16.msrb.mxu1 %v14621_v34 }
 0x517   :  { %v5302_v9 = vpop.f32.mrf.mxu3  ;;  %v5690_v20 = vpop.f32.mrf.mxu1 }
 0x518   :  { %v5303_v8 = vadd.f32 %v5302_v9, %v5243_v10  ;;  %v5691_v33 = vadd.f32 %v5690_v20, %v5631_v40 }
 0x51a   :  { %v5334_v30 = vadd.f32 %v5303_v8, %v17636_v0 }
 0x51c   :  { %v18029_v11 = vadd.f32 %v5689_v37, %v5334_v30  ;;  %v5245_v0 = vpop.f32.mrf.mxu2 }
 0x51e   :  { %21060 = vst [vmem:[#allocation54_spill] sm:$0xff] %v18029_v11  ;;  %v5634_v56 = vpop.f32.mrf.mxu0 }
 0x51f   :  { %v5304_v55 = vpop.f32.mrf.mxu3  ;;  %v5693_v37 = vpop.f32.mrf.mxu1 }
 0x520   :  { %v5305_v62 = vadd.f32 %v5304_v55, %v5245_v0  ;;  %v5694_v9 = vadd.f32 %v5693_v37, %v5634_v56  ;;  %v14516_v0 = vld [vmem:[%s20873_s0 + $0x264] sm:$0xf0]  ;;  %v14515_v55 = vld [vmem:[%s20873_s0 + $0x264] sm:$0xf] }
 0x521   :  { %6157 = vmatmul.bf16.gmra.mxu2 %v18043_v41  ;;  %6391 = vmatmul.bf16.gmra.mxu0 %v17973_v61 }
 0x522   :  { %v5335_v10 = vadd.f32 %v5305_v62, %v17666_v63  ;;  %6450 = vmatmul.bf16.gmra.mxu1 %v17975_v38  ;;  %v14613_v63 = vld [vmem:[%s20872_s1 + $0x190] sm:$0xff]  ;;  %v12521_v38 = vld [vmem:[%s20873_s0 + $0x260] sm:$0xf] }
 0x523   :  { %7115 = vmatpush.bf16.msrb.mxu0 %v14613_v63  ;;  %v18081_v53 = vor.u32 %v14516_v0, %v12521_v38 }
 0x524   :  { %v18056_v8 = vadd.f32 %v5691_v33, %v5335_v10  ;;  %6216 = vmatmul.bf16.gmra.mxu3 %v18045_v44  ;;  %v5248_v40 = vpop.f32.mrf.mxu2 }
 0x526   :  { %21061 = vst [vmem:[#allocation55_spill] sm:$0xff] %v18056_v8  ;;  %v5636_v60 = vpop.f32.mrf.mxu0 }
 0x527   :  { %v5307_v20 = vpop.f32.mrf.mxu3  ;;  %v5695_v22 = vpop.f32.mrf.mxu1 }
 0x528   :  { %v5308_v30 = vadd.f32 %v5307_v20, %v5248_v40  ;;  %v5696_v33 = vadd.f32 %v5695_v22, %v5636_v60  ;;  %v14584_v40 = vld [vmem:[%s20872_s1 + $0x148] sm:$0xff] }
 0x529   :  { %6789 = vmatpush.bf16.msrb.mxu3 %v14584_v40 }
 0x52a   :  { %v5336_v61 = vadd.f32 %v5308_v30, %v17678_v32  ;;  %v12523_v32 = vld [vmem:[%s20873_s0 + $0x268] sm:$0xf0] }
 0x52b   :  { %v18083_v10 = vor.u32 %v14515_v55, %v12523_v32 }
 0x52c   :  { %v18067_v43 = vadd.f32 %v5694_v9, %v5336_v61  ;;  %v5250_v62 = vpop.f32.mrf.mxu2  ;;  %v14576_v9 = vld [vmem:[%s20872_s1 + $0x108] sm:$0xff] }
 0x52d   :  { %6730 = vmatpush.bf16.msrb.mxu2 %v14576_v9 }
 0x52e   :  { %21062 = vst [vmem:[#allocation56_spill] sm:$0xff] %v18067_v43  ;;  %v5639_v37 = vpop.f32.mrf.mxu0  ;;  %v14659_v43 = vld [vmem:[%s20872_s1 + $0x260] sm:$0xff] }
 0x52f   :  { %v5309_v56 = vpop.f32.mrf.mxu3  ;;  %v5698_v20 = vpop.f32.mrf.mxu1 }
 0x530   :  { %v5310_v52 = vadd.f32 %v5309_v56, %v5250_v62  ;;  %v5699_v60 = vadd.f32 %v5698_v20, %v5639_v37  ;;  %v12531_v62 = vld [vmem:[%s20873_s0 + $0x278] sm:$0xf0] }
 0x531   :  { %6162 = vmatmul.bf16.gmra.mxu2 %v18081_v53  ;;  %6396 = vmatmul.bf16.gmra.mxu0 %v18011_v46  ;;  %v12529_v46 = vld [vmem:[%s20873_s0 + $0x270] sm:$0xf] }
 0x532   :  { %v5337_v30 = vadd.f32 %v5310_v52, %v17708_v7  ;;  %6455 = vmatmul.bf16.gmra.mxu1 %v18013_v49  ;;  %v14517_v49 = vld [vmem:[%s20873_s0 + $0x274] sm:$0xf] }
 0x533   :  { %v18115_v40 = vor.u32 %v14517_v49, %v12531_v62  ;;  %v14611_v49 = vld [vmem:[%s20872_s1 + $0x180] sm:$0xff] }
 0x534   :  { %v18094_v63 = vadd.f32 %v5696_v33, %v5337_v30  ;;  %6221 = vmatmul.bf16.gmra.mxu3 %v18083_v10  ;;  %v5253_v34 = vpop.f32.mrf.mxu2  ;;  %v14518_v33 = vld [vmem:[%s20873_s0 + $0x274] sm:$0xf0]  ;;  %v14619_v62 = vld [vmem:[%s20872_s1 + $0x1c0] sm:$0xff] }
 0x535   :  { %v18113_v52 = vor.u32 %v14518_v33, %v12529_v46 }
 0x536   :  { %21063 = vst [vmem:[#allocation57_spill] sm:$0xff] %v18094_v63  ;;  %v5641_v38 = vpop.f32.mrf.mxu0  ;;  %v14650_v63 = vld [vmem:[%s20872_s1 + $0x218] sm:$0xff] }
 0x537   :  { %v5312_v22 = vpop.f32.mrf.mxu3  ;;  %v5700_v0 = vpop.f32.mrf.mxu1 }
 0x538   :  { %v5313_v61 = vadd.f32 %v5312_v22, %v5253_v34  ;;  %v5701_v55 = vadd.f32 %v5700_v0, %v5641_v38  ;;  %v14575_v38 = vld [vmem:[%s20872_s1 + $0x100] sm:$0xff] }
 0x539   :  { %v14583_v0 = vld [vmem:[%s20872_s1 + $0x140] sm:$0xff]  ;;  %6731 = vmatpush.bf16.msrb.mxu2 %v14575_v38 }
 0x53a   :  { %v5338_v7 = vadd.f32 %v5313_v61, %v17717_v28  ;;  %v14612_v61 = vld [vmem:[%s20872_s1 + $0x188] sm:$0xff]  ;;  %6790 = vmatpush.bf16.msrb.mxu3 %v14583_v0 }
 0x53b   :  { %7116 = vmatpush.bf16.msrb.mxu0 %v14612_v61 }
 0x53c   :  { %v18099_v32 = vadd.f32 %v5699_v60, %v5338_v7  ;;  %v5255_v28 = vpop.f32.mrf.mxu2 }
 0x53e   :  { %21064 = vst [vmem:[#allocation58_spill] sm:$0xff] %v18099_v32  ;;  %v5644_v9 = vpop.f32.mrf.mxu0  ;;  %v14651_v32 = vld [vmem:[%s20872_s1 + $0x220] sm:$0xff] }
 0x53f   :  { %v5314_v56 = vpop.f32.mrf.mxu3  ;;  %v5703_v20 = vpop.f32.mrf.mxu1  ;;  %7117 = vmatpush.bf16.msrb.mxu0 %v14611_v49 }
 0x540   :  { %v5315_v37 = vadd.f32 %v5314_v56, %v5255_v28  ;;  %v5704_v60 = vadd.f32 %v5703_v20, %v5644_v9  ;;  %v12537_v56 = vld [vmem:[%s20873_s0 + $0x280] sm:$0xf]  ;;  %v12539_v9 = vld [vmem:[%s20873_s0 + $0x288] sm:$0xf0] }
 0x541   :  { %6167 = vmatmul.bf16.gmra.mxu2 %v18113_v52  ;;  %6401 = vmatmul.bf16.gmra.mxu0 %v18043_v41 }
 0x542   :  { %v5339_v30 = vadd.f32 %v5315_v37, %v17744_v13  ;;  %6460 = vmatmul.bf16.gmra.mxu1 %v18045_v44  ;;  %v14620_v13 = vld [vmem:[%s20872_s1 + $0x1c8] sm:$0xff] }
 0x543   :  { %7175 = vmatpush.bf16.msrb.mxu1 %v14620_v13  ;;  %v14536_v37 = vld [vmem:[%s20873_s0 + $0x284] sm:$0xf0] }
 0x544   :  { %v18120_v34 = vadd.f32 %v5701_v55, %v5339_v30  ;;  %6226 = vmatmul.bf16.gmra.mxu3 %v18115_v40  ;;  %v5258_v22 = vpop.f32.mrf.mxu2 }
 0x546   :  { %21065 = vst [vmem:[#allocation59_spill] sm:$0xff] %v18120_v34  ;;  %v5646_v44 = vpop.f32.mrf.mxu0 }
 0x547   :  { %v5317_v41 = vpop.f32.mrf.mxu3  ;;  %v5705_v55 = vpop.f32.mrf.mxu1  ;;  %7176 = vmatpush.bf16.msrb.mxu1 %v14619_v62  ;;  %v14718_v62 = vld [vmem:[%s20872_s1 + $0xf8] sm:$0xff] }
 0x548   :  { %v5318_v7 = vadd.f32 %v5317_v41, %v5258_v22  ;;  %v5706_v33 = vadd.f32 %v5705_v55, %v5646_v44  ;;  %v14662_v44 = vld [vmem:[%s20872_s1 + $0x278] sm:$0xff] }
 0x549   :  { %7555 = vmatpush.bf16.msra.mxu3 %v14662_v44 }
 0x54a   :  { %v5340_v46 = vadd.f32 %v5318_v7, %v17753_v36  ;;  %v14535_v36 = vld [vmem:[%s20873_s0 + $0x284] sm:$0xf]  ;;  %v14654_v7 = vld [vmem:[%s20872_s1 + $0x238] sm:$0xff] }
 0x54b   :  { %v12542_v13 = vor.u32 %v14535_v36, %v12539_v9  ;;  %7496 = vmatpush.bf16.msra.mxu2 %v14654_v7  ;;  %8089 = vmatpush.bf16.msra.mxu1 %v14718_v62  ;;  %v14537_v9 = vld [vmem:[%s20873_s0 + $0x294] sm:$0xf] }
 0x54c   :  { %v18143_v28 = vadd.f32 %v5704_v60, %v5340_v46  ;;  %v5260_v20 = vpop.f32.mrf.mxu2  ;;  %v12538_v60 = vor.u32 %v14536_v37, %v12537_v56  ;;  %v12545_v56 = vld [vmem:[%s20873_s0 + $0x290] sm:$0xf]  ;;  %v14538_v37 = vld [vmem:[%s20873_s0 + $0x294] sm:$0xf0] }
 0x54e   :  { %21066 = vst [vmem:[#allocation60_spill] sm:$0xff] %v18143_v28  ;;  %v6367_v61 = vpop.f32.mrf.mxu0  ;;  %v14717_v28 = vld [vmem:[%s20872_s1 + $0xf0] sm:$0xff] }
 0x54f   :  { %v5319_v30 = vpop.f32.mrf.mxu3  ;;  %v6426_v38 = vpop.f32.mrf.mxu1  ;;  %8090 = vmatpush.bf16.msra.mxu1 %v14717_v28  ;;  %v14558_v28 = vld [vmem:[%s20873_s0 + $0x234] sm:$0xf0] }
 0x550   :  { %v5320_v22 = vadd.f32 %v5319_v30, %v5260_v20  ;;  %v12547_v20 = vld [vmem:[%s20873_s0 + $0x298] sm:$0xf0] }
 0x551   :  { %6172 = vmatmul.bf16.gmra.mxu2 %v12538_v60  ;;  %6406 = vmatmul.bf16.gmra.mxu0 %v18081_v53 }
 0x552   :  { %v5341_v41 = vadd.f32 %v5320_v22, %v17786_v5  ;;  %6465 = vmatmul.bf16.gmra.mxu1 %v18083_v10  ;;  %v14710_v10 = vld [vmem:[%s20872_s1 + $0xb8] sm:$0xff]  ;;  %v12546_v22 = vor.u32 %v14538_v37, %v12545_v56  ;;  %v14653_v56 = vld [vmem:[%s20872_s1 + $0x230] sm:$0xff]  ;;  %v12905_v37 = vld [vmem:[%s20873_s0 + $0x240] sm:$0xf] }
 0x553   :  { %8030 = vmatpush.bf16.msra.mxu0 %v14710_v10  ;;  %7497 = vmatpush.bf16.msra.mxu2 %v14653_v56 }
 0x554   :  { %v18159_v0 = vadd.f32 %v5706_v33, %v5341_v41  ;;  %6231 = vmatmul.bf16.gmra.mxu3 %v12542_v13  ;;  %v6133_v55 = vpop.f32.mrf.mxu2  ;;  %v12550_v41 = vor.u32 %v14537_v9, %v12547_v20  ;;  %v14592_v9 = vld [vmem:[%s20873_s0 + $0x244] sm:$0xf0] }
 0x556   :  { %21067 = vst [vmem:[#allocation61_spill] sm:$0xff] %v18159_v0  ;;  %v6369_v49 = vpop.f32.mrf.mxu0  ;;  %v14708_v0 = vld [vmem:[%s20872_s1 + $0xa8] sm:$0xff] }
 0x557   :  { %v6192_v46 = vpop.f32.mrf.mxu3  ;;  %v6428_v53 = vpop.f32.mrf.mxu1 }
 0x558   :  { %v6193_v5 = vadd.f32 %v6192_v46, %v6133_v55 }
 0x55a   :  { %v6368_v33 = vadd.f32 %v6367_v61, %v6193_v5 }
 0x55c   :  { %v18180_v36 = vadd.f32 %v6426_v38, %v6368_v33  ;;  %v6135_v30 = vpop.f32.mrf.mxu2 }
 0x55e   :  { %v6372_v13 = vpop.f32.mrf.mxu0 }
 0x55f   :  { %v6194_v60 = vpop.f32.mrf.mxu3  ;;  %v6431_v7 = vpop.f32.mrf.mxu1 }
 0x560   :  { %v6195_v61 = vadd.f32 %v6194_v60, %v6135_v30  ;;  %v12731_v30 = vld [vmem:[%s20873_s0 + $0x228] sm:$0xf0]  ;;  %v14591_v60 = vld [vmem:[%s20873_s0 + $0x244] sm:$0xf] }
 0x561   :  { %6177 = vmatmul.bf16.gmra.mxu2 %v12546_v22  ;;  %6411 = vmatmul.bf16.gmra.mxu0 %v18113_v52  ;;  %v12729_v52 = vld [vmem:[%s20873_s0 + $0x220] sm:$0xf]  ;;  %v12907_v22 = vld [vmem:[%s20873_s0 + $0x248] sm:$0xf0] }
 0x562   :  { %v6370_v44 = vadd.f32 %v6369_v49, %v6195_v61  ;;  %6470 = vmatmul.bf16.gmra.mxu1 %v18115_v40  ;;  %v14661_v49 = vld [vmem:[%s20872_s1 + $0x270] sm:$0xff]  ;;  %v14556_v40 = vld [vmem:[%s20873_s0 + $0x224] sm:$0xf0] }
 0x563   :  { %7556 = vmatpush.bf16.msra.mxu3 %v14661_v49  ;;  %v14709_v49 = vld [vmem:[%s20872_s1 + $0xb0] sm:$0xff] }
 0x564   :  { %6236 = vmatmul.bf16.gmra.mxu3 %v12550_v41  ;;  %v18190_v38 = vadd.f32 %v6428_v53, %v6370_v44  ;;  %v6138_v55 = vpop.f32.mrf.mxu2  ;;  %v14555_v53 = vld [vmem:[%s20873_s0 + $0x224] sm:$0xf]  ;;  %v12730_v41 = vor.u32 %v14556_v40, %v12729_v52  ;;  %v12906_v44 = vor.u32 %v14592_v9, %v12905_v37  ;;  %8031 = vmatpush.bf16.msra.mxu0 %v14709_v49 }
 0x566   :  { %v6374_v33 = vpop.f32.mrf.mxu0 }
 0x567   :  { %v6197_v46 = vpop.f32.mrf.mxu3  ;;  %v6433_v10 = vpop.f32.mrf.mxu1 }
 0x568   :  { %v6198_v5 = vadd.f32 %v6197_v46, %v6138_v55  ;;  %8032 = vmatpush.bf16.msra.mxu0 %v14708_v0  ;;  %v12921_v0 = vld [vmem:[%s20873_s0 + $0x260] sm:$0xf] }
 0x56a   :  { %v6373_v62 = vadd.f32 %v6372_v13, %v6198_v5  ;;  %v12910_v5 = vor.u32 %v14591_v60, %v12907_v22  ;;  %v14652_v60 = vld [vmem:[%s20872_s1 + $0x228] sm:$0xff] }
 0x56b   :  { %v14660_v22 = vld [vmem:[%s20872_s1 + $0x268] sm:$0xff]  ;;  %7498 = vmatpush.bf16.msra.mxu2 %v14652_v60 }
 0x56c   :  { %v18213_v20 = vadd.f32 %v6431_v7, %v6373_v62  ;;  %v6140_v61 = vpop.f32.mrf.mxu2  ;;  %v12734_v7 = vor.u32 %v14555_v53, %v12731_v30  ;;  %7557 = vmatpush.bf16.msra.mxu3 %v14660_v22 }
 0x56e   :  { %v6377_v46 = vpop.f32.mrf.mxu0 }
 0x56f   :  { %v6199_v13 = vpop.f32.mrf.mxu3  ;;  %v6436_v62 = vpop.f32.mrf.mxu1  ;;  %7499 = vmatpush.bf16.msra.mxu2 %v14651_v32  ;;  %v14561_v32 = vld [vmem:[%s20873_s0 + $0x254] sm:$0xf] }
 0x570   :  { %v6200_v55 = vadd.f32 %v6199_v13, %v6140_v61  ;;  %v14557_v61 = vld [vmem:[%s20873_s0 + $0x234] sm:$0xf]  ;;  %v12913_v13 = vld [vmem:[%s20873_s0 + $0x250] sm:$0xf]  ;;  %7558 = vmatpush.bf16.msra.mxu3 %v14659_v43  ;;  %v14562_v43 = vld [vmem:[%s20873_s0 + $0x254] sm:$0xf0] }
 0x571   :  { %6732 = vmatmul.bf16.vlgmr.msrb.gmra.mxu2 %v12730_v41  ;;  %7118 = vmatmul.bf16.vlgmr.msrb.gmra.mxu0 %v12906_v44  ;;  %v14594_v41 = vld [vmem:[%s20873_s0 + $0x254] sm:$0xf0] }
 0x572   :  { %v6375_v56 = vadd.f32 %v6374_v33, %v6200_v55  ;;  %7177 = vmatmul.bf16.vlgmr.msrb.gmra.mxu1 %v12910_v5  ;;  %v12739_v55 = vld [vmem:[%s20873_s0 + $0x238] sm:$0xf0] }
 0x573   :  { %7500 = vmatpush.bf16.msra.mxu2 %v14650_v63  ;;  %v14564_v63 = vld [vmem:[%s20873_s0 + $0x264] sm:$0xf0] }
 0x574   :  { %6791 = vmatmul.bf16.vlgmr.msrb.gmra.mxu3 %v12734_v7  ;;  %v18230_v52 = vadd.f32 %v6433_v10, %v6375_v56  ;;  %v6143_v40 = vpop.f32.mrf.mxu2  ;;  %v12737_v10 = vld [vmem:[%s20873_s0 + $0x230] sm:$0xf]  ;;  %v12915_v7 = vld [vmem:[%s20873_s0 + $0x258] sm:$0xf0] }
 0x575   :  { %v12738_v49 = vor.u32 %v14558_v28, %v12737_v10  ;;  %v14716_v10 = vld [vmem:[%s20872_s1 + $0xe8] sm:$0xff] }
 0x576   :  { %v6379_v33 = vpop.f32.mrf.mxu0  ;;  %8091 = vmatpush.bf16.msra.mxu1 %v14716_v10 }
 0x577   :  { %v6202_v53 = vpop.f32.mrf.mxu3  ;;  %v6438_v9 = vpop.f32.mrf.mxu1 }
 0x578   :  { %v6203_v37 = vadd.f32 %v6202_v53, %v6143_v40  ;;  %v12914_v40 = vor.u32 %v14594_v41, %v12913_v13 }
 0x57a   :  { %v6378_v30 = vadd.f32 %v6377_v46, %v6203_v37  ;;  %v14593_v46 = vld [vmem:[%s20873_s0 + $0x254] sm:$0xf] }
 0x57c   :  { %v18253_v44 = vadd.f32 %v6436_v62, %v6378_v30  ;;  %v6145_v5 = vpop.f32.mrf.mxu2  ;;  %v12742_v62 = vor.u32 %v14557_v61, %v12739_v55  ;;  %v12918_v30 = vor.u32 %v14593_v46, %v12915_v7  ;;  %v12745_v46 = vld [vmem:[%s20873_s0 + $0x240] sm:$0xf]  ;;  %v14559_v7 = vld [vmem:[%s20873_s0 + $0x244] sm:$0xf] }
 0x57e   :  { %v6382_v37 = vpop.f32.mrf.mxu0 }
 0x57f   :  { %v6204_v56 = vpop.f32.mrf.mxu3  ;;  %v6441_v60 = vpop.f32.mrf.mxu1 }
 0x580   :  { %v6205_v53 = vadd.f32 %v6204_v56, %v6145_v5  ;;  %v14596_v5 = vld [vmem:[%s20873_s0 + $0x264] sm:$0xf0] }
 0x581   :  { %6737 = vmatmul.bf16.gmra.mxu2 %v12738_v49  ;;  %7123 = vmatmul.bf16.gmra.mxu0 %v12914_v40  ;;  %v12747_v49 = vld [vmem:[%s20873_s0 + $0x248] sm:$0xf0]  ;;  %v14595_v40 = vld [vmem:[%s20873_s0 + $0x264] sm:$0xf] }
 0x582   :  { %v6380_v22 = vadd.f32 %v6379_v33, %v6205_v53  ;;  %7182 = vmatmul.bf16.gmra.mxu1 %v12918_v30  ;;  %v12923_v53 = vld [vmem:[%s20873_s0 + $0x268] sm:$0xf0] }
 0x584   :  { %6796 = vmatmul.bf16.gmra.mxu3 %v12742_v62  ;;  %v18267_v34 = vadd.f32 %v6438_v9, %v6380_v22  ;;  %v6148_v28 = vpop.f32.mrf.mxu2  ;;  %v14560_v9 = vld [vmem:[%s20873_s0 + $0x244] sm:$0xf0]  ;;  %v12922_v22 = vor.u32 %v14596_v5, %v12921_v0 }
 0x585   :  { %v12746_v30 = vor.u32 %v14560_v9, %v12745_v46 }
 0x586   :  { %v6384_v33 = vpop.f32.mrf.mxu0 }
 0x587   :  { %v6207_v61 = vpop.f32.mrf.mxu3  ;;  %v6443_v41 = vpop.f32.mrf.mxu1 }
 0x588   :  { %v6208_v13 = vadd.f32 %v6207_v61, %v6148_v28  ;;  %v12926_v61 = vor.u32 %v14595_v40, %v12923_v53  ;;  %v14707_v40 = vld [vmem:[%s20872_s1 + $0xa0] sm:$0xff] }
 0x589   :  { %v14715_v53 = vld [vmem:[%s20872_s1 + $0xe0] sm:$0xff]  ;;  %8033 = vmatpush.bf16.msra.mxu0 %v14707_v40 }
 0x58a   :  { %v6383_v55 = vadd.f32 %v6382_v37, %v6208_v13  ;;  %8092 = vmatpush.bf16.msra.mxu1 %v14715_v53 }
 0x58c   :  { %v18287_v56 = vadd.f32 %v6441_v60, %v6383_v55  ;;  %v6150_v37 = vpop.f32.mrf.mxu2  ;;  %v12750_v60 = vor.u32 %v14559_v7, %v12747_v49 }
 0x58e   :  { %v6387_v28 = vpop.f32.mrf.mxu0 }
 0x58f   :  { %v6209_v62 = vpop.f32.mrf.mxu3  ;;  %v6446_v13 = vpop.f32.mrf.mxu1 }
 0x590   :  { %v6210_v10 = vadd.f32 %v6209_v62, %v6150_v37  ;;  %v12929_v37 = vld [vmem:[%s20873_s0 + $0x270] sm:$0xf]  ;;  %v14598_v62 = vld [vmem:[%s20873_s0 + $0x274] sm:$0xf0] }
 0x591   :  { %6742 = vmatmul.bf16.gmra.mxu2 %v12746_v30  ;;  %7128 = vmatmul.bf16.gmra.mxu0 %v12922_v22  ;;  %v12755_v22 = vld [vmem:[%s20873_s0 + $0x258] sm:$0xf0] }
 0x592   :  { %v6385_v55 = vadd.f32 %v6384_v33, %v6210_v10  ;;  %7187 = vmatmul.bf16.gmra.mxu1 %v12926_v61  ;;  %v14597_v10 = vld [vmem:[%s20873_s0 + $0x274] sm:$0xf] }
 0x594   :  { %6801 = vmatmul.bf16.gmra.mxu3 %v12750_v60  ;;  %v18304_v46 = vadd.f32 %v6443_v41, %v6385_v55  ;;  %v6153_v9 = vpop.f32.mrf.mxu2  ;;  %v12753_v41 = vld [vmem:[%s20873_s0 + $0x250] sm:$0xf] }
 0x595   :  { %v12754_v55 = vor.u32 %v14562_v43, %v12753_v41  ;;  %v14658_v41 = vld [vmem:[%s20872_s1 + $0x258] sm:$0xff] }
 0x596   :  { %v6389_v33 = vpop.f32.mrf.mxu0  ;;  %7559 = vmatpush.bf16.msra.mxu3 %v14658_v41 }
 0x597   :  { %v6212_v7 = vpop.f32.mrf.mxu3  ;;  %v6448_v5 = vpop.f32.mrf.mxu1 }
 0x598   :  { %v6213_v0 = vadd.f32 %v6212_v7, %v6153_v9  ;;  %v12930_v9 = vor.u32 %v14598_v62, %v12929_v37 }
 0x59a   :  { %v6388_v49 = vadd.f32 %v6387_v28, %v6213_v0  ;;  %v12931_v28 = vld [vmem:[%s20873_s0 + $0x278] sm:$0xf0] }
 0x59c   :  { %v18327_v30 = vadd.f32 %v6446_v13, %v6388_v49  ;;  %v6155_v60 = vpop.f32.mrf.mxu2  ;;  %v12758_v13 = vor.u32 %v14561_v32, %v12755_v22  ;;  %v12934_v49 = vor.u32 %v14597_v10, %v12931_v28  ;;  %v14706_v10 = vld [vmem:[%s20872_s1 + $0x98] sm:$0xff]  ;;  %v12761_v28 = vld [vmem:[%s20873_s0 + $0x260] sm:$0xf] }
 0x59d   :  { %8034 = vmatpush.bf16.msra.mxu0 %v14706_v10  ;;  %v12762_v41 = vor.u32 %v14564_v63, %v12761_v28  ;;  %v14649_v28 = vld [vmem:[%s20872_s1 + $0x210] sm:$0xff] }
 0x59e   :  { %v6392_v0 = vpop.f32.mrf.mxu0  ;;  %v12769_v63 = vld [vmem:[%s20873_s0 + $0x270] sm:$0xf]  ;;  %7501 = vmatpush.bf16.msra.mxu2 %v14649_v28 }
 0x59f   :  { %v6214_v61 = vpop.f32.mrf.mxu3  ;;  %v6451_v40 = vpop.f32.mrf.mxu1 }
 0x5a0   :  { %v6215_v7 = vadd.f32 %v6214_v61, %v6155_v60  ;;  %v14563_v60 = vld [vmem:[%s20873_s0 + $0x264] sm:$0xf]  ;;  %v12937_v61 = vld [vmem:[%s20873_s0 + $0x280] sm:$0xf] }
 0x5a1   :  { %6747 = vmatmul.bf16.gmra.mxu2 %v12754_v55  ;;  %7133 = vmatmul.bf16.gmra.mxu0 %v12930_v9  ;;  %v14600_v55 = vld [vmem:[%s20873_s0 + $0x284] sm:$0xf0] }
 0x5a2   :  { %v6390_v53 = vadd.f32 %v6389_v33, %v6215_v7  ;;  %7192 = vmatmul.bf16.gmra.mxu1 %v12934_v49  ;;  %v12763_v7 = vld [vmem:[%s20873_s0 + $0x268] sm:$0xf0] }
 0x5a4   :  { %6806 = vmatmul.bf16.gmra.mxu3 %v12758_v13  ;;  %v18341_v8 = vadd.f32 %v6448_v5, %v6390_v53  ;;  %v6158_v43 = vpop.f32.mrf.mxu2  ;;  %v14714_v5 = vld [vmem:[%s20872_s1 + $0xd8] sm:$0xff]  ;;  %v12939_v13 = vld [vmem:[%s20873_s0 + $0x288] sm:$0xf0] }
 0x5a5   :  { %8093 = vmatpush.bf16.msra.mxu1 %v14714_v5 }
 0x5a6   :  { %v6394_v33 = vpop.f32.mrf.mxu0 }
 0x5a7   :  { %v6217_v32 = vpop.f32.mrf.mxu3  ;;  %v6453_v62 = vpop.f32.mrf.mxu1 }
 0x5a8   :  { %v6218_v37 = vadd.f32 %v6217_v32, %v6158_v43  ;;  %v12938_v43 = vor.u32 %v14600_v55, %v12937_v61  ;;  %v12771_v61 = vld [vmem:[%s20873_s0 + $0x278] sm:$0xf0]  ;;  %v14601_v55 = vld [vmem:[%s20873_s0 + $0x294] sm:$0xf] }
 0x5aa   :  { %v6393_v22 = vadd.f32 %v6392_v0, %v6218_v37  ;;  %v14599_v0 = vld [vmem:[%s20873_s0 + $0x284] sm:$0xf] }
 0x5ac   :  { %v18367_v9 = vadd.f32 %v6451_v40, %v6393_v22  ;;  %v6160_v49 = vpop.f32.mrf.mxu2  ;;  %v12766_v40 = vor.u32 %v14563_v60, %v12763_v7  ;;  %v12942_v22 = vor.u32 %v14599_v0, %v12939_v13  ;;  %v12947_v7 = vld [vmem:[%s20873_s0 + $0x298] sm:$0xf0] }
 0x5ae   :  { %v6397_v37 = vpop.f32.mrf.mxu0 }
 0x5af   :  { %v6219_v53 = vpop.f32.mrf.mxu3  ;;  %v6456_v10 = vpop.f32.mrf.mxu1 }
 0x5b0   :  { %v6220_v32 = vadd.f32 %v6219_v53, %v6160_v49 }
 0x5b1   :  { %6752 = vmatmul.bf16.gmra.mxu2 %v12762_v41  ;;  %7138 = vmatmul.bf16.gmra.mxu0 %v12938_v43 }
 0x5b2   :  { %v6395_v5 = vadd.f32 %v6394_v33, %v6220_v32  ;;  %7197 = vmatmul.bf16.gmra.mxu1 %v12942_v22  ;;  %v14657_v33 = vld [vmem:[%s20872_s1 + $0x250] sm:$0xff]  ;;  %v12950_v32 = vor.u32 %v14601_v55, %v12947_v7  ;;  %v14567_v55 = vld [vmem:[%s20873_s0 + $0x284] sm:$0xf]  ;;  %v12953_v7 = vld [vmem:[%s20873_s0 + $0x2a0] sm:$0xf] }
 0x5b3   :  { %7560 = vmatpush.bf16.msra.mxu3 %v14657_v33  ;;  %v14705_v22 = vld [vmem:[%s20872_s1 + $0x90] sm:$0xff] }
 0x5b4   :  { %6811 = vmatmul.bf16.gmra.mxu3 %v12766_v40  ;;  %v18378_v21 = vadd.f32 %v6453_v62, %v6395_v5  ;;  %v6163_v11 = vpop.f32.mrf.mxu2  ;;  %v14566_v62 = vld [vmem:[%s20873_s0 + $0x274] sm:$0xf0]  ;;  %8035 = vmatpush.bf16.msra.mxu0 %v14705_v22 }
 0x5b5   :  { %v12770_v49 = vor.u32 %v14566_v62, %v12769_v63 }
 0x5b6   :  { %v6399_v27 = vpop.f32.mrf.mxu0 }
 0x5b7   :  { %v6222_v26 = vpop.f32.mrf.mxu3  ;;  %v6458_v15 = vpop.f32.mrf.mxu1 }
 0x5b8   :  { %v6223_v16 = vadd.f32 %v6222_v26, %v6163_v11  ;;  %v14565_v26 = vld [vmem:[%s20873_s0 + $0x274] sm:$0xf]  ;;  %v14602_v11 = vld [vmem:[%s20873_s0 + $0x294] sm:$0xf0] }
 0x5ba   :  { %v6398_v35 = vadd.f32 %v6397_v37, %v6223_v16  ;;  %v12945_v16 = vld [vmem:[%s20873_s0 + $0x290] sm:$0xf] }
 0x5bb   :  { %v12946_v53 = vor.u32 %v14602_v11, %v12945_v16  ;;  %v14648_v16 = vld [vmem:[%s20872_s1 + $0x208] sm:$0xff] }
 0x5bc   :  { %v18401_v60 = vadd.f32 %v6456_v10, %v6398_v35  ;;  %v6165_v0 = vpop.f32.mrf.mxu2  ;;  %v12774_v35 = vor.u32 %v14565_v26, %v12771_v61  ;;  %v14713_v10 = vld [vmem:[%s20872_s1 + $0xd0] sm:$0xff]  ;;  %v14656_v11 = vld [vmem:[%s20872_s1 + $0x248] sm:$0xff]  ;;  %7502 = vmatpush.bf16.msra.mxu2 %v14648_v16 }
 0x5bd   :  { %8094 = vmatpush.bf16.msra.mxu1 %v14713_v10  ;;  %v14568_v61 = vld [vmem:[%s20873_s0 + $0x284] sm:$0xf0]  ;;  %7561 = vmatpush.bf16.msra.mxu3 %v14656_v11 }
 0x5be   :  { %v6402_v43 = vpop.f32.mrf.mxu0  ;;  %v14712_v11 = vld [vmem:[%s20872_s1 + $0xc8] sm:$0xff] }
 0x5bf   :  { %v6224_v13 = vpop.f32.mrf.mxu3  ;;  %v6461_v37 = vpop.f32.mrf.mxu1 }
 0x5c0   :  { %v6225_v41 = vadd.f32 %v6224_v13, %v6165_v0  ;;  %v14604_v0 = vld [vmem:[%s20873_s0 + $0x2a4] sm:$0xf0] }
 0x5c1   :  { %6757 = vmatmul.bf16.gmra.mxu2 %v12770_v49  ;;  %7143 = vmatmul.bf16.gmra.mxu0 %v12946_v53  ;;  %v12779_v49 = vld [vmem:[%s20873_s0 + $0x288] sm:$0xf0]  ;;  %v14603_v53 = vld [vmem:[%s20873_s0 + $0x2a4] sm:$0xf] }
 0x5c2   :  { %v6400_v40 = vadd.f32 %v6399_v27, %v6225_v41  ;;  %7202 = vmatmul.bf16.gmra.mxu1 %v12950_v32  ;;  %v12955_v41 = vld [vmem:[%s20873_s0 + $0x2a8] sm:$0xf0]  ;;  %7562 = vmatpush.bf16.msra.mxu3 %v14655_v58  ;;  %v14572_v58 = vld [vmem:[%s20873_s0 + $0x2a4] sm:$0xf0] }
 0x5c3   :  { %8095 = vmatpush.bf16.msra.mxu1 %v14712_v11 }
 0x5c4   :  { %6816 = vmatmul.bf16.gmra.mxu3 %v12774_v35  ;;  %v18418_v5 = vadd.f32 %v6458_v15, %v6400_v40  ;;  %v6168_v28 = vpop.f32.mrf.mxu2  ;;  %v12777_v15 = vld [vmem:[%s20873_s0 + $0x280] sm:$0xf]  ;;  %v12954_v40 = vor.u32 %v14604_v0, %v12953_v7 }
 0x5c5   :  { %v12778_v32 = vor.u32 %v14568_v61, %v12777_v15 }
 0x5c6   :  { %v6404_v27 = vpop.f32.mrf.mxu0 }
 0x5c7   :  { %v6227_v33 = vpop.f32.mrf.mxu3  ;;  %v6463_v62 = vpop.f32.mrf.mxu1 }
 0x5c8   :  { %v6228_v63 = vadd.f32 %v6227_v33, %v6168_v28  ;;  %v12958_v28 = vor.u32 %v14603_v53, %v12955_v41  ;;  %v14569_v53 = vld [vmem:[%s20873_s0 + $0x294] sm:$0xf]  ;;  %v12961_v41 = vld [vmem:[%s20873_s0 + $0x2b0] sm:$0xf] }
 0x5ca   :  { %v6403_v26 = vadd.f32 %v6402_v43, %v6228_v63 }
 0x5cc   :  { %v18441_v13 = vadd.f32 %v6461_v37, %v6403_v26  ;;  %v6170_v43 = vpop.f32.mrf.mxu2  ;;  %v12782_v37 = vor.u32 %v14567_v55, %v12779_v49  ;;  %v14704_v26 = vld [vmem:[%s20872_s1 + $0x88] sm:$0xff]  ;;  %v12785_v49 = vld [vmem:[%s20873_s0 + $0x290] sm:$0xf] }
 0x5cd   :  { %8036 = vmatpush.bf16.msra.mxu0 %v14704_v26 }
 0x5ce   :  { %v6407_v10 = vpop.f32.mrf.mxu0 }
 0x5cf   :  { %v6229_v35 = vpop.f32.mrf.mxu3  ;;  %v6466_v33 = vpop.f32.mrf.mxu1 }
 0x5d0   :  { %v6230_v22 = vadd.f32 %v6229_v35, %v6170_v43  ;;  %v14606_v43 = vld [vmem:[%s20873_s0 + $0x2b4] sm:$0xf0] }
 0x5d1   :  { %6762 = vmatmul.bf16.gmra.mxu2 %v12778_v32  ;;  %7148 = vmatmul.bf16.gmra.mxu0 %v12954_v40  ;;  %v12787_v32 = vld [vmem:[%s20873_s0 + $0x298] sm:$0xf0]  ;;  %v14605_v40 = vld [vmem:[%s20873_s0 + $0x2b4] sm:$0xf] }
 0x5d2   :  { %v6405_v63 = vadd.f32 %v6404_v27, %v6230_v22  ;;  %7207 = vmatmul.bf16.gmra.mxu1 %v12958_v28  ;;  %v12963_v22 = vld [vmem:[%s20873_s0 + $0x2b8] sm:$0xf0] }
 0x5d4   :  { %6821 = vmatmul.bf16.gmra.mxu3 %v12782_v37  ;;  %v18455_v16 = vadd.f32 %v6463_v62, %v6405_v63  ;;  %v6173_v15 = vpop.f32.mrf.mxu2  ;;  %v14570_v62 = vld [vmem:[%s20873_s0 + $0x294] sm:$0xf0]  ;;  %v12962_v63 = vor.u32 %v14606_v43, %v12961_v41 }
 0x5d5   :  { %v12786_v28 = vor.u32 %v14570_v62, %v12785_v49 }
 0x5d6   :  { %v6409_v27 = vpop.f32.mrf.mxu0 }
 0x5d7   :  { %v6232_v61 = vpop.f32.mrf.mxu3  ;;  %v6468_v7 = vpop.f32.mrf.mxu1 }
 0x5d8   :  { %v6233_v55 = vadd.f32 %v6232_v61, %v6173_v15  ;;  %v12966_v15 = vor.u32 %v14605_v40, %v12963_v22  ;;  %v14703_v40 = vld [vmem:[%s20872_s1 + $0x80] sm:$0xff] }
 0x5d9   :  { %v14711_v22 = vld [vmem:[%s20872_s1 + $0xc0] sm:$0xff]  ;;  %8037 = vmatpush.bf16.msra.mxu0 %v14703_v40 }
 0x5da   :  { %v6408_v0 = vadd.f32 %v6407_v10, %v6233_v55  ;;  %8096 = vmatpush.bf16.msra.mxu1 %v14711_v22 }
 0x5dc   :  { %v18475_v35 = vadd.f32 %v6466_v33, %v6408_v0  ;;  %v6175_v10 = vpop.f32.mrf.mxu2  ;;  %v12790_v33 = vor.u32 %v14569_v53, %v12787_v32  ;;  %v14647_v0 = vld [vmem:[%s20872_s1 + $0x200] sm:$0xff] }
 0x5dd   :  { %7503 = vmatpush.bf16.msra.mxu2 %v14647_v0 }
 0x5de   :  { %v6412_v11 = vpop.f32.mrf.mxu0 }
 0x5df   :  { %v6234_v37 = vpop.f32.mrf.mxu3  ;;  %v6471_v61 = vpop.f32.mrf.mxu1 }
 0x5e0   :  { %v6235_v26 = vadd.f32 %v6234_v37, %v6175_v10  ;;  %v14571_v10 = vld [vmem:[%s20873_s0 + $0x2a4] sm:$0xf]  ;;  %v12969_v37 = vld [vmem:[%s20873_s0 + $0x2c0] sm:$0xf] }
 0x5e1   :  { %6767 = vmatmul.bf16.gmra.mxu2 %v12786_v28  ;;  %7153 = vmatmul.bf16.gmra.mxu0 %v12962_v63  ;;  %v14608_v28 = vld [vmem:[%s20873_s0 + $0x2c4] sm:$0xf0] }
 0x5e2   :  { %v6410_v55 = vadd.f32 %v6409_v27, %v6235_v26  ;;  %7212 = vmatmul.bf16.gmra.mxu1 %v12966_v15  ;;  %v12795_v26 = vld [vmem:[%s20873_s0 + $0x2a8] sm:$0xf0]  ;;  %8264 = vmatpush.bf16.msrb.mxu2 %v14690_v54  ;;  %v12801_v54 = vld [vmem:[%s20873_s0 + $0x2b0] sm:$0xf] }
 0x5e4   :  { %6826 = vmatmul.bf16.gmra.mxu3 %v12790_v33  ;;  %v18492_v49 = vadd.f32 %v6468_v7, %v6410_v55  ;;  %v6178_v62 = vpop.f32.mrf.mxu2  ;;  %v12793_v7 = vld [vmem:[%s20873_s0 + $0x2a0] sm:$0xf]  ;;  %v12971_v33 = vld [vmem:[%s20873_s0 + $0x2c8] sm:$0xf0] }
 0x5e5   :  { %v12794_v0 = vor.u32 %v14572_v58, %v12793_v7  ;;  %v14698_v7 = vld [vmem:[%s20872_s1 + $0x78] sm:$0xff] }
 0x5e6   :  { %v6414_v27 = vpop.f32.mrf.mxu0  ;;  %8323 = vmatpush.bf16.msrb.mxu3 %v14698_v7 }
 0x5e7   :  { %v6237_v53 = vpop.f32.mrf.mxu3  ;;  %v6473_v43 = vpop.f32.mrf.mxu1 }
 0x5e8   :  { %v6238_v41 = vadd.f32 %v6237_v53, %v6178_v62  ;;  %v12970_v62 = vor.u32 %v14608_v28, %v12969_v37 }
 0x5ea   :  { %v6413_v32 = vadd.f32 %v6412_v11, %v6238_v41  ;;  %v14607_v11 = vld [vmem:[%s20873_s0 + $0x2c4] sm:$0xf] }
 0x5ec   :  { %v18515_v63 = vadd.f32 %v6471_v61, %v6413_v32  ;;  %v6180_v15 = vpop.f32.mrf.mxu2  ;;  %v12798_v61 = vor.u32 %v14571_v10, %v12795_v26  ;;  %v12974_v32 = vor.u32 %v14607_v11, %v12971_v33  ;;  %v14746_v33 = vld [vmem:[%s20872_s1 + $0x138] sm:$0xff] }
 0x5ed   :  { %8630 = vmatpush.bf16.msrb.mxu0 %v14746_v33 }
 0x5ee   :  { %v7119_v41 = vpop.f32.mrf.mxu0 }
 0x5ef   :  { %v6239_v55 = vpop.f32.mrf.mxu3  ;;  %v7178_v40 = vpop.f32.mrf.mxu1 }
 0x5f0   :  { %v6240_v53 = vadd.f32 %v6239_v55, %v6180_v15  ;;  %v7179_v59 = vadd.f32 %v7178_v40, %v7119_v41  ;;  %v14574_v15 = vld [vmem:[%s20873_s0 + $0x2b4] sm:$0xf0]  ;;  %v12977_v55 = vld [vmem:[%s20873_s0 + $0x2d0] sm:$0xf]  ;;  %v14609_v41 = vld [vmem:[%s20873_s0 + $0x2d4] sm:$0xf] }
 0x5f1   :  { %6772 = vmatmul.bf16.gmra.mxu2 %v12794_v0  ;;  %7158 = vmatmul.bf16.gmra.mxu0 %v12970_v62  ;;  %v14610_v0 = vld [vmem:[%s20873_s0 + $0x2d4] sm:$0xf0] }
 0x5f2   :  { %v6415_v22 = vadd.f32 %v6414_v27, %v6240_v53  ;;  %7217 = vmatmul.bf16.gmra.mxu1 %v12974_v32  ;;  %v12803_v53 = vld [vmem:[%s20873_s0 + $0x2b8] sm:$0xf0]  ;;  %v12978_v7 = vor.u32 %v14610_v0, %v12977_v55 }
 0x5f4   :  { %6831 = vmatmul.bf16.gmra.mxu3 %v12798_v61  ;;  %v18529_v4 = vadd.f32 %v6473_v43, %v6415_v22  ;;  %v6733_v58 = vpop.f32.mrf.mxu2  ;;  %v14754_v43 = vld [vmem:[%s20872_s1 + $0x178] sm:$0xff]  ;;  %v12802_v22 = vor.u32 %v14574_v15, %v12801_v54 }
 0x5f5   :  { %8689 = vmatpush.bf16.msrb.mxu1 %v14754_v43  ;;  %v12979_v61 = vld [vmem:[%s20873_s0 + $0x2d8] sm:$0xf0] }
 0x5f6   :  { %v7121_v37 = vpop.f32.mrf.mxu0 }
 0x5f7   :  { %v6792_v10 = vpop.f32.mrf.mxu3  ;;  %v7180_v28 = vpop.f32.mrf.mxu1 }
 0x5f8   :  { %v6793_v27 = vadd.f32 %v6792_v10, %v6733_v58  ;;  %v7181_v11 = vadd.f32 %v7180_v28, %v7121_v37 }
 0x5fa   :  { %v6842_v26 = vadd.f32 %v6793_v27, %v18180_v36  ;;  %v14573_v36 = vld [vmem:[%s20873_s0 + $0x2b4] sm:$0xf]  ;;  %v12982_v27 = vor.u32 %v14609_v41, %v12979_v61  ;;  %v14667_v41 = vld [vmem:[%s20873_s0 + $0x2a4] sm:$0xf]  ;;  %v13259_v61 = vld [vmem:[%s20873_s0 + $0x2a8] sm:$0xf0] }
 0x5fc   :  { %v18556_v62 = vadd.f32 %v7179_v59, %v6842_v26  ;;  %v6735_v32 = vpop.f32.mrf.mxu2  ;;  %v12806_v59 = vor.u32 %v14573_v36, %v12803_v53  ;;  %v14689_v36 = vld [vmem:[%s20872_s1 + $0x30] sm:$0xff]  ;;  %v13083_v53 = vld [vmem:[%s20873_s0 + $0x268] sm:$0xf0] }
 0x5fd   :  { %8265 = vmatpush.bf16.msrb.mxu2 %v14689_v36 }
 0x5fe   :  { %v7124_v10 = vpop.f32.mrf.mxu0 }
 0x5ff   :  { %v6794_v40 = vpop.f32.mrf.mxu3  ;;  %v7183_v37 = vpop.f32.mrf.mxu1 }
 0x600   :  { %v6795_v58 = vadd.f32 %v6794_v40, %v6735_v32  ;;  %v7184_v26 = vadd.f32 %v7183_v37, %v7124_v10 }
 0x601   :  { %6777 = vmatmul.bf16.gmra.mxu2 %v12802_v22  ;;  %7163 = vmatmul.bf16.gmra.mxu0 %v12978_v7 }
 0x602   :  { %v6843_v28 = vadd.f32 %v6795_v58, %v18190_v38  ;;  %7222 = vmatmul.bf16.gmra.mxu1 %v12982_v27  ;;  %v14697_v38 = vld [vmem:[%s20872_s1 + $0x70] sm:$0xff]  ;;  %v18605_v27 = vor.u32 %v14667_v41, %v13259_v61  ;;  %v14630_v41 = vld [vmem:[%s20873_s0 + $0x274] sm:$0xf0] }
 0x603   :  { %8324 = vmatpush.bf16.msrb.mxu3 %v14697_v38  ;;  %v13265_v61 = vld [vmem:[%s20873_s0 + $0x2b0] sm:$0xf] }
 0x604   :  { %6836 = vmatmul.bf16.gmra.mxu3 %v12806_v59  ;;  %v18568_v33 = vadd.f32 %v7181_v11, %v6843_v28  ;;  %v6738_v43 = vpop.f32.mrf.mxu2  ;;  %v13081_v11 = vld [vmem:[%s20873_s0 + $0x260] sm:$0xf] }
 0x606   :  { %v7126_v14 = vpop.f32.mrf.mxu0 }
 0x607   :  { %v6797_v2 = vpop.f32.mrf.mxu3  ;;  %v7185_v54 = vpop.f32.mrf.mxu1 }
 0x608   :  { %v6798_v12 = vadd.f32 %v6797_v2, %v6738_v43  ;;  %v7186_v55 = vadd.f32 %v7185_v54, %v7126_v14  ;;  %v14628_v2 = vld [vmem:[%s20873_s0 + $0x264] sm:$0xf0]  ;;  %v13257_v14 = vld [vmem:[%s20873_s0 + $0x2a0] sm:$0xf]  ;;  %v14745_v43 = vld [vmem:[%s20872_s1 + $0x130] sm:$0xff] }
 0x609   :  { %v13082_v22 = vor.u32 %v14628_v2, %v13081_v11  ;;  %v14753_v54 = vld [vmem:[%s20872_s1 + $0x170] sm:$0xff]  ;;  %8631 = vmatpush.bf16.msrb.mxu0 %v14745_v43 }
 0x60a   :  { %v6844_v15 = vadd.f32 %v6798_v12, %v18213_v20  ;;  %v14627_v12 = vld [vmem:[%s20873_s0 + $0x264] sm:$0xf]  ;;  %v14668_v20 = vld [vmem:[%s20873_s0 + $0x2a4] sm:$0xf0]  ;;  %8690 = vmatpush.bf16.msrb.mxu1 %v14753_v54 }
 0x60b   :  { %v18603_v7 = vor.u32 %v14668_v20, %v13257_v14  ;;  %v13086_v59 = vor.u32 %v14627_v12, %v13083_v53  ;;  %v14688_v20 = vld [vmem:[%s20872_s1 + $0x28] sm:$0xff] }
 0x60c   :  { %v18592_v0 = vadd.f32 %v7184_v26, %v6844_v15  ;;  %v6740_v32 = vpop.f32.mrf.mxu2  ;;  %v14696_v53 = vld [vmem:[%s20872_s1 + $0x68] sm:$0xff]  ;;  %8266 = vmatpush.bf16.msrb.mxu2 %v14688_v20 }
 0x60d   :  { %8325 = vmatpush.bf16.msrb.mxu3 %v14696_v53  ;;  %v14752_v53 = vld [vmem:[%s20872_s1 + $0x168] sm:$0xff] }
 0x60e   :  { %v7129_v10 = vpop.f32.mrf.mxu0  ;;  %8691 = vmatpush.bf16.msrb.mxu1 %v14752_v53 }
 0x60f   :  { %v6799_v40 = vpop.f32.mrf.mxu3  ;;  %v7188_v37 = vpop.f32.mrf.mxu1 }
 0x610   :  { %v6800_v58 = vadd.f32 %v6799_v40, %v6740_v32  ;;  %v7189_v26 = vadd.f32 %v7188_v37, %v7129_v10  ;;  %v14670_v32 = vld [vmem:[%s20873_s0 + $0x2b4] sm:$0xf0]  ;;  %v13267_v10 = vld [vmem:[%s20873_s0 + $0x2b8] sm:$0xf0] }
 0x611   :  { %7504 = vmatmul.bf16.vlgmr.msra.gmra.mxu2 %v13082_v22  ;;  %8038 = vmatmul.bf16.vlgmr.msra.gmra.mxu0 %v18603_v7  ;;  %v13091_v22 = vld [vmem:[%s20873_s0 + $0x278] sm:$0xf0]  ;;  %v18651_v43 = vor.u32 %v14670_v32, %v13265_v61 }
 0x612   :  { %v6845_v28 = vadd.f32 %v6800_v58, %v18230_v52  ;;  %8097 = vmatmul.bf16.vlgmr.msra.gmra.mxu1 %v18605_v27  ;;  %v14669_v58 = vld [vmem:[%s20873_s0 + $0x2b4] sm:$0xf]  ;;  %8326 = vmatpush.bf16.msrb.mxu3 %v14695_v18  ;;  %v13105_v18 = vld [vmem:[%s20873_s0 + $0x290] sm:$0xf] }
 0x614   :  { %7563 = vmatmul.bf16.vlgmr.msra.gmra.mxu3 %v13086_v59  ;;  %v18616_v15 = vadd.f32 %v7186_v55, %v6845_v28  ;;  %v6743_v52 = vpop.f32.mrf.mxu2  ;;  %v13089_v55 = vld [vmem:[%s20873_s0 + $0x270] sm:$0xf] }
 0x615   :  { %v13090_v28 = vor.u32 %v14630_v41, %v13089_v55 }
 0x616   :  { %v7131_v11 = vpop.f32.mrf.mxu0 }
 0x617   :  { %v6802_v36 = vpop.f32.mrf.mxu3  ;;  %v7190_v2 = vpop.f32.mrf.mxu1 }
 0x618   :  { %v6803_v38 = vadd.f32 %v6802_v36, %v6743_v52  ;;  %v7191_v14 = vadd.f32 %v7190_v2, %v7131_v11  ;;  %v18653_v36 = vor.u32 %v14669_v58, %v13267_v10  ;;  %v13097_v58 = vld [vmem:[%s20873_s0 + $0x280] sm:$0xf]  ;;  %v14631_v10 = vld [vmem:[%s20873_s0 + $0x284] sm:$0xf] }
 0x61a   :  { %v6846_v12 = vadd.f32 %v6803_v38, %v18253_v44  ;;  %v14629_v44 = vld [vmem:[%s20873_s0 + $0x274] sm:$0xf] }
 0x61b   :  { %v13094_v52 = vor.u32 %v14629_v44, %v13091_v22 }
 0x61c   :  { %v18640_v40 = vadd.f32 %v7189_v26, %v6846_v12  ;;  %v6745_v59 = vpop.f32.mrf.mxu2  ;;  %v14744_v12 = vld [vmem:[%s20872_s1 + $0x128] sm:$0xff] }
 0x61d   :  { %8632 = vmatpush.bf16.msrb.mxu0 %v14744_v12 }
 0x61e   :  { %v7134_v26 = vpop.f32.mrf.mxu0 }
 0x61f   :  { %v6804_v37 = vpop.f32.mrf.mxu3  ;;  %v7193_v38 = vpop.f32.mrf.mxu1 }
 0x620   :  { %v6805_v54 = vadd.f32 %v6804_v37, %v6745_v59  ;;  %v7194_v2 = vadd.f32 %v7193_v38, %v7134_v26  ;;  %v13273_v59 = vld [vmem:[%s20873_s0 + $0x2c0] sm:$0xf]  ;;  %v13275_v26 = vld [vmem:[%s20873_s0 + $0x2c8] sm:$0xf0] }
 0x621   :  { %7509 = vmatmul.bf16.gmra.mxu2 %v13090_v28  ;;  %8043 = vmatmul.bf16.gmra.mxu0 %v18651_v43  ;;  %v13099_v28 = vld [vmem:[%s20873_s0 + $0x288] sm:$0xf0] }
 0x622   :  { %v6847_v11 = vadd.f32 %v6805_v54, %v18267_v34  ;;  %8102 = vmatmul.bf16.gmra.mxu1 %v18653_v36  ;;  %v14671_v54 = vld [vmem:[%s20873_s0 + $0x2c4] sm:$0xf] }
 0x624   :  { %7568 = vmatmul.bf16.gmra.mxu3 %v13094_v52  ;;  %v18661_v20 = vadd.f32 %v7191_v14, %v6847_v11  ;;  %v6748_v55 = vpop.f32.mrf.mxu2  ;;  %v14632_v14 = vld [vmem:[%s20873_s0 + $0x284] sm:$0xf0] }
 0x625   :  { %v13098_v11 = vor.u32 %v14632_v14, %v13097_v58 }
 0x626   :  { %v7136_v44 = vpop.f32.mrf.mxu0 }
 0x627   :  { %v6807_v34 = vpop.f32.mrf.mxu3  ;;  %v7195_v61 = vpop.f32.mrf.mxu1 }
 0x628   :  { %v6808_v41 = vadd.f32 %v6807_v34, %v6748_v55  ;;  %v7196_v22 = vadd.f32 %v7195_v61, %v7136_v44  ;;  %v13102_v55 = vor.u32 %v14631_v10, %v13099_v28  ;;  %v18695_v34 = vor.u32 %v14671_v54, %v13275_v26  ;;  %v14743_v26 = vld [vmem:[%s20872_s1 + $0x120] sm:$0xff] }
 0x629   :  { %8633 = vmatpush.bf16.msrb.mxu0 %v14743_v26 }
 0x62a   :  { %v6848_v32 = vadd.f32 %v6808_v41, %v18287_v56  ;;  %v14672_v56 = vld [vmem:[%s20873_s0 + $0x2c4] sm:$0xf0] }
 0x62b   :  { %v18693_v12 = vor.u32 %v14672_v56, %v13273_v59 }
 0x62c   :  { %v18682_v37 = vadd.f32 %v7194_v2, %v6848_v32  ;;  %v6750_v52 = vpop.f32.mrf.mxu2  ;;  %v14687_v32 = vld [vmem:[%s20872_s1 + $0x20] sm:$0xff] }
 0x62d   :  { %8267 = vmatpush.bf16.msrb.mxu2 %v14687_v32 }
 0x62e   :  { %v7139_v2 = vpop.f32.mrf.mxu0 }
 0x62f   :  { %v6809_v38 = vpop.f32.mrf.mxu3  ;;  %v7198_v41 = vpop.f32.mrf.mxu1 }
 0x630   :  { %v6810_v53 = vadd.f32 %v6809_v38, %v6750_v52  ;;  %v7199_v61 = vadd.f32 %v7198_v41, %v7139_v2  ;;  %v14751_v52 = vld [vmem:[%s20872_s1 + $0x160] sm:$0xff]  ;;  %v13281_v38 = vld [vmem:[%s20873_s0 + $0x2d0] sm:$0xf]  ;;  %v13107_v2 = vld [vmem:[%s20873_s0 + $0x298] sm:$0xf0] }
 0x631   :  { %7514 = vmatmul.bf16.gmra.mxu2 %v13098_v11  ;;  %8048 = vmatmul.bf16.gmra.mxu0 %v18693_v12  ;;  %v14674_v11 = vld [vmem:[%s20873_s0 + $0x2d4] sm:$0xf0]  ;;  %v13283_v41 = vld [vmem:[%s20873_s0 + $0x2d8] sm:$0xf0] }
 0x632   :  { %v6849_v44 = vadd.f32 %v6810_v53, %v18304_v46  ;;  %8107 = vmatmul.bf16.gmra.mxu1 %v18695_v34 }
 0x633   :  { %8692 = vmatpush.bf16.msrb.mxu1 %v14751_v52 }
 0x634   :  { %7573 = vmatmul.bf16.gmra.mxu3 %v13102_v55  ;;  %v18706_v58 = vadd.f32 %v7196_v22, %v6849_v44  ;;  %v6753_v46 = vpop.f32.mrf.mxu2  ;;  %v14634_v22 = vld [vmem:[%s20873_s0 + $0x294] sm:$0xf0]  ;;  %v14673_v55 = vld [vmem:[%s20873_s0 + $0x2d4] sm:$0xf] }
 0x636   :  { %v7141_v59 = vpop.f32.mrf.mxu0 }
 0x637   :  { %v6812_v14 = vpop.f32.mrf.mxu3  ;;  %v7200_v56 = vpop.f32.mrf.mxu1 }
 0x638   :  { %v6813_v10 = vadd.f32 %v6812_v14, %v6753_v46  ;;  %v7201_v54 = vadd.f32 %v7200_v56, %v7141_v59  ;;  %v13106_v46 = vor.u32 %v14634_v22, %v13105_v18  ;;  %v18741_v14 = vor.u32 %v14674_v11, %v13281_v38  ;;  %v14686_v18 = vld [vmem:[%s20872_s1 + $0x18] sm:$0xff] }
 0x639   :  { %v18743_v56 = vor.u32 %v14673_v55, %v13283_v41  ;;  %8268 = vmatpush.bf16.msrb.mxu2 %v14686_v18  ;;  %v14675_v18 = vld [vmem:[%s20873_s0 + $0x2e4] sm:$0xf] }
 0x63a   :  { %v6850_v28 = vadd.f32 %v6813_v10, %v18327_v30  ;;  %v14633_v30 = vld [vmem:[%s20873_s0 + $0x294] sm:$0xf] }
 0x63b   :  { %v13110_v59 = vor.u32 %v14633_v30, %v13107_v2  ;;  %v14694_v30 = vld [vmem:[%s20872_s1 + $0x58] sm:$0xff] }
 0x63c   :  { %v18730_v53 = vadd.f32 %v7199_v61, %v6850_v28  ;;  %v6755_v44 = vpop.f32.mrf.mxu2  ;;  %8327 = vmatpush.bf16.msrb.mxu3 %v14694_v30  ;;  %v13291_v30 = vld [vmem:[%s20873_s0 + $0x2e8] sm:$0xf0] }
 0x63e   :  { %v7144_v61 = vpop.f32.mrf.mxu0 }
 0x63f   :  { %v6814_v32 = vpop.f32.mrf.mxu3  ;;  %v7203_v28 = vpop.f32.mrf.mxu1 }
 0x640   :  { %v6815_v10 = vadd.f32 %v6814_v32, %v6755_v44  ;;  %v7204_v52 = vadd.f32 %v7203_v28, %v7144_v61  ;;  %v14742_v32 = vld [vmem:[%s20872_s1 + $0x118] sm:$0xff]  ;;  %v13289_v61 = vld [vmem:[%s20873_s0 + $0x2e0] sm:$0xf] }
 0x641   :  { %7519 = vmatmul.bf16.gmra.mxu2 %v13106_v46  ;;  %8053 = vmatmul.bf16.gmra.mxu0 %v18741_v14  ;;  %v13113_v46 = vld [vmem:[%s20873_s0 + $0x2a0] sm:$0xf] }
 0x642   :  { %v6851_v26 = vadd.f32 %v6815_v10, %v18341_v8  ;;  %8112 = vmatmul.bf16.gmra.mxu1 %v18743_v56  ;;  %v14636_v10 = vld [vmem:[%s20873_s0 + $0x2a4] sm:$0xf0]  ;;  %8634 = vmatpush.bf16.msrb.mxu0 %v14742_v32  ;;  %v18791_v32 = vor.u32 %v14675_v18, %v13291_v30  ;;  %v14693_v18 = vld [vmem:[%s20872_s1 + $0x50] sm:$0xff] }
 0x643   :  { %v13297_v30 = vld [vmem:[%s20873_s0 + $0x2f0] sm:$0xf]  ;;  %8328 = vmatpush.bf16.msrb.mxu3 %v14693_v18 }
 0x644   :  { %7578 = vmatmul.bf16.gmra.mxu3 %v13110_v59  ;;  %v18751_v22 = vadd.f32 %v7201_v54, %v6851_v26  ;;  %v6758_v38 = vpop.f32.mrf.mxu2  ;;  %v14750_v54 = vld [vmem:[%s20872_s1 + $0x158] sm:$0xff]  ;;  %v14676_v59 = vld [vmem:[%s20873_s0 + $0x2e4] sm:$0xf0]  ;;  %v13115_v26 = vld [vmem:[%s20873_s0 + $0x2a8] sm:$0xf0] }
 0x645   :  { %8693 = vmatpush.bf16.msrb.mxu1 %v14750_v54 }
 0x646   :  { %v7146_v2 = vpop.f32.mrf.mxu0  ;;  %8635 = vmatpush.bf16.msrb.mxu0 %v14741_v17  ;;  %v14640_v17 = vld [vmem:[%s20873_s0 + $0x2c4] sm:$0xf0] }
 0x647   :  { %v6817_v8 = vpop.f32.mrf.mxu3  ;;  %v7205_v55 = vpop.f32.mrf.mxu1 }
 0x648   :  { %v6818_v11 = vadd.f32 %v6817_v8, %v6758_v38  ;;  %v7206_v44 = vadd.f32 %v7205_v55, %v7146_v2  ;;  %v18789_v2 = vor.u32 %v14676_v59, %v13289_v61 }
 0x649   :  { %8694 = vmatpush.bf16.msrb.mxu1 %v14749_v1  ;;  %v13129_v1 = vld [vmem:[%s20873_s0 + $0x2c0] sm:$0xf] }
 0x64a   :  { %v6852_v41 = vadd.f32 %v6818_v11, %v18367_v9  ;;  %v14635_v9 = vld [vmem:[%s20873_s0 + $0x2a4] sm:$0xf]  ;;  %v13114_v11 = vor.u32 %v14636_v10, %v13113_v46 }
 0x64c   :  { %v18778_v28 = vadd.f32 %v7204_v52, %v6852_v41  ;;  %v6760_v38 = vpop.f32.mrf.mxu2  ;;  %v13118_v41 = vor.u32 %v14635_v9, %v13115_v26 }
 0x64e   :  { %v7149_v52 = vpop.f32.mrf.mxu0 }
 0x64f   :  { %v6819_v8 = vpop.f32.mrf.mxu3  ;;  %v7208_v54 = vpop.f32.mrf.mxu1 }
 0x650   :  { %v6820_v55 = vadd.f32 %v6819_v8, %v6760_v38  ;;  %v7209_v19 = vadd.f32 %v7208_v54, %v7149_v52  ;;  %v14678_v8 = vld [vmem:[%s20873_s0 + $0x2f4] sm:$0xf0]  ;;  %v14677_v52 = vld [vmem:[%s20873_s0 + $0x2f4] sm:$0xf] }
 0x651   :  { %7524 = vmatmul.bf16.gmra.mxu2 %v13114_v11  ;;  %8058 = vmatmul.bf16.gmra.mxu0 %v18789_v2 }
 0x652   :  { %v6853_v48 = vadd.f32 %v6820_v55, %v18378_v21  ;;  %8117 = vmatmul.bf16.gmra.mxu1 %v18791_v32  ;;  %v14685_v21 = vld [vmem:[%s20872_s1 + $0x10] sm:$0xff]  ;;  %v13123_v55 = vld [vmem:[%s20873_s0 + $0x2b8] sm:$0xf0] }
 0x653   :  { %8269 = vmatpush.bf16.msrb.mxu2 %v14685_v21 }
 0x654   :  { %7583 = vmatmul.bf16.gmra.mxu3 %v13118_v41  ;;  %v18796_v47 = vadd.f32 %v7206_v44, %v6853_v48  ;;  %v6763_v46 = vpop.f32.mrf.mxu2  ;;  %v13121_v48 = vld [vmem:[%s20873_s0 + $0x2b0] sm:$0xf]  ;;  %v14638_v44 = vld [vmem:[%s20873_s0 + $0x2b4] sm:$0xf0]  ;;  %v13299_v41 = vld [vmem:[%s20873_s0 + $0x2f8] sm:$0xf0] }
 0x656   :  { %v7151_v59 = vpop.f32.mrf.mxu0 }
 0x657   :  { %v6822_v10 = vpop.f32.mrf.mxu3  ;;  %v7210_v38 = vpop.f32.mrf.mxu1 }
 0x658   :  { %v6823_v61 = vadd.f32 %v6822_v10, %v6763_v46  ;;  %v7211_v26 = vadd.f32 %v7210_v38, %v7151_v59  ;;  %v13122_v10 = vor.u32 %v14638_v44, %v13121_v48 }
 0x65a   :  { %v6854_v9 = vadd.f32 %v6823_v61, %v18401_v60  ;;  %v14637_v60 = vld [vmem:[%s20873_s0 + $0x2b4] sm:$0xf]  ;;  %v18831_v61 = vor.u32 %v14678_v8, %v13297_v30 }
 0x65b   :  { %v13126_v38 = vor.u32 %v14637_v60, %v13123_v55 }
 0x65c   :  { %v18820_v11 = vadd.f32 %v7209_v19, %v6854_v9  ;;  %v6765_v54 = vpop.f32.mrf.mxu2  ;;  %v18833_v9 = vor.u32 %v14677_v52, %v13299_v41  ;;  %v14684_v41 = vld [vmem:[%s20872_s1 + $0x8] sm:$0xff] }
 0x65d   :  { %8270 = vmatpush.bf16.msrb.mxu2 %v14684_v41 }
 0x65e   :  { %v7154_v19 = vpop.f32.mrf.mxu0 }
 0x65f   :  { %v6824_v46 = vpop.f32.mrf.mxu3  ;;  %v7213_v21 = vpop.f32.mrf.mxu1 }
 0x660   :  { %v6825_v59 = vadd.f32 %v6824_v46, %v6765_v54  ;;  %v7214_v50 = vadd.f32 %v7213_v21, %v7154_v19  ;;  %v14692_v54 = vld [vmem:[%s20872_s1 + $0x48] sm:$0xff]  ;;  %v14679_v19 = vld [vmem:[%s20873_s0 + $0x304] sm:$0xf] }
 0x661   :  { %7529 = vmatmul.bf16.gmra.mxu2 %v13122_v10  ;;  %8063 = vmatmul.bf16.gmra.mxu0 %v18831_v61  ;;  %v14680_v46 = vld [vmem:[%s20873_s0 + $0x304] sm:$0xf0] }
 0x662   :  { %v6855_v18 = vadd.f32 %v6825_v59, %v18418_v5  ;;  %8122 = vmatmul.bf16.gmra.mxu1 %v18833_v9  ;;  %8329 = vmatpush.bf16.msrb.mxu3 %v14692_v54  ;;  %v13131_v59 = vld [vmem:[%s20873_s0 + $0x2c8] sm:$0xf0] }
 0x664   :  { %7588 = vmatmul.bf16.gmra.mxu3 %v13126_v38  ;;  %v18844_v48 = vadd.f32 %v7211_v26, %v6855_v18  ;;  %v6768_v5 = vpop.f32.mrf.mxu2  ;;  %v13305_v26 = vld [vmem:[%s20873_s0 + $0x300] sm:$0xf]  ;;  %v13307_v38 = vld [vmem:[%s20873_s0 + $0x308] sm:$0xf0] }
 0x666   :  { %v7156_v30 = vpop.f32.mrf.mxu0 }
 0x667   :  { %v6827_v44 = vpop.f32.mrf.mxu3  ;;  %v7215_v8 = vpop.f32.mrf.mxu1 }
 0x668   :  { %v6828_v60 = vadd.f32 %v6827_v44, %v6768_v5  ;;  %v7216_v52 = vadd.f32 %v7215_v8, %v7156_v30  ;;  %v13130_v5 = vor.u32 %v14640_v17, %v13129_v1  ;;  %v18879_v44 = vor.u32 %v14680_v46, %v13305_v26  ;;  %v14740_v1 = vld [vmem:[%s20872_s1 + $0x108] sm:$0xff] }
 0x669   :  { %v18881_v8 = vor.u32 %v14679_v19, %v13307_v38  ;;  %8636 = vmatpush.bf16.msrb.mxu0 %v14740_v1 }
 0x66a   :  { %v6856_v55 = vadd.f32 %v6828_v60, %v18441_v13  ;;  %v14639_v13 = vld [vmem:[%s20873_s0 + $0x2c4] sm:$0xf] }
 0x66b   :  { %v13134_v30 = vor.u32 %v14639_v13, %v13131_v59  ;;  %v14748_v13 = vld [vmem:[%s20872_s1 + $0x148] sm:$0xff] }
 0x66c   :  { %v18868_v10 = vadd.f32 %v7214_v50, %v6856_v55  ;;  %v6770_v21 = vpop.f32.mrf.mxu2  ;;  %8695 = vmatpush.bf16.msrb.mxu1 %v14748_v13 }
 0x66e   :  { %v7159_v50 = vpop.f32.mrf.mxu0 }
 0x66f   :  { %v6829_v18 = vpop.f32.mrf.mxu3  ;;  %v7218_v55 = vpop.f32.mrf.mxu1 }
 0x670   :  { %v6830_v60 = vadd.f32 %v6829_v18, %v6770_v21  ;;  %v7219_v54 = vadd.f32 %v7218_v55, %v7159_v50  ;;  %v13137_v18 = vld [vmem:[%s20873_s0 + $0x2d0] sm:$0xf]  ;;  %v14681_v55 = vld [vmem:[%s20873_s0 + $0x314] sm:$0xf] }
 0x671   :  { %7534 = vmatmul.bf16.gmra.mxu2 %v13130_v5  ;;  %8068 = vmatmul.bf16.gmra.mxu0 %v18879_v44  ;;  %v14641_v5 = vld [vmem:[%s20873_s0 + $0x2d4] sm:$0xf] }
 0x672   :  { %v6857_v41 = vadd.f32 %v6830_v60, %v18455_v16  ;;  %8127 = vmatmul.bf16.gmra.mxu1 %v18881_v8  ;;  %v13313_v60 = vld [vmem:[%s20873_s0 + $0x310] sm:$0xf] }
 0x674   :  { %7593 = vmatmul.bf16.gmra.mxu3 %v13134_v30  ;;  %v18889_v17 = vadd.f32 %v7216_v52, %v6857_v41  ;;  %v6773_v26 = vpop.f32.mrf.mxu2  ;;  %v14642_v52 = vld [vmem:[%s20873_s0 + $0x2d4] sm:$0xf0]  ;;  %v13139_v30 = vld [vmem:[%s20873_s0 + $0x2d8] sm:$0xf0] }
 0x675   :  { %v13315_v41 = vld [vmem:[%s20873_s0 + $0x318] sm:$0xf0] }
 0x676   :  { %v7161_v59 = vpop.f32.mrf.mxu0 }
 0x677   :  { %v6832_v16 = vpop.f32.mrf.mxu3  ;;  %v7220_v19 = vpop.f32.mrf.mxu1 }
 0x678   :  { %v6833_v46 = vadd.f32 %v6832_v16, %v6773_v26  ;;  %v7221_v21 = vadd.f32 %v7220_v19, %v7161_v59  ;;  %v13138_v26 = vor.u32 %v14642_v52, %v13137_v18  ;;  %v13142_v59 = vor.u32 %v14641_v5, %v13139_v30  ;;  %v14683_v52 = vld [vmem:[%s20872_s1] sm:$0xff] }
 0x679   :  { %v18923_v19 = vor.u32 %v14681_v55, %v13315_v41  ;;  %v14691_v5 = vld [vmem:[%s20872_s1 + $0x40] sm:$0xff]  ;;  %8271 = vmatpush.bf16.msrb.mxu2 %v14683_v52 }
 0x67a   :  { %v6858_v38 = vadd.f32 %v6833_v46, %v18475_v35  ;;  %v14682_v35 = vld [vmem:[%s20873_s0 + $0x314] sm:$0xf0]  ;;  %8330 = vmatpush.bf16.msrb.mxu3 %v14691_v5 }
 0x67b   :  { %v18921_v16 = vor.u32 %v14682_v35, %v13313_v60 }
 0x67c   :  { %v18910_v50 = vadd.f32 %v7219_v54, %v6858_v38  ;;  %v6775_v1 = vpop.f32.mrf.mxu2 }
 0x67e   :  { %v7164_v54 = vpop.f32.mrf.mxu0 }
 0x67f   :  { %v6834_v13 = vpop.f32.mrf.mxu3  ;;  %v7223_v38 = vpop.f32.mrf.mxu1 }
 0x680   :  { %v6835_v46 = vadd.f32 %v6834_v13, %v6775_v1  ;;  %v7224_v24 = vadd.f32 %v7223_v38, %v7164_v54  ;;  %v14643_v1 = vld [vmem:[%s20873_s0 + $0x2e4] sm:$0xf]  ;;  %v13321_v13 = vld [vmem:[%s20873_s0 + $0x320] sm:$0xf] }
 0x681   :  { %7539 = vmatmul.bf16.gmra.mxu2 %v13138_v26  ;;  %8073 = vmatmul.bf16.gmra.mxu0 %v18921_v16  ;;  %v14699_v54 = vld [vmem:[%s20873_s0 + $0x324] sm:$0xf] }
 0x682   :  { %v6859_v31 = vadd.f32 %v6835_v46, %v18492_v49  ;;  %8132 = vmatmul.bf16.gmra.mxu1 %v18923_v19  ;;  %v13147_v46 = vld [vmem:[%s20873_s0 + $0x2e8] sm:$0xf0] }
 0x684   :  { %7598 = vmatmul.bf16.gmra.mxu3 %v13142_v59  ;;  %v18928_v42 = vadd.f32 %v7221_v21, %v6859_v31  ;;  %v6778_v18 = vpop.f32.mrf.mxu2  ;;  %v13145_v31 = vld [vmem:[%s20873_s0 + $0x2e0] sm:$0xf]  ;;  %v14644_v21 = vld [vmem:[%s20873_s0 + $0x2e4] sm:$0xf0]  ;;  %v13323_v59 = vld [vmem:[%s20873_s0 + $0x328] sm:$0xf0] }
 0x685   :  { %v13146_v5 = vor.u32 %v14644_v21, %v13145_v31 }
 0x686   :  { %v7166_v35 = vpop.f32.mrf.mxu0 }
 0x687   :  { %v6837_v60 = vpop.f32.mrf.mxu3  ;;  %v7225_v30 = vpop.f32.mrf.mxu1 }
 0x688   :  { %v6838_v49 = vadd.f32 %v6837_v60, %v6778_v18  ;;  %v7226_v41 = vadd.f32 %v7225_v30, %v7166_v35  ;;  %v14739_v18 = vld [vmem:[%s20872_s1 + $0x100] sm:$0xff]  ;;  %v13150_v30 = vor.u32 %v14643_v1, %v13147_v46  ;;  %v14782_v1 = vld [vmem:[%s20872_s1 + $0x1b8] sm:$0xff] }
 0x689   :  { %8637 = vmatpush.bf16.msrb.mxu0 %v14739_v18  ;;  %9016 = vmatpush.bf16.msra.mxu2 %v14782_v1  ;;  %v13331_v18 = vld [vmem:[%s20873_s0 + $0x338] sm:$0xf0] }
 0x68a   :  { %v6860_v55 = vadd.f32 %v6838_v49, %v18515_v63  ;;  %v14700_v63 = vld [vmem:[%s20873_s0 + $0x324] sm:$0xf0] }
 0x68b   :  { %v13322_v60 = vor.u32 %v14700_v63, %v13321_v13 }
 0x68c   :  { %v18952_v26 = vadd.f32 %v7224_v24, %v6860_v55  ;;  %v6780_v38 = vpop.f32.mrf.mxu2  ;;  %v14747_v24 = vld [vmem:[%s20872_s1 + $0x140] sm:$0xff]  ;;  %v13326_v55 = vor.u32 %v14699_v54, %v13323_v59  ;;  %v14702_v54 = vld [vmem:[%s20873_s0 + $0x334] sm:$0xf0]  ;;  %v13155_v59 = vld [vmem:[%s20873_s0 + $0x2f8] sm:$0xf0] }
 0x68d   :  { %8696 = vmatpush.bf16.msrb.mxu1 %v14747_v24 }
 0x68e   :  { %v8039_v35 = vpop.f32.mrf.mxu0 }
 0x68f   :  { %v6839_v52 = vpop.f32.mrf.mxu3  ;;  %v8098_v51 = vpop.f32.mrf.mxu1 }
 0x690   :  { %v6840_v49 = vadd.f32 %v6839_v52, %v6780_v38  ;;  %v18970_v6 = vadd.f32 %v8098_v51, %v8039_v35  ;;  %v14701_v38 = vld [vmem:[%s20873_s0 + $0x334] sm:$0xf]  ;;  %v14818_v52 = vld [vmem:[%s20872_s1 + $0x238] sm:$0xff] }
 0x691   :  { %7544 = vmatmul.bf16.gmra.mxu2 %v13146_v5  ;;  %8078 = vmatmul.bf16.gmra.mxu0 %v13322_v60  ;;  %v14826_v5 = vld [vmem:[%s20872_s1 + $0x278] sm:$0xff] }
 0x692   :  { %v6861_v3 = vadd.f32 %v6840_v49, %v18529_v4  ;;  %8137 = vmatmul.bf16.gmra.mxu1 %v13326_v55  ;;  %v14790_v4 = vld [vmem:[%s20872_s1 + $0x1f8] sm:$0xff]  ;;  %9402 = vmatpush.bf16.msra.mxu0 %v14818_v52  ;;  %v13515_v52 = vld [vmem:[%s20873_s0 + $0x2c8] sm:$0xf0] }
 0x693   :  { %9075 = vmatpush.bf16.msra.mxu3 %v14790_v4  ;;  %9461 = vmatpush.bf16.msra.mxu1 %v14826_v5 }
 0x694   :  { %7603 = vmatmul.bf16.gmra.mxu3 %v13150_v30  ;;  %v18972_v29 = vadd.f32 %v7226_v41, %v6861_v3  ;;  %v7505_v57 = vpop.f32.mrf.mxu2  ;;  %v14646_v3 = vld [vmem:[%s20873_s0 + $0x2f4] sm:$0xf0]  ;;  %v14645_v41 = vld [vmem:[%s20873_s0 + $0x2f4] sm:$0xf] }
 0x696   :  { %v8041_v13 = vpop.f32.mrf.mxu0 }
 0x697   :  { %v7564_v31 = vpop.f32.mrf.mxu3  ;;  %v8100_v51 = vpop.f32.mrf.mxu1 }
 0x698   :  { %v7565_v21 = vadd.f32 %v7564_v31, %v7505_v57  ;;  %v18983_v46 = vadd.f32 %v8100_v51, %v8041_v13  ;;  %v13153_v57 = vld [vmem:[%s20873_s0 + $0x2f0] sm:$0xf]  ;;  %v13158_v31 = vor.u32 %v14645_v41, %v13155_v59  ;;  %v14664_v59 = vld [vmem:[%s20873_s0 + $0x284] sm:$0xf0] }
 0x699   :  { %v13154_v49 = vor.u32 %v14646_v3, %v13153_v57 }
 0x69a   :  { %v18981_v63 = vadd.f32 %v7565_v21, %v18556_v62  ;;  %v13329_v62 = vld [vmem:[%s20873_s0 + $0x330] sm:$0xf]  ;;  %v13334_v21 = vor.u32 %v14701_v38, %v13331_v18  ;;  %v14663_v38 = vld [vmem:[%s20873_s0 + $0x284] sm:$0xf]  ;;  %v13403_v18 = vld [vmem:[%s20873_s0 + $0x288] sm:$0xf0] }
 0x69b   :  { %v13330_v35 = vor.u32 %v14702_v54, %v13329_v62 }
 0x69c   :  { %21068 = vst [vmem:[#allocation62_spill] sm:$0xff] %v18981_v63  ;;  %v7507_v24 = vpop.f32.mrf.mxu2 }
 0x69e   :  { %v8044_v55 = vpop.f32.mrf.mxu0 }
 0x69f   :  { %v7566_v60 = vpop.f32.mrf.mxu3  ;;  %v8103_v13 = vpop.f32.mrf.mxu1 }
 0x6a0   :  { %v7567_v30 = vadd.f32 %v7566_v60, %v7507_v24  ;;  %v19018_v4 = vadd.f32 %v8103_v13, %v8044_v55  ;;  %v14719_v24 = vld [vmem:[%s20873_s0 + $0x2c4] sm:$0xf]  ;;  %v14781_v60 = vld [vmem:[%s20872_s1 + $0x1b0] sm:$0xff]  ;;  %v13406_v13 = vor.u32 %v14663_v38, %v13403_v18 }
 0x6a1   :  { %7549 = vmatmul.bf16.gmra.mxu2 %v13154_v49  ;;  %8083 = vmatmul.bf16.gmra.mxu0 %v13330_v35  ;;  %v14789_v49 = vld [vmem:[%s20872_s1 + $0x1f0] sm:$0xff] }
 0x6a2   :  { %v19016_v1 = vadd.f32 %v7567_v30, %v18568_v33  ;;  %8142 = vmatmul.bf16.gmra.mxu1 %v13334_v21  ;;  %v13401_v33 = vld [vmem:[%s20873_s0 + $0x280] sm:$0xf]  ;;  %9017 = vmatpush.bf16.msra.mxu2 %v14781_v60  ;;  %v14817_v38 = vld [vmem:[%s20872_s1 + $0x230] sm:$0xff] }
 0x6a3   :  { %v13402_v30 = vor.u32 %v14664_v59, %v13401_v33  ;;  %9076 = vmatpush.bf16.msra.mxu3 %v14789_v49  ;;  %9403 = vmatpush.bf16.msra.mxu0 %v14817_v38  ;;  %v14721_v60 = vld [vmem:[%s20873_s0 + $0x2d4] sm:$0xf]  ;;  %v13523_v49 = vld [vmem:[%s20873_s0 + $0x2d8] sm:$0xf0] }
 0x6a4   :  { %21069 = vst [vmem:[#allocation63_spill] sm:$0xff] %v19016_v1  ;;  %7608 = vmatmul.bf16.gmra.mxu3 %v13158_v31  ;;  %v7510_v51 = vpop.f32.mrf.mxu2 }
 0x6a6   :  { %v8046_v3 = vpop.f32.mrf.mxu0 }
 0x6a7   :  { %v7569_v63 = vpop.f32.mrf.mxu3  ;;  %v8105_v62 = vpop.f32.mrf.mxu1 }
 0x6a8   :  { %v7570_v57 = vadd.f32 %v7569_v63, %v7510_v51  ;;  %v19023_v54 = vadd.f32 %v8105_v62, %v8046_v3  ;;  %v13513_v63 = vld [vmem:[%s20873_s0 + $0x2c0] sm:$0xf]  ;;  %v13518_v51 = vor.u32 %v14719_v24, %v13515_v52  ;;  %v14665_v24 = vld [vmem:[%s20873_s0 + $0x294] sm:$0xf]  ;;  %v14722_v52 = vld [vmem:[%s20873_s0 + $0x2d4] sm:$0xf0] }
 0x6aa   :  { %v19021_v41 = vadd.f32 %v7570_v57, %v18592_v0  ;;  %v14720_v0 = vld [vmem:[%s20873_s0 + $0x2c4] sm:$0xf0] }
 0x6ab   :  { %v13514_v55 = vor.u32 %v14720_v0, %v13513_v63  ;;  %v14825_v63 = vld [vmem:[%s20872_s1 + $0x270] sm:$0xff] }
 0x6ac   :  { %21070 = vst [vmem:[#allocation64_spill] sm:$0xff] %v19021_v41  ;;  %v7512_v5 = vpop.f32.mrf.mxu2  ;;  %9462 = vmatpush.bf16.msra.mxu1 %v14825_v63 }
 0x6ae   :  { %v8049_v21 = vpop.f32.mrf.mxu0 }
 0x6af   :  { %v7571_v35 = vpop.f32.mrf.mxu3  ;;  %v8108_v57 = vpop.f32.mrf.mxu1 }
 0x6b0   :  { %v7572_v31 = vadd.f32 %v7571_v35, %v7512_v5  ;;  %v19058_v62 = vadd.f32 %v8108_v57, %v8049_v21  ;;  %v13411_v5 = vld [vmem:[%s20873_s0 + $0x298] sm:$0xf0] }
 0x6b1   :  { %8272 = vmatmul.bf16.vlgmr.msrb.gmra.mxu2 %v13402_v30  ;;  %8638 = vmatmul.bf16.vlgmr.msrb.gmra.mxu0 %v13514_v55  ;;  %v14780_v30 = vld [vmem:[%s20872_s1 + $0x1a8] sm:$0xff] }
 0x6b2   :  { %v19056_v3 = vadd.f32 %v7572_v31, %v18616_v15  ;;  %8697 = vmatmul.bf16.vlgmr.msrb.gmra.mxu1 %v13518_v51  ;;  %v14788_v55 = vld [vmem:[%s20872_s1 + $0x1e8] sm:$0xff]  ;;  %9018 = vmatpush.bf16.msra.mxu2 %v14780_v30 }
 0x6b3   :  { %9077 = vmatpush.bf16.msra.mxu3 %v14788_v55  ;;  %v13531_v30 = vld [vmem:[%s20873_s0 + $0x2e8] sm:$0xf0] }
 0x6b4   :  { %21071 = vst [vmem:[#allocation65_spill] sm:$0xff] %v19056_v3  ;;  %8331 = vmatmul.bf16.vlgmr.msrb.gmra.mxu3 %v13406_v13  ;;  %v7515_v41 = vpop.f32.mrf.mxu2 }
 0x6b6   :  { %v8051_v59 = vpop.f32.mrf.mxu0 }
 0x6b7   :  { %v7574_v1 = vpop.f32.mrf.mxu3  ;;  %v8110_v15 = vpop.f32.mrf.mxu1 }
 0x6b8   :  { %v7575_v33 = vadd.f32 %v7574_v1, %v7515_v41  ;;  %v19069_v18 = vadd.f32 %v8110_v15, %v8051_v59  ;;  %v13409_v1 = vld [vmem:[%s20873_s0 + $0x290] sm:$0xf]  ;;  %v14666_v41 = vld [vmem:[%s20873_s0 + $0x294] sm:$0xf0]  ;;  %v13526_v59 = vor.u32 %v14721_v60, %v13523_v49  ;;  %v13529_v49 = vld [vmem:[%s20873_s0 + $0x2e0] sm:$0xf] }
 0x6b9   :  { %v13410_v21 = vor.u32 %v14666_v41, %v13409_v1  ;;  %v14816_v1 = vld [vmem:[%s20872_s1 + $0x228] sm:$0xff] }
 0x6ba   :  { %v19067_v0 = vadd.f32 %v7575_v33, %v18640_v40  ;;  %v13521_v40 = vld [vmem:[%s20873_s0 + $0x2d0] sm:$0xf]  ;;  %v13414_v33 = vor.u32 %v14665_v24, %v13411_v5  ;;  %v14824_v41 = vld [vmem:[%s20872_s1 + $0x268] sm:$0xff]  ;;  %9404 = vmatpush.bf16.msra.mxu0 %v14816_v1 }
 0x6bb   :  { %v13522_v13 = vor.u32 %v14722_v52, %v13521_v40  ;;  %9463 = vmatpush.bf16.msra.mxu1 %v14824_v41 }
 0x6bc   :  { %21072 = vst [vmem:[#allocation66_spill] sm:$0xff] %v19067_v0  ;;  %v7517_v35 = vpop.f32.mrf.mxu2 }
 0x6be   :  { %v8054_v57 = vpop.f32.mrf.mxu0 }
 0x6bf   :  { %v7576_v31 = vpop.f32.mrf.mxu3  ;;  %v8113_v38 = vpop.f32.mrf.mxu1 }
 0x6c0   :  { %v7577_v51 = vadd.f32 %v7576_v31, %v7517_v35  ;;  %v19104_v15 = vadd.f32 %v8113_v38, %v8054_v57  ;;  %v14724_v35 = vld [vmem:[%s20873_s0 + $0x2e4] sm:$0xf0] }
 0x6c1   :  { %8277 = vmatmul.bf16.gmra.mxu2 %v13410_v21  ;;  %8643 = vmatmul.bf16.gmra.mxu0 %v13522_v13  ;;  %v13530_v31 = vor.u32 %v14724_v35, %v13529_v49  ;;  %v14726_v49 = vld [vmem:[%s20873_s0 + $0x2f4] sm:$0xf0]  ;;  %v14725_v35 = vld [vmem:[%s20873_s0 + $0x2f4] sm:$0xf] }
 0x6c2   :  { %v19102_v63 = vadd.f32 %v7577_v51, %v18661_v20  ;;  %8702 = vmatmul.bf16.gmra.mxu1 %v13526_v59 }
 0x6c4   :  { %21073 = vst [vmem:[#allocation67_spill] sm:$0xff] %v19102_v63  ;;  %8336 = vmatmul.bf16.gmra.mxu3 %v13414_v33  ;;  %v7520_v0 = vpop.f32.mrf.mxu2 }
 0x6c6   :  { %v8056_v52 = vpop.f32.mrf.mxu0 }
 0x6c7   :  { %v7579_v24 = vpop.f32.mrf.mxu3  ;;  %v8115_v20 = vpop.f32.mrf.mxu1 }
 0x6c8   :  { %v7580_v40 = vadd.f32 %v7579_v24, %v7520_v0  ;;  %v19115_v60 = vadd.f32 %v8115_v20, %v8056_v52  ;;  %v14723_v0 = vld [vmem:[%s20873_s0 + $0x2e4] sm:$0xf] }
 0x6c9   :  { %v13534_v51 = vor.u32 %v14723_v0, %v13531_v30  ;;  %v14815_v30 = vld [vmem:[%s20872_s1 + $0x220] sm:$0xff] }
 0x6ca   :  { %v19113_v5 = vadd.f32 %v7580_v40, %v18682_v37  ;;  %v14779_v40 = vld [vmem:[%s20872_s1 + $0x1a0] sm:$0xff]  ;;  %9405 = vmatpush.bf16.msra.mxu0 %v14815_v30  ;;  %v14814_v30 = vld [vmem:[%s20872_s1 + $0x218] sm:$0xff] }
 0x6cb   :  { %9019 = vmatpush.bf16.msra.mxu2 %v14779_v40  ;;  %v14786_v40 = vld [vmem:[%s20872_s1 + $0x1d8] sm:$0xff] }
 0x6cc   :  { %v7522_v37 = vpop.f32.mrf.mxu2 }
 0x6ce   :  { %v8059_v13 = vpop.f32.mrf.mxu0  ;;  %9406 = vmatpush.bf16.msra.mxu0 %v14814_v30 }
 0x6cf   :  { %v7581_v55 = vpop.f32.mrf.mxu3  ;;  %v8118_v57 = vpop.f32.mrf.mxu1 }
 0x6d0   :  { %v7582_v21 = vadd.f32 %v7581_v55, %v7522_v37  ;;  %v19132_v59 = vadd.f32 %v8118_v57, %v8059_v13  ;;  %v14823_v37 = vld [vmem:[%s20872_s1 + $0x260] sm:$0xff] }
 0x6d1   :  { %8282 = vmatmul.bf16.gmra.mxu2 %v18603_v7  ;;  %8648 = vmatmul.bf16.gmra.mxu0 %v13530_v31 }
 0x6d2   :  { %v19130_v33 = vadd.f32 %v7582_v21, %v18706_v58  ;;  %8707 = vmatmul.bf16.gmra.mxu1 %v13534_v51  ;;  %v14787_v58 = vld [vmem:[%s20872_s1 + $0x1e0] sm:$0xff] }
 0x6d3   :  { %9078 = vmatpush.bf16.msra.mxu3 %v14787_v58  ;;  %9464 = vmatpush.bf16.msra.mxu1 %v14823_v37  ;;  %v14822_v37 = vld [vmem:[%s20872_s1 + $0x258] sm:$0xff] }
 0x6d4   :  { %21074 = vst [vmem:[#allocation68_spill] sm:$0xff] %v19130_v33  ;;  %8341 = vmatmul.bf16.gmra.mxu3 %v18605_v27  ;;  %v7525_v38 = vpop.f32.mrf.mxu2  ;;  %v13537_v27 = vld [vmem:[%s20873_s0 + $0x2f0] sm:$0xf] }
 0x6d5   :  { %v13538_v31 = vor.u32 %v14726_v49, %v13537_v27  ;;  %v13545_v49 = vld [vmem:[%s20873_s0 + $0x300] sm:$0xf] }
 0x6d6   :  { %v8061_v24 = vpop.f32.mrf.mxu0 }
 0x6d7   :  { %v7584_v1 = vpop.f32.mrf.mxu3  ;;  %v8120_v52 = vpop.f32.mrf.mxu1  ;;  %9079 = vmatpush.bf16.msra.mxu3 %v14786_v40  ;;  %9465 = vmatpush.bf16.msra.mxu1 %v14822_v37 }
 0x6d8   :  { %v7585_v41 = vadd.f32 %v7584_v1, %v7525_v38  ;;  %v19145_v7 = vadd.f32 %v8120_v52, %v8061_v24  ;;  %v14778_v24 = vld [vmem:[%s20872_s1 + $0x198] sm:$0xff] }
 0x6d9   :  { %9020 = vmatpush.bf16.msra.mxu2 %v14778_v24 }
 0x6da   :  { %v19143_v20 = vadd.f32 %v7585_v41, %v18730_v53  ;;  %v13539_v53 = vld [vmem:[%s20873_s0 + $0x2f8] sm:$0xf0] }
 0x6db   :  { %v13542_v51 = vor.u32 %v14725_v35, %v13539_v53  ;;  %v14728_v35 = vld [vmem:[%s20873_s0 + $0x304] sm:$0xf0]  ;;  %v14727_v53 = vld [vmem:[%s20873_s0 + $0x304] sm:$0xf] }
 0x6dc   :  { %v7527_v0 = vpop.f32.mrf.mxu2 }
 0x6de   :  { %v8064_v13 = vpop.f32.mrf.mxu0 }
 0x6df   :  { %v7586_v55 = vpop.f32.mrf.mxu3  ;;  %v8123_v57 = vpop.f32.mrf.mxu1 }
 0x6e0   :  { %v7587_v21 = vadd.f32 %v7586_v55, %v7527_v0  ;;  %v19168_v1 = vadd.f32 %v8123_v57, %v8064_v13  ;;  %v13547_v0 = vld [vmem:[%s20873_s0 + $0x308] sm:$0xf0] }
 0x6e1   :  { %8287 = vmatmul.bf16.gmra.mxu2 %v18651_v43  ;;  %8653 = vmatmul.bf16.gmra.mxu0 %v13538_v31  ;;  %v13546_v31 = vor.u32 %v14728_v35, %v13545_v49 }
 0x6e2   :  { %v19166_v38 = vadd.f32 %v7587_v21, %v18751_v22  ;;  %8712 = vmatmul.bf16.gmra.mxu1 %v13542_v51  ;;  %v13550_v51 = vor.u32 %v14727_v53, %v13547_v0  ;;  %v13555_v53 = vld [vmem:[%s20873_s0 + $0x318] sm:$0xf0]  ;;  %v14777_v0 = vld [vmem:[%s20872_s1 + $0x190] sm:$0xff] }
 0x6e3   :  { %9021 = vmatpush.bf16.msra.mxu2 %v14777_v0  ;;  %v14776_v0 = vld [vmem:[%s20872_s1 + $0x188] sm:$0xff] }
 0x6e4   :  { %8346 = vmatmul.bf16.gmra.mxu3 %v18653_v36  ;;  %v7530_v41 = vpop.f32.mrf.mxu2 }
 0x6e6   :  { %v8066_v52 = vpop.f32.mrf.mxu0 }
 0x6e7   :  { %v7589_v58 = vpop.f32.mrf.mxu3  ;;  %v8125_v27 = vpop.f32.mrf.mxu1  ;;  %9022 = vmatpush.bf16.msra.mxu2 %v14776_v0 }
 0x6e8   :  { %v7590_v22 = vadd.f32 %v7589_v58, %v7530_v41  ;;  %v19181_v36 = vadd.f32 %v8125_v27, %v8066_v52 }
 0x6ea   :  { %v19179_v43 = vadd.f32 %v7590_v22, %v18778_v28 }
 0x6ec   :  { %v7532_v28 = vpop.f32.mrf.mxu2 }
 0x6ee   :  { %v8069_v13 = vpop.f32.mrf.mxu0 }
 0x6ef   :  { %v7591_v55 = vpop.f32.mrf.mxu3  ;;  %v8128_v57 = vpop.f32.mrf.mxu1 }
 0x6f0   :  { %v7592_v21 = vadd.f32 %v7591_v55, %v7532_v28  ;;  %v19204_v24 = vadd.f32 %v8128_v57, %v8069_v13  ;;  %v14785_v28 = vld [vmem:[%s20872_s1 + $0x1d0] sm:$0xff] }
 0x6f1   :  { %8292 = vmatmul.bf16.gmra.mxu2 %v18693_v12  ;;  %8658 = vmatmul.bf16.gmra.mxu0 %v13546_v31  ;;  %v14730_v12 = vld [vmem:[%s20873_s0 + $0x314] sm:$0xf0] }
 0x6f2   :  { %v19202_v41 = vadd.f32 %v7592_v21, %v18796_v47  ;;  %8717 = vmatmul.bf16.gmra.mxu1 %v13550_v51  ;;  %v13553_v47 = vld [vmem:[%s20873_s0 + $0x310] sm:$0xf]  ;;  %9080 = vmatpush.bf16.msra.mxu3 %v14785_v28  ;;  %v14784_v28 = vld [vmem:[%s20872_s1 + $0x1c8] sm:$0xff] }
 0x6f3   :  { %v13554_v37 = vor.u32 %v14730_v12, %v13553_v47  ;;  %v13561_v12 = vld [vmem:[%s20873_s0 + $0x320] sm:$0xf] }
 0x6f4   :  { %21075 = vst [vmem:[#allocation69_spill] sm:$0xff] %v19202_v41  ;;  %8351 = vmatmul.bf16.gmra.mxu3 %v18695_v34  ;;  %v7535_v40 = vpop.f32.mrf.mxu2  ;;  %v14729_v34 = vld [vmem:[%s20873_s0 + $0x314] sm:$0xf] }
 0x6f5   :  { %v13558_v21 = vor.u32 %v14729_v34, %v13555_v53  ;;  %v14732_v34 = vld [vmem:[%s20873_s0 + $0x324] sm:$0xf0]  ;;  %v14731_v53 = vld [vmem:[%s20873_s0 + $0x324] sm:$0xf] }
 0x6f6   :  { %v8071_v52 = vpop.f32.mrf.mxu0  ;;  %9081 = vmatpush.bf16.msra.mxu3 %v14784_v28 }
 0x6f7   :  { %v7594_v58 = vpop.f32.mrf.mxu3  ;;  %v8130_v27 = vpop.f32.mrf.mxu1 }
 0x6f8   :  { %v7595_v22 = vadd.f32 %v7594_v58, %v7535_v40  ;;  %v19211_v35 = vadd.f32 %v8130_v27, %v8071_v52  ;;  %v14813_v58 = vld [vmem:[%s20872_s1 + $0x210] sm:$0xff] }
 0x6f9   :  { %9407 = vmatpush.bf16.msra.mxu0 %v14813_v58 }
 0x6fa   :  { %v19209_v49 = vadd.f32 %v7595_v22, %v18820_v11  ;;  %v14821_v22 = vld [vmem:[%s20872_s1 + $0x250] sm:$0xff] }
 0x6fb   :  { %9466 = vmatpush.bf16.msra.mxu1 %v14821_v22 }
 0x6fc   :  { %21076 = vst [vmem:[#allocation70_spill] sm:$0xff] %v19209_v49  ;;  %v7537_v11 = vpop.f32.mrf.mxu2 }
 0x6fe   :  { %v8074_v31 = vpop.f32.mrf.mxu0 }
 0x6ff   :  { %v7596_v30 = vpop.f32.mrf.mxu3  ;;  %v8133_v13 = vpop.f32.mrf.mxu1 }
 0x700   :  { %v7597_v55 = vadd.f32 %v7596_v30, %v7537_v11  ;;  %v19234_v57 = vadd.f32 %v8133_v13, %v8074_v31  ;;  %v13563_v11 = vld [vmem:[%s20873_s0 + $0x328] sm:$0xf0] }
 0x701   :  { %8297 = vmatmul.bf16.gmra.mxu2 %v18741_v14  ;;  %8663 = vmatmul.bf16.gmra.mxu0 %v13554_v37  ;;  %v13562_v37 = vor.u32 %v14732_v34, %v13561_v12 }
 0x702   :  { %v19232_v51 = vadd.f32 %v7597_v55, %v18844_v48  ;;  %8722 = vmatmul.bf16.gmra.mxu1 %v13558_v21  ;;  %v13566_v21 = vor.u32 %v14731_v53, %v13563_v11  ;;  %v13571_v53 = vld [vmem:[%s20873_s0 + $0x338] sm:$0xf0] }
 0x704   :  { %8356 = vmatmul.bf16.gmra.mxu3 %v18743_v56  ;;  %v7540_v40 = vpop.f32.mrf.mxu2 }
 0x706   :  { %v8076_v27 = vpop.f32.mrf.mxu0 }
 0x707   :  { %v7599_v52 = vpop.f32.mrf.mxu3  ;;  %v8135_v47 = vpop.f32.mrf.mxu1 }
 0x708   :  { %v7600_v48 = vadd.f32 %v7599_v52, %v7540_v40  ;;  %v19247_v56 = vadd.f32 %v8135_v47, %v8076_v27 }
 0x70a   :  { %v19245_v14 = vadd.f32 %v7600_v48, %v18868_v10 }
 0x70c   :  { %v7542_v10 = vpop.f32.mrf.mxu2 }
 0x70e   :  { %v8079_v31 = vpop.f32.mrf.mxu0 }
 0x70f   :  { %v7601_v30 = vpop.f32.mrf.mxu3  ;;  %v8138_v13 = vpop.f32.mrf.mxu1 }
 0x710   :  { %v7602_v55 = vadd.f32 %v7601_v30, %v7542_v10  ;;  %v19270_v58 = vadd.f32 %v8138_v13, %v8079_v31  ;;  %v14812_v13 = vld [vmem:[%s20872_s1 + $0x208] sm:$0xff] }
 0x711   :  { %8302 = vmatmul.bf16.gmra.mxu2 %v18789_v2  ;;  %8668 = vmatmul.bf16.gmra.mxu0 %v13562_v37  ;;  %v14734_v2 = vld [vmem:[%s20873_s0 + $0x334] sm:$0xf0] }
 0x712   :  { %v19268_v40 = vadd.f32 %v7602_v55, %v18889_v17  ;;  %8727 = vmatmul.bf16.gmra.mxu1 %v13566_v21  ;;  %v13569_v17 = vld [vmem:[%s20873_s0 + $0x330] sm:$0xf]  ;;  %9408 = vmatpush.bf16.msra.mxu0 %v14812_v13 }
 0x713   :  { %v13570_v10 = vor.u32 %v14734_v2, %v13569_v17  ;;  %v14811_v2 = vld [vmem:[%s20872_s1 + $0x200] sm:$0xff] }
 0x714   :  { %21077 = vst [vmem:[#allocation71_spill] sm:$0xff] %v19268_v40  ;;  %8361 = vmatmul.bf16.gmra.mxu3 %v18791_v32  ;;  %v7545_v22 = vpop.f32.mrf.mxu2  ;;  %v14733_v32 = vld [vmem:[%s20873_s0 + $0x334] sm:$0xf] }
 0x715   :  { %v13574_v30 = vor.u32 %v14733_v32, %v13571_v53  ;;  %v14819_v32 = vld [vmem:[%s20872_s1 + $0x240] sm:$0xff] }
 0x716   :  { %v8081_v27 = vpop.f32.mrf.mxu0  ;;  %v13577_v53 = vld [vmem:[%s20873_s0 + $0x340] sm:$0xf]  ;;  %9409 = vmatpush.bf16.msra.mxu0 %v14811_v2 }
 0x717   :  { %v7604_v52 = vpop.f32.mrf.mxu3  ;;  %v8140_v47 = vpop.f32.mrf.mxu1 }
 0x718   :  { %v7605_v48 = vadd.f32 %v7604_v52, %v7545_v22  ;;  %v19277_v34 = vadd.f32 %v8140_v47, %v8081_v27  ;;  %v14820_v22 = vld [vmem:[%s20872_s1 + $0x248] sm:$0xff] }
 0x719   :  { %9467 = vmatpush.bf16.msra.mxu1 %v14820_v22 }
 0x71a   :  { %v19275_v12 = vadd.f32 %v7605_v48, %v18910_v50 }
 0x71c   :  { %v7547_v50 = vpop.f32.mrf.mxu2 }
 0x71d   :  { %9468 = vmatpush.bf16.msra.mxu1 %v14819_v32 }
 0x71e   :  { %v8084_v28 = vpop.f32.mrf.mxu0 }
 0x71f   :  { %v7606_v11 = vpop.f32.mrf.mxu3  ;;  %v8143_v37 = vpop.f32.mrf.mxu1 }
 0x720   :  { %v7607_v0 = vadd.f32 %v7606_v11, %v7547_v50  ;;  %v19294_v31 = vadd.f32 %v8143_v37, %v8084_v28  ;;  %v14736_v50 = vld [vmem:[%s20873_s0 + $0x344] sm:$0xf0]  ;;  %v13579_v11 = vld [vmem:[%s20873_s0 + $0x348] sm:$0xf0] }
 0x721   :  { %8307 = vmatmul.bf16.gmra.mxu2 %v18831_v61  ;;  %8673 = vmatmul.bf16.gmra.mxu0 %v13570_v10  ;;  %v14783_v61 = vld [vmem:[%s20872_s1 + $0x1c0] sm:$0xff]  ;;  %v13578_v28 = vor.u32 %v14736_v50, %v13577_v53 }
 0x722   :  { %v19292_v55 = vadd.f32 %v7607_v0, %v18928_v42  ;;  %8732 = vmatmul.bf16.gmra.mxu1 %v13574_v30  ;;  %v14775_v42 = vld [vmem:[%s20872_s1 + $0x180] sm:$0xff]  ;;  %9082 = vmatpush.bf16.msra.mxu3 %v14783_v61 }
 0x723   :  { %9023 = vmatpush.bf16.msra.mxu2 %v14775_v42 }
 0x724   :  { %21078 = vst [vmem:[#allocation72_spill] sm:$0xff] %v19292_v55  ;;  %8366 = vmatmul.bf16.gmra.mxu3 %v18833_v9  ;;  %v7550_v21 = vpop.f32.mrf.mxu2 }
 0x726   :  { %v8086_v48 = vpop.f32.mrf.mxu0 }
 0x727   :  { %v7609_v52 = vpop.f32.mrf.mxu3  ;;  %v8145_v27 = vpop.f32.mrf.mxu1 }
 0x728   :  { %v7610_v9 = vadd.f32 %v7609_v52, %v7550_v21  ;;  %v19313_v17 = vadd.f32 %v8145_v27, %v8086_v48 }
 0x72a   :  { %v19311_v47 = vadd.f32 %v7610_v9, %v18952_v26  ;;  %v14735_v26 = vld [vmem:[%s20873_s0 + $0x344] sm:$0xf] }
 0x72b   :  { %v13582_v21 = vor.u32 %v14735_v26, %v13579_v11 }
 0x72c   :  { %21079 = vst [vmem:[#allocation73_spill] sm:$0xff] %v19311_v47  ;;  %v7552_v10 = vpop.f32.mrf.mxu2 }
 0x72e   :  { %v8639_v37 = vpop.f32.mrf.mxu0 }
 0x72f   :  { %v7611_v0 = vpop.f32.mrf.mxu3  ;;  %v8698_v13 = vpop.f32.mrf.mxu1 }
 0x730   :  { %v7612_v30 = vadd.f32 %v7611_v0, %v7552_v10  ;;  %v8699_v42 = vadd.f32 %v8698_v13, %v8639_v37 }
 0x731   :  { %8312 = vmatmul.bf16.gmra.mxu2 %v18879_v44  ;;  %8678 = vmatmul.bf16.gmra.mxu0 %v13578_v28  ;;  %v14738_v44 = vld [vmem:[%s20873_s0 + $0x354] sm:$0xf0] }
 0x732   :  { %v19334_v22 = vadd.f32 %v7612_v30, %v18972_v29  ;;  %8737 = vmatmul.bf16.gmra.mxu1 %v13582_v21  ;;  %v13585_v29 = vld [vmem:[%s20873_s0 + $0x350] sm:$0xf] }
 0x733   :  { %v13586_v10 = vor.u32 %v14738_v44, %v13585_v29  ;;  %v14792_v29 = vld [vmem:[%s20873_s0 + $0x304] sm:$0xf0]  ;;  %v13691_v44 = vld [vmem:[%s20873_s0 + $0x2e8] sm:$0xf0] }
 0x734   :  { %21080 = vst [vmem:[#allocation74_spill] sm:$0xff] %v19334_v22  ;;  %8371 = vmatmul.bf16.gmra.mxu3 %v18881_v8  ;;  %v8273_v52 = vpop.f32.mrf.mxu2  ;;  %v14737_v8 = vld [vmem:[%s20873_s0 + $0x354] sm:$0xf] }
 0x735   :  { %v8274_v61 = vadd.f32 %v8273_v52, %v18970_v6  ;;  %v13587_v6 = vld [vmem:[%s20873_s0 + $0x358] sm:$0xf0] }
 0x736   :  { %v8641_v48 = vpop.f32.mrf.mxu0  ;;  %v13590_v28 = vor.u32 %v14737_v8, %v13587_v6  ;;  %v14791_v8 = vld [vmem:[%s20873_s0 + $0x304] sm:$0xf]  ;;  %v13867_v6 = vld [vmem:[%s20873_s0 + $0x308] sm:$0xf0] }
 0x737   :  { %v8332_v9 = vpop.f32.mrf.mxu3  ;;  %v8700_v2 = vpop.f32.mrf.mxu1 }
 0x738   :  { %v8333_v27 = vadd.f32 %v8332_v9, %v8274_v61  ;;  %v8701_v32 = vadd.f32 %v8700_v2, %v8641_v48 }
 0x73a   :  { %v19339_v53 = vadd.f32 %v8699_v42, %v8333_v27 }
 0x73c   :  { %v8275_v50 = vpop.f32.mrf.mxu2 }
 0x73d   :  { %v8276_v26 = vadd.f32 %v8275_v50, %v18983_v46 }
 0x73e   :  { %v8644_v0 = vpop.f32.mrf.mxu0 }
 0x73f   :  { %v8334_v11 = vpop.f32.mrf.mxu3  ;;  %v8703_v37 = vpop.f32.mrf.mxu1 }
 0x740   :  { %v8335_v30 = vadd.f32 %v8334_v11, %v8276_v26  ;;  %v8704_v21 = vadd.f32 %v8703_v37, %v8644_v0  ;;  %v13870_v37 = vor.u32 %v14791_v8, %v13867_v6  ;;  %v13699_v8 = vld [vmem:[%s20873_s0 + $0x2f8] sm:$0xf0]  ;;  %v14793_v6 = vld [vmem:[%s20873_s0 + $0x314] sm:$0xf] }
 0x741   :  { %8317 = vmatmul.bf16.gmra.mxu2 %v18921_v16  ;;  %8683 = vmatmul.bf16.gmra.mxu0 %v13586_v10  ;;  %v14756_v16 = vld [vmem:[%s20873_s0 + $0x2e4] sm:$0xf0] }
 0x742   :  { %v19354_v13 = vadd.f32 %v8701_v32, %v8335_v30  ;;  %8742 = vmatmul.bf16.gmra.mxu1 %v13590_v28  ;;  %v13689_v32 = vld [vmem:[%s20873_s0 + $0x2e0] sm:$0xf] }
 0x743   :  { %v13690_v10 = vor.u32 %v14756_v16, %v13689_v32 }
 0x744   :  { %8376 = vmatmul.bf16.gmra.mxu3 %v18923_v19  ;;  %v8278_v42 = vpop.f32.mrf.mxu2  ;;  %v14755_v19 = vld [vmem:[%s20873_s0 + $0x2e4] sm:$0xf] }
 0x745   :  { %v8279_v52 = vadd.f32 %v8278_v42, %v19018_v4  ;;  %v13865_v4 = vld [vmem:[%s20873_s0 + $0x300] sm:$0xf]  ;;  %v13694_v30 = vor.u32 %v14755_v19, %v13691_v44  ;;  %v13697_v19 = vld [vmem:[%s20873_s0 + $0x2f0] sm:$0xf]  ;;  %v14794_v44 = vld [vmem:[%s20873_s0 + $0x314] sm:$0xf0] }
 0x746   :  { %v8646_v46 = vpop.f32.mrf.mxu0  ;;  %v13866_v0 = vor.u32 %v14792_v29, %v13865_v4  ;;  %v14757_v29 = vld [vmem:[%s20873_s0 + $0x2f4] sm:$0xf] }
 0x747   :  { %v8337_v61 = vpop.f32.mrf.mxu3  ;;  %v8705_v48 = vpop.f32.mrf.mxu1 }
 0x748   :  { %v8338_v9 = vadd.f32 %v8337_v61, %v8279_v52  ;;  %v8706_v27 = vadd.f32 %v8705_v48, %v8646_v46 }
 0x74a   :  { %v19359_v2 = vadd.f32 %v8704_v21, %v8338_v9 }
 0x74c   :  { %v8280_v50 = vpop.f32.mrf.mxu2 }
 0x74d   :  { %v8281_v26 = vadd.f32 %v8280_v50, %v19023_v54 }
 0x74e   :  { %v8649_v28 = vpop.f32.mrf.mxu0 }
 0x74f   :  { %v8339_v11 = vpop.f32.mrf.mxu3  ;;  %v8708_v42 = vpop.f32.mrf.mxu1 }
 0x750   :  { %v8340_v21 = vadd.f32 %v8339_v11, %v8281_v26  ;;  %v8709_v52 = vadd.f32 %v8708_v42, %v8649_v28  ;;  %v13875_v26 = vld [vmem:[%s20873_s0 + $0x318] sm:$0xf0] }
 0x751   :  { %9024 = vmatmul.bf16.vlgmr.msra.gmra.mxu2 %v13690_v10  ;;  %9410 = vmatmul.bf16.vlgmr.msra.gmra.mxu0 %v13866_v0  ;;  %v13878_v42 = vor.u32 %v14793_v6, %v13875_v26  ;;  %v13707_v6 = vld [vmem:[%s20873_s0 + $0x308] sm:$0xf0]  ;;  %v14795_v26 = vld [vmem:[%s20873_s0 + $0x324] sm:$0xf] }
 0x752   :  { %v19386_v61 = vadd.f32 %v8706_v27, %v8340_v21  ;;  %9469 = vmatmul.bf16.vlgmr.msra.gmra.mxu1 %v13870_v37  ;;  %v14758_v27 = vld [vmem:[%s20873_s0 + $0x2f4] sm:$0xf0]  ;;  %v13702_v21 = vor.u32 %v14757_v29, %v13699_v8  ;;  %v13705_v29 = vld [vmem:[%s20873_s0 + $0x300] sm:$0xf]  ;;  %v14796_v8 = vld [vmem:[%s20873_s0 + $0x324] sm:$0xf0] }
 0x753   :  { %v13698_v28 = vor.u32 %v14758_v27, %v13697_v19 }
 0x754   :  { %9083 = vmatmul.bf16.vlgmr.msra.gmra.mxu3 %v13694_v30  ;;  %v8283_v46 = vpop.f32.mrf.mxu2 }
 0x755   :  { %v8284_v9 = vadd.f32 %v8283_v46, %v19058_v62  ;;  %v13873_v62 = vld [vmem:[%s20873_s0 + $0x310] sm:$0xf] }
 0x756   :  { %v8651_v54 = vpop.f32.mrf.mxu0  ;;  %v13874_v30 = vor.u32 %v14794_v44, %v13873_v62  ;;  %v14759_v44 = vld [vmem:[%s20873_s0 + $0x304] sm:$0xf] }
 0x757   :  { %v8342_v48 = vpop.f32.mrf.mxu3  ;;  %v8710_v32 = vpop.f32.mrf.mxu1 }
 0x758   :  { %v8343_v50 = vadd.f32 %v8342_v48, %v8284_v9  ;;  %v8711_v16 = vadd.f32 %v8710_v32, %v8651_v54 }
 0x75a   :  { %v19389_v4 = vadd.f32 %v8709_v52, %v8343_v50 }
 0x75c   :  { %v8285_v11 = vpop.f32.mrf.mxu2 }
 0x75d   :  { %v8286_v10 = vadd.f32 %v8285_v11, %v19069_v18 }
 0x75e   :  { %v8654_v37 = vpop.f32.mrf.mxu0 }
 0x75f   :  { %v8344_v0 = vpop.f32.mrf.mxu3  ;;  %v8713_v46 = vpop.f32.mrf.mxu1 }
 0x760   :  { %v8345_v52 = vadd.f32 %v8344_v0, %v8286_v10  ;;  %v8714_v9 = vadd.f32 %v8713_v46, %v8654_v37  ;;  %v13883_v10 = vld [vmem:[%s20873_s0 + $0x328] sm:$0xf0] }
 0x761   :  { %9029 = vmatmul.bf16.gmra.mxu2 %v13698_v28  ;;  %9415 = vmatmul.bf16.gmra.mxu0 %v13874_v30  ;;  %v13886_v46 = vor.u32 %v14795_v26, %v13883_v10  ;;  %v13715_v26 = vld [vmem:[%s20873_s0 + $0x318] sm:$0xf0]  ;;  %v14797_v10 = vld [vmem:[%s20873_s0 + $0x334] sm:$0xf] }
 0x762   :  { %v19416_v48 = vadd.f32 %v8711_v16, %v8345_v52  ;;  %9474 = vmatmul.bf16.gmra.mxu1 %v13878_v42  ;;  %v14760_v16 = vld [vmem:[%s20873_s0 + $0x304] sm:$0xf0]  ;;  %v13710_v52 = vor.u32 %v14759_v44, %v13707_v6  ;;  %v13713_v44 = vld [vmem:[%s20873_s0 + $0x310] sm:$0xf]  ;;  %v14798_v6 = vld [vmem:[%s20873_s0 + $0x334] sm:$0xf0] }
 0x763   :  { %v13706_v37 = vor.u32 %v14760_v16, %v13705_v29 }
 0x764   :  { %9088 = vmatmul.bf16.gmra.mxu3 %v13702_v21  ;;  %v8288_v54 = vpop.f32.mrf.mxu2 }
 0x765   :  { %v8289_v50 = vadd.f32 %v8288_v54, %v19104_v15  ;;  %v13881_v15 = vld [vmem:[%s20873_s0 + $0x320] sm:$0xf] }
 0x766   :  { %v8656_v18 = vpop.f32.mrf.mxu0  ;;  %v13882_v21 = vor.u32 %v14796_v8, %v13881_v15  ;;  %v14761_v8 = vld [vmem:[%s20873_s0 + $0x314] sm:$0xf] }
 0x767   :  { %v8347_v32 = vpop.f32.mrf.mxu3  ;;  %v8715_v19 = vpop.f32.mrf.mxu1 }
 0x768   :  { %v8348_v11 = vadd.f32 %v8347_v32, %v8289_v50  ;;  %v8716_v27 = vadd.f32 %v8715_v19, %v8656_v18 }
 0x76a   :  { %v19419_v62 = vadd.f32 %v8714_v9, %v8348_v11 }
 0x76c   :  { %v8290_v0 = vpop.f32.mrf.mxu2 }
 0x76d   :  { %v8291_v28 = vadd.f32 %v8290_v0, %v19115_v60 }
 0x76e   :  { %v8659_v42 = vpop.f32.mrf.mxu0 }
 0x76f   :  { %v8349_v30 = vpop.f32.mrf.mxu3  ;;  %v8718_v54 = vpop.f32.mrf.mxu1 }
 0x770   :  { %v8350_v9 = vadd.f32 %v8349_v30, %v8291_v28  ;;  %v8719_v50 = vadd.f32 %v8718_v54, %v8659_v42  ;;  %v13891_v28 = vld [vmem:[%s20873_s0 + $0x338] sm:$0xf0] }
 0x771   :  { %9034 = vmatmul.bf16.gmra.mxu2 %v13706_v37  ;;  %9420 = vmatmul.bf16.gmra.mxu0 %v13882_v21  ;;  %v13894_v54 = vor.u32 %v14797_v10, %v13891_v28  ;;  %v13723_v10 = vld [vmem:[%s20873_s0 + $0x328] sm:$0xf0]  ;;  %v14799_v28 = vld [vmem:[%s20873_s0 + $0x344] sm:$0xf] }
 0x772   :  { %v19446_v32 = vadd.f32 %v8716_v27, %v8350_v9  ;;  %9479 = vmatmul.bf16.gmra.mxu1 %v13886_v46  ;;  %v14762_v27 = vld [vmem:[%s20873_s0 + $0x314] sm:$0xf0]  ;;  %v13718_v9 = vor.u32 %v14761_v8, %v13715_v26  ;;  %v13721_v8 = vld [vmem:[%s20873_s0 + $0x320] sm:$0xf]  ;;  %v14800_v26 = vld [vmem:[%s20873_s0 + $0x344] sm:$0xf0] }
 0x773   :  { %v13714_v42 = vor.u32 %v14762_v27, %v13713_v44 }
 0x774   :  { %9093 = vmatmul.bf16.gmra.mxu3 %v13710_v52  ;;  %v8293_v18 = vpop.f32.mrf.mxu2 }
 0x775   :  { %v8294_v11 = vadd.f32 %v8293_v18, %v19132_v59  ;;  %v13889_v59 = vld [vmem:[%s20873_s0 + $0x330] sm:$0xf] }
 0x776   :  { %v8661_v60 = vpop.f32.mrf.mxu0  ;;  %v13890_v52 = vor.u32 %v14798_v6, %v13889_v59  ;;  %v14763_v6 = vld [vmem:[%s20873_s0 + $0x324] sm:$0xf] }
 0x777   :  { %v8352_v19 = vpop.f32.mrf.mxu3  ;;  %v8720_v29 = vpop.f32.mrf.mxu1 }
 0x778   :  { %v8353_v0 = vadd.f32 %v8352_v19, %v8294_v11  ;;  %v8721_v16 = vadd.f32 %v8720_v29, %v8661_v60 }
 0x77a   :  { %v19449_v15 = vadd.f32 %v8719_v50, %v8353_v0 }
 0x77c   :  { %v8295_v30 = vpop.f32.mrf.mxu2 }
 0x77d   :  { %v8296_v37 = vadd.f32 %v8295_v30, %v19145_v7 }
 0x77e   :  { %v8664_v46 = vpop.f32.mrf.mxu0 }
 0x77f   :  { %v8354_v21 = vpop.f32.mrf.mxu3  ;;  %v8723_v18 = vpop.f32.mrf.mxu1 }
 0x780   :  { %v8355_v50 = vadd.f32 %v8354_v21, %v8296_v37  ;;  %v8724_v11 = vadd.f32 %v8723_v18, %v8664_v46  ;;  %v13899_v37 = vld [vmem:[%s20873_s0 + $0x348] sm:$0xf0] }
 0x781   :  { %9039 = vmatmul.bf16.gmra.mxu2 %v13714_v42  ;;  %9425 = vmatmul.bf16.gmra.mxu0 %v13890_v52  ;;  %v13902_v18 = vor.u32 %v14799_v28, %v13899_v37  ;;  %v13731_v28 = vld [vmem:[%s20873_s0 + $0x338] sm:$0xf0]  ;;  %v14801_v37 = vld [vmem:[%s20873_s0 + $0x354] sm:$0xf] }
 0x782   :  { %v19476_v19 = vadd.f32 %v8721_v16, %v8355_v50  ;;  %9484 = vmatmul.bf16.gmra.mxu1 %v13894_v54  ;;  %v14764_v16 = vld [vmem:[%s20873_s0 + $0x324] sm:$0xf0]  ;;  %v13726_v50 = vor.u32 %v14763_v6, %v13723_v10  ;;  %v13729_v6 = vld [vmem:[%s20873_s0 + $0x330] sm:$0xf]  ;;  %v14802_v10 = vld [vmem:[%s20873_s0 + $0x354] sm:$0xf0] }
 0x783   :  { %v13722_v46 = vor.u32 %v14764_v16, %v13721_v8 }
 0x784   :  { %21081 = vst [vmem:[#allocation75_spill] sm:$0xff] %v19476_v19  ;;  %9098 = vmatmul.bf16.gmra.mxu3 %v13718_v9  ;;  %v8298_v60 = vpop.f32.mrf.mxu2  ;;  %v21165_v19 = vld [vmem:[#allocation66_spill] sm:$0xff] }
 0x785   :  { %v8299_v0 = vadd.f32 %v8298_v60, %v19168_v1  ;;  %v13897_v1 = vld [vmem:[%s20873_s0 + $0x340] sm:$0xf] }
 0x786   :  { %v8666_v7 = vpop.f32.mrf.mxu0  ;;  %v13898_v9 = vor.u32 %v14800_v26, %v13897_v1  ;;  %v14765_v26 = vld [vmem:[%s20873_s0 + $0x334] sm:$0xf] }
 0x787   :  { %v8357_v29 = vpop.f32.mrf.mxu3  ;;  %v8725_v44 = vpop.f32.mrf.mxu1 }
 0x788   :  { %v8358_v30 = vadd.f32 %v8357_v29, %v8299_v0  ;;  %v8726_v27 = vadd.f32 %v8725_v44, %v8666_v7 }
 0x78a   :  { %v19479_v59 = vadd.f32 %v8724_v11, %v8358_v30 }
 0x78c   :  { %21082 = vst [vmem:[#allocation76_spill] sm:$0xff] %v19479_v59  ;;  %v8300_v21 = vpop.f32.mrf.mxu2 }
 0x78d   :  { %v8301_v42 = vadd.f32 %v8300_v21, %v19181_v36 }
 0x78e   :  { %v8669_v54 = vpop.f32.mrf.mxu0 }
 0x78f   :  { %v8359_v52 = vpop.f32.mrf.mxu3  ;;  %v8728_v60 = vpop.f32.mrf.mxu1 }
 0x790   :  { %v8360_v11 = vadd.f32 %v8359_v52, %v8301_v42  ;;  %v8729_v0 = vadd.f32 %v8728_v60, %v8669_v54  ;;  %v13907_v42 = vld [vmem:[%s20873_s0 + $0x358] sm:$0xf0] }
 0x791   :  { %9044 = vmatmul.bf16.gmra.mxu2 %v13722_v46  ;;  %9430 = vmatmul.bf16.gmra.mxu0 %v13898_v9  ;;  %v13910_v60 = vor.u32 %v14801_v37, %v13907_v42  ;;  %v13739_v37 = vld [vmem:[%s20873_s0 + $0x348] sm:$0xf0]  ;;  %v14803_v42 = vld [vmem:[%s20873_s0 + $0x364] sm:$0xf] }
 0x792   :  { %v19506_v29 = vadd.f32 %v8726_v27, %v8360_v11  ;;  %9489 = vmatmul.bf16.gmra.mxu1 %v13902_v18  ;;  %v14766_v27 = vld [vmem:[%s20873_s0 + $0x334] sm:$0xf0]  ;;  %v13734_v11 = vor.u32 %v14765_v26, %v13731_v28  ;;  %v13737_v26 = vld [vmem:[%s20873_s0 + $0x340] sm:$0xf]  ;;  %v14804_v28 = vld [vmem:[%s20873_s0 + $0x364] sm:$0xf0] }
 0x793   :  { %v13730_v54 = vor.u32 %v14766_v27, %v13729_v6 }
 0x794   :  { %21083 = vst [vmem:[#allocation77_spill] sm:$0xff] %v19506_v29  ;;  %9103 = vmatmul.bf16.gmra.mxu3 %v13726_v50  ;;  %v8303_v7 = vpop.f32.mrf.mxu2  ;;  %v21164_v29 = vld [vmem:[#allocation52_spill] sm:$0xff] }
 0x795   :  { %v8304_v30 = vadd.f32 %v8303_v7, %v19204_v24  ;;  %v13905_v24 = vld [vmem:[%s20873_s0 + $0x350] sm:$0xf] }
 0x796   :  { %v8671_v36 = vpop.f32.mrf.mxu0  ;;  %v13906_v50 = vor.u32 %v14802_v10, %v13905_v24  ;;  %v14767_v10 = vld [vmem:[%s20873_s0 + $0x344] sm:$0xf] }
 0x797   :  { %v8362_v44 = vpop.f32.mrf.mxu3  ;;  %v8730_v8 = vpop.f32.mrf.mxu1 }
 0x798   :  { %v8363_v21 = vadd.f32 %v8362_v44, %v8304_v30  ;;  %v8731_v16 = vadd.f32 %v8730_v8, %v8671_v36 }
 0x79a   :  { %v19509_v1 = vadd.f32 %v8729_v0, %v8363_v21 }
 0x79c   :  { %21084 = vst [vmem:[#allocation78_spill] sm:$0xff] %v19509_v1  ;;  %v8305_v52 = vpop.f32.mrf.mxu2 }
 0x79d   :  { %v8306_v46 = vadd.f32 %v8305_v52, %v19211_v35 }
 0x79e   :  { %v8674_v18 = vpop.f32.mrf.mxu0 }
 0x79f   :  { %v8364_v9 = vpop.f32.mrf.mxu3  ;;  %v8733_v7 = vpop.f32.mrf.mxu1 }
 0x7a0   :  { %v8365_v0 = vadd.f32 %v8364_v9, %v8306_v46  ;;  %v8734_v30 = vadd.f32 %v8733_v7, %v8674_v18  ;;  %v13915_v46 = vld [vmem:[%s20873_s0 + $0x368] sm:$0xf0] }
 0x7a1   :  { %9049 = vmatmul.bf16.gmra.mxu2 %v13730_v54  ;;  %9435 = vmatmul.bf16.gmra.mxu0 %v13906_v50  ;;  %v13918_v7 = vor.u32 %v14803_v42, %v13915_v46  ;;  %v13747_v42 = vld [vmem:[%s20873_s0 + $0x358] sm:$0xf0]  ;;  %v14805_v46 = vld [vmem:[%s20873_s0 + $0x374] sm:$0xf] }
 0x7a2   :  { %v19536_v44 = vadd.f32 %v8731_v16, %v8365_v0  ;;  %9494 = vmatmul.bf16.gmra.mxu1 %v13910_v60  ;;  %v14768_v16 = vld [vmem:[%s20873_s0 + $0x344] sm:$0xf0]  ;;  %v13742_v0 = vor.u32 %v14767_v10, %v13739_v37  ;;  %v13745_v10 = vld [vmem:[%s20873_s0 + $0x350] sm:$0xf]  ;;  %v14806_v37 = vld [vmem:[%s20873_s0 + $0x374] sm:$0xf0] }
 0x7a3   :  { %v13738_v18 = vor.u32 %v14768_v16, %v13737_v26 }
 0x7a4   :  { %21085 = vst [vmem:[#allocation79_spill] sm:$0xff] %v19536_v44  ;;  %9108 = vmatmul.bf16.gmra.mxu3 %v13734_v11  ;;  %v8308_v36 = vpop.f32.mrf.mxu2  ;;  %v21116_v44 = vld [vmem:[#allocation14_spill] sm:$0xff] }
 0x7a5   :  { %v8309_v21 = vadd.f32 %v8308_v36, %v19234_v57  ;;  %v13913_v57 = vld [vmem:[%s20873_s0 + $0x360] sm:$0xf] }
 0x7a6   :  { %v8676_v35 = vpop.f32.mrf.mxu0  ;;  %v13914_v11 = vor.u32 %v14804_v28, %v13913_v57  ;;  %v14769_v28 = vld [vmem:[%s20873_s0 + $0x354] sm:$0xf] }
 0x7a7   :  { %v8367_v8 = vpop.f32.mrf.mxu3  ;;  %v8735_v6 = vpop.f32.mrf.mxu1 }
 0x7a8   :  { %v8368_v52 = vadd.f32 %v8367_v8, %v8309_v21  ;;  %v8736_v27 = vadd.f32 %v8735_v6, %v8676_v35 }
 0x7aa   :  { %v19539_v24 = vadd.f32 %v8734_v30, %v8368_v52 }
 0x7ac   :  { %21086 = vst [vmem:[#allocation80_spill] sm:$0xff] %v19539_v24  ;;  %v8310_v9 = vpop.f32.mrf.mxu2 }
 0x7ad   :  { %v8311_v54 = vadd.f32 %v8310_v9, %v19247_v56 }
 0x7ae   :  { %v8679_v60 = vpop.f32.mrf.mxu0 }
 0x7af   :  { %v8369_v50 = vpop.f32.mrf.mxu3  ;;  %v8738_v36 = vpop.f32.mrf.mxu1 }
 0x7b0   :  { %v8370_v30 = vadd.f32 %v8369_v50, %v8311_v54  ;;  %v8739_v21 = vadd.f32 %v8738_v36, %v8679_v60  ;;  %v13923_v54 = vld [vmem:[%s20873_s0 + $0x378] sm:$0xf0] }
 0x7b1   :  { %9054 = vmatmul.bf16.gmra.mxu2 %v13738_v18  ;;  %9440 = vmatmul.bf16.gmra.mxu0 %v13914_v11  ;;  %v13926_v36 = vor.u32 %v14805_v46, %v13923_v54  ;;  %v13755_v46 = vld [vmem:[%s20873_s0 + $0x368] sm:$0xf0]  ;;  %v14807_v54 = vld [vmem:[%s20873_s0 + $0x384] sm:$0xf] }
 0x7b2   :  { %v19566_v8 = vadd.f32 %v8736_v27, %v8370_v30  ;;  %9499 = vmatmul.bf16.gmra.mxu1 %v13918_v7  ;;  %v14770_v27 = vld [vmem:[%s20873_s0 + $0x354] sm:$0xf0]  ;;  %v13750_v30 = vor.u32 %v14769_v28, %v13747_v42  ;;  %v13753_v28 = vld [vmem:[%s20873_s0 + $0x360] sm:$0xf]  ;;  %v14808_v42 = vld [vmem:[%s20873_s0 + $0x384] sm:$0xf0] }
 0x7b3   :  { %v13746_v60 = vor.u32 %v14770_v27, %v13745_v10 }
 0x7b4   :  { %21087 = vst [vmem:[#allocation81_spill] sm:$0xff] %v19566_v8  ;;  %9113 = vmatmul.bf16.gmra.mxu3 %v13742_v0  ;;  %v8313_v35 = vpop.f32.mrf.mxu2 }
 0x7b5   :  { %v8314_v52 = vadd.f32 %v8313_v35, %v19270_v58  ;;  %v13921_v58 = vld [vmem:[%s20873_s0 + $0x370] sm:$0xf] }
 0x7b6   :  { %v8681_v56 = vpop.f32.mrf.mxu0  ;;  %v13922_v0 = vor.u32 %v14806_v37, %v13921_v58  ;;  %v14771_v37 = vld [vmem:[%s20873_s0 + $0x364] sm:$0xf] }
 0x7b7   :  { %v8372_v6 = vpop.f32.mrf.mxu3  ;;  %v8740_v26 = vpop.f32.mrf.mxu1 }
 0x7b8   :  { %v8373_v9 = vadd.f32 %v8372_v6, %v8314_v52  ;;  %v8741_v16 = vadd.f32 %v8740_v26, %v8681_v56 }
 0x7ba   :  { %v19569_v57 = vadd.f32 %v8739_v21, %v8373_v9 }
 0x7bc   :  { %21088 = vst [vmem:[#allocation82_spill] sm:$0xff] %v19569_v57  ;;  %v8315_v50 = vpop.f32.mrf.mxu2 }
 0x7bd   :  { %v8316_v18 = vadd.f32 %v8315_v50, %v19277_v34 }
 0x7be   :  { %v8684_v7 = vpop.f32.mrf.mxu0 }
 0x7bf   :  { %v8374_v11 = vpop.f32.mrf.mxu3  ;;  %v8743_v35 = vpop.f32.mrf.mxu1 }
 0x7c0   :  { %v8375_v21 = vadd.f32 %v8374_v11, %v8316_v18  ;;  %v8744_v52 = vadd.f32 %v8743_v35, %v8684_v7  ;;  %v13931_v18 = vld [vmem:[%s20873_s0 + $0x388] sm:$0xf0] }
 0x7c1   :  { %9059 = vmatmul.bf16.gmra.mxu2 %v13746_v60  ;;  %9445 = vmatmul.bf16.gmra.mxu0 %v13922_v0  ;;  %v13934_v35 = vor.u32 %v14807_v54, %v13931_v18  ;;  %v14809_v54 = vld [vmem:[%s20873_s0 + $0x394] sm:$0xf]  ;;  %v13939_v18 = vld [vmem:[%s20873_s0 + $0x398] sm:$0xf0] }
 0x7c2   :  { %v19596_v6 = vadd.f32 %v8741_v16, %v8375_v21  ;;  %9504 = vmatmul.bf16.gmra.mxu1 %v13926_v36  ;;  %v14772_v16 = vld [vmem:[%s20873_s0 + $0x364] sm:$0xf0]  ;;  %v13758_v21 = vor.u32 %v14771_v37, %v13755_v46  ;;  %v13761_v37 = vld [vmem:[%s20873_s0 + $0x370] sm:$0xf] }
 0x7c3   :  { %v13754_v7 = vor.u32 %v14772_v16, %v13753_v28  ;;  %v13937_v46 = vld [vmem:[%s20873_s0 + $0x390] sm:$0xf] }
 0x7c4   :  { %21089 = vst [vmem:[#allocation83_spill] sm:$0xff] %v19596_v6  ;;  %9118 = vmatmul.bf16.gmra.mxu3 %v13750_v30  ;;  %v8318_v56 = vpop.f32.mrf.mxu2 }
 0x7c5   :  { %v8319_v9 = vadd.f32 %v8318_v56, %v19294_v31  ;;  %v13929_v31 = vld [vmem:[%s20873_s0 + $0x380] sm:$0xf] }
 0x7c6   :  { %v8686_v34 = vpop.f32.mrf.mxu0  ;;  %v13930_v30 = vor.u32 %v14808_v42, %v13929_v31  ;;  %v14773_v42 = vld [vmem:[%s20873_s0 + $0x374] sm:$0xf] }
 0x7c7   :  { %v8377_v26 = vpop.f32.mrf.mxu3  ;;  %v8745_v10 = vpop.f32.mrf.mxu1 }
 0x7c8   :  { %v8378_v50 = vadd.f32 %v8377_v26, %v8319_v9  ;;  %v8746_v27 = vadd.f32 %v8745_v10, %v8686_v34 }
 0x7ca   :  { %v19599_v58 = vadd.f32 %v8744_v52, %v8378_v50 }
 0x7cc   :  { %21090 = vst [vmem:[#allocation84_spill] sm:$0xff] %v19599_v58  ;;  %v8320_v11 = vpop.f32.mrf.mxu2 }
 0x7cd   :  { %v8321_v60 = vadd.f32 %v8320_v11, %v19313_v17 }
 0x7ce   :  { %v9411_v36 = vpop.f32.mrf.mxu0 }
 0x7cf   :  { %v8379_v0 = vpop.f32.mrf.mxu3  ;;  %v9470_v56 = vpop.f32.mrf.mxu1 }
 0x7d0   :  { %v8380_v52 = vadd.f32 %v8379_v0, %v8321_v60  ;;  %v9471_v9 = vadd.f32 %v9470_v56, %v9411_v36 }
 0x7d1   :  { %9064 = vmatmul.bf16.gmra.mxu2 %v13754_v7  ;;  %9450 = vmatmul.bf16.gmra.mxu0 %v13930_v30 }
 0x7d2   :  { %v19626_v26 = vadd.f32 %v8746_v27, %v8380_v52  ;;  %9509 = vmatmul.bf16.gmra.mxu1 %v13934_v35  ;;  %v14774_v27 = vld [vmem:[%s20873_s0 + $0x374] sm:$0xf0]  ;;  %v13942_v35 = vor.u32 %v14809_v54, %v13939_v18  ;;  %v17_v18 = vlaneseq }
 0x7d3   :  { %v13762_v0 = vor.u32 %v14774_v27, %v13761_v37 }
 0x7d4   :  { %21091 = vst [vmem:[#allocation85_spill] sm:$0xff] %v19626_v26  ;;  %9123 = vmatmul.bf16.gmra.mxu3 %v13758_v21  ;;  %v9025_v34 = vpop.f32.mrf.mxu2 }
 0x7d6   :  { %v9413_v58 = vpop.f32.mrf.mxu0 }
 0x7d7   :  { %v9084_v50 = vpop.f32.mrf.mxu3  ;;  %v9472_v17 = vpop.f32.mrf.mxu1 }
 0x7d8   :  { %v9085_v10 = vadd.f32 %v9084_v50, %v9025_v34  ;;  %v9473_v16 = vadd.f32 %v9472_v17, %v9413_v58  ;;  %v13763_v58 = vld [vmem:[%s20873_s0 + $0x378] sm:$0xf0] }
 0x7d9   :  { %v13766_v21 = vor.u32 %v14773_v42, %v13763_v58 }
 0x7da   :  { %v9134_v28 = vadd.f32 %v9085_v10, %v19339_v53  ;;  %v14810_v53 = vld [vmem:[%s20873_s0 + $0x394] sm:$0xf0] }
 0x7db   :  { %v13938_v7 = vor.u32 %v14810_v53, %v13937_v46 }
 0x7dc   :  { %v19635_v31 = vadd.f32 %v9471_v9, %v9134_v28  ;;  %v9027_v11 = vpop.f32.mrf.mxu2 }
 0x7de   :  { %21092 = vst [vmem:[#allocation86_spill] sm:$0xff] %v19635_v31  ;;  %v9416_v36 = vpop.f32.mrf.mxu0 }
 0x7df   :  { %v9086_v60 = vpop.f32.mrf.mxu3  ;;  %v9475_v52 = vpop.f32.mrf.mxu1 }
 0x7e0   :  { %v9087_v30 = vadd.f32 %v9086_v60, %v9027_v11  ;;  %v9476_v9 = vadd.f32 %v9475_v52, %v9416_v36 }
 0x7e1   :  { %9069 = vmatmul.bf16.gmra.mxu2 %v13762_v0  ;;  %9455 = vmatmul.bf16.gmra.mxu0 %v13938_v7  ;;  %v19664_v7 = vshrl.u32 %v17_v18, 7 }
 0x7e2   :  { %v9135_v56 = vadd.f32 %v9087_v30, %v19354_v13  ;;  %9514 = vmatmul.bf16.gmra.mxu1 %v13942_v35 }
 0x7e3   :  { %v21_v35 = vadd.s32 24, %v19664_v7 }
 0x7e4   :  { %v19656_v34 = vadd.f32 %v9473_v16, %v9135_v56  ;;  %9128 = vmatmul.bf16.gmra.mxu3 %v13766_v21  ;;  %v9030_v50 = vpop.f32.mrf.mxu2 }
 0x7e6   :  { %21093 = vst [vmem:[#allocation87_spill] sm:$0xff] %v19656_v34  ;;  %v9418_v28 = vpop.f32.mrf.mxu0 }
 0x7e7   :  { %v9089_v10 = vpop.f32.mrf.mxu3  ;;  %v9477_v37 = vpop.f32.mrf.mxu1 }
 0x7e8   :  { %v9090_v17 = vadd.f32 %v9089_v10, %v9030_v50  ;;  %v9478_v46 = vadd.f32 %v9477_v37, %v9418_v28  ;;  %v41_v10 = vand.u32 31, %v21_v35  ;;  %v29_v35 = vadd.s32 88, %v19664_v7 }
 0x7ea   :  { %v9136_v27 = vadd.f32 %v9090_v17, %v19359_v2  ;;  %vm61_vm0 = vcmp.lt.s32.totalorder %v41_v10, 25  ;;  %v1936_v10 = vadd.f32 %v15892_v39, %v15865_v25 }
 0x7ec   :  { %v19659_v42 = vadd.f32 %v9476_v9, %v9136_v27  ;;  %v9032_v53 = vpop.f32.mrf.mxu2  ;;  %v25_v27 = vadd.s32 56, %v19664_v7 }
 0x7ee   :  { %21094 = vst [vmem:[#allocation88_spill] sm:$0xff] %v19659_v42  ;;  %v9421_v54 = vpop.f32.mrf.mxu0  ;;  %v45_v18 = vand.u32 31, %v25_v27  ;;  %v1937_v27 = vadd.f32 %v1936_v10, %v15901_v23 }
 0x7ef   :  { %v9091_v58 = vpop.f32.mrf.mxu3  ;;  %v9480_v11 = vpop.f32.mrf.mxu1 }
 0x7f0   :  { %v9092_v13 = vadd.f32 %v9091_v58, %v9032_v53  ;;  %v9481_v60 = vadd.f32 %v9480_v11, %v9421_v54  ;;  %vm65_vm1 = vcmp.lt.s32.totalorder %v45_v18, 25 }
 0x7f2   :  { %v9137_v16 = vadd.f32 %v9092_v13, %v19386_v61  ;;  %v20937_v13 = vmov 0.0  }
 0x7f3   :  { %v19673_v54 = vsel %vm61_vm0, 1.0, %v20937_v13 }
 0x7f4   :  { %v19662_v0 = vadd.f32 %v9478_v46, %v9137_v16  ;;  %v9035_v30 = vpop.f32.mrf.mxu2  ;;  %v1963_v16 = vmul.f32 %v15892_v39, %v15892_v39  ;;  %v21103_v39 = vmov 0.0  }
 0x7f6   :  { %21095 = vst [vmem:[#allocation89_spill] sm:$0xff] %v19662_v0  ;;  %v9423_v2 = vpop.f32.mrf.mxu0 }
 0x7f7   :  { %v9094_v36 = vpop.f32.mrf.mxu3  ;;  %v9482_v52 = vpop.f32.mrf.mxu1 }
 0x7f8   :  { %v9095_v21 = vadd.f32 %v9094_v36, %v9035_v30  ;;  %v9483_v9 = vadd.f32 %v9482_v52, %v9423_v2  ;;  %v1964_v2 = vmul.f32 %v15901_v23, %v15901_v23 }
 0x7fa   :  { %v9138_v56 = vadd.f32 %v9095_v21, %v19389_v4 }
 0x7fc   :  { %v19668_v50 = vadd.f32 %v9481_v60, %v9138_v56  ;;  %v9037_v17 = vpop.f32.mrf.mxu2  ;;  %v1919_v60 = vmul.f32 %v19673_v54, %v15933_v45 }
 0x7fe   :  { %21096 = vst [vmem:[#allocation90_spill] sm:$0xff] %v19668_v50  ;;  %v9426_v37 = vpop.f32.mrf.mxu0 }
 0x7ff   :  { %v9096_v61 = vpop.f32.mrf.mxu3  ;;  %v9485_v46 = vpop.f32.mrf.mxu1 }
 0x800   :  { %v9097_v28 = vadd.f32 %v9096_v61, %v9037_v17  ;;  %v9486_v58 = vadd.f32 %v9485_v46, %v9426_v37  ;;  %v1965_v61 = vmul.f32 %v1919_v60, %v1919_v60 }
 0x802   :  { %v9139_v53 = vadd.f32 %v9097_v28, %v19416_v48  ;;  %v1962_v48 = vmul.f32 %v15865_v25, %v15865_v25  ;;  %v19690_v28 = vsel %vm65_vm1, 1.0, %v20937_v13 }
 0x804   :  { %v19675_v4 = vadd.f32 %v9483_v9, %v9139_v53  ;;  %v9040_v11 = vpop.f32.mrf.mxu2  ;;  %v1982_v17 = vadd.f32 %v1963_v16, %v1962_v48  ;;  %v21099_v53 = vld [vmem:[#allocation6_spill] sm:$0xff]  ;;  %v21101_v16 = vld [vmem:[#allocation9_spill] sm:$0xff] }
 0x805   :  { %v1966_v18 = vmul.f32 %v21099_v53, %v21099_v53  ;;  %v1923_v48 = vmul.f32 %v19690_v28, %v21101_v16 }
 0x806   :  { %21097 = vst [vmem:[#allocation91_spill] sm:$0xff] %v19675_v4  ;;  %v9428_v21 = vpop.f32.mrf.mxu0  ;;  %v1983_v46 = vadd.f32 %v1982_v17, %v1964_v2  ;;  %v21102_v17 = vld [vmem:[#allocation8_spill] sm:$0xff] }
 0x807   :  { %v9099_v30 = vpop.f32.mrf.mxu3  ;;  %v9487_v52 = vpop.f32.mrf.mxu1  ;;  %v1969_v16 = vmul.f32 %v1923_v48, %v1923_v48 }
 0x808   :  { %v9100_v36 = vadd.f32 %v9099_v30, %v9040_v11  ;;  %v9488_v9 = vadd.f32 %v9487_v52, %v9428_v21  ;;  %v49_v11 = vand.u32 31, %v29_v35  ;;  %v21100_v21 = vld [vmem:[#allocation7_spill] sm:$0xff]  ;;  %v1968_v35 = vmul.f32 %v21102_v17, %v21102_v17 }
 0x809   :  { %v1967_v52 = vmul.f32 %v21100_v21, %v21100_v21 }
 0x80a   :  { %v9140_v56 = vadd.f32 %v9100_v36, %v19419_v62  ;;  %v1938_v62 = vadd.f32 %v1937_v27, %v1919_v60  ;;  %v1984_v36 = vadd.f32 %v1983_v46, %v1965_v61  ;;  %vm69_vm2 = vcmp.lt.s32.totalorder %v49_v11, 25 }
 0x80b   :  { %v19708_v25 = vsel %vm69_vm2, 1.0, %v21103_v39 }
 0x80c   :  { %v19692_v37 = vadd.f32 %v9486_v58, %v9140_v56  ;;  %v9042_v30 = vpop.f32.mrf.mxu2  ;;  %v33_v58 = vadd.s32 120, %v19664_v7  ;;  %v1939_v2 = vadd.f32 %v1938_v62, %v21099_v53  ;;  %v1985_v10 = vadd.f32 %v1984_v36, %v1966_v18  ;;  %v21105_v36 = vld [vmem:[#allocation10_spill] sm:$0xff] }
 0x80d   :  { %v1970_v11 = vmul.f32 %v21105_v36, %v21105_v36 }
 0x80e   :  { %21098 = vst [vmem:[#allocation92_spill] sm:$0xff] %v19692_v37  ;;  %v9431_v45 = vpop.f32.mrf.mxu0  ;;  %v1940_v46 = vadd.f32 %v1939_v2, %v21100_v21  ;;  %v1986_v23 = vadd.f32 %v1985_v10, %v1967_v52  ;;  %v21107_v52 = vld [vmem:[#allocation13_spill] sm:$0xff] }
 0x80f   :  { %v9101_v13 = vpop.f32.mrf.mxu3  ;;  %v9490_v60 = vpop.f32.mrf.mxu1  ;;  %v1927_v2 = vmul.f32 %v19708_v25, %v21107_v52  ;;  %v21113_v52 = vld [vmem:[#allocation22_spill] sm:$0xff] }
 0x810   :  { %v9102_v56 = vadd.f32 %v9101_v13, %v9042_v30  ;;  %v9491_v27 = vadd.f32 %v9490_v60, %v9431_v45  ;;  %v53_v13 = vand.u32 31, %v33_v58  ;;  %v1941_v18 = vadd.f32 %v1940_v46, %v21102_v17  ;;  %v21106_v45 = vld [vmem:[#allocation11_spill] sm:$0xff]  ;;  %v21109_v60 = vld [vmem:[#allocation25_spill] sm:$0xff]  ;;  %v21111_v46 = vld [vmem:[#allocation12_spill] sm:$0xff] }
 0x811   :  { %v1987_v62 = vadd.f32 %v1986_v23, %v1968_v35  ;;  %v21108_v58 = vld [vmem:[#allocation23_spill] sm:$0xff]  ;;  %v3825_v23 = vmul.f32 %v19673_v54, %v21109_v60  ;;  %v21114_v17 = vld [vmem:[#allocation24_spill] sm:$0xff]  ;;  %v1973_v60 = vmul.f32 %v1927_v2, %v1927_v2 }
 0x812   :  { %v9141_v61 = vadd.f32 %v9102_v56, %v19446_v32  ;;  %v1942_v26 = vadd.f32 %v1941_v18, %v1923_v48  ;;  %v1971_v56 = vmul.f32 %v21106_v45, %v21106_v45  ;;  %vm73_vm3 = vcmp.lt.s32.totalorder %v53_v13, 25 }
 0x813   :  { %v1988_v32 = vadd.f32 %v1987_v62, %v1969_v16  ;;  %v1972_v18 = vmul.f32 %v21111_v46, %v21111_v46  ;;  %v3868_v13 = vmul.f32 %v21113_v52, %v21113_v52  ;;  %v3870_v21 = vmul.f32 %v21114_v17, %v21114_v17 }
 0x814   :  { %v19710_v30 = vadd.f32 %v9488_v9, %v9141_v61  ;;  %v9045_v53 = vpop.f32.mrf.mxu2  ;;  %v3869_v9 = vmul.f32 %v21108_v58, %v21108_v58  ;;  %v1943_v48 = vadd.f32 %v1942_v26, %v21105_v36  ;;  %v19737_v26 = vsel %vm73_vm3, 1.0, %v21103_v39 }
 0x815   :  { %v1989_v16 = vadd.f32 %v1988_v32, %v1970_v11  ;;  %v3842_v11 = vadd.f32 %v21108_v58, %v21113_v52  ;;  %v3871_v36 = vmul.f32 %v3825_v23, %v3825_v23  ;;  %v21120_v52 = vld [vmem:[#allocation27_spill] sm:$0xff] }
 0x816   :  { %21104 = vst [vmem:[#allocation93_spill] sm:$0xff] %v19710_v30  ;;  %v19723_v61 = vpop.f32.mrf.mxu0  ;;  %v3888_v32 = vadd.f32 %v3869_v9, %v3868_v13 }
 0x817   :  { %v9104_v10 = vpop.f32.mrf.mxu3  ;;  %21110 = vst [vmem:[#allocation94_spill] sm:$0xff] %v19723_v61  ;;  %v19728_v62 = vpop.f32.mrf.mxu1 }
 0x818   :  { %v9105_v35 = vadd.f32 %v9104_v10, %v9045_v53  ;;  %21112 = vst [vmem:[#allocation95_spill] sm:$0xff] %v19728_v62  ;;  %v1944_v53 = vadd.f32 %v1943_v48, %v21106_v45  ;;  %v1990_v10 = vadd.f32 %v1989_v16, %v1971_v56  ;;  %v3843_v56 = vadd.f32 %v3842_v11, %v21114_v17  ;;  %v21117_v16 = vld [vmem:[#allocation26_spill] sm:$0xff]  ;;  %v21121_v11 = vld [vmem:[#allocation29_spill] sm:$0xff] }
 0x819   :  { %v3889_v48 = vadd.f32 %v3888_v32, %v3870_v21  ;;  %v3872_v45 = vmul.f32 %v21117_v16, %v21117_v16  ;;  %v3873_v21 = vmul.f32 %v21120_v52, %v21120_v52  ;;  %v3829_v32 = vmul.f32 %v19690_v28, %v21121_v11 }
 0x81a   :  { %v9142_v6 = vadd.f32 %v9105_v35, %v19449_v15  ;;  %v1945_v24 = vadd.f32 %v1944_v53, %v21111_v46  ;;  %v1991_v8 = vadd.f32 %v1990_v10, %v1972_v18  ;;  %v1974_v15 = vmul.f32 %v21116_v44, %v21116_v44  ;;  %v21119_v53 = vld [vmem:[#allocation17_spill] sm:$0xff] }
 0x81b   :  { %v37_v35 = vadd.s32 152, %v19664_v7  ;;  %v1931_v18 = vmul.f32 %v19737_v26, %v21119_v53  ;;  %v3844_v58 = vadd.f32 %v3843_v56, %v3825_v23  ;;  %v3890_v7 = vadd.f32 %v3889_v48, %v3871_v36  ;;  %v21125_v56 = vld [vmem:[#allocation28_spill] sm:$0xff] }
 0x81c   :  { %v19741_v57 = vadd.f32 %v9491_v27, %v9142_v6  ;;  %v19750_v47 = vpop.f32.mrf.mxu2  ;;  %v1946_v9 = vadd.f32 %v1945_v24, %v1927_v2  ;;  %v1992_v13 = vadd.f32 %v1991_v8, %v1973_v60  ;;  %v21118_v6 = vld [vmem:[#allocation15_spill] sm:$0xff]  ;;  %v21123_v2 = vld [vmem:[#allocation16_spill] sm:$0xff]  ;;  %v3874_v48 = vmul.f32 %v21125_v56, %v21125_v56 }
 0x81d   :  { %v1975_v27 = vmul.f32 %v21118_v6, %v21118_v6  ;;  %v1976_v60 = vmul.f32 %v21123_v2, %v21123_v2  ;;  %v57_v46 = vand.u32 31, %v37_v35  ;;  %v3845_v23 = vadd.f32 %v3844_v58, %v21117_v16  ;;  %v21128_v58 = vld [vmem:[#allocation18_spill] sm:$0xff] }
 0x81e   :  { %21115 = vst [vmem:[#allocation96_spill] sm:$0xff] %v19741_v57  ;;  %v19762_v17 = vpop.f32.mrf.mxu0  ;;  %v1947_v24 = vadd.f32 %v1946_v9, %v21116_v44  ;;  %v1993_v8 = vadd.f32 %v1992_v13, %v1974_v15  ;;  %v3891_v36 = vadd.f32 %v3890_v7, %v3872_v45  ;;  %v1977_v1 = vmul.f32 %v1931_v18, %v1931_v18 }
 0x81f   :  { %v19756_v10 = vpop.f32.mrf.mxu3  ;;  %21122 = vst [vmem:[#allocation97_spill] sm:$0xff] %v19762_v17  ;;  %v19767_v53 = vpop.f32.mrf.mxu1  ;;  %v3846_v57 = vadd.f32 %v3845_v23, %v21120_v52  ;;  %v3875_v15 = vmul.f32 %v3829_v32, %v3829_v32  ;;  %vm19775_vm4 = vcmp.lt.s32.totalorder %v57_v46, 25  ;;  %v1978_v45 = vmul.f32 %v21128_v58, %v21128_v58  ;;  %v21131_v52 = vld [vmem:[#allocation31_spill] sm:$0xff] }
 0x820   :  { %21124 = vst [vmem:[#allocation98_spill] sm:$0xff] %v19767_v53  ;;  %v1948_v22 = vadd.f32 %v1947_v24, %v21118_v6  ;;  %v1994_v11 = vadd.f32 %v1993_v8, %v1975_v27  ;;  %v3892_v9 = vadd.f32 %v3891_v36, %v3873_v21  ;;  %v21129_v24 = vld [vmem:[#allocation30_spill] sm:$0xff]  ;;  %v21130_v36 = vld [vmem:[#allocation19_spill] sm:$0xff]  ;;  %v21132_v6 = vld [vmem:[#allocation33_spill] sm:$0xff] }
 0x821   :  { %v3847_v7 = vadd.f32 %v3846_v57, %v21125_v56  ;;  %v3876_v27 = vmul.f32 %v21129_v24, %v21129_v24  ;;  %v3833_v57 = vmul.f32 %v19708_v25, %v21132_v6  ;;  %v21136_v6 = vld [vmem:[#allocation43_spill] sm:$0xff] }
 0x822   :  { %v1949_v13 = vadd.f32 %v1948_v22, %v21123_v2  ;;  %v1995_v44 = vadd.f32 %v1994_v11, %v1976_v60  ;;  %v3893_v16 = vadd.f32 %v3892_v9, %v3874_v48  ;;  %v1979_v22 = vmul.f32 %v21130_v36, %v21130_v36 }
 0x823   :  { %v3848_v11 = vadd.f32 %v3847_v7, %v3829_v32  ;;  %v3877_v2 = vmul.f32 %v21131_v52, %v21131_v52  ;;  %v5775_v56 = vmul.f32 %v21136_v6, %v21136_v6 }
 0x824   :  { %v19784_v8 = vpop.f32.mrf.mxu2  ;;  %v1950_v21 = vadd.f32 %v1949_v13, %v1931_v18  ;;  %v1996_v23 = vadd.f32 %v1995_v44, %v1977_v1  ;;  %v3894_v60 = vadd.f32 %v3893_v16, %v3875_v15  ;;  %v19800_v1 = vsel %vm19775_vm4, 1.0, %v21103_v39  ;;  %v21135_v15 = vld [vmem:[#allocation32_spill] sm:$0xff] }
 0x825   :  { %v3849_v16 = vadd.f32 %v3848_v11, %v21129_v24  ;;  %v3878_v13 = vmul.f32 %v21135_v15, %v21135_v15 }
 0x826   :  { %v19794_v48 = vpop.f32.mrf.mxu0  ;;  %v1951_v9 = vadd.f32 %v1950_v21, %v21128_v58  ;;  %v1997_v18 = vadd.f32 %v1996_v23, %v1978_v45  ;;  %v3895_v32 = vadd.f32 %v3894_v60, %v3876_v27  ;;  %v21137_v21 = vld [vmem:[#allocation45_spill] sm:$0xff]  ;;  %v21139_v27 = vld [vmem:[#allocation42_spill] sm:$0xff] }
 0x827   :  { %v19788_v46 = vpop.f32.mrf.mxu3  ;;  %21133 = vst [vmem:[#allocation99_spill] sm:$0xff] %v19794_v48  ;;  %v19802_v44 = vpop.f32.mrf.mxu1  ;;  %v5731_v58 = vmul.f32 %v19673_v54, %v21137_v21  ;;  %v3850_v39 = vadd.f32 %v3849_v16, %v21131_v52  ;;  %v21138_v45 = vld [vmem:[#allocation21_spill] sm:$0xff]  ;;  %v5774_v11 = vmul.f32 %v21139_v27, %v21139_v27  ;;  %v5748_v60 = vadd.f32 %v21136_v6, %v21139_v27  ;;  %v21142_v16 = vld [vmem:[#allocation34_spill] sm:$0xff] }
 0x828   :  { %21134 = vst [vmem:[#allocation100_spill] sm:$0xff] %v19802_v44  ;;  %v1952_v7 = vadd.f32 %v1951_v9, %v21130_v36  ;;  %v1998_v35 = vadd.f32 %v1997_v18, %v1979_v22  ;;  %v3896_v48 = vadd.f32 %v3895_v32, %v3877_v2  ;;  %v3879_v44 = vmul.f32 %v3833_v57, %v3833_v57  ;;  %v21140_v9 = vld [vmem:[#allocation44_spill] sm:$0xff] }
 0x829   :  { %v1935_v23 = vmul.f32 %v19800_v1, %v21138_v45  ;;  %v5776_v24 = vmul.f32 %v21140_v9, %v21140_v9  ;;  %v21141_v36 = vld [vmem:[#allocation20_spill] sm:$0xff]  ;;  %v3851_v22 = vadd.f32 %v3850_v39, %v21135_v15  ;;  %v3880_v2 = vmul.f32 %v21142_v16, %v21142_v16 }
 0x82a   :  { %v1953_v55 = vadd.f32 %v1952_v7, %v21141_v36  ;;  %v3897_v18 = vadd.f32 %v3896_v48, %v3878_v13  ;;  %v1980_v21 = vmul.f32 %v21141_v36, %v21141_v36  ;;  %v5794_v52 = vadd.f32 %v5775_v56, %v5774_v11  ;;  %v21143_v7 = vld [vmem:[#allocation35_spill] sm:$0xff]  ;;  %v21144_v48 = vld [vmem:[#allocation37_spill] sm:$0xff]  ;;  %v21146_v56 = vld [vmem:[#allocation46_spill] sm:$0xff] }
 0x82b   :  { %v5749_v45 = vadd.f32 %v5748_v60, %v21140_v9  ;;  %v5777_v6 = vmul.f32 %v5731_v58, %v5731_v58  ;;  %v3852_v59 = vadd.f32 %v3851_v22, %v3833_v57  ;;  %v3881_v39 = vmul.f32 %v21143_v7, %v21143_v7  ;;  %v21148_v22 = vld [vmem:[#allocation36_spill] sm:$0xff] }
 0x82c   :  { %v19825_v32 = vpop.f32.mrf.mxu2  ;;  %v3898_v53 = vadd.f32 %v3897_v18, %v3879_v44  ;;  %v3837_v13 = vmul.f32 %v19737_v26, %v21144_v48  ;;  %v19838_v17 = vadd.f32 %v1953_v55, %v1935_v23  ;;  %v5795_v62 = vadd.f32 %v5794_v52, %v5776_v24  ;;  %v21150_v52 = vld [vmem:[#allocation49_spill] sm:$0xff] }
 0x82d   :  { %v5750_v36 = vadd.f32 %v5749_v45, %v5731_v58  ;;  %v5778_v11 = vmul.f32 %v21146_v56, %v21146_v56  ;;  %v1981_v9 = vmul.f32 %v1935_v23, %v1935_v23  ;;  %v3853_v57 = vadd.f32 %v3852_v59, %v21142_v16 }
 0x82e   :  { %v19836_v15 = vpop.f32.mrf.mxu0  ;;  %v3899_v44 = vadd.f32 %v3898_v53, %v3880_v2  ;;  %v3882_v18 = vmul.f32 %v21148_v22, %v21148_v22  ;;  %v5796_v61 = vadd.f32 %v5795_v62, %v5777_v6  ;;  %v5735_v58 = vmul.f32 %v19690_v28, %v21150_v52  ;;  %v21151_v53 = vld [vmem:[#allocation48_spill] sm:$0xff] }
 0x82f   :  { %v19830_v27 = vpop.f32.mrf.mxu3  ;;  %21145 = vst [vmem:[#allocation101_spill] sm:$0xff] %v19836_v15  ;;  %v19842_v60 = vpop.f32.mrf.mxu1  ;;  %v5751_v48 = vadd.f32 %v5750_v36, %v21146_v56  ;;  %v21149_v15 = vld [vmem:[#allocation47_spill] sm:$0xff]  ;;  %v3854_v24 = vadd.f32 %v3853_v57, %v21143_v7  ;;  %v1999_v23 = vadd.f32 %v1998_v35, %v1980_v21  ;;  %v5780_v2 = vmul.f32 %v21151_v53, %v21151_v53 }
 0x830   :  { %21147 = vst [vmem:[#allocation102_spill] sm:$0xff] %v19842_v60  ;;  %v5779_v55 = vmul.f32 %v21149_v15, %v21149_v15  ;;  %v3900_v45 = vadd.f32 %v3899_v44, %v3881_v39  ;;  %v3883_v60 = vmul.f32 %v3837_v13, %v3837_v13  ;;  %v5797_v37 = vadd.f32 %v5796_v61, %v5778_v11 }
 0x831   :  { %v5752_v59 = vadd.f32 %v5751_v48, %v21149_v15  ;;  %v3855_v6 = vadd.f32 %v3854_v24, %v21148_v22  ;;  %v19860_v16 = vadd.f32 %v1999_v23, %v1981_v9  ;;  %v5781_v57 = vmul.f32 %v5735_v58, %v5735_v58  ;;  %v21154_v48 = vld [vmem:[#allocation63_spill] sm:$0xff] }
 0x832   :  { %v3901_v36 = vadd.f32 %v3900_v45, %v3882_v18  ;;  %v5798_v52 = vadd.f32 %v5797_v37, %v5779_v55  ;;  %v7681_v11 = vmul.f32 %v21154_v48, %v21154_v48  ;;  %v7637_v44 = vmul.f32 %v19673_v54, %v19056_v3  ;;  %v21156_v18 = vld [vmem:[#allocation38_spill] sm:$0xff] }
 0x833   :  { %v5753_v39 = vadd.f32 %v5752_v59, %v21151_v53  ;;  %v3856_v61 = vadd.f32 %v3855_v6, %v3837_v13  ;;  %v3884_v9 = vmul.f32 %v21156_v18, %v21156_v18  ;;  %v21157_v55 = vld [vmem:[#allocation50_spill] sm:$0xff]  ;;  %v21159_v13 = vld [vmem:[#allocation39_spill] sm:$0xff]  ;;  %v21161_v53 = vld [vmem:[#allocation64_spill] sm:$0xff] }
 0x834   :  { %v19858_v56 = vpop.f32.mrf.mxu2  ;;  %v3902_v35 = vadd.f32 %v3901_v36, %v3883_v60  ;;  %v5799_v45 = vadd.f32 %v5798_v52, %v5780_v2  ;;  %v5782_v23 = vmul.f32 %v21157_v55, %v21157_v55  ;;  %v3885_v60 = vmul.f32 %v21159_v13, %v21159_v13  ;;  %v21160_v6 = vld [vmem:[#allocation62_spill] sm:$0xff] }
 0x835   :  { %21152 = vst [vmem:[#allocation103_spill] sm:$0xff] %v19858_v56  ;;  %v5754_v37 = vadd.f32 %v5753_v39, %v5735_v58  ;;  %v7680_v36 = vmul.f32 %v21160_v6, %v21160_v6  ;;  %v7654_v62 = vadd.f32 %v21154_v48, %v21160_v6  ;;  %v7682_v15 = vmul.f32 %v21161_v53, %v21161_v53  ;;  %v21162_v58 = vld [vmem:[#allocation51_spill] sm:$0xff]  ;;  %v21163_v39 = vld [vmem:[#allocation53_spill] sm:$0xff] }
 0x836   :  { %v19869_v24 = vpop.f32.mrf.mxu0  ;;  %v5800_v3 = vadd.f32 %v5799_v45, %v5781_v57  ;;  %v5783_v2 = vmul.f32 %v21162_v58, %v21162_v58  ;;  %v5739_v22 = vmul.f32 %v19708_v25, %v21163_v39  ;;  %v3857_v7 = vadd.f32 %v3856_v61, %v21156_v18 }
 0x837   :  { %v19863_v21 = vpop.f32.mrf.mxu3  ;;  %21155 = vst [vmem:[#allocation105_spill] sm:$0xff] %v19869_v24  ;;  %v19875_v59 = vpop.f32.mrf.mxu1  ;;  %v5755_v52 = vadd.f32 %v5754_v37, %v21157_v55  ;;  %v7655_v24 = vadd.f32 %v7654_v62, %v21161_v53  ;;  %v3903_v56 = vadd.f32 %v3902_v35, %v3884_v9  ;;  %v5784_v57 = vmul.f32 %v21164_v29, %v21164_v29 }
 0x838   :  { %21153 = vst [vmem:[#allocation104_spill] sm:$0xff] %v19863_v21  ;;  %v7683_v21 = vmul.f32 %v7637_v44, %v7637_v44  ;;  %v5801_v48 = vadd.f32 %v5800_v3, %v5782_v23  ;;  %v3858_v45 = vadd.f32 %v3857_v7, %v21159_v13  ;;  %v7684_v39 = vmul.f32 %v21165_v19, %v21165_v19 }
 0x839   :  { %21158 = vst [vmem:[#allocation38_spill] sm:$0xff] %v19875_v59  ;;  %v7700_v59 = vadd.f32 %v7681_v11, %v7680_v36  ;;  %v5756_v6 = vadd.f32 %v5755_v52, %v21162_v58  ;;  %v7656_v55 = vadd.f32 %v7655_v24, %v7637_v44  ;;  %v3904_v61 = vadd.f32 %v3903_v56, %v3885_v60  ;;  %v21166_v24 = vld [vmem:[#allocation41_spill] sm:$0xff]  ;;  %v21167_v60 = vld [vmem:[#allocation54_spill] sm:$0xff]  ;;  %v21169_v58 = vld [vmem:[#allocation55_spill] sm:$0xff] }
 0x83a   :  { %v5802_v11 = vadd.f32 %v5801_v48, %v5783_v2  ;;  %v5785_v35 = vmul.f32 %v5739_v22, %v5739_v22  ;;  %v7685_v7 = vmul.f32 %v19102_v63, %v19102_v63  ;;  %v3841_v56 = vmul.f32 %v19800_v1, %v21166_v24  ;;  %v21171_v24 = vld [vmem:[#allocation56_spill] sm:$0xff] }
 0x83b   :  { %v7701_v37 = vadd.f32 %v7700_v59, %v7682_v15  ;;  %v5757_v62 = vadd.f32 %v5756_v6, %v21164_v29  ;;  %v7657_v23 = vadd.f32 %v7656_v55, %v21165_v19  ;;  %v7641_v15 = vmul.f32 %v19690_v28, %v19130_v33 }
 0x83c   :  { %v19898_v30 = vpop.f32.mrf.mxu2  ;;  %v5803_v48 = vadd.f32 %v5802_v11, %v5784_v57  ;;  %v5786_v6 = vmul.f32 %v21167_v60, %v21167_v60  ;;  %v21170_v57 = vld [vmem:[#allocation57_spill] sm:$0xff]  ;;  %v7688_v13 = vmul.f32 %v19143_v20, %v19143_v20 }
 0x83d   :  { %v7702_v9 = vadd.f32 %v7701_v37, %v7683_v21  ;;  %v5758_v59 = vadd.f32 %v5757_v62, %v5739_v22  ;;  %v21168_v21 = vld [vmem:[#allocation40_spill] sm:$0xff]  ;;  %v7658_v2 = vadd.f32 %v7657_v23, %v19102_v63  ;;  %v7686_v37 = vmul.f32 %v19113_v5, %v19113_v5 }
 0x83e   :  { %v19908_v44 = vpop.f32.mrf.mxu0  ;;  %v3886_v55 = vmul.f32 %v21168_v21, %v21168_v21  ;;  %v5804_v53 = vadd.f32 %v5803_v48, %v5785_v35  ;;  %v5787_v22 = vmul.f32 %v21169_v58, %v21169_v58  ;;  %v5743_v11 = vmul.f32 %v19737_v26, %v21170_v57 }
 0x83f   :  { %v19901_v3 = vpop.f32.mrf.mxu3  ;;  %v19914_v36 = vpop.f32.mrf.mxu1  ;;  %v7703_v52 = vadd.f32 %v7702_v9, %v7684_v39  ;;  %v5759_v29 = vadd.f32 %v5758_v59, %v21167_v60  ;;  %v3859_v62 = vadd.f32 %v3858_v45, %v21168_v21  ;;  %v7659_v19 = vadd.f32 %v7658_v2, %v19113_v5 }
 0x840   :  { %v7687_v39 = vmul.f32 %v7641_v15, %v7641_v15  ;;  %v3887_v9 = vmul.f32 %v3841_v56, %v3841_v56  ;;  %v5805_v23 = vadd.f32 %v5804_v53, %v5786_v6  ;;  %v5788_v35 = vmul.f32 %v21171_v24, %v21171_v24 }
 0x841   :  { %v7704_v33 = vadd.f32 %v7703_v52, %v7685_v7  ;;  %v5760_v63 = vadd.f32 %v5759_v29, %v21169_v58  ;;  %v3905_v48 = vadd.f32 %v3904_v61, %v3886_v55  ;;  %v7660_v60 = vadd.f32 %v7659_v19, %v7641_v15 }
 0x842   :  { %v19935_v45 = vadd.f32 %v3859_v62, %v3841_v56  ;;  %v5806_v7 = vadd.f32 %v5805_v23, %v5787_v22  ;;  %v5789_v2 = vmul.f32 %v5743_v11, %v5743_v11  ;;  %v7645_v19 = vmul.f32 %v19708_v25, %v19202_v41 }
 0x843   :  { %v7705_v59 = vadd.f32 %v7704_v33, %v7686_v37  ;;  %v5761_v52 = vadd.f32 %v5760_v63, %v21171_v24  ;;  %v7661_v6 = vadd.f32 %v7660_v60, %v19143_v20  ;;  %v7689_v33 = vmul.f32 %v19166_v38, %v19166_v38  ;;  %v21172_v37 = vld [vmem:[#allocation58_spill] sm:$0xff]  ;;  %v21174_v24 = vld [vmem:[#allocation59_spill] sm:$0xff] }
 0x844   :  { %v19933_v57 = vpop.f32.mrf.mxu2  ;;  %v19947_v15 = vadd.f32 %v3905_v48, %v3887_v9  ;;  %v5807_v56 = vadd.f32 %v5806_v7, %v5788_v35  ;;  %v5790_v63 = vmul.f32 %v21172_v37, %v21172_v37  ;;  %v21173_v23 = vrot.slane %v19838_v17, 4 }
 0x845   :  { %v7706_v29 = vadd.f32 %v7705_v59, %v7687_v39  ;;  %v5762_v55 = vadd.f32 %v5761_v52, %v5743_v11  ;;  %v7662_v60 = vadd.f32 %v7661_v6, %v19166_v38  ;;  %v7690_v39 = vmul.f32 %v19179_v43, %v19179_v43 }
 0x846   :  { %v19945_v61 = vpop.f32.mrf.mxu0  ;;  %v19959_v59 = vadd.f32 %v21173_v23, %v19838_v17  ;;  %v5808_v35 = vadd.f32 %v5807_v56, %v5789_v2  ;;  %v7691_v52 = vmul.f32 %v7645_v19, %v7645_v19  ;;  %v5791_v17 = vmul.f32 %v21174_v24, %v21174_v24  ;;  %v21175_v23 = vld [vmem:[#allocation61_spill] sm:$0xff] }
 0x847   :  { %v19938_v53 = vpop.f32.mrf.mxu3  ;;  %v19951_v22 = vpop.f32.mrf.mxu1  ;;  %v7707_v62 = vadd.f32 %v7706_v29, %v7688_v13  ;;  %v5763_v11 = vadd.f32 %v5762_v55, %v21172_v37  ;;  %v7663_v13 = vadd.f32 %v7662_v60, %v19179_v43  ;;  %v5747_v9 = vmul.f32 %v19800_v1, %v21175_v23 }
 0x848   :  { %v5809_v6 = vadd.f32 %v5808_v35, %v5790_v63  ;;  %v7692_v55 = vmul.f32 %v19209_v49, %v19209_v49  ;;  %v9587_v35 = vmul.f32 %v19656_v34, %v19656_v34  ;;  %v9586_v23 = vmul.f32 %v19635_v31, %v19635_v31 }
 0x849   :  { %v7708_v7 = vadd.f32 %v7707_v62, %v7689_v33  ;;  %v5764_v58 = vadd.f32 %v5763_v11, %v21174_v24  ;;  %v7664_v56 = vadd.f32 %v7663_v13, %v7645_v19  ;;  %v21176_v62 = vld [vmem:[#allocation60_spill] sm:$0xff]  ;;  %v9543_v11 = vmul.f32 %v19673_v54, %v19662_v0 }
 0x84a   :  { %v5792_v63 = vmul.f32 %v21176_v62, %v21176_v62  ;;  %v5810_v13 = vadd.f32 %v5809_v6, %v5791_v17  ;;  %v9588_v54 = vmul.f32 %v19659_v42, %v19659_v42  ;;  %v7694_v0 = vmul.f32 %v19245_v14, %v19245_v14 }
 0x84b   :  { %v7709_v2 = vadd.f32 %v7708_v7, %v7690_v39  ;;  %v5765_v60 = vadd.f32 %v5764_v58, %v21176_v62  ;;  %v7665_v19 = vadd.f32 %v7664_v56, %v19209_v49  ;;  %v7693_v39 = vmul.f32 %v19232_v51, %v19232_v51 }
 0x84c   :  { %v19973_v33 = vpop.f32.mrf.mxu2  ;;  %v7649_v7 = vmul.f32 %v19737_v26, %v19268_v40  ;;  %v9560_v62 = vadd.f32 %v19656_v34, %v19635_v31  ;;  %v20002_v6 = vadd.f32 %v5810_v13, %v5792_v63  ;;  %v9606_v17 = vadd.f32 %v9587_v35, %v9586_v23 }
 0x84d   :  { %v7710_v48 = vadd.f32 %v7709_v2, %v7691_v52  ;;  %v19997_v2 = vadd.f32 %v5765_v60, %v5747_v9  ;;  %v7666_v24 = vadd.f32 %v7665_v19, %v19232_v51  ;;  %v9589_v40 = vmul.f32 %v9543_v11, %v9543_v11 }
 0x84e   :  { %v19987_v58 = vpop.f32.mrf.mxu0  ;;  %v9561_v37 = vadd.f32 %v9560_v62, %v19659_v42  ;;  %v7695_v49 = vmul.f32 %v7649_v7, %v7649_v7  ;;  %v9107_v60 = vadd.f32 %v19756_v10, %v19750_v47  ;;  %v9607_v41 = vadd.f32 %v9606_v17, %v9588_v54 }
 0x84f   :  { %v9121_v29 = vpop.f32.mrf.mxu3  ;;  %v19995_v52 = vpop.f32.mrf.mxu1  ;;  %v7711_v56 = vadd.f32 %v7710_v48, %v7692_v55  ;;  %v7667_v31 = vadd.f32 %v7666_v24, %v19245_v14  ;;  %v9590_v55 = vmul.f32 %v19668_v50, %v19668_v50  ;;  %v9112_v63 = vadd.f32 %v19830_v27, %v19825_v32  ;;  %v21177_v32 = vld [vmem:[#allocation93_spill] sm:$0xff] }
 0x850   :  { %v9562_v48 = vadd.f32 %v9561_v37, %v9543_v11  ;;  %v20013_v35 = vmul.f32 %v5747_v9, %v5747_v9  ;;  %v9110_v24 = vadd.f32 %v19788_v46, %v19784_v8  ;;  %v7696_v47 = vmul.f32 %v19275_v12, %v19275_v12 }
 0x851   :  { %v7712_v34 = vadd.f32 %v7711_v56, %v7693_v39  ;;  %v7668_v39 = vadd.f32 %v7667_v31, %v7649_v7  ;;  %v9608_v10 = vadd.f32 %v9607_v41, %v9589_v40  ;;  %v9591_v27 = vmul.f32 %v19675_v4, %v19675_v4  ;;  %v21179_v7 = vld [vmem:[#allocation77_spill] sm:$0xff]  ;;  %v21180_v41 = vld [vmem:[#allocation92_spill] sm:$0xff]  ;;  %v21181_v56 = vld [vmem:[#allocation94_spill] sm:$0xff] }
 0x852   :  { %v9563_v37 = vadd.f32 %v9562_v48, %v19668_v50  ;;  %v9547_v9 = vmul.f32 %v19690_v28, %v21177_v32  ;;  %v9145_v54 = vadd.f32 %v9112_v63, %v21179_v7  ;;  %v9592_v40 = vmul.f32 %v21180_v41, %v21180_v41  ;;  %v21183_v48 = vld [vmem:[#allocation97_spill] sm:$0xff]  ;;  %v21185_v50 = vld [vmem:[#allocation76_spill] sm:$0xff] }
 0x853   :  { %v7713_v62 = vadd.f32 %v7712_v34, %v7694_v0  ;;  %v21178_v34 = vld [vmem:[#allocation75_spill] sm:$0xff]  ;;  %v7669_v8 = vadd.f32 %v7668_v39, %v19275_v12  ;;  %v9609_v46 = vadd.f32 %v9608_v10, %v9590_v55  ;;  %v9144_v28 = vadd.f32 %v9110_v24, %v21185_v50  ;;  %v21186_v39 = vld [vmem:[#allocation72_spill] sm:$0xff] }
 0x854   :  { %v9065_v19 = vpop.f32.mrf.mxu2  ;;  %v9143_v0 = vadd.f32 %v9107_v60, %v21178_v34  ;;  %v9564_v31 = vadd.f32 %v9563_v37, %v19675_v4  ;;  %v7697_v55 = vmul.f32 %v21186_v39, %v21186_v39  ;;  %v21187_v10 = vld [vmem:[#allocation99_spill] sm:$0xff]  ;;  %v21188_v37 = vld [vmem:[#allocation100_spill] sm:$0xff] }
 0x855   :  { %v7714_v13 = vadd.f32 %v7713_v62, %v7695_v49  ;;  %v21182_v49 = vld [vmem:[#allocation95_spill] sm:$0xff]  ;;  %v21184_v62 = vld [vmem:[#allocation98_spill] sm:$0xff]  ;;  %v9498_v63 = vadd.f32 %v21188_v37, %v21187_v10  ;;  %v21190_v7 = vld [vmem:[#allocation104_spill] sm:$0xff]  ;;  %v7670_v50 = vadd.f32 %v7669_v8, %v21186_v39 }
 0x856   :  { %v9493_v17 = vadd.f32 %v21182_v49, %v21181_v56  ;;  %v9496_v23 = vadd.f32 %v21184_v62, %v21183_v48  ;;  %v20035_v32 = vpop.f32.mrf.mxu0  ;;  %v21189_v34 = vld [vmem:[#allocation103_spill] sm:$0xff]  ;;  %v9610_v56 = vadd.f32 %v9609_v46, %v9591_v27  ;;  %v9565_v49 = vadd.f32 %v9564_v31, %v21180_v41  ;;  %v21195_v8 = vld [vmem:[#allocation78_spill] sm:$0xff] }
 0x857   :  { %v9124_v11 = vpop.f32.mrf.mxu3  ;;  %v7715_v60 = vadd.f32 %v7714_v13, %v7696_v47  ;;  %v9115_v4 = vadd.f32 %v21190_v7, %v21189_v34  ;;  %v20043_v42 = vpop.f32.mrf.mxu1  ;;  %v9593_v48 = vmul.f32 %v9547_v9, %v9547_v9  ;;  %v20049_v24 = vadd.f32 %v9498_v63, %v9145_v54  ;;  %v21192_v34 = vld [vmem:[#allocation96_spill] sm:$0xff] }
 0x858   :  { %v20046_v62 = vadd.f32 %v9493_v17, %v9143_v0  ;;  %v9117_v47 = vadd.f32 %v19901_v3, %v19898_v30  ;;  %v9122_v13 = vadd.f32 %v9121_v29, %v19973_v33  ;;  %v9611_v10 = vadd.f32 %v9610_v56, %v9592_v40  ;;  %v21193_v0 = vld [vmem:[#allocation101_spill] sm:$0xff]  ;;  %v21194_v17 = vld [vmem:[#allocation102_spill] sm:$0xff] }
 0x859   :  { %21191 = vst [vmem:[#allocation40_spill] sm:$0xff] %v20049_v24  ;;  %v9566_v37 = vadd.f32 %v9565_v49, %v9547_v9  ;;  %v9594_v7 = vmul.f32 %v21192_v34, %v21192_v34  ;;  %v20056_v27 = vadd.f32 %v9496_v23, %v9144_v28  ;;  %v7716_v31 = vadd.f32 %v7715_v60, %v7697_v55  ;;  %v21196_v3 = vld [vmem:[#allocation74_spill] sm:$0xff]  ;;  %v21197_v40 = vld [vmem:[#allocation73_spill] sm:$0xff] }
 0x85a   :  { %v9501_v41 = vadd.f32 %v21194_v17, %v21193_v0  ;;  %v9146_v54 = vadd.f32 %v9115_v4, %v21195_v8  ;;  %v9120_v63 = vadd.f32 %v19938_v53, %v19933_v57  ;;  %v7653_v29 = vmul.f32 %v19800_v1, %v21196_v3  ;;  %v21198_v4 = vld [vmem:[#allocation79_spill] sm:$0xff]  ;;  %v21199_v56 = vld [vmem:[#allocation81_spill] sm:$0xff] }
 0x85b   :  { %v9612_v33 = vadd.f32 %v9611_v10, %v9593_v48  ;;  %v9567_v9 = vadd.f32 %v9566_v37, %v21192_v34  ;;  %v9595_v23 = vmul.f32 %v20046_v62, %v20046_v62  ;;  %v7698_v28 = vmul.f32 %v21197_v40, %v21197_v40  ;;  %v21200_v10 = vld [vmem:[#allocation105_spill] sm:$0xff]  ;;  %v21201_v37 = vld [vmem:[#allocation38_spill] sm:$0xff]  ;;  %v21202_v34 = vld [vmem:[#allocation80_spill] sm:$0xff] }
 0x85c   :  { %v9067_v46 = vpop.f32.mrf.mxu2  ;;  %v9551_v60 = vmul.f32 %v19708_v25, %v20049_v24  ;;  %v9147_v55 = vadd.f32 %v9117_v47, %v21198_v4  ;;  %v9149_v57 = vadd.f32 %v9122_v13, %v21199_v56  ;;  %v9596_v48 = vmul.f32 %v20056_v27, %v20056_v27 }
 0x85d   :  { %v9613_v53 = vadd.f32 %v9612_v33, %v9594_v7  ;;  %v9568_v49 = vadd.f32 %v9567_v9, %v20046_v62  ;;  %v9503_v0 = vadd.f32 %v21201_v37, %v21200_v10  ;;  %v20079_v17 = vadd.f32 %v9501_v41, %v9146_v54 }
 0x85e   :  { %v9506_v8 = vadd.f32 %v19914_v36, %v19908_v44  ;;  %v9148_v25 = vadd.f32 %v9120_v63, %v21202_v34  ;;  %v9508_v47 = vadd.f32 %v19951_v22, %v19945_v61  ;;  %v7671_v13 = vadd.f32 %v7670_v50, %v21197_v40  ;;  %v9456_v4 = vpop.f32.mrf.mxu0 }
 0x85f   :  { %v9126_v30 = vpop.f32.mrf.mxu3  ;;  %v7699_v7 = vmul.f32 %v7653_v29, %v7653_v29  ;;  %v9614_v33 = vadd.f32 %v9613_v53, %v9595_v23  ;;  %v9125_v9 = vadd.f32 %v9124_v11, %v9065_v19  ;;  %v9569_v56 = vadd.f32 %v9568_v49, %v20056_v27  ;;  %v9515_v54 = vpop.f32.mrf.mxu1  ;;  %v21203_v53 = vld [vmem:[#allocation82_spill] sm:$0xff] }
 0x860   :  { %v9597_v24 = vmul.f32 %v9551_v60, %v9551_v60  ;;  %v20088_v10 = vadd.f32 %v9503_v0, %v9147_v55  ;;  %v20090_v41 = vadd.f32 %v9508_v47, %v9149_v57  ;;  %v5812_v44 = vadd.f32 %v20002_v6, %v20013_v35 }
 0x861   :  { %v7717_v36 = vadd.f32 %v7716_v31, %v7698_v28  ;;  %v7672_v34 = vadd.f32 %v7671_v13, %v7653_v29  ;;  %v9127_v61 = vadd.f32 %v9126_v30, %v9067_v46  ;;  %v9615_v50 = vadd.f32 %v9614_v33, %v9596_v48  ;;  %v21207_v13 = vld [vmem:[#allocation84_spill] sm:$0xff] }
 0x862   :  { %v9570_v63 = vadd.f32 %v9569_v56, %v9551_v60  ;;  %v9598_v19 = vmul.f32 %v20079_v17, %v20079_v17  ;;  %v20096_v11 = vadd.f32 %v9506_v8, %v9148_v25  ;;  %v9511_v57 = vadd.f32 %v19995_v52, %v19987_v58  ;;  %v21206_v60 = vld [vmem:[#allocation83_spill] sm:$0xff] }
 0x863   :  { %v7718_v55 = vadd.f32 %v7717_v36, %v7699_v7  ;;  %v9150_v49 = vadd.f32 %v9125_v9, %v21203_v53  ;;  %v9616_v6 = vadd.f32 %v9615_v50, %v9597_v24  ;;  %v9599_v46 = vmul.f32 %v20088_v10, %v20088_v10 }
 0x864   :  { %v9070_v22 = vpop.f32.mrf.mxu2  ;;  %v9571_v35 = vadd.f32 %v9570_v63, %v20079_v17  ;;  %v9555_v31 = vmul.f32 %v19737_v26, %v20090_v41  ;;  %v21204_v30 = vrot.slane %v19935_v45, 4  ;;  %v21205_v28 = vrot.slane %v19947_v15, 4 }
 0x865   :  { %v5813_v52 = vrot.slane %v5812_v44, 4  ;;  %v9151_v48 = vadd.f32 %v9127_v61, %v21206_v60  ;;  %v7673_v24 = vrot.slane %v7672_v34, 4  ;;  %v9617_v0 = vadd.f32 %v9616_v6, %v9598_v19 }
 0x866   :  { %v3862_v29 = vadd.f32 %v21204_v30, %v19935_v45  ;;  %v3908_v58 = vadd.f32 %v21205_v28, %v19947_v15  ;;  %v9572_v8 = vadd.f32 %v9571_v35, %v20088_v10  ;;  %v9600_v25 = vmul.f32 %v20096_v11, %v20096_v11 }
 0x867   :  { %v9129_v23 = vpop.f32.mrf.mxu3  ;;  %v20116_v47 = vadd.f32 %v9511_v57, %v9150_v49  ;;  %v9513_v26 = vadd.f32 %v20043_v42, %v20035_v32  ;;  %v9516_v45 = vadd.f32 %v9515_v54, %v9456_v4  ;;  %v21208_v15 = vrot.slane %v19997_v2, 4  ;;  %v9458_v42 = vpop.f32.mrf.mxu0 }
 0x868   :  { %v9130_v37 = vadd.f32 %v9129_v23, %v9070_v22  ;;  %v7719_v9 = vrot.slane %v7718_v55, 4  ;;  %v9618_v56 = vadd.f32 %v9617_v0, %v9599_v46  ;;  %v9601_v36 = vmul.f32 %v9555_v31, %v9555_v31 }
 0x869   :  { %v5768_v33 = vadd.f32 %v21208_v15, %v19997_v2  ;;  %v1957_v61 = vrot.slane %v19959_v59, 2  ;;  %v21209_v22 = vrot.slane %v19860_v16, 4  ;;  %v9573_v63 = vadd.f32 %v9572_v8, %v20096_v11  ;;  %v9517_v2 = vpop.f32.mrf.mxu1 }
 0x86a   :  { %v9152_v7 = vadd.f32 %v9130_v37, %v21207_v13  ;;  %v20129_v19 = vadd.f32 %v9513_v26, %v9151_v48  ;;  %v3863_v4 = vrot.slane %v3862_v29, 2  ;;  %v5814_v54 = vadd.f32 %v5813_v52, %v5812_v44  ;;  %v21210_v52 = vld [vmem:[#allocation85_spill] sm:$0xff] }
 0x86b   :  { %v2002_v50 = vadd.f32 %v21209_v22, %v19860_v16  ;;  %v7674_v23 = vadd.f32 %v7673_v24, %v7672_v34  ;;  %v9619_v57 = vadd.f32 %v9618_v56, %v9600_v25  ;;  %v9574_v49 = vadd.f32 %v9573_v63, %v9555_v31 }
 0x86c   :  { %v9072_v32 = vpop.f32.mrf.mxu2  ;;  %v9602_v37 = vmul.f32 %v20116_v47, %v20116_v47  ;;  %v20133_v6 = vadd.f32 %v9516_v45, %v9152_v7  ;;  %v3909_v16 = vrot.slane %v3908_v58, 2  ;;  %v5769_v46 = vrot.slane %v5768_v33, 2 }
 0x86d   :  { %v7720_v30 = vadd.f32 %v7719_v9, %v7718_v55  ;;  %v9620_v28 = vadd.f32 %v9619_v57, %v9601_v36  ;;  %v9575_v60 = vadd.f32 %v9574_v49, %v20116_v47  ;;  %v9603_v44 = vmul.f32 %v20129_v19, %v20129_v19 }
 0x86e   :  { %v9518_v34 = vadd.f32 %v9517_v2, %v9458_v42  ;;  %v2003_v24 = vrot.slane %v2002_v50, 2  ;;  %v3864_v31 = vadd.f32 %v3863_v4, %v3862_v29  ;;  %v5815_v0 = vrot.slane %v5814_v54, 2 }
 0x86f   :  { %v9131_v53 = vpop.f32.mrf.mxu3  ;;  %v7675_v8 = vrot.slane %v7674_v23, 2  ;;  %v9621_v25 = vadd.f32 %v9620_v28, %v9602_v37  ;;  %v9576_v26 = vadd.f32 %v9575_v60, %v20129_v19  ;;  %v9604_v45 = vmul.f32 %v20133_v6, %v20133_v6 }
 0x870   :  { %v9132_v35 = vadd.f32 %v9131_v53, %v9072_v32  ;;  %v1958_v13 = vadd.f32 %v1957_v61, %v19959_v59  ;;  %v3910_v7 = vadd.f32 %v3909_v16, %v3908_v58  ;;  %v5770_v15 = vadd.f32 %v5769_v46, %v5768_v33 }
 0x871   :  { %v7721_v9 = vrot.slane %v7720_v30, 2  ;;  %v9622_v56 = vadd.f32 %v9621_v25, %v9603_v44  ;;  %v9577_v36 = vadd.f32 %v9576_v26, %v20133_v6  ;;  %v2004_v22 = vadd.f32 %v2003_v24, %v2002_v50 }
 0x872   :  { %v9153_v48 = vadd.f32 %v9132_v35, %v21210_v52  ;;  %v3865_v63 = vrot.slane %v3864_v31, 1  ;;  %v5816_v42 = vadd.f32 %v5815_v0, %v5814_v54  ;;  %v7676_v32 = vadd.f32 %v7675_v8, %v7674_v23 }
 0x873   :  { %v9623_v4 = vadd.f32 %v9622_v56, %v9604_v45  ;;  %v1959_v53 = vrot.slane %v1958_v13, 1  ;;  %v3911_v49 = vrot.slane %v3910_v7, 1  ;;  %v5771_v37 = vrot.slane %v5770_v15, 1 }
 0x874   :  { %v20142_v55 = vadd.f32 %v9518_v34, %v9153_v48  ;;  %v7722_v59 = vadd.f32 %v7721_v9, %v7720_v30  ;;  %v2005_v61 = vrot.slane %v2004_v22, 1  ;;  %v3866_v35 = vadd.f32 %v3865_v63, %v3864_v31 }
 0x875   :  { %v5817_v16 = vrot.slane %v5816_v42, 1  ;;  %v7677_v46 = vrot.slane %v7676_v32, 1  ;;  %v3912_v50 = vadd.f32 %v3911_v49, %v3910_v7  ;;  %v5772_v44 = vadd.f32 %v5771_v37, %v5770_v15 }
 0x876   :  { %v9559_v29 = vmul.f32 %v19800_v1, %v20142_v55  ;;  %v1960_v1 = vadd.f32 %v1959_v53, %v1958_v13  ;;  %v7723_v54 = vrot.slane %v7722_v59, 1  ;;  %v2006_v52 = vadd.f32 %v2005_v61, %v2004_v22  ;;  %v9667_v61 = vld [vmem:[%s20874_s2] sm:$0x1] }
 0x877   :  { %v5818_v24 = vadd.f32 %v5817_v16, %v5816_v42  ;;  %v7678_v0 = vadd.f32 %v7677_v46, %v7676_v32  ;;  %v9669_v46 = vld [vmem:[%s20875_s3] sm:$0x1] }
 0x878   :  { %v9578_v57 = vadd.f32 %v9577_v36, %v9559_v29  ;;  %v9605_v2 = vmul.f32 %v9559_v29, %v9559_v29  ;;  %v3867_v48 = vadd.f32 %v3866_v35, %v1960_v1  ;;  %v3913_v25 = vadd.f32 %v3912_v50, %v2006_v52  ;;  %v21211_v50 = vld [vmem:[#allocation2_spill] sm:$0xff] }
 0x879   :  { %v7724_v45 = vadd.f32 %v7723_v54, %v7722_v59  ;;  %v21212_v54 = vld [vmem:[#allocation3_spill] sm:$0xff] }
 0x87a   :  { %v9579_v58 = vrot.slane %v9578_v57, 4  ;;  %v9624_v33 = vadd.f32 %v9623_v4, %v9605_v2  ;;  %v5773_v26 = vadd.f32 %v5772_v44, %v3867_v48  ;;  %v5819_v56 = vadd.f32 %v5818_v24, %v3913_v25  ;;  %v21214_v24 = vld [vmem:[#allocation5_spill] sm:$0xff] }
 0x87c   :  { %v9580_v28 = vadd.f32 %v9579_v58, %v9578_v57  ;;  %v9625_v60 = vrot.slane %v9624_v33, 4  ;;  %v7679_v36 = vadd.f32 %v7678_v0, %v5773_v26  ;;  %v7725_v7 = vadd.f32 %v7724_v45, %v5819_v56 }
 0x87e   :  { %v9581_v23 = vrot.slane %v9580_v28, 2  ;;  %v9626_v34 = vadd.f32 %v9625_v60, %v9624_v33 }
 0x880   :  { %v9582_v8 = vadd.f32 %v9581_v23, %v9580_v28  ;;  %v9627_v30 = vrot.slane %v9626_v34, 2 }
 0x882   :  { %v9583_v31 = vrot.slane %v9582_v8, 1  ;;  %v9628_v9 = vadd.f32 %v9627_v30, %v9626_v34  ;;  %v21213_v34 = vld [vmem:[#allocation4_spill] sm:$0xff] }
 0x884   :  { %v9584_v29 = vadd.f32 %v9583_v31, %v9582_v8  ;;  %v9629_v13 = vrot.slane %v9628_v9, 1  ;;  %v21215_v8 = vld [vmem:[#allocation6_spill] sm:$0xff]  ;;  %v21216_v31 = vld [vmem:[#allocation7_spill] sm:$0xff] }
 0x886   :  { %v9585_v15 = vadd.f32 %v9584_v29, %v7679_v36  ;;  %v9630_v63 = vadd.f32 %v9629_v13, %v9628_v9  ;;  %v21217_v36 = vld [vmem:[#allocation8_spill] sm:$0xff] }
 0x888   :  { %v9631_v4 = vadd.f32 %v9630_v63, %v7725_v7  ;;  %v9652_v57 = vmul.f32 0.0016, %v9585_v15  ;;  %v21218_v7 = vld [vmem:[#allocation9_spill] sm:$0xff] }
 0x88a   :  { %v9653_v22 = vmul.f32 0.0016, %v9631_v4  ;;  %v9654_v2 = vmul.f32 %v9652_v57, %v9652_v57  ;;  %v21219_v4 = vld [vmem:[#allocation10_spill] sm:$0xff] }
 0x88c   :  { %v9655_v42 = vsub.f32 %v9653_v22, %v9654_v2  ;;  %v21220_v2 = vld [vmem:[#allocation11_spill] sm:$0xff] }
 0x88e   :  { %v9656_v32 = vadd.f32 0.001, %v9655_v42 }
 0x890   :  { %14844 = vrsqrt.f32 %v9656_v32  ;;  %vm9663_vm6 = vweird.f32 %v9656_v32 }
 0x896   :  { %v14845_v53 = vpop.eup %14844 }
 0x897   :  { %v9658_v49 = vmul.f32 %v14845_v53, %v9656_v32  ;;  %vm9664_vm5 = vweird.f32 %v14845_v53 }
 0x898   :  { %vm9665_vm7 = vmor %vm9663_vm6, %vm9664_vm5 }
 0x899   :  { %v9659_v37 = vmul.f32 %v14845_v53, %v9658_v49 }
 0x89b   :  { %v9660_v59 = vmul.f32 0.5, %v9659_v37 }
 0x89d   :  { %v9661_v58 = vsub.f32 1.5, %v9660_v59  ;;  %v21222_v59 = vld [vmem:[#allocation13_spill] sm:$0xff] }
 0x89f   :  { %v9662_v33 = vmul.f32 %v14845_v53, %v9661_v58 }
 0x8a1   :  { %v9666_v35 = vsel %vm9665_vm7, %v14845_v53, %v9662_v33  ;;  %v21221_v53 = vld [vmem:[#allocation12_spill] sm:$0xff] }
 0x8a2   :  { %v9668_v16 = vmul.f32 %v9667_v61, %v9666_v35  ;;  %v21223_v61 = vld [vmem:[#allocation14_spill] sm:$0xff] }
 0x8a4   :  { %v9670_v28 = vmul.f32 %v9668_v16, %v9652_v57  ;;  %v20154_v1 = vperm.slane %v9668_v16, 0 }
 0x8a6   :  { %v9671_v60 = vsub.f32 %v9669_v46, %v9670_v28  ;;  %v9695_v44 = vmul.f32 %v20154_v1, %v21211_v50  ;;  %v9696_v23 = vmul.f32 %v20154_v1, %v21212_v54  ;;  %v9697_v52 = vmul.f32 %v20154_v1, %v21213_v34  ;;  %v21224_v46 = vld [vmem:[#allocation15_spill] sm:$0xff]  ;;  %v21225_v50 = vld [vmem:[#allocation16_spill] sm:$0xff] }
 0x8a7   :  { %v9698_v0 = vmul.f32 %v20154_v1, %v21214_v24  ;;  %v9699_v30 = vmul.f32 %v20154_v1, %v21215_v8  ;;  %v9700_v9 = vmul.f32 %v20154_v1, %v21216_v31  ;;  %v9701_v29 = vmul.f32 %v20154_v1, %v21217_v36  ;;  %v21227_v24 = vld [vmem:[#allocation18_spill] sm:$0xff] }
 0x8a8   :  { %v20162_v48 = vperm.slane %v9671_v60, 0  ;;  %v9702_v15 = vmul.f32 %v20154_v1, %v21218_v7  ;;  %v9703_v57 = vmul.f32 %v20154_v1, %v21219_v4  ;;  %v9704_v42 = vmul.f32 %v20154_v1, %v21220_v2  ;;  %v21234_v2 = vld [vmem:[#allocation25_spill] sm:$0xff] }
 0x8a9   :  { %v9705_v49 = vmul.f32 %v20154_v1, %v21221_v53  ;;  %v9706_v58 = vmul.f32 %v20154_v1, %v21222_v59  ;;  %v9707_v35 = vmul.f32 %v20154_v1, %v21223_v61  ;;  %v9708_v28 = vmul.f32 %v20154_v1, %v21224_v46  ;;  %v21235_v53 = vld [vmem:[#allocation26_spill] sm:$0xff]  ;;  %v21238_v61 = vld [vmem:[#allocation29_spill] sm:$0xff] }
 0x8aa   :  { %v9718_v25 = vadd.f32 %v20162_v48, %v9695_v44  ;;  %v9719_v26 = vadd.f32 %v20162_v48, %v9696_v23  ;;  %v9720_v45 = vadd.f32 %v20162_v48, %v9697_v52  ;;  %v9721_v56 = vadd.f32 %v20162_v48, %v9698_v0  ;;  %v21226_v23 = vld [vmem:[#allocation17_spill] sm:$0xff] }
 0x8ab   :  { %v9722_v13 = vadd.f32 %v20162_v48, %v9699_v30  ;;  %v9723_v63 = vadd.f32 %v20162_v48, %v9700_v9  ;;  %v9724_v22 = vadd.f32 %v20162_v48, %v9701_v29  ;;  %v9725_v32 = vadd.f32 %v20162_v48, %v9702_v15  ;;  %v21228_v30 = vld [vmem:[#allocation19_spill] sm:$0xff] }
 0x8ac   :  { %9738 = vst [vmem:[%s20876_s4] sm:$0xff] %v9718_v25  ;;  %v9726_v37 = vadd.f32 %v20162_v48, %v9703_v57  ;;  %v9727_v33 = vadd.f32 %v20162_v48, %v9704_v42  ;;  %v9728_v16 = vadd.f32 %v20162_v48, %v9705_v49  ;;  %v9729_v60 = vadd.f32 %v20162_v48, %v9706_v58  ;;  %v21233_v57 = vld [vmem:[#allocation24_spill] sm:$0xff] }
 0x8ad   :  { %9739 = vst [vmem:[%s20876_s4 + $0x8] sm:$0xff] %v9719_v26  ;;  %v9709_v44 = vmul.f32 %v20154_v1, %v21225_v50  ;;  %v9730_v54 = vadd.f32 %v20162_v48, %v9707_v35  ;;  %v9710_v34 = vmul.f32 %v20154_v1, %v21226_v23  ;;  %v9731_v52 = vadd.f32 %v20162_v48, %v9708_v28  ;;  %v21237_v58 = vld [vmem:[#allocation28_spill] sm:$0xff]  ;;  %v21240_v28 = vld [vmem:[#allocation31_spill] sm:$0xff]  ;;  %v21242_v23 = vld [vmem:[#allocation33_spill] sm:$0xff] }
 0x8ae   :  { %9740 = vst [vmem:[%s20876_s4 + $0x10] sm:$0xff] %v9720_v45  ;;  %v9711_v0 = vmul.f32 %v20154_v1, %v21227_v24  ;;  %v9712_v25 = vmul.f32 %v20154_v1, %v21228_v30  ;;  %v21229_v45 = vld [vmem:[#allocation20_spill] sm:$0xff]  ;;  %v9781_v42 = vmul.f32 %v20154_v1, %v21234_v2  ;;  %v9782_v49 = vmul.f32 %v20154_v1, %v21235_v53 }
 0x8af   :  { %9741 = vst [vmem:[%s20876_s4 + $0x18] sm:$0xff] %v9721_v56  ;;  %v9732_v8 = vadd.f32 %v20162_v48, %v9709_v44  ;;  %v9733_v26 = vadd.f32 %v20162_v48, %v9710_v34  ;;  %v9713_v31 = vmul.f32 %v20154_v1, %v21229_v45  ;;  %v21230_v56 = vld [vmem:[#allocation21_spill] sm:$0xff]  ;;  %v9785_v35 = vmul.f32 %v20154_v1, %v21238_v61  ;;  %v21241_v44 = vld [vmem:[#allocation32_spill] sm:$0xff] }
 0x8b0   :  { %9742 = vst [vmem:[%s20876_s4 + $0x20] sm:$0xff] %v9722_v13  ;;  %v9734_v9 = vadd.f32 %v20162_v48, %v9711_v0  ;;  %v9714_v36 = vmul.f32 %v20154_v1, %v21230_v56  ;;  %v9735_v29 = vadd.f32 %v20162_v48, %v9712_v25  ;;  %v21231_v13 = vld [vmem:[#allocation22_spill] sm:$0xff]  ;;  %v9789_v34 = vmul.f32 %v20154_v1, %v21242_v23  ;;  %v21245_v25 = vld [vmem:[#allocation36_spill] sm:$0xff]  ;;  %v21246_v45 = vld [vmem:[#allocation37_spill] sm:$0xff] }
 0x8b1   :  { %9743 = vst [vmem:[%s20876_s4 + $0x28] sm:$0xff] %v9723_v63  ;;  %v9778_v7 = vmul.f32 %v20154_v1, %v21231_v13  ;;  %v9736_v15 = vadd.f32 %v20162_v48, %v9713_v31  ;;  %v21232_v63 = vld [vmem:[#allocation23_spill] sm:$0xff]  ;;  %v9793_v31 = vmul.f32 %v20154_v1, %v21246_v45  ;;  %v20315_v56 = vmul.f32 %v20154_v1, %v21156_v18 }
 0x8b2   :  { %9744 = vst [vmem:[%s20876_s4 + $0x30] sm:$0xff] %v9724_v22  ;;  %v9779_v4 = vmul.f32 %v20154_v1, %v21232_v63  ;;  %v9780_v22 = vmul.f32 %v20154_v1, %v21233_v57  ;;  %v20323_v13 = vmul.f32 %v20154_v1, %v21168_v21 }
 0x8b3   :  { %9745 = vst [vmem:[%s20876_s4 + $0x38] sm:$0xff] %v9725_v32  ;;  %v9737_v32 = vadd.f32 %v20162_v48, %v9714_v36  ;;  %v9798_v50 = vadd.f32 %v9778_v7, %v20162_v48  ;;  %v21247_v36 = vld [vmem:[#allocation39_spill] sm:$0xff]  ;;  %v9801_v7 = vadd.f32 %v9781_v42, %v20162_v48 }
 0x8b4   :  { %9746 = vst [vmem:[%s20876_s4 + $0x40] sm:$0xff] %v9726_v37  ;;  %v21236_v37 = vld [vmem:[#allocation27_spill] sm:$0xff]  ;;  %v9799_v0 = vadd.f32 %v9779_v4, %v20162_v48  ;;  %v9802_v4 = vadd.f32 %v9782_v49, %v20162_v48 }
 0x8b5   :  { %9747 = vst [vmem:[%s20876_s4 + $0x48] sm:$0xff] %v9727_v33  ;;  %v9783_v59 = vmul.f32 %v20154_v1, %v21236_v37  ;;  %v9784_v33 = vmul.f32 %v20154_v1, %v21237_v58 }
 0x8b6   :  { %9748 = vst [vmem:[%s20876_s4 + $0x50] sm:$0xff] %v9728_v16  ;;  %v21239_v16 = vld [vmem:[#allocation30_spill] sm:$0xff] }
 0x8b7   :  { %9749 = vst [vmem:[%s20876_s4 + $0x58] sm:$0xff] %v9729_v60  ;;  %v9786_v46 = vmul.f32 %v20154_v1, %v21239_v16  ;;  %v9787_v60 = vmul.f32 %v20154_v1, %v21240_v28  ;;  %v9803_v57 = vadd.f32 %v9783_v59, %v20162_v48  ;;  %v9804_v18 = vadd.f32 %v9784_v33, %v20162_v48  ;;  %v21249_v59 = vld [vmem:[#allocation65_spill] sm:$0xff]  ;;  %v21250_v33 = vld [vmem:[#allocation66_spill] sm:$0xff]  ;;  %v21252_v28 = vld [vmem:[#allocation68_spill] sm:$0xff] }
 0x8b8   :  { %9750 = vst [vmem:[%s20876_s4 + $0x60] sm:$0xff] %v9730_v54  ;;  %v9788_v54 = vmul.f32 %v20154_v1, %v21241_v44  ;;  %v9941_v58 = vmul.f32 %v20154_v1, %v21249_v59  ;;  %v9942_v61 = vmul.f32 %v20154_v1, %v21250_v33  ;;  %v9947_v44 = vmul.f32 %v20154_v1, %v19166_v38  ;;  %v21255_v38 = vld [vmem:[#allocation71_spill] sm:$0xff] }
 0x8b9   :  { %9751 = vst [vmem:[%s20876_s4 + $0x68] sm:$0xff] %v9731_v52  ;;  %v21243_v52 = vld [vmem:[#allocation34_spill] sm:$0xff]  ;;  %v9806_v21 = vadd.f32 %v9786_v46, %v20162_v48  ;;  %v9807_v2 = vadd.f32 %v9787_v60, %v20162_v48  ;;  %v9944_v46 = vmul.f32 %v20154_v1, %v19113_v5  ;;  %v9945_v60 = vmul.f32 %v20154_v1, %v21252_v28  ;;  %v21253_v5 = vld [vmem:[#allocation69_spill] sm:$0xff]  ;;  %v21262_v28 = vld [vmem:[#allocation48_spill] sm:$0xff] }
 0x8ba   :  { %9752 = vst [vmem:[%s20876_s4 + $0x70] sm:$0xff] %v9732_v8  ;;  %v9790_v24 = vmul.f32 %v20154_v1, %v21243_v52  ;;  %v21244_v8 = vld [vmem:[#allocation35_spill] sm:$0xff]  ;;  %v9808_v42 = vadd.f32 %v9788_v54, %v20162_v48  ;;  %v9948_v54 = vmul.f32 %v20154_v1, %v19179_v43  ;;  %v9949_v23 = vmul.f32 %v20154_v1, %v21253_v5 }
 0x8bb   :  { %9753 = vst [vmem:[%s20876_s4 + $0x78] sm:$0xff] %v9733_v26  ;;  %v9791_v30 = vmul.f32 %v20154_v1, %v21244_v8  ;;  %v9792_v26 = vmul.f32 %v20154_v1, %v21245_v25  ;;  %v9953_v43 = vmul.f32 %v20154_v1, %v21255_v38  ;;  %v9955_v8 = vmul.f32 %v20154_v1, %v21186_v39  ;;  %v21268_v38 = vld [vmem:[#allocation54_spill] sm:$0xff] }
 0x8bc   :  { %9754 = vst [vmem:[%s20876_s4 + $0x80] sm:$0xff] %v9734_v9  ;;  %v9800_v9 = vadd.f32 %v9780_v22, %v20162_v48  ;;  %v9805_v22 = vadd.f32 %v9785_v35, %v20162_v48  ;;  %v9810_v53 = vadd.f32 %v9790_v24, %v20162_v48  ;;  %v21251_v35 = vld [vmem:[#allocation67_spill] sm:$0xff]  ;;  %v9951_v24 = vmul.f32 %v20154_v1, %v19232_v51 }
 0x8bd   :  { %9755 = vst [vmem:[%s20876_s4 + $0x88] sm:$0xff] %v9735_v29  ;;  %v20319_v29 = vmul.f32 %v20154_v1, %v21247_v36  ;;  %v9811_v49 = vadd.f32 %v9791_v30, %v20162_v48  ;;  %v9812_v37 = vadd.f32 %v9792_v26, %v20162_v48  ;;  %v9943_v16 = vmul.f32 %v20154_v1, %v21251_v35 }
 0x8be   :  { %9756 = vst [vmem:[%s20876_s4 + $0x90] sm:$0xff] %v9736_v15  ;;  %v21248_v15 = vld [vmem:[#allocation41_spill] sm:$0xff]  ;;  %v9956_v30 = vmul.f32 %v20154_v1, %v21197_v40  ;;  %v9957_v51 = vmul.f32 %v20154_v1, %v21196_v3  ;;  %v20401_v25 = vadd.f32 %v9942_v61, %v20162_v48  ;;  %v20410_v39 = vadd.f32 %v9944_v46, %v20162_v48 }
 0x8bf   :  { %9757 = vst [vmem:[%s20876_s4 + $0x98] sm:$0xff] %v9737_v32  ;;  %v9797_v63 = vmul.f32 %v20154_v1, %v21248_v15  ;;  %v9809_v32 = vadd.f32 %v9789_v34, %v20162_v48  ;;  %v21254_v34 = vld [vmem:[#allocation70_spill] sm:$0xff]  ;;  %v20413_v40 = vadd.f32 %v9945_v60, %v20162_v48  ;;  %v20419_v26 = vadd.f32 %v9947_v44, %v20162_v48 }
 0x8c0   :  { %9818 = vst [vmem:[%s20876_s4 + $0xa0] sm:$0xff] %v9798_v50  ;;  %v9946_v50 = vmul.f32 %v20154_v1, %v19143_v20  ;;  %v9950_v52 = vmul.f32 %v20154_v1, %v21254_v34  ;;  %v9952_v20 = vmul.f32 %v20154_v1, %v19245_v14  ;;  %v20398_v14 = vadd.f32 %v9941_v58, %v20162_v48  ;;  %v21266_v34 = vld [vmem:[#allocation52_spill] sm:$0xff] }
 0x8c1   :  { %9819 = vst [vmem:[%s20876_s4 + $0xa8] sm:$0xff] %v9799_v0  ;;  %v9954_v0 = vmul.f32 %v20154_v1, %v19275_v12  ;;  %v20404_v12 = vadd.f32 %v9943_v16, %v20162_v48  ;;  %v20425_v45 = vadd.f32 %v9948_v54, %v20162_v48  ;;  %v9815_v59 = vadd.f32 %v20319_v29, %v20162_v48  ;;  %v21258_v29 = vld [vmem:[#allocation44_spill] sm:$0xff]  ;;  %v21264_v54 = vld [vmem:[#allocation50_spill] sm:$0xff] }
 0x8c2   :  { %9820 = vst [vmem:[%s20876_s4 + $0xb0] sm:$0xff] %v9800_v9  ;;  %v20416_v3 = vadd.f32 %v9946_v50, %v20162_v48  ;;  %v20428_v9 = vadd.f32 %v9949_v23, %v20162_v48  ;;  %v20431_v36 = vadd.f32 %v9950_v52, %v20162_v48  ;;  %v20440_v15 = vadd.f32 %v9952_v20, %v20162_v48  ;;  %v21263_v50 = vld [vmem:[#allocation49_spill] sm:$0xff] }
 0x8c3   :  { %9821 = vst [vmem:[%s20876_s4 + $0xb8] sm:$0xff] %v9801_v7  ;;  %v20434_v7 = vadd.f32 %v9951_v24, %v20162_v48  ;;  %v9816_v58 = vadd.f32 %v20323_v13, %v20162_v48  ;;  %v9860_v35 = vmul.f32 %v20154_v1, %v21258_v29  ;;  %v21259_v13 = vld [vmem:[#allocation45_spill] sm:$0xff]  ;;  %v9864_v60 = vmul.f32 %v20154_v1, %v21262_v28 }
 0x8c4   :  { %9822 = vst [vmem:[%s20876_s4 + $0xc0] sm:$0xff] %v9802_v4  ;;  %v20443_v4 = vadd.f32 %v9953_v43, %v20162_v48  ;;  %v9865_v44 = vmul.f32 %v20154_v1, %v21263_v50  ;;  %v9866_v5 = vmul.f32 %v20154_v1, %v21264_v54  ;;  %v9868_v52 = vmul.f32 %v20154_v1, %v21266_v34  ;;  %v21267_v24 = vld [vmem:[#allocation53_spill] sm:$0xff]  ;;  %v21274_v54 = vld [vmem:[#allocation87_spill] sm:$0xff] }
 0x8c5   :  { %9823 = vst [vmem:[%s20876_s4 + $0xc8] sm:$0xff] %v9803_v57  ;;  %v20446_v57 = vadd.f32 %v9954_v0, %v20162_v48  ;;  %v9869_v20 = vmul.f32 %v20154_v1, %v21267_v24  ;;  %v9870_v43 = vmul.f32 %v20154_v1, %v21268_v38  ;;  %v21269_v0 = vld [vmem:[#allocation55_spill] sm:$0xff]  ;;  %v9884_v28 = vadd.f32 %v9864_v60, %v20162_v48  ;;  %v21276_v34 = vld [vmem:[#allocation89_spill] sm:$0xff]  ;;  %v21277_v24 = vld [vmem:[#allocation90_spill] sm:$0xff] }
 0x8c6   :  { %9824 = vst [vmem:[%s20876_s4 + $0xd0] sm:$0xff] %v9804_v18  ;;  %v20449_v18 = vadd.f32 %v9955_v8, %v20162_v48  ;;  %v9871_v8 = vmul.f32 %v20154_v1, %v21269_v0  ;;  %v21278_v38 = vld [vmem:[#allocation91_spill] sm:$0xff]  ;;  %v21279_v0 = vld [vmem:[#allocation92_spill] sm:$0xff] }
 0x8c7   :  { %9825 = vst [vmem:[%s20876_s4 + $0xd8] sm:$0xff] %v9805_v22  ;;  %v9813_v22 = vadd.f32 %v9793_v31, %v20162_v48  ;;  %v9817_v31 = vadd.f32 %v9797_v63, %v20162_v48  ;;  %v9861_v63 = vmul.f32 %v20154_v1, %v21259_v13 }
 0x8c8   :  { %9826 = vst [vmem:[%s20876_s4 + $0xe0] sm:$0xff] %v9806_v21  ;;  %v20456_v21 = vadd.f32 %v9956_v30, %v20162_v48  ;;  %v21270_v30 = vld [vmem:[#allocation56_spill] sm:$0xff] }
 0x8c9   :  { %9827 = vst [vmem:[%s20876_s4 + $0xe8] sm:$0xff] %v9807_v2  ;;  %v20459_v2 = vadd.f32 %v9957_v51, %v20162_v48  ;;  %v9872_v51 = vmul.f32 %v20154_v1, %v21270_v30  ;;  %v21280_v30 = vld [vmem:[#allocation93_spill] sm:$0xff] }
 0x8ca   :  { %9828 = vst [vmem:[%s20876_s4 + $0xf0] sm:$0xff] %v9808_v42  ;;  %v9814_v42 = vadd.f32 %v20315_v56, %v20162_v48  ;;  %v21257_v56 = vld [vmem:[#allocation43_spill] sm:$0xff] }
 0x8cb   :  { %9829 = vst [vmem:[%s20876_s4 + $0xf8] sm:$0xff] %v9809_v32  ;;  %v21256_v32 = vld [vmem:[#allocation42_spill] sm:$0xff]  ;;  %v9859_v61 = vmul.f32 %v20154_v1, %v21257_v56  ;;  %v9892_v60 = vadd.f32 %v9872_v51, %v20162_v48  ;;  %v10025_v51 = vmul.f32 %v20154_v1, %v21280_v30 }
 0x8cc   :  { %9830 = vst [vmem:[%s20876_s4 + $0x100] sm:$0xff] %v9810_v53  ;;  %v9858_v33 = vmul.f32 %v20154_v1, %v21256_v32  ;;  %v21260_v53 = vld [vmem:[#allocation46_spill] sm:$0xff]  ;;  %v21271_v32 = vld [vmem:[#allocation57_spill] sm:$0xff] }
 0x8cd   :  { %9831 = vst [vmem:[%s20876_s4 + $0x108] sm:$0xff] %v9811_v49  ;;  %v9862_v16 = vmul.f32 %v20154_v1, %v21260_v53  ;;  %v21261_v49 = vld [vmem:[#allocation47_spill] sm:$0xff]  ;;  %v20519_v56 = vmul.f32 %v20154_v1, %v21271_v32  ;;  %v9879_v13 = vadd.f32 %v9859_v61, %v20162_v48  ;;  %v9880_v53 = vadd.f32 %v9860_v35, %v20162_v48 }
 0x8ce   :  { %9832 = vst [vmem:[%s20876_s4 + $0x110] sm:$0xff] %v9812_v37  ;;  %v9863_v46 = vmul.f32 %v20154_v1, %v21261_v49  ;;  %v21265_v37 = vld [vmem:[#allocation51_spill] sm:$0xff]  ;;  %v9885_v61 = vadd.f32 %v9865_v44, %v20162_v48  ;;  %v9886_v35 = vadd.f32 %v9866_v5, %v20162_v48  ;;  %v10019_v5 = vmul.f32 %v20154_v1, %v21274_v54 }
 0x8cf   :  { %9833 = vst [vmem:[%s20876_s4 + $0x118] sm:$0xff] %v9813_v22  ;;  %v9867_v23 = vmul.f32 %v20154_v1, %v21265_v37  ;;  %v9878_v22 = vadd.f32 %v9858_v33, %v20162_v48  ;;  %v9881_v33 = vadd.f32 %v9861_v63, %v20162_v48  ;;  %v9889_v63 = vadd.f32 %v9869_v20, %v20162_v48  ;;  %v21275_v37 = vld [vmem:[#allocation88_spill] sm:$0xff] }
 0x8d0   :  { %9834 = vst [vmem:[%s20876_s4 + $0x120] sm:$0xff] %v9814_v42  ;;  %v21272_v42 = vld [vmem:[#allocation58_spill] sm:$0xff]  ;;  %v9883_v49 = vadd.f32 %v9863_v46, %v20162_v48  ;;  %v9891_v46 = vadd.f32 %v9871_v8, %v20162_v48  ;;  %v10022_v20 = vmul.f32 %v20154_v1, %v21277_v24  ;;  %v10024_v8 = vmul.f32 %v20154_v1, %v21279_v0  ;;  %v21283_v0 = vld [vmem:[#allocation59_spill] sm:$0xff] }
 0x8d1   :  { %9835 = vst [vmem:[%s20876_s4 + $0x128] sm:$0xff] %v9815_v59  ;;  %v20523_v29 = vmul.f32 %v20154_v1, %v21272_v42  ;;  %v9882_v59 = vadd.f32 %v9862_v16, %v20162_v48  ;;  %v9887_v50 = vadd.f32 %v9867_v23, %v20162_v48  ;;  %v9890_v16 = vadd.f32 %v9870_v43, %v20162_v48 }
 0x8d2   :  { %9836 = vst [vmem:[%s20876_s4 + $0x130] sm:$0xff] %v9816_v58  ;;  %v9888_v58 = vadd.f32 %v9868_v52, %v20162_v48  ;;  %v10020_v23 = vmul.f32 %v20154_v1, %v21275_v37  ;;  %v10021_v52 = vmul.f32 %v20154_v1, %v21276_v34  ;;  %v10023_v43 = vmul.f32 %v20154_v1, %v21278_v38 }
 0x8d3   :  { %9837 = vst [vmem:[%s20876_s4 + $0x138] sm:$0xff] %v9817_v31  ;;  %v21273_v31 = vld [vmem:[#allocation86_spill] sm:$0xff]  ;;  %v10027_v42 = vmul.f32 %v20154_v1, %v20046_v62  ;;  %v10030_v54 = vmul.f32 %v20154_v1, %v20079_v17  ;;  %v10032_v37 = vmul.f32 %v20154_v1, %v20096_v11  ;;  %v10033_v62 = vmul.f32 %v20154_v1, %v20090_v41 }
 0x8d4   :  { %9898 = vst [vmem:[%s20876_s4 + $0x140] sm:$0xff] %v9878_v22  ;;  %v10018_v44 = vmul.f32 %v20154_v1, %v21273_v31  ;;  %v21281_v22 = vld [vmem:[#allocation96_spill] sm:$0xff]  ;;  %v10036_v17 = vmul.f32 %v20154_v1, %v20133_v6  ;;  %v20610_v11 = vadd.f32 %v10019_v5, %v20162_v48  ;;  %v20622_v6 = vadd.f32 %v10022_v20, %v20162_v48 }
 0x8d5   :  { %9899 = vst [vmem:[%s20876_s4 + $0x148] sm:$0xff] %v9879_v13  ;;  %v10026_v32 = vmul.f32 %v20154_v1, %v21281_v22  ;;  %v10028_v13 = vmul.f32 %v20154_v1, %v20056_v27  ;;  %v10034_v27 = vmul.f32 %v20154_v1, %v20116_v47  ;;  %v20613_v47 = vadd.f32 %v10020_v23, %v20162_v48 }
 0x8d6   :  { %9900 = vst [vmem:[%s20876_s4 + $0x150] sm:$0xff] %v9880_v53  ;;  %v21282_v53 = vld [vmem:[#allocation40_spill] sm:$0xff]  ;;  %v20607_v41 = vadd.f32 %v10018_v44, %v20162_v48  ;;  %v20652_v34 = vadd.f32 %v10030_v54, %v20162_v48  ;;  %v20661_v24 = vadd.f32 %v10033_v62, %v20162_v48  ;;  %v10056_v38 = vadd.f32 %v10036_v17, %v20162_v48 }
 0x8d7   :  { %9901 = vst [vmem:[%s20876_s4 + $0x158] sm:$0xff] %v9881_v33  ;;  %v10029_v31 = vmul.f32 %v20154_v1, %v21282_v53  ;;  %v10031_v33 = vmul.f32 %v20154_v1, %v20088_v10  ;;  %v10037_v10 = vmul.f32 %v20154_v1, %v20142_v55  ;;  %v20625_v55 = vadd.f32 %v10023_v43, %v20162_v48  ;;  %v21287_v53 = vld [vmem:[#allocation63_spill] sm:$0xff] }
 0x8d8   :  { %9902 = vst [vmem:[%s20876_s4 + $0x160] sm:$0xff] %v9882_v59  ;;  %v10035_v59 = vmul.f32 %v20154_v1, %v20129_v19  ;;  %v20616_v19 = vadd.f32 %v10021_v52, %v20162_v48  ;;  %v20637_v44 = vadd.f32 %v10026_v32, %v20162_v48  ;;  %v20643_v5 = vadd.f32 %v10028_v13, %v20162_v48  ;;  %v21285_v32 = vld [vmem:[#allocation61_spill] sm:$0xff] }
 0x8d9   :  { %9903 = vst [vmem:[%s20876_s4 + $0x168] sm:$0xff] %v9883_v49  ;;  %v20628_v49 = vadd.f32 %v10024_v8, %v20162_v48  ;;  %v20646_v23 = vadd.f32 %v10029_v31, %v20162_v48  ;;  %v20658_v52 = vadd.f32 %v10032_v37, %v20162_v48  ;;  %v10054_v20 = vadd.f32 %v10034_v27, %v20162_v48 }
 0x8da   :  { %9904 = vst [vmem:[%s20876_s4 + $0x170] sm:$0xff] %v9884_v28  ;;  %v20631_v28 = vadd.f32 %v10025_v51, %v20162_v48  ;;  %v10057_v43 = vadd.f32 %v10037_v10, %v20162_v48  ;;  %v9875_v8 = vmul.f32 %v20154_v1, %v21283_v0  ;;  %v9893_v30 = vadd.f32 %v20519_v56, %v20162_v48  ;;  %v21284_v51 = vld [vmem:[#allocation60_spill] sm:$0xff] }
 0x8db   :  { %9905 = vst [vmem:[%s20876_s4 + $0x178] sm:$0xff] %v9885_v61  ;;  %v20640_v61 = vadd.f32 %v10027_v42, %v20162_v48  ;;  %v9894_v22 = vadd.f32 %v20523_v29, %v20162_v48  ;;  %v9877_v42 = vmul.f32 %v20154_v1, %v21285_v32  ;;  %v21286_v29 = vld [vmem:[#allocation62_spill] sm:$0xff]  ;;  %v9939_v31 = vmul.f32 %v20154_v1, %v21287_v53 }
 0x8dc   :  { %9906 = vst [vmem:[%s20876_s4 + $0x180] sm:$0xff] %v9886_v35  ;;  %v20655_v35 = vadd.f32 %v10031_v33, %v20162_v48  ;;  %v9895_v13 = vadd.f32 %v9875_v8, %v20162_v48 }
 0x8dd   :  { %9907 = vst [vmem:[%s20876_s4 + $0x188] sm:$0xff] %v9887_v50  ;;  %v10055_v50 = vadd.f32 %v10035_v59, %v20162_v48  ;;  %v9959_v33 = vadd.f32 %v9939_v31, %v20162_v48 }
 0x8de   :  { %9908 = vst [vmem:[%s20876_s4 + $0x190] sm:$0xff] %v9888_v58  ;;  %v9876_v58 = vmul.f32 %v20154_v1, %v21284_v51 }
 0x8df   :  { %9909 = vst [vmem:[%s20876_s4 + $0x198] sm:$0xff] %v9889_v63  ;;  %v9938_v63 = vmul.f32 %v20154_v1, %v21286_v29 }
 0x8e0   :  { %9910 = vst [vmem:[%s20876_s4 + $0x1a0] sm:$0xff] %v9890_v16  ;;  %v9896_v56 = vadd.f32 %v9876_v58, %v20162_v48  ;;  %v9897_v16 = vadd.f32 %v9877_v42, %v20162_v48 }
 0x8e1   :  { %9911 = vst [vmem:[%s20876_s4 + $0x1a8] sm:$0xff] %v9891_v46  ;;  %v21288_v46 = vld [vmem:[#allocation64_spill] sm:$0xff] }
 0x8e2   :  { %9912 = vst [vmem:[%s20876_s4 + $0x1b0] sm:$0xff] %v9892_v60  ;;  %v9940_v54 = vmul.f32 %v20154_v1, %v21288_v46  ;;  %v9958_v60 = vadd.f32 %v9938_v63, %v20162_v48 }
 0x8e3   :  { %9913 = vst [vmem:[%s20876_s4 + $0x1b8] sm:$0xff] %v9893_v30 }
 0x8e4   :  { %9914 = vst [vmem:[%s20876_s4 + $0x1c0] sm:$0xff] %v9894_v22  ;;  %v9960_v37 = vadd.f32 %v9940_v54, %v20162_v48 }
 0x8e5   :  { %9915 = vst [vmem:[%s20876_s4 + $0x1c8] sm:$0xff] %v9895_v13 }
 0x8e6   :  { %9916 = vst [vmem:[%s20876_s4 + $0x1d0] sm:$0xff] %v9896_v56 }
 0x8e7   :  { %9917 = vst [vmem:[%s20876_s4 + $0x1d8] sm:$0xff] %v9897_v16 }
 0x8e8   :  { %9978 = vst [vmem:[%s20876_s4 + $0x1e0] sm:$0xff] %v9958_v60 }
 0x8e9   :  { %9979 = vst [vmem:[%s20876_s4 + $0x1e8] sm:$0xff] %v9959_v33 }
 0x8ea   :  { %9980 = vst [vmem:[%s20876_s4 + $0x1f0] sm:$0xff] %v9960_v37 }
 0x8eb   :  { %9981 = vst [vmem:[%s20876_s4 + $0x1f8] sm:$0xff] %v20398_v14 }
 0x8ec   :  { %9982 = vst [vmem:[%s20876_s4 + $0x200] sm:$0xff] %v20401_v25 }
 0x8ed   :  { %9983 = vst [vmem:[%s20876_s4 + $0x208] sm:$0xff] %v20404_v12 }
 0x8ee   :  { %9984 = vst [vmem:[%s20876_s4 + $0x210] sm:$0xff] %v20410_v39 }
 0x8ef   :  { %9985 = vst [vmem:[%s20876_s4 + $0x218] sm:$0xff] %v20413_v40 }
 0x8f0   :  { %9986 = vst [vmem:[%s20876_s4 + $0x220] sm:$0xff] %v20416_v3 }
 0x8f1   :  { %9987 = vst [vmem:[%s20876_s4 + $0x228] sm:$0xff] %v20419_v26 }
 0x8f2   :  { %9988 = vst [vmem:[%s20876_s4 + $0x230] sm:$0xff] %v20425_v45 }
 0x8f3   :  { %9989 = vst [vmem:[%s20876_s4 + $0x238] sm:$0xff] %v20428_v9 }
 0x8f4   :  { %9990 = vst [vmem:[%s20876_s4 + $0x240] sm:$0xff] %v20431_v36 }
 0x8f5   :  { %9991 = vst [vmem:[%s20876_s4 + $0x248] sm:$0xff] %v20434_v7 }
 0x8f6   :  { %9992 = vst [vmem:[%s20876_s4 + $0x250] sm:$0xff] %v20440_v15 }
 0x8f7   :  { %9993 = vst [vmem:[%s20876_s4 + $0x258] sm:$0xff] %v20443_v4 }
 0x8f8   :  { %9994 = vst [vmem:[%s20876_s4 + $0x260] sm:$0xff] %v20446_v57 }
 0x8f9   :  { %9995 = vst [vmem:[%s20876_s4 + $0x268] sm:$0xff] %v20449_v18 }
 0x8fa   :  { %9996 = vst [vmem:[%s20876_s4 + $0x270] sm:$0xff] %v20456_v21 }
 0x8fb   :  { %9997 = vst [vmem:[%s20876_s4 + $0x278] sm:$0xff] %v20459_v2 }
 0x8fc   :  { %10058 = vst [vmem:[%s20876_s4 + $0x280] sm:$0xff] %v20607_v41 }
 0x8fd   :  { %10059 = vst [vmem:[%s20876_s4 + $0x288] sm:$0xff] %v20610_v11 }
 0x8fe   :  { %10060 = vst [vmem:[%s20876_s4 + $0x290] sm:$0xff] %v20613_v47 }
 0x8ff   :  { %10061 = vst [vmem:[%s20876_s4 + $0x298] sm:$0xff] %v20616_v19 }
 0x900   :  { %10062 = vst [vmem:[%s20876_s4 + $0x2a0] sm:$0xff] %v20622_v6 }
 0x901   :  { %10063 = vst [vmem:[%s20876_s4 + $0x2a8] sm:$0xff] %v20625_v55 }
 0x902   :  { %10064 = vst [vmem:[%s20876_s4 + $0x2b0] sm:$0xff] %v20628_v49 }
 0x903   :  { %10065 = vst [vmem:[%s20876_s4 + $0x2b8] sm:$0xff] %v20631_v28 }
 0x904   :  { %10066 = vst [vmem:[%s20876_s4 + $0x2c0] sm:$0xff] %v20637_v44 }
 0x905   :  { %10067 = vst [vmem:[%s20876_s4 + $0x2c8] sm:$0xff] %v20640_v61 }
 0x906   :  { %10068 = vst [vmem:[%s20876_s4 + $0x2d0] sm:$0xff] %v20643_v5 }
 0x907   :  { %10069 = vst [vmem:[%s20876_s4 + $0x2d8] sm:$0xff] %v20646_v23 }
 0x908   :  { %10070 = vst [vmem:[%s20876_s4 + $0x2e0] sm:$0xff] %v20652_v34 }
 0x909   :  { %10071 = vst [vmem:[%s20876_s4 + $0x2e8] sm:$0xff] %v20655_v35 }
 0x90a   :  { %10072 = vst [vmem:[%s20876_s4 + $0x2f0] sm:$0xff] %v20658_v52 }
 0x90b   :  { %10073 = vst [vmem:[%s20876_s4 + $0x2f8] sm:$0xff] %v20661_v24 }
 0x90c   :  { %10074 = vst [vmem:[%s20876_s4 + $0x300] sm:$0xff] %v10054_v20 }
 0x90d   :  { %10075 = vst [vmem:[%s20876_s4 + $0x308] sm:$0xff] %v10055_v50 }
 0x90e   :  { %10076 = vst [vmem:[%s20876_s4 + $0x310] sm:$0xff] %v10056_v38 }
 0x90f   :  { %10077 = vst [vmem:[%s20876_s4 + $0x318] sm:$0xff] %v10057_v43 }

</bundles_post_ra>
